<compile_context>
chip_gen: v7x
topology: tpu7x:2x2x1
jax: 0.10.0
libtpu: 0.0.40
codegen_flags: <defaults>
</compile_context>

<pallas_src>
import math
import jax
import jax.numpy as jnp
from jax.experimental import pallas as pl
from jax.experimental.pallas import tpu as pltpu

# ---------------- small synthetic ViT config (mirrors ViT-H-14 structure) ----
B = 4             # batch
C = 3             # image channels
IMG = 16          # image spatial size
PATCH = 4         # patch size
GH = IMG // PATCH
P = GH * GH               # number of patches
S = P + 1                 # true sequence length (cls + patches) = 17
S_PAD = 32                # padded sequence length (power of two)
SP_LOG2 = 5               # log2(S_PAD)
D = 32                    # transformer width
HEADS = 4
HD = D // HEADS
L = 2                     # number of resblocks ('last' layer => run all of them)
MLP = 4 * D
E = 16                    # output embedding dim (visual.proj out)
F = C * PATCH * PATCH     # im2col feature size

# Single slab: v5e/v6e have one TensorCore, so a batch-split grid is pure
# per-step overhead.  On v7x set NB=2 + core-parallel semantics for 2 TCs.
NB = 1
BB = B // NB              # images folded into each grid step's row dim
R = BB * S_PAD            # rows per slab (= 128: one full lane tile)


def _ln(x, g, b, eps=1e-5):
    # centered two-pass layernorm (numerically safer than E[x^2]-E[x]^2)
    m = jnp.mean(x, axis=-1, keepdims=True)
    d = x - m
    var = jnp.mean(d * d, axis=-1, keepdims=True)
    return d * jax.lax.rsqrt(var + eps) * g + b


def vit_kernel(patches_ref, pos_ref,
               conv_w_ref, ln_pre_g_ref, ln_pre_b_ref,
               wqkv_ref, bqkv_ref, wo_ref, bo_ref,
               ln1_g_ref, ln1_b_ref, ln2_g_ref, ln2_b_ref,
               mlp_w1_ref, mlp_b1_ref, mlp_w2_ref, mlp_b2_ref,
               ln_post_g_ref, ln_post_b_ref, proj_ref,
               out_ref):
    f32 = jnp.float32
    bf16 = jnp.bfloat16

    # ---- block-diagonal (per-image) + padded-key additive mask, built in-kernel
    row = jax.lax.broadcasted_iota(jnp.int32, (R, R), 0)
    col = jax.lax.broadcasted_iota(jnp.int32, (R, R), 1)
    same_img = (row >> SP_LOG2) == (col >> SP_LOG2)
    key_valid = (col & (S_PAD - 1)) < S
    mask = jnp.where(same_img & key_valid, 0.0, -1e30).astype(f32)   # [R, R]

    # ---- patch embedding: one [R, F] @ [F, D] matmul for the whole slab -----
    x = jnp.dot(patches_ref[...], conv_w_ref[...],
                preferred_element_type=f32)                          # [R, D]
    # cls token folded into pos row 0 host-side; padded rows get zero pos
    x = x + pos_ref[...]
    x = _ln(x, ln_pre_g_ref[...], ln_pre_b_ref[...])

    # ---- transformer resblocks (pre-LN) --------------------------------------
    for l in range(L):
        # ---------------- attention ----------------
        xn = _ln(x, ln1_g_ref[l], ln1_b_ref[l])
        # fused q/k/v: single [R, D] @ [D, 3D] matmul, scale pre-folded into q
        qkv = (jnp.dot(xn.astype(bf16), wqkv_ref[l],
                       preferred_element_type=f32) + bqkv_ref[l]).astype(bf16)  # [R, 3D]
        # head split via static lane slices + leading-axis stack (no MXU ops)
        q = jnp.stack([qkv[:, h * HD:(h + 1) * HD]
                       for h in range(HEADS)], axis=0)               # [H, R, HD]
        k = jnp.stack([qkv[:, D + h * HD:D + (h + 1) * HD]
                       for h in range(HEADS)], axis=0)               # [H, R, HD]
        v = jnp.stack([qkv[:, 2 * D + h * HD:2 * D + (h + 1) * HD]
                       for h in range(HEADS)], axis=0)               # [H, R, HD]

        s = jax.lax.dot_general(
            q, k, dimension_numbers=(((2,), (2,)), ((0,), (0,))),
            preferred_element_type=f32) + mask                       # [H, R, R]
        m = jnp.max(s, axis=-1, keepdims=True)
        e = jnp.exp(s - m)
        p = e / jnp.sum(e, axis=-1, keepdims=True)

        ctx = jax.lax.dot_general(
            p.astype(bf16), v,
            dimension_numbers=(((2,), (1,)), ((0,), (0,))),
            preferred_element_type=f32)                              # [H, R, HD]
        # fold heads back into lanes, then one [R, D] @ [D, D] out-proj matmul
        ctx2 = jnp.concatenate([ctx[h] for h in range(HEADS)],
                               axis=-1).astype(bf16)                 # [R, D]
        attn_out = jnp.dot(ctx2, wo_ref[l],
                           preferred_element_type=f32) + bo_ref[l]   # [R, D]
        x = x + attn_out

        # ---------------- MLP ----------------
        xn = _ln(x, ln2_g_ref[l], ln2_b_ref[l])
        h1 = jnp.dot(xn.astype(bf16), mlp_w1_ref[l],
                     preferred_element_type=f32) + mlp_b1_ref[l]     # [R, MLP]
        # TODO(synk): open_clip uses exact (erf) GELU; tanh approximation used
        # here for guaranteed Mosaic lowering.
        h1 = jax.nn.gelu(h1, approximate=True)
        h2 = jnp.dot(h1.astype(bf16), mlp_w2_ref[l],
                     preferred_element_type=f32) + mlp_b2_ref[l]     # [R, D]
        x = x + h2

    # ---- pool cls rows (one-hot selector built in-kernel), ln_post, project --
    b_ids = jax.lax.broadcasted_iota(jnp.int32, (BB, R), 0)
    r_ids = jax.lax.broadcasted_iota(jnp.int32, (BB, R), 1)
    sel = jnp.where(r_ids == b_ids * S_PAD, 1.0, 0.0).astype(f32)    # [BB, R]
    pooled = jnp.dot(sel, x, preferred_element_type=f32)             # [BB, D]
    pooled = _ln(pooled, ln_post_g_ref[...], ln_post_b_ref[...])
    z = jnp.dot(pooled.astype(jnp.bfloat16), proj_ref[...],
                preferred_element_type=f32)                          # [BB, E]
    out_ref[...] = z.astype(out_ref.dtype)


def _rep_spec(arr):
    shape = tuple(arr.shape)
    return pl.BlockSpec(shape, lambda i, _s=shape: (0,) * len(_s))


def frozen_openclip_visual_embed(image, params):
    """image: [B, C, IMG, IMG] float32 (NCHW, like the PyTorch module input)."""
    # ---- host-side glue (plain JAX): im2col, padding, cls/pos fold -----------
    x = image.reshape(B, C, GH, PATCH, GH, PATCH)
    x = x.transpose(0, 2, 4, 1, 3, 5).reshape(B, P, F)               # [B, P, F]
    patches = jnp.zeros((B, S_PAD, F), jnp.float32).at[:, 1:S, :].set(x)
    patches2d = patches.reshape(B * S_PAD, F).astype(jnp.bfloat16)   # pre-cast bf16

    # positional embedding with cls folded into row 0; zero for padded rows
    pos_plus = jnp.zeros((S_PAD, D), jnp.float32)
    pos_plus = pos_plus.at[0].set(params["cls"] + params["pos"][0])
    pos_plus = pos_plus.at[1:S].set(params["pos"][1:])
    pos_tiled = jnp.tile(pos_plus, (BB, 1))                          # [R, D]

    weights = (params["conv_w"], params["ln_pre_g"], params["ln_pre_b"],
               params["wqkv"], params["bqkv"], params["wo"], params["bo"],
               params["ln1_g"], params["ln1_b"], params["ln2_g"], params["ln2_b"],
               params["mlp_w1"], params["mlp_b1"], params["mlp_w2"], params["mlp_b2"],
               params["ln_post_g"], params["ln_post_b"], params["proj"])

    in_specs = ([pl.BlockSpec((R, F), lambda i: (i, 0)),
                 _rep_spec(pos_tiled)]
                + [_rep_spec(w) for w in weights])

    out = pl.pallas_call(
        vit_kernel,
        out_shape=jax.ShapeDtypeStruct((B, E), jnp.float32),
        grid_spec=pltpu.PrefetchScalarGridSpec(
            num_scalar_prefetch=0,
            grid=(NB,),
            in_specs=in_specs,
            out_specs=pl.BlockSpec((BB, E), lambda i: (i, 0)),
        ),
        compiler_params=pltpu.CompilerParams(
            dimension_semantics=("parallel",)),
    )(patches2d, pos_tiled, *weights)
    return out


def make_params(key):
    ks = jax.random.split(key, 12)

    def n(k, shape, std=0.02):
        return (std * jax.random.normal(k, shape)).astype(jnp.float32)

    bf16 = jnp.bfloat16
    scale = 1.0 / math.sqrt(HD)

    # conv1 weight [D, C, p, p] (bias=False) -> flattened & transposed [F, D]
    conv_w = n(ks[0], (D, C, PATCH, PATCH)).reshape(D, F).T

    cls = n(ks[1], (D,))
    pos = n(ks[2], (S, D))

    # attention in_proj: torch weight [3D, D], bias [3D]
    # -> fused [L, D, 3D]: columns = [q heads | k heads | v heads], scale in q
    in_w = n(ks[3], (L, 3 * D, D))
    in_b = n(ks[4], (L, 3 * D))
    wqkv = jnp.transpose(in_w, (0, 2, 1))                            # [L, D, 3D]
    bqkv = in_b.reshape(L, 1, 3 * D)
    qscale = jnp.concatenate([jnp.full((D,), scale, jnp.float32),
                              jnp.ones((2 * D,), jnp.float32)])
    wqkv = wqkv * qscale[None, None, :]
    bqkv = bqkv * qscale[None, None, :]

    # attention out_proj: torch weight [D, D], bias [D] -> [L, D, D] (x @ W^T)
    out_w = n(ks[5], (L, D, D))
    out_b = n(ks[6], (L, D))
    wo = jnp.transpose(out_w, (0, 2, 1))                             # [L, D, D]

    # MLP: c_fc [MLP, D], c_proj [D, MLP]; pre-transposed
    w1 = n(ks[7], (L, MLP, D))
    b1 = n(ks[8], (L, MLP))
    w2 = n(ks[9], (L, D, MLP))
    b2 = n(ks[10], (L, D))

    return dict(
        conv_w=conv_w.astype(bf16),
        cls=cls, pos=pos,
        ln_pre_g=jnp.ones((1, D), jnp.float32),
        ln_pre_b=jnp.zeros((1, D), jnp.float32),
        wqkv=wqkv.astype(bf16),
        bqkv=bqkv.astype(jnp.float32),
        wo=wo.astype(bf16),
        bo=out_b.reshape(L, 1, D),
        ln1_g=jnp.ones((L, 1, D), jnp.float32),
        ln1_b=jnp.zeros((L, 1, D), jnp.float32),
        ln2_g=jnp.ones((L, 1, D), jnp.float32),
        ln2_b=jnp.zeros((L, 1, D), jnp.float32),
        mlp_w1=jnp.transpose(w1, (0, 2, 1)).astype(bf16),
        mlp_b1=b1.reshape(L, 1, MLP),
        mlp_w2=jnp.transpose(w2, (0, 2, 1)).astype(bf16),
        mlp_b2=b2.reshape(L, 1, D),
        ln_post_g=jnp.ones((1, D), jnp.float32),
        ln_post_b=jnp.zeros((1, D), jnp.float32),
        proj=n(ks[11], (D, E)).astype(bf16),
    )


if __name__ == "__main__":
    key = jax.random.PRNGKey(0)
    k_img, k_par = jax.random.split(key)
    image = jax.random.uniform(k_img, (B, C, IMG, IMG), dtype=jnp.float32)
    params = make_params(k_par)

    z = frozen_openclip_visual_embed(image, params)
    z = jax.block_until_ready(z)
    assert z.shape == (B, E) and z.dtype == jnp.float32
    assert bool(jnp.all(jnp.isfinite(z)))
    print("KERNEL_OK")
</pallas_src>

<mosaic_0001>
module attributes {stable_mosaic.version = 11 : i64} {
  func.func @vit_kernel(%arg0: i32, %arg1: memref<128x48xbf16, #tpu.memory_space<vmem>>, %arg2: memref<128x32xf32, #tpu.memory_space<vmem>>, %arg3: memref<48x32xbf16, #tpu.memory_space<vmem>>, %arg4: memref<1x32xf32, #tpu.memory_space<vmem>>, %arg5: memref<1x32xf32, #tpu.memory_space<vmem>>, %arg6: memref<2x32x96xbf16, #tpu.memory_space<vmem>>, %arg7: memref<2x1x96xf32, #tpu.memory_space<vmem>>, %arg8: memref<2x32x32xbf16, #tpu.memory_space<vmem>>, %arg9: memref<2x1x32xf32, #tpu.memory_space<vmem>>, %arg10: memref<2x1x32xf32, #tpu.memory_space<vmem>>, %arg11: memref<2x1x32xf32, #tpu.memory_space<vmem>>, %arg12: memref<2x1x32xf32, #tpu.memory_space<vmem>>, %arg13: memref<2x1x32xf32, #tpu.memory_space<vmem>>, %arg14: memref<2x32x128xbf16, #tpu.memory_space<vmem>>, %arg15: memref<2x1x128xf32, #tpu.memory_space<vmem>>, %arg16: memref<2x128x32xbf16, #tpu.memory_space<vmem>>, %arg17: memref<2x1x32xf32, #tpu.memory_space<vmem>>, %arg18: memref<1x32xf32, #tpu.memory_space<vmem>>, %arg19: memref<1x32xf32, #tpu.memory_space<vmem>>, %arg20: memref<32x16xbf16, #tpu.memory_space<vmem>>, %arg21: memref<4x16xf32, #tpu.memory_space<vmem>>) attributes {dimension_semantics = [#tpu.dimension_semantics<parallel>], iteration_bounds = array<i64: 1>, scalar_prefetch = 0 : i64, scratch_operands = 0 : i64, tpu.core_type = #tpu.core_type<tc>, window_params = [{transform_indices = @transform_0, window_bounds = array<i64: 128, 48>}, {pipeline_mode = #tpu.pipeline_mode<synchronous>, transform_indices = @transform_1, window_bounds = array<i64: 128, 32>}, {pipeline_mode = #tpu.pipeline_mode<synchronous>, transform_indices = @transform_2, window_bounds = array<i64: 48, 32>}, {pipeline_mode = #tpu.pipeline_mode<synchronous>, transform_indices = @transform_3, window_bounds = array<i64: 1, 32>}, {pipeline_mode = #tpu.pipeline_mode<synchronous>, transform_indices = @transform_4, window_bounds = array<i64: 1, 32>}, {pipeline_mode = #tpu.pipeline_mode<synchronous>, transform_indices = @transform_5, window_bounds = array<i64: 2, 32, 96>}, {pipeline_mode = #tpu.pipeline_mode<synchronous>, transform_indices = @transform_6, window_bounds = array<i64: 2, 1, 96>}, {pipeline_mode = #tpu.pipeline_mode<synchronous>, transform_indices = @transform_7, window_bounds = array<i64: 2, 32, 32>}, {pipeline_mode = #tpu.pipeline_mode<synchronous>, transform_indices = @transform_8, window_bounds = array<i64: 2, 1, 32>}, {pipeline_mode = #tpu.pipeline_mode<synchronous>, transform_indices = @transform_9, window_bounds = array<i64: 2, 1, 32>}, {pipeline_mode = #tpu.pipeline_mode<synchronous>, transform_indices = @transform_10, window_bounds = array<i64: 2, 1, 32>}, {pipeline_mode = #tpu.pipeline_mode<synchronous>, transform_indices = @transform_11, window_bounds = array<i64: 2, 1, 32>}, {pipeline_mode = #tpu.pipeline_mode<synchronous>, transform_indices = @transform_12, window_bounds = array<i64: 2, 1, 32>}, {pipeline_mode = #tpu.pipeline_mode<synchronous>, transform_indices = @transform_13, window_bounds = array<i64: 2, 32, 128>}, {pipeline_mode = #tpu.pipeline_mode<synchronous>, transform_indices = @transform_14, window_bounds = array<i64: 2, 1, 128>}, {pipeline_mode = #tpu.pipeline_mode<synchronous>, transform_indices = @transform_15, window_bounds = array<i64: 2, 128, 32>}, {pipeline_mode = #tpu.pipeline_mode<synchronous>, transform_indices = @transform_16, window_bounds = array<i64: 2, 1, 32>}, {pipeline_mode = #tpu.pipeline_mode<synchronous>, transform_indices = @transform_17, window_bounds = array<i64: 1, 32>}, {pipeline_mode = #tpu.pipeline_mode<synchronous>, transform_indices = @transform_18, window_bounds = array<i64: 1, 32>}, {pipeline_mode = #tpu.pipeline_mode<synchronous>, transform_indices = @transform_19, window_bounds = array<i64: 32, 16>}, {transform_indices = @transform_20, window_bounds = array<i64: 4, 16>}]} {
    %0 = tpu.iota {dimensions = array<i32: 0>} : vector<128x128xi32>
    %1 = tpu.iota {dimensions = array<i32: 1>} : vector<128x128xi32>
    %c5_i32 = arith.constant 5 : i32
    %2 = vector.broadcast %c5_i32 : i32 to vector<128x128xi32>
    %3 = arith.shrsi %0, %2 : vector<128x128xi32>
    %c5_i32_0 = arith.constant 5 : i32
    %4 = vector.broadcast %c5_i32_0 : i32 to vector<128x128xi32>
    %5 = arith.shrsi %1, %4 : vector<128x128xi32>
    %6 = arith.cmpi eq, %3, %5 : vector<128x128xi32>
    %c31_i32 = arith.constant 31 : i32
    %7 = vector.broadcast %c31_i32 : i32 to vector<128x128xi32>
    %8 = arith.andi %1, %7 : vector<128x128xi32>
    %c17_i32 = arith.constant 17 : i32
    %9 = vector.broadcast %c17_i32 : i32 to vector<128x128xi32>
    %10 = arith.cmpi slt, %8, %9 : vector<128x128xi32>
    %11 = arith.andi %6, %10 : vector<128x128xi1>
    %cst = arith.constant 0.000000e+00 : f32
    %cst_1 = arith.constant -1.000000e+30 : f32
    %12 = vector.broadcast %cst : f32 to vector<128x128xf32>
    %13 = vector.broadcast %cst_1 : f32 to vector<128x128xf32>
    %14 = arith.select %11, %12, %13 : vector<128x128xi1>, vector<128x128xf32>
    %c0 = arith.constant 0 : index
    %c0_2 = arith.constant 0 : index
    %15 = vector.load %arg1[%c0, %c0_2] : memref<128x48xbf16, #tpu.memory_space<vmem>>, vector<128x48xbf16>
    %c0_3 = arith.constant 0 : index
    %c0_4 = arith.constant 0 : index
    %16 = vector.load %arg3[%c0_3, %c0_4] : memref<48x32xbf16, #tpu.memory_space<vmem>>, vector<48x32xbf16>
    %cst_5 = arith.constant dense<0.000000e+00> : vector<128x32xf32>
    %17 = tpu.matmul %15, %16, %cst_5 {dimension_numbers = #tpu.dot_dimension_numbers<[1], [0], [0], [1], [0, 0, 1, 1], [], []>} : vector<128x48xbf16>, vector<48x32xbf16>, vector<128x32xf32> -> vector<128x32xf32>
    %c0_6 = arith.constant 0 : index
    %c0_7 = arith.constant 0 : index
    %18 = vector.load %arg2[%c0_6, %c0_7] : memref<128x32xf32, #tpu.memory_space<vmem>>, vector<128x32xf32>
    %19 = arith.addf %17, %18 : vector<128x32xf32>
    %c0_8 = arith.constant 0 : index
    %c0_9 = arith.constant 0 : index
    %20 = vector.load %arg4[%c0_8, %c0_9] : memref<1x32xf32, #tpu.memory_space<vmem>>, vector<1x32xf32>
    %c0_10 = arith.constant 0 : index
    %c0_11 = arith.constant 0 : index
    %21 = vector.load %arg5[%c0_10, %c0_11] : memref<1x32xf32, #tpu.memory_space<vmem>>, vector<1x32xf32>
    %cst_12 = arith.constant dense<0.000000e+00> : vector<128xf32>
    %22 = vector.multi_reduction <add>, %19, %cst_12 [1] : vector<128x32xf32> to vector<128xf32>
    %23 = vector.shape_cast %22 : vector<128xf32> to vector<128x1xf32>
    %cst_13 = arith.constant 3.200000e+01 : f32
    %24 = vector.broadcast %cst_13 : f32 to vector<128x1xf32>
    %25 = arith.divf %23, %24 : vector<128x1xf32>
    %26 = vector.broadcast %25 : vector<128x1xf32> to vector<128x32xf32>
    %27 = arith.subf %19, %26 : vector<128x32xf32>
    %28 = arith.mulf %27, %27 : vector<128x32xf32>
    %cst_14 = arith.constant dense<0.000000e+00> : vector<128xf32>
    %29 = vector.multi_reduction <add>, %28, %cst_14 [1] : vector<128x32xf32> to vector<128xf32>
    %30 = vector.shape_cast %29 : vector<128xf32> to vector<128x1xf32>
    %cst_15 = arith.constant 3.200000e+01 : f32
    %31 = vector.broadcast %cst_15 : f32 to vector<128x1xf32>
    %32 = arith.divf %30, %31 : vector<128x1xf32>
    %cst_16 = arith.constant 9.99999974E-6 : f32
    %33 = vector.broadcast %cst_16 : f32 to vector<128x1xf32>
    %34 = arith.addf %32, %33 : vector<128x1xf32>
    %35 = math.rsqrt %34 : vector<128x1xf32>
    %36 = vector.broadcast %35 : vector<128x1xf32> to vector<128x32xf32>
    %37 = arith.mulf %27, %36 : vector<128x32xf32>
    %38 = vector.broadcast %20 : vector<1x32xf32> to vector<128x32xf32>
    %39 = arith.mulf %37, %38 : vector<128x32xf32>
    %40 = vector.broadcast %21 : vector<1x32xf32> to vector<128x32xf32>
    %41 = arith.addf %39, %40 : vector<128x32xf32>
    %c0_17 = arith.constant 0 : index
    %c0_18 = arith.constant 0 : index
    %c0_19 = arith.constant 0 : index
    %42 = vector.load %arg10[%c0_17, %c0_18, %c0_19] : memref<2x1x32xf32, #tpu.memory_space<vmem>>, vector<1x1x32xf32>
    %43 = vector.shape_cast %42 : vector<1x1x32xf32> to vector<1x32xf32>
    %c0_20 = arith.constant 0 : index
    %c0_21 = arith.constant 0 : index
    %c0_22 = arith.constant 0 : index
    %44 = vector.load %arg11[%c0_20, %c0_21, %c0_22] : memref<2x1x32xf32, #tpu.memory_space<vmem>>, vector<1x1x32xf32>
    %45 = vector.shape_cast %44 : vector<1x1x32xf32> to vector<1x32xf32>
    %cst_23 = arith.constant dense<0.000000e+00> : vector<128xf32>
    %46 = vector.multi_reduction <add>, %41, %cst_23 [1] : vector<128x32xf32> to vector<128xf32>
    %47 = vector.shape_cast %46 : vector<128xf32> to vector<128x1xf32>
    %cst_24 = arith.constant 3.200000e+01 : f32
    %48 = vector.broadcast %cst_24 : f32 to vector<128x1xf32>
    %49 = arith.divf %47, %48 : vector<128x1xf32>
    %50 = vector.broadcast %49 : vector<128x1xf32> to vector<128x32xf32>
    %51 = arith.subf %41, %50 : vector<128x32xf32>
    %52 = arith.mulf %51, %51 : vector<128x32xf32>
    %cst_25 = arith.constant dense<0.000000e+00> : vector<128xf32>
    %53 = vector.multi_reduction <add>, %52, %cst_25 [1] : vector<128x32xf32> to vector<128xf32>
    %54 = vector.shape_cast %53 : vector<128xf32> to vector<128x1xf32>
    %cst_26 = arith.constant 3.200000e+01 : f32
    %55 = vector.broadcast %cst_26 : f32 to vector<128x1xf32>
    %56 = arith.divf %54, %55 : vector<128x1xf32>
    %cst_27 = arith.constant 9.99999974E-6 : f32
    %57 = vector.broadcast %cst_27 : f32 to vector<128x1xf32>
    %58 = arith.addf %56, %57 : vector<128x1xf32>
    %59 = math.rsqrt %58 : vector<128x1xf32>
    %60 = vector.broadcast %59 : vector<128x1xf32> to vector<128x32xf32>
    %61 = arith.mulf %51, %60 : vector<128x32xf32>
    %62 = vector.broadcast %43 : vector<1x32xf32> to vector<128x32xf32>
    %63 = arith.mulf %61, %62 : vector<128x32xf32>
    %64 = vector.broadcast %45 : vector<1x32xf32> to vector<128x32xf32>
    %65 = arith.addf %63, %64 : vector<128x32xf32>
    %66 = arith.truncf %65 : vector<128x32xf32> to vector<128x32xbf16>
    %c0_28 = arith.constant 0 : index
    %c0_29 = arith.constant 0 : index
    %c0_30 = arith.constant 0 : index
    %67 = vector.load %arg6[%c0_28, %c0_29, %c0_30] : memref<2x32x96xbf16, #tpu.memory_space<vmem>>, vector<1x32x96xbf16>
    %68 = vector.shape_cast %67 : vector<1x32x96xbf16> to vector<32x96xbf16>
    %cst_31 = arith.constant dense<0.000000e+00> : vector<128x96xf32>
    %69 = tpu.matmul %66, %68, %cst_31 {dimension_numbers = #tpu.dot_dimension_numbers<[1], [0], [0], [1], [0, 0, 1, 1], [], []>} : vector<128x32xbf16>, vector<32x96xbf16>, vector<128x96xf32> -> vector<128x96xf32>
    %c0_32 = arith.constant 0 : index
    %c0_33 = arith.constant 0 : index
    %c0_34 = arith.constant 0 : index
    %70 = vector.load %arg7[%c0_32, %c0_33, %c0_34] : memref<2x1x96xf32, #tpu.memory_space<vmem>>, vector<1x1x96xf32>
    %71 = vector.shape_cast %70 : vector<1x1x96xf32> to vector<1x96xf32>
    %72 = vector.broadcast %71 : vector<1x96xf32> to vector<128x96xf32>
    %73 = arith.addf %69, %72 : vector<128x96xf32>
    %74 = arith.truncf %73 : vector<128x96xf32> to vector<128x96xbf16>
    %75 = vector.extract_strided_slice %74 {offsets = [0, 0], sizes = [128, 8], strides = [1, 1]} : vector<128x96xbf16> to vector<128x8xbf16>
    %76 = vector.extract_strided_slice %74 {offsets = [0, 8], sizes = [128, 8], strides = [1, 1]} : vector<128x96xbf16> to vector<128x8xbf16>
    %77 = vector.extract_strided_slice %74 {offsets = [0, 16], sizes = [128, 8], strides = [1, 1]} : vector<128x96xbf16> to vector<128x8xbf16>
    %78 = vector.extract_strided_slice %74 {offsets = [0, 24], sizes = [128, 8], strides = [1, 1]} : vector<128x96xbf16> to vector<128x8xbf16>
    %79 = vector.shape_cast %75 : vector<128x8xbf16> to vector<1x128x8xbf16>
    %80 = vector.shape_cast %76 : vector<128x8xbf16> to vector<1x128x8xbf16>
    %81 = vector.shape_cast %77 : vector<128x8xbf16> to vector<1x128x8xbf16>
    %82 = vector.shape_cast %78 : vector<128x8xbf16> to vector<1x128x8xbf16>
    %83 = tpu.concatenate %79, %80, %81, %82 in 0 : vector<1x128x8xbf16>, vector<1x128x8xbf16>, vector<1x128x8xbf16>, vector<1x128x8xbf16> -> vector<4x128x8xbf16>
    %84 = vector.extract_strided_slice %74 {offsets = [0, 32], sizes = [128, 8], strides = [1, 1]} : vector<128x96xbf16> to vector<128x8xbf16>
    %85 = vector.extract_strided_slice %74 {offsets = [0, 40], sizes = [128, 8], strides = [1, 1]} : vector<128x96xbf16> to vector<128x8xbf16>
    %86 = vector.extract_strided_slice %74 {offsets = [0, 48], sizes = [128, 8], strides = [1, 1]} : vector<128x96xbf16> to vector<128x8xbf16>
    %87 = vector.extract_strided_slice %74 {offsets = [0, 56], sizes = [128, 8], strides = [1, 1]} : vector<128x96xbf16> to vector<128x8xbf16>
    %88 = vector.shape_cast %84 : vector<128x8xbf16> to vector<1x128x8xbf16>
    %89 = vector.shape_cast %85 : vector<128x8xbf16> to vector<1x128x8xbf16>
    %90 = vector.shape_cast %86 : vector<128x8xbf16> to vector<1x128x8xbf16>
    %91 = vector.shape_cast %87 : vector<128x8xbf16> to vector<1x128x8xbf16>
    %92 = tpu.concatenate %88, %89, %90, %91 in 0 : vector<1x128x8xbf16>, vector<1x128x8xbf16>, vector<1x128x8xbf16>, vector<1x128x8xbf16> -> vector<4x128x8xbf16>
    %93 = vector.extract_strided_slice %74 {offsets = [0, 64], sizes = [128, 8], strides = [1, 1]} : vector<128x96xbf16> to vector<128x8xbf16>
    %94 = vector.extract_strided_slice %74 {offsets = [0, 72], sizes = [128, 8], strides = [1, 1]} : vector<128x96xbf16> to vector<128x8xbf16>
    %95 = vector.extract_strided_slice %74 {offsets = [0, 80], sizes = [128, 8], strides = [1, 1]} : vector<128x96xbf16> to vector<128x8xbf16>
    %96 = vector.extract_strided_slice %74 {offsets = [0, 88], sizes = [128, 8], strides = [1, 1]} : vector<128x96xbf16> to vector<128x8xbf16>
    %97 = vector.shape_cast %93 : vector<128x8xbf16> to vector<1x128x8xbf16>
    %98 = vector.shape_cast %94 : vector<128x8xbf16> to vector<1x128x8xbf16>
    %99 = vector.shape_cast %95 : vector<128x8xbf16> to vector<1x128x8xbf16>
    %100 = vector.shape_cast %96 : vector<128x8xbf16> to vector<1x128x8xbf16>
    %101 = tpu.concatenate %97, %98, %99, %100 in 0 : vector<1x128x8xbf16>, vector<1x128x8xbf16>, vector<1x128x8xbf16>, vector<1x128x8xbf16> -> vector<4x128x8xbf16>
    %cst_35 = arith.constant dense<0.000000e+00> : vector<4x128x128xf32>
    %102 = tpu.matmul %83, %92, %cst_35 {dimension_numbers = #tpu.dot_dimension_numbers<[2], [2], [1], [1], [0, 0, 0, 1, 1, 1], [0], [0]>} : vector<4x128x8xbf16>, vector<4x128x8xbf16>, vector<4x128x128xf32> -> vector<4x128x128xf32>
    %103 = vector.shape_cast %14 : vector<128x128xf32> to vector<1x128x128xf32>
    %104 = vector.broadcast %103 : vector<1x128x128xf32> to vector<4x128x128xf32>
    %105 = arith.addf %102, %104 : vector<4x128x128xf32>
    %cst_36 = arith.constant dense<0xFF800000> : vector<4x128xf32>
    %106 = vector.multi_reduction <maximumf>, %105, %cst_36 [2] : vector<4x128x128xf32> to vector<4x128xf32>
    %107 = vector.shape_cast %106 : vector<4x128xf32> to vector<4x128x1xf32>
    %108 = vector.broadcast %107 : vector<4x128x1xf32> to vector<4x128x128xf32>
    %109 = arith.subf %105, %108 : vector<4x128x128xf32>
    %110 = math.exp %109 : vector<4x128x128xf32>
    %cst_37 = arith.constant dense<0.000000e+00> : vector<4x128xf32>
    %111 = vector.multi_reduction <add>, %110, %cst_37 [2] : vector<4x128x128xf32> to vector<4x128xf32>
    %112 = vector.shape_cast %111 : vector<4x128xf32> to vector<4x128x1xf32>
    %113 = vector.broadcast %112 : vector<4x128x1xf32> to vector<4x128x128xf32>
    %114 = arith.divf %110, %113 : vector<4x128x128xf32>
    %115 = arith.truncf %114 : vector<4x128x128xf32> to vector<4x128x128xbf16>
    %cst_38 = arith.constant dense<0.000000e+00> : vector<4x128x8xf32>
    %116 = tpu.matmul %115, %101, %cst_38 {dimension_numbers = #tpu.dot_dimension_numbers<[2], [1], [1], [2], [0, 0, 0, 1, 1, 2], [0], [0]>} : vector<4x128x128xbf16>, vector<4x128x8xbf16>, vector<4x128x8xf32> -> vector<4x128x8xf32>
    %117 = vector.extract_strided_slice %116 {offsets = [0, 0, 0], sizes = [1, 128, 8], strides = [1, 1, 1]} : vector<4x128x8xf32> to vector<1x128x8xf32>
    %118 = vector.shape_cast %117 : vector<1x128x8xf32> to vector<128x8xf32>
    %119 = vector.extract_strided_slice %116 {offsets = [1, 0, 0], sizes = [1, 128, 8], strides = [1, 1, 1]} : vector<4x128x8xf32> to vector<1x128x8xf32>
    %120 = vector.shape_cast %119 : vector<1x128x8xf32> to vector<128x8xf32>
    %121 = vector.extract_strided_slice %116 {offsets = [2, 0, 0], sizes = [1, 128, 8], strides = [1, 1, 1]} : vector<4x128x8xf32> to vector<1x128x8xf32>
    %122 = vector.shape_cast %121 : vector<1x128x8xf32> to vector<128x8xf32>
    %123 = vector.extract_strided_slice %116 {offsets = [3, 0, 0], sizes = [1, 128, 8], strides = [1, 1, 1]} : vector<4x128x8xf32> to vector<1x128x8xf32>
    %124 = vector.shape_cast %123 : vector<1x128x8xf32> to vector<128x8xf32>
    %125 = tpu.concatenate %118, %120, %122, %124 in 1 : vector<128x8xf32>, vector<128x8xf32>, vector<128x8xf32>, vector<128x8xf32> -> vector<128x32xf32>
    %126 = arith.truncf %125 : vector<128x32xf32> to vector<128x32xbf16>
    %c0_39 = arith.constant 0 : index
    %c0_40 = arith.constant 0 : index
    %c0_41 = arith.constant 0 : index
    %127 = vector.load %arg8[%c0_39, %c0_40, %c0_41] : memref<2x32x32xbf16, #tpu.memory_space<vmem>>, vector<1x32x32xbf16>
    %128 = vector.shape_cast %127 : vector<1x32x32xbf16> to vector<32x32xbf16>
    %cst_42 = arith.constant dense<0.000000e+00> : vector<128x32xf32>
    %129 = tpu.matmul %126, %128, %cst_42 {dimension_numbers = #tpu.dot_dimension_numbers<[1], [0], [0], [1], [0, 0, 1, 1], [], []>} : vector<128x32xbf16>, vector<32x32xbf16>, vector<128x32xf32> -> vector<128x32xf32>
    %c0_43 = arith.constant 0 : index
    %c0_44 = arith.constant 0 : index
    %c0_45 = arith.constant 0 : index
    %130 = vector.load %arg9[%c0_43, %c0_44, %c0_45] : memref<2x1x32xf32, #tpu.memory_space<vmem>>, vector<1x1x32xf32>
    %131 = vector.shape_cast %130 : vector<1x1x32xf32> to vector<1x32xf32>
    %132 = vector.broadcast %131 : vector<1x32xf32> to vector<128x32xf32>
    %133 = arith.addf %129, %132 : vector<128x32xf32>
    %134 = arith.addf %41, %133 : vector<128x32xf32>
    %c0_46 = arith.constant 0 : index
    %c0_47 = arith.constant 0 : index
    %c0_48 = arith.constant 0 : index
    %135 = vector.load %arg12[%c0_46, %c0_47, %c0_48] : memref<2x1x32xf32, #tpu.memory_space<vmem>>, vector<1x1x32xf32>
    %136 = vector.shape_cast %135 : vector<1x1x32xf32> to vector<1x32xf32>
    %c0_49 = arith.constant 0 : index
    %c0_50 = arith.constant 0 : index
    %c0_51 = arith.constant 0 : index
    %137 = vector.load %arg13[%c0_49, %c0_50, %c0_51] : memref<2x1x32xf32, #tpu.memory_space<vmem>>, vector<1x1x32xf32>
    %138 = vector.shape_cast %137 : vector<1x1x32xf32> to vector<1x32xf32>
    %cst_52 = arith.constant dense<0.000000e+00> : vector<128xf32>
    %139 = vector.multi_reduction <add>, %134, %cst_52 [1] : vector<128x32xf32> to vector<128xf32>
    %140 = vector.shape_cast %139 : vector<128xf32> to vector<128x1xf32>
    %cst_53 = arith.constant 3.200000e+01 : f32
    %141 = vector.broadcast %cst_53 : f32 to vector<128x1xf32>
    %142 = arith.divf %140, %141 : vector<128x1xf32>
    %143 = vector.broadcast %142 : vector<128x1xf32> to vector<128x32xf32>
    %144 = arith.subf %134, %143 : vector<128x32xf32>
    %145 = arith.mulf %144, %144 : vector<128x32xf32>
    %cst_54 = arith.constant dense<0.000000e+00> : vector<128xf32>
    %146 = vector.multi_reduction <add>, %145, %cst_54 [1] : vector<128x32xf32> to vector<128xf32>
    %147 = vector.shape_cast %146 : vector<128xf32> to vector<128x1xf32>
    %cst_55 = arith.constant 3.200000e+01 : f32
    %148 = vector.broadcast %cst_55 : f32 to vector<128x1xf32>
    %149 = arith.divf %147, %148 : vector<128x1xf32>
    %cst_56 = arith.constant 9.99999974E-6 : f32
    %150 = vector.broadcast %cst_56 : f32 to vector<128x1xf32>
    %151 = arith.addf %149, %150 : vector<128x1xf32>
    %152 = math.rsqrt %151 : vector<128x1xf32>
    %153 = vector.broadcast %152 : vector<128x1xf32> to vector<128x32xf32>
    %154 = arith.mulf %144, %153 : vector<128x32xf32>
    %155 = vector.broadcast %136 : vector<1x32xf32> to vector<128x32xf32>
    %156 = arith.mulf %154, %155 : vector<128x32xf32>
    %157 = vector.broadcast %138 : vector<1x32xf32> to vector<128x32xf32>
    %158 = arith.addf %156, %157 : vector<128x32xf32>
    %159 = arith.truncf %158 : vector<128x32xf32> to vector<128x32xbf16>
    %c0_57 = arith.constant 0 : index
    %c0_58 = arith.constant 0 : index
    %c0_59 = arith.constant 0 : index
    %160 = vector.load %arg14[%c0_57, %c0_58, %c0_59] : memref<2x32x128xbf16, #tpu.memory_space<vmem>>, vector<1x32x128xbf16>
    %161 = vector.shape_cast %160 : vector<1x32x128xbf16> to vector<32x128xbf16>
    %cst_60 = arith.constant dense<0.000000e+00> : vector<128x128xf32>
    %162 = tpu.matmul %159, %161, %cst_60 {dimension_numbers = #tpu.dot_dimension_numbers<[1], [0], [0], [1], [0, 0, 1, 1], [], []>} : vector<128x32xbf16>, vector<32x128xbf16>, vector<128x128xf32> -> vector<128x128xf32>
    %c0_61 = arith.constant 0 : index
    %c0_62 = arith.constant 0 : index
    %c0_63 = arith.constant 0 : index
    %163 = vector.load %arg15[%c0_61, %c0_62, %c0_63] : memref<2x1x128xf32, #tpu.memory_space<vmem>>, vector<1x1x128xf32>
    %164 = vector.shape_cast %163 : vector<1x1x128xf32> to vector<1x128xf32>
    %165 = vector.broadcast %164 : vector<1x128xf32> to vector<128x128xf32>
    %166 = arith.addf %162, %165 : vector<128x128xf32>
    %167 = arith.mulf %166, %166 : vector<128x128xf32>
    %168 = arith.mulf %166, %167 : vector<128x128xf32>
    %cst_64 = arith.constant 4.471500e-02 : f32
    %169 = vector.broadcast %cst_64 : f32 to vector<128x128xf32>
    %170 = arith.mulf %169, %168 : vector<128x128xf32>
    %171 = arith.addf %166, %170 : vector<128x128xf32>
    %cst_65 = arith.constant 0.797884583 : f32
    %172 = vector.broadcast %cst_65 : f32 to vector<128x128xf32>
    %173 = arith.mulf %172, %171 : vector<128x128xf32>
    %174 = math.tanh %173 : vector<128x128xf32>
    %cst_66 = arith.constant 1.000000e+00 : f32
    %175 = vector.broadcast %cst_66 : f32 to vector<128x128xf32>
    %176 = arith.addf %175, %174 : vector<128x128xf32>
    %cst_67 = arith.constant 5.000000e-01 : f32
    %177 = vector.broadcast %cst_67 : f32 to vector<128x128xf32>
    %178 = arith.mulf %177, %176 : vector<128x128xf32>
    %179 = arith.mulf %166, %178 : vector<128x128xf32>
    %180 = arith.truncf %179 : vector<128x128xf32> to vector<128x128xbf16>
    %c0_68 = arith.constant 0 : index
    %c0_69 = arith.constant 0 : index
    %c0_70 = arith.constant 0 : index
    %181 = vector.load %arg16[%c0_68, %c0_69, %c0_70] : memref<2x128x32xbf16, #tpu.memory_space<vmem>>, vector<1x128x32xbf16>
    %182 = vector.shape_cast %181 : vector<1x128x32xbf16> to vector<128x32xbf16>
    %cst_71 = arith.constant dense<0.000000e+00> : vector<128x32xf32>
    %183 = tpu.matmul %180, %182, %cst_71 {dimension_numbers = #tpu.dot_dimension_numbers<[1], [0], [0], [1], [0, 0, 1, 1], [], []>} : vector<128x128xbf16>, vector<128x32xbf16>, vector<128x32xf32> -> vector<128x32xf32>
    %c0_72 = arith.constant 0 : index
    %c0_73 = arith.constant 0 : index
    %c0_74 = arith.constant 0 : index
    %184 = vector.load %arg17[%c0_72, %c0_73, %c0_74] : memref<2x1x32xf32, #tpu.memory_space<vmem>>, vector<1x1x32xf32>
    %185 = vector.shape_cast %184 : vector<1x1x32xf32> to vector<1x32xf32>
    %186 = vector.broadcast %185 : vector<1x32xf32> to vector<128x32xf32>
    %187 = arith.addf %183, %186 : vector<128x32xf32>
    %188 = arith.addf %134, %187 : vector<128x32xf32>
    %c1 = arith.constant 1 : index
    %c0_75 = arith.constant 0 : index
    %c0_76 = arith.constant 0 : index
    %189 = vector.load %arg10[%c1, %c0_75, %c0_76] : memref<2x1x32xf32, #tpu.memory_space<vmem>>, vector<1x1x32xf32>
    %190 = vector.shape_cast %189 : vector<1x1x32xf32> to vector<1x32xf32>
    %c1_77 = arith.constant 1 : index
    %c0_78 = arith.constant 0 : index
    %c0_79 = arith.constant 0 : index
    %191 = vector.load %arg11[%c1_77, %c0_78, %c0_79] : memref<2x1x32xf32, #tpu.memory_space<vmem>>, vector<1x1x32xf32>
    %192 = vector.shape_cast %191 : vector<1x1x32xf32> to vector<1x32xf32>
    %cst_80 = arith.constant dense<0.000000e+00> : vector<128xf32>
    %193 = vector.multi_reduction <add>, %188, %cst_80 [1] : vector<128x32xf32> to vector<128xf32>
    %194 = vector.shape_cast %193 : vector<128xf32> to vector<128x1xf32>
    %cst_81 = arith.constant 3.200000e+01 : f32
    %195 = vector.broadcast %cst_81 : f32 to vector<128x1xf32>
    %196 = arith.divf %194, %195 : vector<128x1xf32>
    %197 = vector.broadcast %196 : vector<128x1xf32> to vector<128x32xf32>
    %198 = arith.subf %188, %197 : vector<128x32xf32>
    %199 = arith.mulf %198, %198 : vector<128x32xf32>
    %cst_82 = arith.constant dense<0.000000e+00> : vector<128xf32>
    %200 = vector.multi_reduction <add>, %199, %cst_82 [1] : vector<128x32xf32> to vector<128xf32>
    %201 = vector.shape_cast %200 : vector<128xf32> to vector<128x1xf32>
    %cst_83 = arith.constant 3.200000e+01 : f32
    %202 = vector.broadcast %cst_83 : f32 to vector<128x1xf32>
    %203 = arith.divf %201, %202 : vector<128x1xf32>
    %cst_84 = arith.constant 9.99999974E-6 : f32
    %204 = vector.broadcast %cst_84 : f32 to vector<128x1xf32>
    %205 = arith.addf %203, %204 : vector<128x1xf32>
    %206 = math.rsqrt %205 : vector<128x1xf32>
    %207 = vector.broadcast %206 : vector<128x1xf32> to vector<128x32xf32>
    %208 = arith.mulf %198, %207 : vector<128x32xf32>
    %209 = vector.broadcast %190 : vector<1x32xf32> to vector<128x32xf32>
    %210 = arith.mulf %208, %209 : vector<128x32xf32>
    %211 = vector.broadcast %192 : vector<1x32xf32> to vector<128x32xf32>
    %212 = arith.addf %210, %211 : vector<128x32xf32>
    %213 = arith.truncf %212 : vector<128x32xf32> to vector<128x32xbf16>
    %c1_85 = arith.constant 1 : index
    %c0_86 = arith.constant 0 : index
    %c0_87 = arith.constant 0 : index
    %214 = vector.load %arg6[%c1_85, %c0_86, %c0_87] : memref<2x32x96xbf16, #tpu.memory_space<vmem>>, vector<1x32x96xbf16>
    %215 = vector.shape_cast %214 : vector<1x32x96xbf16> to vector<32x96xbf16>
    %cst_88 = arith.constant dense<0.000000e+00> : vector<128x96xf32>
    %216 = tpu.matmul %213, %215, %cst_88 {dimension_numbers = #tpu.dot_dimension_numbers<[1], [0], [0], [1], [0, 0, 1, 1], [], []>} : vector<128x32xbf16>, vector<32x96xbf16>, vector<128x96xf32> -> vector<128x96xf32>
    %c1_89 = arith.constant 1 : index
    %c0_90 = arith.constant 0 : index
    %c0_91 = arith.constant 0 : index
    %217 = vector.load %arg7[%c1_89, %c0_90, %c0_91] : memref<2x1x96xf32, #tpu.memory_space<vmem>>, vector<1x1x96xf32>
    %218 = vector.shape_cast %217 : vector<1x1x96xf32> to vector<1x96xf32>
    %219 = vector.broadcast %218 : vector<1x96xf32> to vector<128x96xf32>
    %220 = arith.addf %216, %219 : vector<128x96xf32>
    %221 = arith.truncf %220 : vector<128x96xf32> to vector<128x96xbf16>
    %222 = vector.extract_strided_slice %221 {offsets = [0, 0], sizes = [128, 8], strides = [1, 1]} : vector<128x96xbf16> to vector<128x8xbf16>
    %223 = vector.extract_strided_slice %221 {offsets = [0, 8], sizes = [128, 8], strides = [1, 1]} : vector<128x96xbf16> to vector<128x8xbf16>
    %224 = vector.extract_strided_slice %221 {offsets = [0, 16], sizes = [128, 8], strides = [1, 1]} : vector<128x96xbf16> to vector<128x8xbf16>
    %225 = vector.extract_strided_slice %221 {offsets = [0, 24], sizes = [128, 8], strides = [1, 1]} : vector<128x96xbf16> to vector<128x8xbf16>
    %226 = vector.shape_cast %222 : vector<128x8xbf16> to vector<1x128x8xbf16>
    %227 = vector.shape_cast %223 : vector<128x8xbf16> to vector<1x128x8xbf16>
    %228 = vector.shape_cast %224 : vector<128x8xbf16> to vector<1x128x8xbf16>
    %229 = vector.shape_cast %225 : vector<128x8xbf16> to vector<1x128x8xbf16>
    %230 = tpu.concatenate %226, %227, %228, %229 in 0 : vector<1x128x8xbf16>, vector<1x128x8xbf16>, vector<1x128x8xbf16>, vector<1x128x8xbf16> -> vector<4x128x8xbf16>
    %231 = vector.extract_strided_slice %221 {offsets = [0, 32], sizes = [128, 8], strides = [1, 1]} : vector<128x96xbf16> to vector<128x8xbf16>
    %232 = vector.extract_strided_slice %221 {offsets = [0, 40], sizes = [128, 8], strides = [1, 1]} : vector<128x96xbf16> to vector<128x8xbf16>
    %233 = vector.extract_strided_slice %221 {offsets = [0, 48], sizes = [128, 8], strides = [1, 1]} : vector<128x96xbf16> to vector<128x8xbf16>
    %234 = vector.extract_strided_slice %221 {offsets = [0, 56], sizes = [128, 8], strides = [1, 1]} : vector<128x96xbf16> to vector<128x8xbf16>
    %235 = vector.shape_cast %231 : vector<128x8xbf16> to vector<1x128x8xbf16>
    %236 = vector.shape_cast %232 : vector<128x8xbf16> to vector<1x128x8xbf16>
    %237 = vector.shape_cast %233 : vector<128x8xbf16> to vector<1x128x8xbf16>
    %238 = vector.shape_cast %234 : vector<128x8xbf16> to vector<1x128x8xbf16>
    %239 = tpu.concatenate %235, %236, %237, %238 in 0 : vector<1x128x8xbf16>, vector<1x128x8xbf16>, vector<1x128x8xbf16>, vector<1x128x8xbf16> -> vector<4x128x8xbf16>
    %240 = vector.extract_strided_slice %221 {offsets = [0, 64], sizes = [128, 8], strides = [1, 1]} : vector<128x96xbf16> to vector<128x8xbf16>
    %241 = vector.extract_strided_slice %221 {offsets = [0, 72], sizes = [128, 8], strides = [1, 1]} : vector<128x96xbf16> to vector<128x8xbf16>
    %242 = vector.extract_strided_slice %221 {offsets = [0, 80], sizes = [128, 8], strides = [1, 1]} : vector<128x96xbf16> to vector<128x8xbf16>
    %243 = vector.extract_strided_slice %221 {offsets = [0, 88], sizes = [128, 8], strides = [1, 1]} : vector<128x96xbf16> to vector<128x8xbf16>
    %244 = vector.shape_cast %240 : vector<128x8xbf16> to vector<1x128x8xbf16>
    %245 = vector.shape_cast %241 : vector<128x8xbf16> to vector<1x128x8xbf16>
    %246 = vector.shape_cast %242 : vector<128x8xbf16> to vector<1x128x8xbf16>
    %247 = vector.shape_cast %243 : vector<128x8xbf16> to vector<1x128x8xbf16>
    %248 = tpu.concatenate %244, %245, %246, %247 in 0 : vector<1x128x8xbf16>, vector<1x128x8xbf16>, vector<1x128x8xbf16>, vector<1x128x8xbf16> -> vector<4x128x8xbf16>
    %cst_92 = arith.constant dense<0.000000e+00> : vector<4x128x128xf32>
    %249 = tpu.matmul %230, %239, %cst_92 {dimension_numbers = #tpu.dot_dimension_numbers<[2], [2], [1], [1], [0, 0, 0, 1, 1, 1], [0], [0]>} : vector<4x128x8xbf16>, vector<4x128x8xbf16>, vector<4x128x128xf32> -> vector<4x128x128xf32>
    %250 = vector.shape_cast %14 : vector<128x128xf32> to vector<1x128x128xf32>
    %251 = vector.broadcast %250 : vector<1x128x128xf32> to vector<4x128x128xf32>
    %252 = arith.addf %249, %251 : vector<4x128x128xf32>
    %cst_93 = arith.constant dense<0xFF800000> : vector<4x128xf32>
    %253 = vector.multi_reduction <maximumf>, %252, %cst_93 [2] : vector<4x128x128xf32> to vector<4x128xf32>
    %254 = vector.shape_cast %253 : vector<4x128xf32> to vector<4x128x1xf32>
    %255 = vector.broadcast %254 : vector<4x128x1xf32> to vector<4x128x128xf32>
    %256 = arith.subf %252, %255 : vector<4x128x128xf32>
    %257 = math.exp %256 : vector<4x128x128xf32>
    %cst_94 = arith.constant dense<0.000000e+00> : vector<4x128xf32>
    %258 = vector.multi_reduction <add>, %257, %cst_94 [2] : vector<4x128x128xf32> to vector<4x128xf32>
    %259 = vector.shape_cast %258 : vector<4x128xf32> to vector<4x128x1xf32>
    %260 = vector.broadcast %259 : vector<4x128x1xf32> to vector<4x128x128xf32>
    %261 = arith.divf %257, %260 : vector<4x128x128xf32>
    %262 = arith.truncf %261 : vector<4x128x128xf32> to vector<4x128x128xbf16>
    %cst_95 = arith.constant dense<0.000000e+00> : vector<4x128x8xf32>
    %263 = tpu.matmul %262, %248, %cst_95 {dimension_numbers = #tpu.dot_dimension_numbers<[2], [1], [1], [2], [0, 0, 0, 1, 1, 2], [0], [0]>} : vector<4x128x128xbf16>, vector<4x128x8xbf16>, vector<4x128x8xf32> -> vector<4x128x8xf32>
    %264 = vector.extract_strided_slice %263 {offsets = [0, 0, 0], sizes = [1, 128, 8], strides = [1, 1, 1]} : vector<4x128x8xf32> to vector<1x128x8xf32>
    %265 = vector.shape_cast %264 : vector<1x128x8xf32> to vector<128x8xf32>
    %266 = vector.extract_strided_slice %263 {offsets = [1, 0, 0], sizes = [1, 128, 8], strides = [1, 1, 1]} : vector<4x128x8xf32> to vector<1x128x8xf32>
    %267 = vector.shape_cast %266 : vector<1x128x8xf32> to vector<128x8xf32>
    %268 = vector.extract_strided_slice %263 {offsets = [2, 0, 0], sizes = [1, 128, 8], strides = [1, 1, 1]} : vector<4x128x8xf32> to vector<1x128x8xf32>
    %269 = vector.shape_cast %268 : vector<1x128x8xf32> to vector<128x8xf32>
    %270 = vector.extract_strided_slice %263 {offsets = [3, 0, 0], sizes = [1, 128, 8], strides = [1, 1, 1]} : vector<4x128x8xf32> to vector<1x128x8xf32>
    %271 = vector.shape_cast %270 : vector<1x128x8xf32> to vector<128x8xf32>
    %272 = tpu.concatenate %265, %267, %269, %271 in 1 : vector<128x8xf32>, vector<128x8xf32>, vector<128x8xf32>, vector<128x8xf32> -> vector<128x32xf32>
    %273 = arith.truncf %272 : vector<128x32xf32> to vector<128x32xbf16>
    %c1_96 = arith.constant 1 : index
    %c0_97 = arith.constant 0 : index
    %c0_98 = arith.constant 0 : index
    %274 = vector.load %arg8[%c1_96, %c0_97, %c0_98] : memref<2x32x32xbf16, #tpu.memory_space<vmem>>, vector<1x32x32xbf16>
    %275 = vector.shape_cast %274 : vector<1x32x32xbf16> to vector<32x32xbf16>
    %cst_99 = arith.constant dense<0.000000e+00> : vector<128x32xf32>
    %276 = tpu.matmul %273, %275, %cst_99 {dimension_numbers = #tpu.dot_dimension_numbers<[1], [0], [0], [1], [0, 0, 1, 1], [], []>} : vector<128x32xbf16>, vector<32x32xbf16>, vector<128x32xf32> -> vector<128x32xf32>
    %c1_100 = arith.constant 1 : index
    %c0_101 = arith.constant 0 : index
    %c0_102 = arith.constant 0 : index
    %277 = vector.load %arg9[%c1_100, %c0_101, %c0_102] : memref<2x1x32xf32, #tpu.memory_space<vmem>>, vector<1x1x32xf32>
    %278 = vector.shape_cast %277 : vector<1x1x32xf32> to vector<1x32xf32>
    %279 = vector.broadcast %278 : vector<1x32xf32> to vector<128x32xf32>
    %280 = arith.addf %276, %279 : vector<128x32xf32>
    %281 = arith.addf %188, %280 : vector<128x32xf32>
    %c1_103 = arith.constant 1 : index
    %c0_104 = arith.constant 0 : index
    %c0_105 = arith.constant 0 : index
    %282 = vector.load %arg12[%c1_103, %c0_104, %c0_105] : memref<2x1x32xf32, #tpu.memory_space<vmem>>, vector<1x1x32xf32>
    %283 = vector.shape_cast %282 : vector<1x1x32xf32> to vector<1x32xf32>
    %c1_106 = arith.constant 1 : index
    %c0_107 = arith.constant 0 : index
    %c0_108 = arith.constant 0 : index
    %284 = vector.load %arg13[%c1_106, %c0_107, %c0_108] : memref<2x1x32xf32, #tpu.memory_space<vmem>>, vector<1x1x32xf32>
    %285 = vector.shape_cast %284 : vector<1x1x32xf32> to vector<1x32xf32>
    %cst_109 = arith.constant dense<0.000000e+00> : vector<128xf32>
    %286 = vector.multi_reduction <add>, %281, %cst_109 [1] : vector<128x32xf32> to vector<128xf32>
    %287 = vector.shape_cast %286 : vector<128xf32> to vector<128x1xf32>
    %cst_110 = arith.constant 3.200000e+01 : f32
    %288 = vector.broadcast %cst_110 : f32 to vector<128x1xf32>
    %289 = arith.divf %287, %288 : vector<128x1xf32>
    %290 = vector.broadcast %289 : vector<128x1xf32> to vector<128x32xf32>
    %291 = arith.subf %281, %290 : vector<128x32xf32>
    %292 = arith.mulf %291, %291 : vector<128x32xf32>
    %cst_111 = arith.constant dense<0.000000e+00> : vector<128xf32>
    %293 = vector.multi_reduction <add>, %292, %cst_111 [1] : vector<128x32xf32> to vector<128xf32>
    %294 = vector.shape_cast %293 : vector<128xf32> to vector<128x1xf32>
    %cst_112 = arith.constant 3.200000e+01 : f32
    %295 = vector.broadcast %cst_112 : f32 to vector<128x1xf32>
    %296 = arith.divf %294, %295 : vector<128x1xf32>
    %cst_113 = arith.constant 9.99999974E-6 : f32
    %297 = vector.broadcast %cst_113 : f32 to vector<128x1xf32>
    %298 = arith.addf %296, %297 : vector<128x1xf32>
    %299 = math.rsqrt %298 : vector<128x1xf32>
    %300 = vector.broadcast %299 : vector<128x1xf32> to vector<128x32xf32>
    %301 = arith.mulf %291, %300 : vector<128x32xf32>
    %302 = vector.broadcast %283 : vector<1x32xf32> to vector<128x32xf32>
    %303 = arith.mulf %301, %302 : vector<128x32xf32>
    %304 = vector.broadcast %285 : vector<1x32xf32> to vector<128x32xf32>
    %305 = arith.addf %303, %304 : vector<128x32xf32>
    %306 = arith.truncf %305 : vector<128x32xf32> to vector<128x32xbf16>
    %c1_114 = arith.constant 1 : index
    %c0_115 = arith.constant 0 : index
    %c0_116 = arith.constant 0 : index
    %307 = vector.load %arg14[%c1_114, %c0_115, %c0_116] : memref<2x32x128xbf16, #tpu.memory_space<vmem>>, vector<1x32x128xbf16>
    %308 = vector.shape_cast %307 : vector<1x32x128xbf16> to vector<32x128xbf16>
    %cst_117 = arith.constant dense<0.000000e+00> : vector<128x128xf32>
    %309 = tpu.matmul %306, %308, %cst_117 {dimension_numbers = #tpu.dot_dimension_numbers<[1], [0], [0], [1], [0, 0, 1, 1], [], []>} : vector<128x32xbf16>, vector<32x128xbf16>, vector<128x128xf32> -> vector<128x128xf32>
    %c1_118 = arith.constant 1 : index
    %c0_119 = arith.constant 0 : index
    %c0_120 = arith.constant 0 : index
    %310 = vector.load %arg15[%c1_118, %c0_119, %c0_120] : memref<2x1x128xf32, #tpu.memory_space<vmem>>, vector<1x1x128xf32>
    %311 = vector.shape_cast %310 : vector<1x1x128xf32> to vector<1x128xf32>
    %312 = vector.broadcast %311 : vector<1x128xf32> to vector<128x128xf32>
    %313 = arith.addf %309, %312 : vector<128x128xf32>
    %314 = arith.mulf %313, %313 : vector<128x128xf32>
    %315 = arith.mulf %313, %314 : vector<128x128xf32>
    %cst_121 = arith.constant 4.471500e-02 : f32
    %316 = vector.broadcast %cst_121 : f32 to vector<128x128xf32>
    %317 = arith.mulf %316, %315 : vector<128x128xf32>
    %318 = arith.addf %313, %317 : vector<128x128xf32>
    %cst_122 = arith.constant 0.797884583 : f32
    %319 = vector.broadcast %cst_122 : f32 to vector<128x128xf32>
    %320 = arith.mulf %319, %318 : vector<128x128xf32>
    %321 = math.tanh %320 : vector<128x128xf32>
    %cst_123 = arith.constant 1.000000e+00 : f32
    %322 = vector.broadcast %cst_123 : f32 to vector<128x128xf32>
    %323 = arith.addf %322, %321 : vector<128x128xf32>
    %cst_124 = arith.constant 5.000000e-01 : f32
    %324 = vector.broadcast %cst_124 : f32 to vector<128x128xf32>
    %325 = arith.mulf %324, %323 : vector<128x128xf32>
    %326 = arith.mulf %313, %325 : vector<128x128xf32>
    %327 = arith.truncf %326 : vector<128x128xf32> to vector<128x128xbf16>
    %c1_125 = arith.constant 1 : index
    %c0_126 = arith.constant 0 : index
    %c0_127 = arith.constant 0 : index
    %328 = vector.load %arg16[%c1_125, %c0_126, %c0_127] : memref<2x128x32xbf16, #tpu.memory_space<vmem>>, vector<1x128x32xbf16>
    %329 = vector.shape_cast %328 : vector<1x128x32xbf16> to vector<128x32xbf16>
    %cst_128 = arith.constant dense<0.000000e+00> : vector<128x32xf32>
    %330 = tpu.matmul %327, %329, %cst_128 {dimension_numbers = #tpu.dot_dimension_numbers<[1], [0], [0], [1], [0, 0, 1, 1], [], []>} : vector<128x128xbf16>, vector<128x32xbf16>, vector<128x32xf32> -> vector<128x32xf32>
    %c1_129 = arith.constant 1 : index
    %c0_130 = arith.constant 0 : index
    %c0_131 = arith.constant 0 : index
    %331 = vector.load %arg17[%c1_129, %c0_130, %c0_131] : memref<2x1x32xf32, #tpu.memory_space<vmem>>, vector<1x1x32xf32>
    %332 = vector.shape_cast %331 : vector<1x1x32xf32> to vector<1x32xf32>
    %333 = vector.broadcast %332 : vector<1x32xf32> to vector<128x32xf32>
    %334 = arith.addf %330, %333 : vector<128x32xf32>
    %335 = arith.addf %281, %334 : vector<128x32xf32>
    %336 = tpu.iota {dimensions = array<i32: 0>} : vector<4x128xi32>
    %337 = tpu.iota {dimensions = array<i32: 1>} : vector<4x128xi32>
    %c32_i32 = arith.constant 32 : i32
    %338 = vector.broadcast %c32_i32 : i32 to vector<4x128xi32>
    %339 = arith.muli %336, %338 : vector<4x128xi32>
    %340 = arith.cmpi eq, %337, %339 : vector<4x128xi32>
    %cst_132 = arith.constant 1.000000e+00 : f32
    %cst_133 = arith.constant 0.000000e+00 : f32
    %341 = vector.broadcast %cst_132 : f32 to vector<4x128xf32>
    %342 = vector.broadcast %cst_133 : f32 to vector<4x128xf32>
    %343 = arith.select %340, %341, %342 : vector<4x128xi1>, vector<4x128xf32>
    %cst_134 = arith.constant dense<0.000000e+00> : vector<4x32xf32>
    %344 = tpu.matmul %343, %335, %cst_134 {dimension_numbers = #tpu.dot_dimension_numbers<[1], [0], [0], [1], [0, 0, 1, 1], [], []>} : vector<4x128xf32>, vector<128x32xf32>, vector<4x32xf32> -> vector<4x32xf32>
    %c0_135 = arith.constant 0 : index
    %c0_136 = arith.constant 0 : index
    %345 = vector.load %arg18[%c0_135, %c0_136] : memref<1x32xf32, #tpu.memory_space<vmem>>, vector<1x32xf32>
    %c0_137 = arith.constant 0 : index
    %c0_138 = arith.constant 0 : index
    %346 = vector.load %arg19[%c0_137, %c0_138] : memref<1x32xf32, #tpu.memory_space<vmem>>, vector<1x32xf32>
    %cst_139 = arith.constant dense<0.000000e+00> : vector<4xf32>
    %347 = vector.multi_reduction <add>, %344, %cst_139 [1] : vector<4x32xf32> to vector<4xf32>
    %348 = vector.shape_cast %347 : vector<4xf32> to vector<4x1xf32>
    %cst_140 = arith.constant 3.200000e+01 : f32
    %349 = vector.broadcast %cst_140 : f32 to vector<4x1xf32>
    %350 = arith.divf %348, %349 : vector<4x1xf32>
    %351 = vector.broadcast %350 : vector<4x1xf32> to vector<4x32xf32>
    %352 = arith.subf %344, %351 : vector<4x32xf32>
    %353 = arith.mulf %352, %352 : vector<4x32xf32>
    %cst_141 = arith.constant dense<0.000000e+00> : vector<4xf32>
    %354 = vector.multi_reduction <add>, %353, %cst_141 [1] : vector<4x32xf32> to vector<4xf32>
    %355 = vector.shape_cast %354 : vector<4xf32> to vector<4x1xf32>
    %cst_142 = arith.constant 3.200000e+01 : f32
    %356 = vector.broadcast %cst_142 : f32 to vector<4x1xf32>
    %357 = arith.divf %355, %356 : vector<4x1xf32>
    %cst_143 = arith.constant 9.99999974E-6 : f32
    %358 = vector.broadcast %cst_143 : f32 to vector<4x1xf32>
    %359 = arith.addf %357, %358 : vector<4x1xf32>
    %360 = math.rsqrt %359 : vector<4x1xf32>
    %361 = vector.broadcast %360 : vector<4x1xf32> to vector<4x32xf32>
    %362 = arith.mulf %352, %361 : vector<4x32xf32>
    %363 = vector.broadcast %345 : vector<1x32xf32> to vector<4x32xf32>
    %364 = arith.mulf %362, %363 : vector<4x32xf32>
    %365 = vector.broadcast %346 : vector<1x32xf32> to vector<4x32xf32>
    %366 = arith.addf %364, %365 : vector<4x32xf32>
    %367 = arith.truncf %366 : vector<4x32xf32> to vector<4x32xbf16>
    %c0_144 = arith.constant 0 : index
    %c0_145 = arith.constant 0 : index
    %368 = vector.load %arg20[%c0_144, %c0_145] : memref<32x16xbf16, #tpu.memory_space<vmem>>, vector<32x16xbf16>
    %cst_146 = arith.constant dense<0.000000e+00> : vector<4x16xf32>
    %369 = tpu.matmul %367, %368, %cst_146 {dimension_numbers = #tpu.dot_dimension_numbers<[1], [0], [0], [1], [0, 0, 1, 1], [], []>} : vector<4x32xbf16>, vector<32x16xbf16>, vector<4x16xf32> -> vector<4x16xf32>
    %c0_147 = arith.constant 0 : index
    %c0_148 = arith.constant 0 : index
    %370 = vector.load %arg21[%c0_147, %c0_148] : memref<4x16xf32, #tpu.memory_space<vmem>>, vector<4x16xf32>
    tpu.vector_store %arg21[%c0_147, %c0_148], %369 {strides = array<i32>} : memref<4x16xf32, #tpu.memory_space<vmem>>, vector<4x16xf32>,
    return
  }
  func.func @transform_0(%arg0: i32) -> (i32, i32) {
    %c0_i32 = arith.constant 0 : i32
    %c0_i32_0 = arith.constant 0 : i32
    return %arg0, %c0_i32 : i32, i32
  }
  func.func @transform_1(%arg0: i32) -> (i32, i32) {
    %c0_i32 = arith.constant 0 : i32
    %c0_i32_0 = arith.constant 0 : i32
    %c0_i32_1 = arith.constant 0 : i32
    return %c0_i32, %c0_i32_0 : i32, i32
  }
  func.func @transform_2(%arg0: i32) -> (i32, i32) {
    %c0_i32 = arith.constant 0 : i32
    %c0_i32_0 = arith.constant 0 : i32
    %c0_i32_1 = arith.constant 0 : i32
    return %c0_i32, %c0_i32_0 : i32, i32
  }
  func.func @transform_3(%arg0: i32) -> (i32, i32) {
    %c0_i32 = arith.constant 0 : i32
    %c0_i32_0 = arith.constant 0 : i32
    %c0_i32_1 = arith.constant 0 : i32
    return %c0_i32, %c0_i32_0 : i32, i32
  }
  func.func @transform_4(%arg0: i32) -> (i32, i32) {
    %c0_i32 = arith.constant 0 : i32
    %c0_i32_0 = arith.constant 0 : i32
    %c0_i32_1 = arith.constant 0 : i32
    return %c0_i32, %c0_i32_0 : i32, i32
  }
  func.func @transform_5(%arg0: i32) -> (i32, i32, i32) {
    %c0_i32 = arith.constant 0 : i32
    %c0_i32_0 = arith.constant 0 : i32
    %c0_i32_1 = arith.constant 0 : i32
    %c0_i32_2 = arith.constant 0 : i32
    return %c0_i32, %c0_i32_0, %c0_i32_1 : i32, i32, i32
  }
  func.func @transform_6(%arg0: i32) -> (i32, i32, i32) {
    %c0_i32 = arith.constant 0 : i32
    %c0_i32_0 = arith.constant 0 : i32
    %c0_i32_1 = arith.constant 0 : i32
    %c0_i32_2 = arith.constant 0 : i32
    return %c0_i32, %c0_i32_0, %c0_i32_1 : i32, i32, i32
  }
  func.func @transform_7(%arg0: i32) -> (i32, i32, i32) {
    %c0_i32 = arith.constant 0 : i32
    %c0_i32_0 = arith.constant 0 : i32
    %c0_i32_1 = arith.constant 0 : i32
    %c0_i32_2 = arith.constant 0 : i32
    return %c0_i32, %c0_i32_0, %c0_i32_1 : i32, i32, i32
  }
  func.func @transform_8(%arg0: i32) -> (i32, i32, i32) {
    %c0_i32 = arith.constant 0 : i32
    %c0_i32_0 = arith.constant 0 : i32
    %c0_i32_1 = arith.constant 0 : i32
    %c0_i32_2 = arith.constant 0 : i32
    return %c0_i32, %c0_i32_0, %c0_i32_1 : i32, i32, i32
  }
  func.func @transform_9(%arg0: i32) -> (i32, i32, i32) {
    %c0_i32 = arith.constant 0 : i32
    %c0_i32_0 = arith.constant 0 : i32
    %c0_i32_1 = arith.constant 0 : i32
    %c0_i32_2 = arith.constant 0 : i32
    return %c0_i32, %c0_i32_0, %c0_i32_1 : i32, i32, i32
  }
  func.func @transform_10(%arg0: i32) -> (i32, i32, i32) {
    %c0_i32 = arith.constant 0 : i32
    %c0_i32_0 = arith.constant 0 : i32
    %c0_i32_1 = arith.constant 0 : i32
    %c0_i32_2 = arith.constant 0 : i32
    return %c0_i32, %c0_i32_0, %c0_i32_1 : i32, i32, i32
  }
  func.func @transform_11(%arg0: i32) -> (i32, i32, i32) {
    %c0_i32 = arith.constant 0 : i32
    %c0_i32_0 = arith.constant 0 : i32
    %c0_i32_1 = arith.constant 0 : i32
    %c0_i32_2 = arith.constant 0 : i32
    return %c0_i32, %c0_i32_0, %c0_i32_1 : i32, i32, i32
  }
  func.func @transform_12(%arg0: i32) -> (i32, i32, i32) {
    %c0_i32 = arith.constant 0 : i32
    %c0_i32_0 = arith.constant 0 : i32
    %c0_i32_1 = arith.constant 0 : i32
    %c0_i32_2 = arith.constant 0 : i32
    return %c0_i32, %c0_i32_0, %c0_i32_1 : i32, i32, i32
  }
  func.func @transform_13(%arg0: i32) -> (i32, i32, i32) {
    %c0_i32 = arith.constant 0 : i32
    %c0_i32_0 = arith.constant 0 : i32
    %c0_i32_1 = arith.constant 0 : i32
    %c0_i32_2 = arith.constant 0 : i32
    return %c0_i32, %c0_i32_0, %c0_i32_1 : i32, i32, i32
  }
  func.func @transform_14(%arg0: i32) -> (i32, i32, i32) {
    %c0_i32 = arith.constant 0 : i32
    %c0_i32_0 = arith.constant 0 : i32
    %c0_i32_1 = arith.constant 0 : i32
    %c0_i32_2 = arith.constant 0 : i32
    return %c0_i32, %c0_i32_0, %c0_i32_1 : i32, i32, i32
  }
  func.func @transform_15(%arg0: i32) -> (i32, i32, i32) {
    %c0_i32 = arith.constant 0 : i32
    %c0_i32_0 = arith.constant 0 : i32
    %c0_i32_1 = arith.constant 0 : i32
    %c0_i32_2 = arith.constant 0 : i32
    return %c0_i32, %c0_i32_0, %c0_i32_1 : i32, i32, i32
  }
  func.func @transform_16(%arg0: i32) -> (i32, i32, i32) {
    %c0_i32 = arith.constant 0 : i32
    %c0_i32_0 = arith.constant 0 : i32
    %c0_i32_1 = arith.constant 0 : i32
    %c0_i32_2 = arith.constant 0 : i32
    return %c0_i32, %c0_i32_0, %c0_i32_1 : i32, i32, i32
  }
  func.func @transform_17(%arg0: i32) -> (i32, i32) {
    %c0_i32 = arith.constant 0 : i32
    %c0_i32_0 = arith.constant 0 : i32
    %c0_i32_1 = arith.constant 0 : i32
    return %c0_i32, %c0_i32_0 : i32, i32
  }
  func.func @transform_18(%arg0: i32) -> (i32, i32) {
    %c0_i32 = arith.constant 0 : i32
    %c0_i32_0 = arith.constant 0 : i32
    %c0_i32_1 = arith.constant 0 : i32
    return %c0_i32, %c0_i32_0 : i32, i32
  }
  func.func @transform_19(%arg0: i32) -> (i32, i32) {
    %c0_i32 = arith.constant 0 : i32
    %c0_i32_0 = arith.constant 0 : i32
    %c0_i32_1 = arith.constant 0 : i32
    return %c0_i32, %c0_i32_0 : i32, i32
  }
  func.func @transform_20(%arg0: i32) -> (i32, i32) {
    %c0_i32 = arith.constant 0 : i32
    %c0_i32_0 = arith.constant 0 : i32
    return %arg0, %c0_i32 : i32, i32
  }
}

</mosaic_0001>

<bundles_post_ra>
// kernel: tpu_custom_call.1
= control target key start
LH: loop header
LB: loop body
LE: loop exit
PB: predicated region body
PF: predicated region fallthrough
CT: control target
= control target key end

     0   :  { %s14572_s0 = inlined_call_operand.vmem [shape: bf16[128,48], index: 0, kind: input, shape index: {}]   ;;  %s14573_s1 = inlined_call_operand.vmem [shape: f32[128,32], index: 1, kind: input, shape index: {}]   ;;  %s14574_s2 = inlined_call_operand.vmem [shape: bf16[48,32], index: 2, kind: input, shape index: {}]   ;;  %s14575_s3 = inlined_call_operand.vmem [shape: f32[1,32], index: 3, kind: input, shape index: {}]   ;;  %s14576_s4 = inlined_call_operand.vmem [shape: f32[1,32], index: 4, kind: input, shape index: {}]   ;;  %s14577_s5 = inlined_call_operand.vmem [shape: bf16[2,32,96], index: 5, kind: input, shape index: {}]   ;;  %s14578_s6 = inlined_call_operand.vmem [shape: f32[2,1,96], index: 6, kind: input, shape index: {}]   ;;  %s14579_s7 = inlined_call_operand.vmem [shape: bf16[2,32,32], index: 7, kind: input, shape index: {}]   ;;  %s14580_s8 = inlined_call_operand.vmem [shape: f32[2,1,32], index: 8, kind: input, shape index: {}]   ;;  %s14581_s9 = inlined_call_operand.vmem [shape: f32[2,1,32], index: 9, kind: input, shape index: {}]   ;;  %s14582_s10 = inlined_call_operand.vmem [shape: f32[2,1,32], index: 10, kind: input, shape index: {}]   ;;  %s14583_s11 = inlined_call_operand.vmem [shape: f32[2,1,32], index: 11, kind: input, shape index: {}]   ;;  %s14584_s12 = inlined_call_operand.vmem [shape: f32[2,1,32], index: 12, kind: input, shape index: {}]   ;;  %s14585_s13 = inlined_call_operand.vmem [shape: bf16[2,32,128], index: 13, kind: input, shape index: {}]   ;;  %s14586_s14 = inlined_call_operand.vmem [shape: f32[2,1,128], index: 14, kind: input, shape index: {}]   ;;  %s14587_s15 = inlined_call_operand.vmem [shape: bf16[2,128,32], index: 15, kind: input, shape index: {}]   ;;  %s14588_s16 = inlined_call_operand.vmem [shape: f32[2,1,32], index: 16, kind: input, shape index: {}]   ;;  %s14589_s17 = inlined_call_operand.vmem [shape: f32[1,32], index: 17, kind: input, shape index: {}]   ;;  %s14590_s18 = inlined_call_operand.vmem [shape: f32[1,32], index: 18, kind: input, shape index: {}]   ;;  %s14591_s19 = inlined_call_operand.vmem [shape: bf16[32,16], index: 19, kind: input, shape index: {}]   ;;  %s14592_s20 = inlined_call_operand.hbm [shape: f32[4,16], index: 20, kind: output, shape index: {}]  }
   0x1   :  { %14757 = sst [smem:[#allocation79_spill]] %s14572_s0 }
   0x2   :  { %14758 = sst [smem:[#allocation80_spill]] %s14573_s1 }
   0x3   :  { %14759 = sst [smem:[#allocation81_spill]] %s14574_s2 }
   0x4   :  { %14760 = sst [smem:[#allocation82_spill]] %s14575_s3 }
   0x5   :  { %14761 = sst [smem:[#allocation83_spill]] %s14576_s4 }
   0x6   :  { %s14762_s23 = sld [smem:[#allocation81_spill]]  ;;  %vm249_vm0 = vcmask 392192   ;;  %s14763_s26 = sld [smem:[#allocation79_spill]] }
   0xc   :  { %v9234_v0 = vld [vmem:[%s14762_s23] sm:$0xff]   ;;  %v9235_v1 = vld [vmem:[%s14762_s23 + $0x8] sm:$0xff]   ;;  %v9236_v3 = vld [vmem:[%s14762_s23 + $0x10] sm:$0xff]  }
   0xd   :  { %8131 = vmatprep.subr.bf16.mxu0 %v9234_v0  ;;  %v9237_v2 = vld [vmem:[%s14763_s26] sm:$0xff]   ;;  %v9238_v4 = vld [vmem:[%s14763_s26 + $0x8] sm:$0xff]   ;;  %v9239_v5 = vld [vmem:[%s14763_s26 + $0x10] sm:$0xff]  }
   0xe   :  { %8132 = vmatpush3.bf16.msra.mxu0 %v9234_v0  ;;  %8137 = vmatprep.mubr.msk.bf16.mxu0 %vm249_vm0, %v9237_v2  ;;  %v9240_v6 = vld [vmem:[%s14763_s26 + $0x18] sm:$0xff]   ;;  %v9241_v7 = vld [vmem:[%s14763_s26 + $0x20] sm:$0xff]   ;;  %v9242_v8 = vld [vmem:[%s14763_s26 + $0x28] sm:$0xff]  }
   0xf   :  { %8133 = vmatprep.subr.bf16.mxu0 %v9235_v1  ;;  %v9243_v9 = vld [vmem:[%s14763_s26 + $0x30] sm:$0xff]  }
  0x12   :  { %8134 = vmatpush3.bf16.msra.mxu0 %v9235_v1 }
  0x13   :  { %8135 = vmatprep.subr.bf16.mxu0 %v9236_v3 }
  0x16   :  { %8136 = vmatpush3.bf16.msra.mxu0 %v9236_v3 }
  0x19   :  { %8138 = vmatmul.mubr.msk.bf16.vlgmr.msra.gmra.mrb[0].mxu0 %vm249_vm0, %v9238_v4 }
  0x1a   :  { %8141 = vmatprep.mubr.msk.bf16.mxu0 %vm249_vm0, %v9239_v5 }
  0x21   :  { %8142 = vmatmul.mubr.msk.bf16.gmra.mrb[4].mxu0 %vm249_vm0, %v9240_v6 }
  0x22   :  { %8145 = vmatprep.mubr.msk.bf16.mxu0 %vm249_vm0, %v9241_v7 }
  0x29   :  { %8146 = vmatmul.mubr.msk.bf16.gmra.mrb[8].mxu0 %vm249_vm0, %v9242_v8 }
  0x2a   :  { %8149 = vmatprep.mubr.msk.bf16.mxu0 %vm249_vm0, %v9243_v9 }
  0x2b   :  { %25 = vsyncpa [#allocation3], 0  ;;  %v9244_v10 = vld [vmem:[%s14763_s26 + $0x38] sm:$0xff]   ;;  %s14764_s30 = sld [smem:[#allocation80_spill]]  ;;  %vm373_vm1 = vcmask 261120   ;;  %s14765_s22 = sld [smem:[#allocation82_spill]] }
  0x2c   :  { %s14766_s24 = sld [smem:[#allocation83_spill]]  ;;  %vm1113_vm2 = vcmask 64512   ;;  %s10037_s1 = smov 120  }
  0x2d   :  { %s10039_s26 = smov 112   ;;  %s10040_s23 = smov 104  }
  0x2e   :  { %s10043_s2 = smov 8   ;;  %s10044_s4 = smov 16  }
  0x2f   :  { %s14696_s29 = smov 24  }
  0x31   :  { %8150 = vmatmul.mubr.msk.bf16.gmra.mrb[12].mxu0 %vm249_vm0, %v9244_v10  ;;  %v177_v11 = vld [vmem:[%s14764_s30 + $0x10] sm:$0xff]  ;;  %v175_v12 = vld [vmem:[%s14764_s30] sm:$0xff]  ;;  %v178_v14 = vld [vmem:[%s14764_s30 + $0x18] sm:$0xff] }
  0x32   :  { %v176_v17 = vld [vmem:[%s14764_s30 + $0x8] sm:$0xff]  ;;  %v179_v26 = vld [vmem:[%s14764_s30 + $0x20] sm:$0xff]  ;;  %v181_v29 = vld [vmem:[%s14764_s30 + $0x30] sm:$0xff] }
  0x33   :  { %v180_v31 = vld [vmem:[%s14764_s30 + $0x28] sm:$0xff]  ;;  %v182_v34 = vld [vmem:[%s14764_s30 + $0x38] sm:$0xff]  ;;  %v183_v41 = vld [vmem:[%s14764_s30 + $0x40] sm:$0xff] }
  0x34   :  { %v185_v44 = vld [vmem:[%s14764_s30 + $0x50] sm:$0xff]  ;;  %v184_v46 = vld [vmem:[%s14764_s30 + $0x48] sm:$0xff]  ;;  %v186_v50 = vld [vmem:[%s14764_s30 + $0x58] sm:$0xff] }
  0x35   :  { %v187_v57 = vld [vmem:[%s14764_s30 + $0x60] sm:$0xff]  ;;  %v189_v60 = vld [vmem:[%s14764_s30 + $0x70] sm:$0xff]  ;;  %v188_v62 = vld [vmem:[%s14764_s30 + $0x68] sm:$0xff] }
  0x36   :  { %v190_v2 = vld [vmem:[%s14764_s30 + $0x78] sm:$0xff] }
  0xec   :  { %v8139_v13 = vpop.f32.mrb[0].mxu0 }
  0xed   :  { %v10206_v15 = vadd.f32 %v8139_v13, %v177_v11  ;;  %v308_v16 = vpop.f32.mrb[1].mxu0 }
  0xee   :  { %v10211_v18 = vadd.f32 %v308_v16, %v175_v12  ;;  %v8140_v19 = vpop.f32.mrb[2].mxu0 }
  0xef   :  { %v10213_v20 = vadd.f32 %v8140_v19, %v178_v14  ;;  %v311_v21 = vpop.f32.mrb[3].mxu0  ;;  %v380_v22 = vsel %vm373_vm1, %v10206_v15, 0.0 }
  0xf0   :  { %v10217_v23 = vadd.f32 %v311_v21, %v176_v17  ;;  %381 = vadd.xlane.f32.xlu1 %v380_v22  ;;  %v374_v24 = vsel %vm373_vm1, %v10211_v18, 0.0 }
  0xf1   :  { %375 = vadd.xlane.f32.xlu0 %v374_v24  ;;  %v383_v25 = vsel %vm373_vm1, %v10213_v20, 0.0 }
  0xf2   :  { %v377_v28 = vsel %vm373_vm1, %v10217_v23, 0.0 }
  0xf4   :  { %384 = vadd.xlane.f32.xlu1 %v383_v25  ;;  %v8143_v27 = vpop.f32.mrb[4].mxu0 }
  0xf5   :  { %v324_v30 = vpop.f32.mrb[5].mxu0  ;;  %378 = vadd.xlane.f32.xlu0 %v377_v28  ;;  %v10239_v36 = vadd.f32 %v8143_v27, %v181_v29 }
  0xf6   :  { %v10234_v32 = vadd.f32 %v324_v30, %v179_v26  ;;  %v8144_v33 = vpop.f32.mrb[6].mxu0 }
  0xf7   :  { %v327_v35 = vpop.f32.mrb[7].mxu0  ;;  %v10245_v39 = vadd.f32 %v8144_v33, %v182_v34  ;;  %v392_v43 = vsel %vm373_vm1, %v10239_v36, 0.0 }
  0xf8   :  { %v10241_v37 = vadd.f32 %v327_v35, %v180_v31  ;;  %v386_v38 = vsel %vm373_vm1, %v10234_v32, 0.0 }
  0xf9   :  { %387 = vadd.xlane.f32.xlu0 %v386_v38  ;;  %v395_v49 = vsel %vm373_vm1, %v10245_v39, 0.0 }
  0xfa   :  { %v389_v40 = vsel %vm373_vm1, %v10241_v37, 0.0 }
  0xfb   :  { %390 = vadd.xlane.f32.xlu1 %v389_v40 }
  0xfc   :  { %v8147_v42 = vpop.f32.mrb[8].mxu0 }
  0xfd   :  { %v340_v45 = vpop.f32.mrb[9].mxu0  ;;  %393 = vadd.xlane.f32.xlu0 %v392_v43  ;;  %v10267_v52 = vadd.f32 %v8147_v42, %v185_v44 }
  0xfe   :  { %v10260_v47 = vadd.f32 %v340_v45, %v183_v41  ;;  %v8148_v48 = vpop.f32.mrb[10].mxu0 }
  0xff   :  { %v343_v51 = vpop.f32.mrb[11].mxu0  ;;  %396 = vadd.xlane.f32.xlu1 %v395_v49  ;;  %v10273_v55 = vadd.f32 %v8148_v48, %v186_v50  ;;  %v404_v59 = vsel %vm373_vm1, %v10267_v52, 0.0 }
 0x100   :  { %v10269_v53 = vadd.f32 %v343_v51, %v184_v46  ;;  %v398_v54 = vsel %vm373_vm1, %v10260_v47, 0.0 }
 0x101   :  { %399 = vadd.xlane.f32.xlu0 %v398_v54  ;;  %v407_v1 = vsel %vm373_vm1, %v10273_v55, 0.0 }
 0x102   :  { %v401_v56 = vsel %vm373_vm1, %v10269_v53, 0.0 }
 0x103   :  { %402 = vadd.xlane.f32.xlu1 %v401_v56 }
 0x104   :  { %v8151_v58 = vpop.f32.mrb[12].mxu0 }
 0x105   :  { %v356_v61 = vpop.f32.mrb[13].mxu0  ;;  %405 = vadd.xlane.f32.xlu0 %v404_v59  ;;  %v10295_v4 = vadd.f32 %v8151_v58, %v189_v60 }
 0x106   :  { %v10288_v63 = vadd.f32 %v356_v61, %v187_v57  ;;  %v8152_v0 = vpop.f32.mrb[14].mxu0 }
 0x107   :  { %v359_v3 = vpop.f32.mrb[15].mxu0  ;;  %408 = vadd.xlane.f32.xlu1 %v407_v1  ;;  %v10301_v7 = vadd.f32 %v8152_v0, %v190_v2  ;;  %v416_v9 = vsel %vm373_vm1, %v10295_v4, 0.0 }
 0x108   :  { %v10297_v5 = vadd.f32 %v359_v3, %v188_v62  ;;  %v410_v6 = vsel %vm373_vm1, %v10288_v63, 0.0 }
 0x109   :  { %411 = vadd.xlane.f32.xlu0 %v410_v6  ;;  %v419_v10 = vsel %vm373_vm1, %v10301_v7, 0.0 }
 0x10a   :  { %v413_v8 = vsel %vm373_vm1, %v10297_v5, 0.0 }
 0x10b   :  { %414 = vadd.xlane.f32.xlu1 %v413_v8 }
 0x10d   :  { %417 = vadd.xlane.f32.xlu0 %v416_v9 }
 0x10f   :  { %420 = vadd.xlane.f32.xlu1 %v419_v10 }
 0x17d   :  { %v382_v11 = vpop.xlane.xlu1 %381 }
 0x17e   :  { %v425_v12 = vmul.f32 0.03125, %v382_v11  ;;  %v376_v13 = vpop.xlane.xlu0 %375 }
 0x17f   :  { %v423_v14 = vmul.f32 0.03125, %v376_v13 }
 0x180   :  { %v10310_v16 = vsub.f32 %v10206_v15, %v425_v12 }
 0x181   :  { %v10313_v17 = vsub.f32 %v10211_v18, %v423_v14  ;;  %v385_v19 = vpop.xlane.xlu1 %384 }
 0x182   :  { %v426_v21 = vmul.f32 0.03125, %v385_v19  ;;  %v379_v22 = vpop.xlane.xlu0 %378  ;;  %v457_v15 = vmul.f32 %v10310_v16, %v10310_v16 }
 0x183   :  { %v424_v24 = vmul.f32 0.03125, %v379_v22  ;;  %v455_v25 = vmul.f32 %v10313_v17, %v10313_v17 }
 0x184   :  { %v10318_v26 = vsub.f32 %v10213_v20, %v426_v21  ;;  %v477_v34 = vsel %vm373_vm1, %v457_v15, 0.0 }
 0x185   :  { %v10321_v27 = vsub.f32 %v10217_v23, %v424_v24  ;;  %v471_v28 = vsel %vm373_vm1, %v455_v25, 0.0 }
 0x186   :  { %472 = vadd.xlane.f32.xlu0 %v471_v28  ;;  %v388_v18 = vpop.xlane.xlu0 %387  ;;  %v458_v33 = vmul.f32 %v10318_v26, %v10318_v26 }
 0x187   :  { %v427_v29 = vmul.f32 0.03125, %v388_v18  ;;  %v456_v30 = vmul.f32 %v10321_v27, %v10321_v27 }
 0x188   :  { %v391_v31 = vpop.xlane.xlu1 %390  ;;  %v480_v44 = vsel %vm373_vm1, %v458_v33, 0.0 }
 0x189   :  { %v10331_v20 = vsub.f32 %v10234_v32, %v427_v29  ;;  %v428_v23 = vmul.f32 0.03125, %v391_v31  ;;  %v474_v35 = vsel %vm373_vm1, %v456_v30, 0.0 }
 0x18a   :  { %478 = vadd.xlane.f32.xlu0 %v477_v34  ;;  %475 = vadd.xlane.f32.xlu1 %v474_v35  ;;  %v394_v38 = vpop.xlane.xlu0 %393 }
 0x18b   :  { %v10336_v40 = vsub.f32 %v10241_v37, %v428_v23  ;;  %v429_v41 = vmul.f32 0.03125, %v394_v38  ;;  %v459_v42 = vmul.f32 %v10331_v20, %v10331_v20 }
 0x18c   :  { %v397_v43 = vpop.xlane.xlu1 %396 }
 0x18d   :  { %v10342_v32 = vsub.f32 %v10239_v36, %v429_v41  ;;  %v430_v45 = vmul.f32 0.03125, %v397_v43  ;;  %v483_v46 = vsel %vm373_vm1, %v459_v42, 0.0  ;;  %v460_v48 = vmul.f32 %v10336_v40, %v10336_v40 }
 0x18e   :  { %481 = vadd.xlane.f32.xlu1 %v480_v44  ;;  %484 = vadd.xlane.f32.xlu0 %v483_v46  ;;  %v400_v37 = vpop.xlane.xlu0 %399 }
 0x18f   :  { %v10348_v49 = vsub.f32 %v10245_v39, %v430_v45  ;;  %v431_v50 = vmul.f32 0.03125, %v400_v37  ;;  %v461_v51 = vmul.f32 %v10342_v32, %v10342_v32  ;;  %v486_v36 = vsel %vm373_vm1, %v460_v48, 0.0 }
 0x190   :  { %v403_v54 = vpop.xlane.xlu1 %402 }
 0x191   :  { %v10354_v56 = vsub.f32 %v10260_v47, %v431_v50  ;;  %v432_v57 = vmul.f32 0.03125, %v403_v54  ;;  %v489_v58 = vsel %vm373_vm1, %v461_v51, 0.0  ;;  %v462_v59 = vmul.f32 %v10348_v49, %v10348_v49 }
 0x192   :  { %487 = vadd.xlane.f32.xlu1 %v486_v36  ;;  %490 = vadd.xlane.f32.xlu0 %v489_v58  ;;  %v406_v39 = vpop.xlane.xlu0 %405 }
 0x193   :  { %v10360_v60 = vsub.f32 %v10269_v53, %v432_v57  ;;  %v433_v61 = vmul.f32 0.03125, %v406_v39  ;;  %v463_v62 = vmul.f32 %v10354_v56, %v10354_v56  ;;  %v492_v47 = vsel %vm373_vm1, %v462_v59, 0.0 }
 0x194   :  { %v409_v0 = vpop.xlane.xlu1 %408 }
 0x195   :  { %v10366_v1 = vsub.f32 %v10267_v52, %v433_v61  ;;  %v434_v2 = vmul.f32 0.03125, %v409_v0  ;;  %v495_v3 = vsel %vm373_vm1, %v463_v62, 0.0  ;;  %v464_v6 = vmul.f32 %v10360_v60, %v10360_v60  ;;  %v10408_v0 = vld [vmem:[%s14765_s22] ss:$0 sm:$0xff]  ;;  %s10038_s22 = smov 96  }
 0x196   :  { %493 = vadd.xlane.f32.xlu1 %v492_v47  ;;  %496 = vadd.xlane.f32.xlu0 %v495_v3  ;;  %v412_v53 = vpop.xlane.xlu0 %411 }
 0x197   :  { %v10372_v8 = vsub.f32 %v10273_v55, %v434_v2  ;;  %v435_v9 = vmul.f32 0.03125, %v412_v53  ;;  %v465_v10 = vmul.f32 %v10366_v1, %v10366_v1  ;;  %v498_v52 = vsel %vm373_vm1, %v464_v6, 0.0 }
 0x198   :  { %v415_v11 = vpop.xlane.xlu1 %414 }
 0x199   :  { %v10378_v12 = vsub.f32 %v10288_v63, %v435_v9  ;;  %v436_v13 = vmul.f32 0.03125, %v415_v11  ;;  %v501_v14 = vsel %vm373_vm1, %v465_v10, 0.0  ;;  %v466_v19 = vmul.f32 %v10372_v8, %v10372_v8  ;;  %v10414_v9 = vld [vmem:[%s14766_s24] ss:$0 sm:$0xff]  ;;  %s10041_s24 = smov 64  }
 0x19a   :  { %499 = vadd.xlane.f32.xlu1 %v498_v52  ;;  %502 = vadd.xlane.f32.xlu0 %v501_v14  ;;  %v418_v55 = vpop.xlane.xlu0 %417 }
 0x19b   :  { %v10384_v21 = vsub.f32 %v10297_v5, %v436_v13  ;;  %v437_v22 = vmul.f32 0.03125, %v418_v55  ;;  %v467_v24 = vmul.f32 %v10378_v12, %v10378_v12  ;;  %v504_v63 = vsel %vm373_vm1, %v466_v19, 0.0 }
 0x19c   :  { %v421_v25 = vpop.xlane.xlu1 %420 }
 0x19d   :  { %v10390_v28 = vsub.f32 %v10295_v4, %v437_v22  ;;  %v438_v15 = vmul.f32 0.03125, %v421_v25  ;;  %v507_v18 = vsel %vm373_vm1, %v467_v24, 0.0  ;;  %v468_v29 = vmul.f32 %v10384_v21, %v10384_v21 }
 0x19e   :  { %505 = vadd.xlane.f32.xlu1 %v504_v63  ;;  %508 = vadd.xlane.f32.xlu0 %v507_v18 }
 0x19f   :  { %v10396_v5 = vsub.f32 %v10301_v7, %v438_v15  ;;  %v469_v30 = vmul.f32 %v10390_v28, %v10390_v28  ;;  %v510_v31 = vsel %vm373_vm1, %v468_v29, 0.0 }
 0x1a1   :  { %v513_v33 = vsel %vm373_vm1, %v469_v30, 0.0  ;;  %v470_v4 = vmul.f32 %v10396_v5, %v10396_v5 }
 0x1a2   :  { %511 = vadd.xlane.f32.xlu1 %v510_v31  ;;  %514 = vadd.xlane.f32.xlu0 %v513_v33 }
 0x1a3   :  { %v516_v23 = vsel %vm373_vm1, %v470_v4, 0.0 }
 0x1a6   :  { %517 = vadd.xlane.f32.xlu1 %v516_v23 }
 0x213   :  { %v473_v34 = vpop.xlane.xlu0 %472 }
 0x214   :  { %v519_v35 = vmul.f32 0.03125, %v473_v34 }
 0x216   :  { %v535_v38 = vadd.f32 1e-05, %v519_v35 }
 0x217   :  { %v476_v7 = vpop.xlane.xlu1 %475  ;;  %v479_v41 = vpop.xlane.xlu0 %478 }
 0x218   :  { %9275 = vrsqrt.f32 %v535_v38  ;;  %v520_v42 = vmul.f32 0.03125, %v476_v7  ;;  %v521_v43 = vmul.f32 0.03125, %v479_v41 }
 0x21a   :  { %v536_v44 = vadd.f32 1e-05, %v520_v42  ;;  %v537_v45 = vadd.f32 1e-05, %v521_v43 }
 0x21b   :  { %v482_v46 = vpop.xlane.xlu1 %481  ;;  %v485_v48 = vpop.xlane.xlu0 %484 }
 0x21c   :  { %9277 = vrsqrt.f32 %v536_v44  ;;  %v522_v37 = vmul.f32 0.03125, %v482_v46  ;;  %v523_v50 = vmul.f32 0.03125, %v485_v48 }
 0x21d   :  { %9279 = vrsqrt.f32 %v537_v45 }
 0x21e   :  { %v538_v51 = vadd.f32 1e-05, %v522_v37  ;;  %v539_v54 = vadd.f32 1e-05, %v523_v50 }
 0x21f   :  { %v488_v36 = vpop.xlane.xlu1 %487  ;;  %v491_v57 = vpop.xlane.xlu0 %490 }
 0x220   :  { %9281 = vrsqrt.f32 %v538_v51  ;;  %v524_v58 = vmul.f32 0.03125, %v488_v36  ;;  %v525_v59 = vmul.f32 0.03125, %v491_v57 }
 0x221   :  { %9283 = vrsqrt.f32 %v539_v54 }
 0x222   :  { %v9276_v39 = vpop.eup %9275  ;;  %v540_v61 = vadd.f32 1e-05, %v524_v58  ;;  %v541_v62 = vadd.f32 1e-05, %v525_v59 }
 0x223   :  { %v494_v47 = vpop.xlane.xlu1 %493  ;;  %v497_v2 = vpop.xlane.xlu0 %496  ;;  %v567_v3 = vmul.f32 %v9276_v39, %v10313_v17 }
 0x224   :  { %9285 = vrsqrt.f32 %v540_v61  ;;  %v526_v6 = vmul.f32 0.03125, %v494_v47  ;;  %v527_v53 = vmul.f32 0.03125, %v497_v2 }
 0x225   :  { %9287 = vrsqrt.f32 %v541_v62  ;;  %v589_v10 = vmul.f32 %v10408_v0, %v567_v3 }
 0x226   :  { %v9278_v11 = vpop.eup %9277  ;;  %v542_v52 = vadd.f32 1e-05, %v526_v6  ;;  %v543_v13 = vadd.f32 1e-05, %v527_v53 }
 0x227   :  { %v9280_v14 = vpop.eup %9279  ;;  %v500_v19 = vpop.xlane.xlu1 %499  ;;  %v10418_v22 = vadd.f32 %v10414_v9, %v589_v10  ;;  %v568_v17 = vmul.f32 %v9278_v11, %v10321_v27 }
 0x228   :  { %v503_v55 = vpop.xlane.xlu0 %502  ;;  %9289 = vrsqrt.f32 %v542_v52  ;;  %v528_v24 = vmul.f32 0.03125, %v500_v19  ;;  %v569_v63 = vmul.f32 %v9280_v14, %v10310_v16 }
 0x229   :  { %14767 = vst [vmem:[#allocation5_spill] sm:$0xff] %v10418_v22  ;;  %v529_v25 = vmul.f32 0.03125, %v503_v55  ;;  %9291 = vrsqrt.f32 %v543_v13  ;;  %v629_v15 = vsel %vm373_vm1, %v10418_v22, 0.0  ;;  %v590_v18 = vmul.f32 %v10408_v0, %v568_v17 }
 0x22a   :  { %v9282_v29 = vpop.eup %9281  ;;  %v544_v30 = vadd.f32 1e-05, %v528_v24  ;;  %630 = vadd.xlane.f32.xlu0 %v629_v15  ;;  %v591_v33 = vmul.f32 %v10408_v0, %v569_v63 }
 0x22b   :  { %v545_v31 = vadd.f32 1e-05, %v529_v25  ;;  %v9284_v4 = vpop.eup %9283  ;;  %v506_v23 = vpop.xlane.xlu1 %505  ;;  %v10427_v34 = vadd.f32 %v10414_v9, %v590_v18  ;;  %v570_v16 = vmul.f32 %v9282_v29, %v10318_v26 }
 0x22c   :  { %v509_v27 = vpop.xlane.xlu0 %508  ;;  %9293 = vrsqrt.f32 %v544_v30  ;;  %v530_v35 = vmul.f32 0.03125, %v506_v23  ;;  %v10431_v7 = vadd.f32 %v10414_v9, %v591_v33  ;;  %v571_v43 = vmul.f32 %v9284_v4, %v10331_v20 }
 0x22d   :  { %14768 = vst [vmem:[#allocation6_spill] sm:$0xff] %v10427_v34  ;;  %v531_v38 = vmul.f32 0.03125, %v509_v27  ;;  %9295 = vrsqrt.f32 %v545_v31  ;;  %v632_v41 = vsel %vm373_vm1, %v10427_v34, 0.0  ;;  %v592_v42 = vmul.f32 %v10408_v0, %v570_v16 }
 0x22e   :  { %14769 = vst [vmem:[#allocation7_spill] sm:$0xff] %v10431_v7  ;;  %v9286_v44 = vpop.eup %9285  ;;  %v546_v45 = vadd.f32 1e-05, %v530_v35  ;;  %633 = vadd.xlane.f32.xlu1 %v632_v41  ;;  %v635_v26 = vsel %vm373_vm1, %v10431_v7, 0.0  ;;  %v593_v54 = vmul.f32 %v10408_v0, %v571_v43 }
 0x22f   :  { %v547_v46 = vadd.f32 1e-05, %v531_v38  ;;  %v9288_v48 = vpop.eup %9287  ;;  %636 = vadd.xlane.f32.xlu0 %v635_v26  ;;  %v512_v37 = vpop.xlane.xlu1 %511  ;;  %v10440_v51 = vadd.f32 %v10414_v9, %v592_v42  ;;  %v572_v36 = vmul.f32 %v9286_v44, %v10336_v40 }
 0x230   :  { %v515_v50 = vpop.xlane.xlu0 %514  ;;  %9297 = vrsqrt.f32 %v546_v45  ;;  %v532_v20 = vmul.f32 0.03125, %v512_v37  ;;  %v573_v58 = vmul.f32 %v9288_v48, %v10342_v32  ;;  %v10448_v39 = vadd.f32 %v10414_v9, %v593_v54 }
 0x231   :  { %14770 = vst [vmem:[#allocation8_spill] sm:$0xff] %v10440_v51  ;;  %v533_v57 = vmul.f32 0.03125, %v515_v50  ;;  %9299 = vrsqrt.f32 %v547_v46  ;;  %v638_v59 = vsel %vm373_vm1, %v10440_v51, 0.0  ;;  %v594_v61 = vmul.f32 %v10408_v0, %v572_v36 }
 0x232   :  { %14771 = vst [vmem:[#allocation9_spill] sm:$0xff] %v10448_v39  ;;  %v9290_v62 = vpop.eup %9289  ;;  %v548_v47 = vadd.f32 1e-05, %v532_v20  ;;  %639 = vadd.xlane.f32.xlu1 %v638_v59  ;;  %v595_v40 = vmul.f32 %v10408_v0, %v573_v58  ;;  %v641_v6 = vsel %vm373_vm1, %v10448_v39, 0.0 }
 0x233   :  { %v549_v2 = vadd.f32 1e-05, %v533_v57  ;;  %v9292_v3 = vpop.eup %9291  ;;  %v518_v32 = vpop.xlane.xlu1 %517  ;;  %v10455_v53 = vadd.f32 %v10414_v9, %v594_v61  ;;  %v574_v10 = vmul.f32 %v9290_v62, %v10348_v49  ;;  %642 = vadd.xlane.f32.xlu0 %v641_v6 }
 0x234   :  { %9301 = vrsqrt.f32 %v548_v47  ;;  %v534_v11 = vmul.f32 0.03125, %v518_v32  ;;  %v10459_v52 = vadd.f32 %v10414_v9, %v595_v40  ;;  %v575_v13 = vmul.f32 %v9292_v3, %v10354_v56 }
 0x235   :  { %14772 = vst [vmem:[#allocation10_spill] sm:$0xff] %v10455_v53  ;;  %9303 = vrsqrt.f32 %v549_v2  ;;  %v644_v14 = vsel %vm373_vm1, %v10455_v53, 0.0  ;;  %v596_v19 = vmul.f32 %v10408_v0, %v574_v10 }
 0x236   :  { %14773 = vst [vmem:[#allocation11_spill] sm:$0xff] %v10459_v52  ;;  %v9294_v55 = vpop.eup %9293  ;;  %v550_v17 = vadd.f32 1e-05, %v534_v11  ;;  %645 = vadd.xlane.f32.xlu1 %v644_v14  ;;  %v647_v49 = vsel %vm373_vm1, %v10459_v52, 0.0  ;;  %v597_v24 = vmul.f32 %v10408_v0, %v575_v13 }
 0x237   :  { %v9296_v25 = vpop.eup %9295  ;;  %v10469_v63 = vadd.f32 %v10414_v9, %v596_v19  ;;  %v576_v56 = vmul.f32 %v9294_v55, %v10360_v60  ;;  %648 = vadd.xlane.f32.xlu0 %v647_v49 }
 0x238   :  { %9305 = vrsqrt.f32 %v550_v17  ;;  %v10473_v15 = vadd.f32 %v10414_v9, %v597_v24  ;;  %v577_v18 = vmul.f32 %v9296_v25, %v10366_v1 }
 0x239   :  { %14774 = vst [vmem:[#allocation12_spill] sm:$0xff] %v10469_v63  ;;  %v650_v29 = vsel %vm373_vm1, %v10469_v63, 0.0  ;;  %v598_v30 = vmul.f32 %v10408_v0, %v576_v56 }
 0x23a   :  { %14775 = vst [vmem:[#allocation13_spill] sm:$0xff] %v10473_v15  ;;  %v9298_v31 = vpop.eup %9297  ;;  %651 = vadd.xlane.f32.xlu1 %v650_v29  ;;  %v653_v33 = vsel %vm373_vm1, %v10473_v15, 0.0  ;;  %v599_v4 = vmul.f32 %v10408_v0, %v577_v18 }
 0x23b   :  { %v9300_v60 = vpop.eup %9299  ;;  %v10483_v23 = vadd.f32 %v10414_v9, %v598_v30  ;;  %v578_v27 = vmul.f32 %v9298_v31, %v10372_v8  ;;  %654 = vadd.xlane.f32.xlu0 %v653_v33 }
 0x23c   :  { %v10487_v1 = vadd.f32 %v10414_v9, %v599_v4  ;;  %v579_v16 = vmul.f32 %v9300_v60, %v10378_v12 }
 0x23d   :  { %14776 = vst [vmem:[#allocation14_spill] sm:$0xff] %v10483_v23  ;;  %v656_v35 = vsel %vm373_vm1, %v10483_v23, 0.0  ;;  %v600_v38 = vmul.f32 %v10408_v0, %v578_v27 }
 0x23e   :  { %14777 = vst [vmem:[#allocation15_spill] sm:$0xff] %v10487_v1  ;;  %v9302_v41 = vpop.eup %9301  ;;  %657 = vadd.xlane.f32.xlu1 %v656_v35  ;;  %v659_v42 = vsel %vm373_vm1, %v10487_v1, 0.0  ;;  %v601_v43 = vmul.f32 %v10408_v0, %v579_v16 }
 0x23f   :  { %v9304_v44 = vpop.eup %9303  ;;  %v10497_v8 = vadd.f32 %v10414_v9, %v600_v38  ;;  %v580_v45 = vmul.f32 %v9302_v41, %v10384_v21  ;;  %660 = vadd.xlane.f32.xlu0 %v659_v42 }
 0x240   :  { %v10501_v12 = vadd.f32 %v10414_v9, %v601_v43  ;;  %v581_v46 = vmul.f32 %v9304_v44, %v10390_v28 }
 0x241   :  { %14778 = vst [vmem:[#allocation16_spill] sm:$0xff] %v10497_v8  ;;  %v662_v26 = vsel %vm373_vm1, %v10497_v8, 0.0  ;;  %v602_v48 = vmul.f32 %v10408_v0, %v580_v45 }
 0x242   :  { %14779 = vst [vmem:[#allocation17_spill] sm:$0xff] %v10501_v12  ;;  %v9306_v37 = vpop.eup %9305  ;;  %663 = vadd.xlane.f32.xlu1 %v662_v26  ;;  %v665_v50 = vsel %vm373_vm1, %v10501_v12, 0.0  ;;  %v603_v54 = vmul.f32 %v10408_v0, %v581_v46 }
 0x243   :  { %v10511_v21 = vadd.f32 %v10414_v9, %v602_v48  ;;  %v582_v36 = vmul.f32 %v9306_v37, %v10396_v5  ;;  %666 = vadd.xlane.f32.xlu0 %v665_v50 }
 0x244   :  { %v10515_v28 = vadd.f32 %v10414_v9, %v603_v54 }
 0x245   :  { %14780 = vst [vmem:[#allocation18_spill] sm:$0xff] %v10511_v21  ;;  %v668_v20 = vsel %vm373_vm1, %v10511_v21, 0.0  ;;  %v604_v57 = vmul.f32 %v10408_v0, %v582_v36 }
 0x246   :  { %14781 = vst [vmem:[#allocation19_spill] sm:$0xff] %v10515_v28  ;;  %669 = vadd.xlane.f32.xlu1 %v668_v20  ;;  %v671_v58 = vsel %vm373_vm1, %v10515_v28, 0.0 }
 0x247   :  { %v10523_v59 = vadd.f32 %v10414_v9, %v604_v57  ;;  %672 = vadd.xlane.f32.xlu0 %v671_v58 }
 0x249   :  { %14782 = vst [vmem:[#allocation20_spill] sm:$0xff] %v10523_v59  ;;  %v674_v5 = vsel %vm373_vm1, %v10523_v59, 0.0 }
 0x24a   :  { %675 = vadd.xlane.f32.xlu1 %v674_v5 }
 0x2b7   :  { %v631_v61 = vpop.xlane.xlu0 %630 }
 0x2b8   :  { %v677_v62 = vmul.f32 0.03125, %v631_v61 }
 0x2ba   :  { %v10528_v47 = vsub.f32 %v10418_v22, %v677_v62 }
 0x2bb   :  { %v634_v2 = vpop.xlane.xlu1 %633 }
 0x2bc   :  { %v678_v40 = vmul.f32 0.03125, %v634_v2  ;;  %v637_v0 = vpop.xlane.xlu0 %636  ;;  %v709_v3 = vmul.f32 %v10528_v47, %v10528_v47 }
 0x2bd   :  { %v679_v6 = vmul.f32 0.03125, %v637_v0 }
 0x2be   :  { %v10533_v9 = vsub.f32 %v10427_v34, %v678_v40  ;;  %v725_v32 = vsel %vm373_vm1, %v709_v3, 0.0 }
 0x2bf   :  { %v10537_v10 = vsub.f32 %v10431_v7, %v679_v6  ;;  %v640_v11 = vpop.xlane.xlu1 %639  ;;  %726 = vadd.xlane.f32.xlu0 %v725_v32 }
 0x2c0   :  { %v680_v13 = vmul.f32 0.03125, %v640_v11  ;;  %v710_v14 = vmul.f32 %v10533_v9, %v10533_v9  ;;  %v643_v19 = vpop.xlane.xlu0 %642 }
 0x2c1   :  { %v711_v55 = vmul.f32 %v10537_v10, %v10537_v10  ;;  %v681_v49 = vmul.f32 0.03125, %v643_v19 }
 0x2c2   :  { %v10544_v17 = vsub.f32 %v10440_v51, %v680_v13  ;;  %v728_v24 = vsel %vm373_vm1, %v710_v14, 0.0 }
 0x2c3   :  { %729 = vadd.xlane.f32.xlu1 %v728_v24  ;;  %v646_v25 = vpop.xlane.xlu1 %645  ;;  %v731_v56 = vsel %vm373_vm1, %v711_v55, 0.0  ;;  %v10549_v18 = vsub.f32 %v10448_v39, %v681_v49 }
 0x2c4   :  { %v682_v29 = vmul.f32 0.03125, %v646_v25  ;;  %732 = vadd.xlane.f32.xlu0 %v731_v56  ;;  %v712_v30 = vmul.f32 %v10544_v17, %v10544_v17  ;;  %v649_v31 = vpop.xlane.xlu0 %648 }
 0x2c5   :  { %v683_v4 = vmul.f32 0.03125, %v649_v31  ;;  %v713_v27 = vmul.f32 %v10549_v18, %v10549_v18 }
 0x2c6   :  { %v10554_v33 = vsub.f32 %v10455_v53, %v682_v29  ;;  %v734_v60 = vsel %vm373_vm1, %v712_v30, 0.0 }
 0x2c7   :  { %735 = vadd.xlane.f32.xlu1 %v734_v60  ;;  %v652_v16 = vpop.xlane.xlu1 %651  ;;  %v10560_v35 = vsub.f32 %v10459_v52, %v683_v4  ;;  %v737_v41 = vsel %vm373_vm1, %v713_v27, 0.0 }
 0x2c8   :  { %v684_v38 = vmul.f32 0.03125, %v652_v16  ;;  %v714_v42 = vmul.f32 %v10554_v33, %v10554_v33  ;;  %738 = vadd.xlane.f32.xlu0 %v737_v41  ;;  %v655_v43 = vpop.xlane.xlu0 %654 }
 0x2c9   :  { %v685_v45 = vmul.f32 0.03125, %v655_v43  ;;  %v715_v26 = vmul.f32 %v10560_v35, %v10560_v35 }
 0x2ca   :  { %v10566_v44 = vsub.f32 %v10469_v63, %v684_v38  ;;  %v740_v46 = vsel %vm373_vm1, %v714_v42, 0.0 }
 0x2cb   :  { %741 = vadd.xlane.f32.xlu1 %v740_v46  ;;  %v658_v48 = vpop.xlane.xlu1 %657  ;;  %v10572_v37 = vsub.f32 %v10473_v15, %v685_v45  ;;  %v743_v54 = vsel %vm373_vm1, %v715_v26, 0.0 }
 0x2cc   :  { %v686_v50 = vmul.f32 0.03125, %v658_v48  ;;  %v716_v36 = vmul.f32 %v10566_v44, %v10566_v44  ;;  %744 = vadd.xlane.f32.xlu0 %v743_v54  ;;  %v661_v20 = vpop.xlane.xlu0 %660  ;;  %v9246_v54 = vld [vmem:[%s14577_s5 + $0x8] sm:$0xff]  }
 0x2cd   :  { %v687_v58 = vmul.f32 0.03125, %v661_v20  ;;  %v717_v61 = vmul.f32 %v10572_v37, %v10572_v37 }
 0x2ce   :  { %v10578_v57 = vsub.f32 %v10483_v23, %v686_v50  ;;  %v746_v5 = vsel %vm373_vm1, %v716_v36, 0.0  ;;  %v9245_v50 = vld [vmem:[%s14577_s5] sm:$0xff]  }
 0x2cf   :  { %747 = vadd.xlane.f32.xlu1 %v746_v5  ;;  %v664_v62 = vpop.xlane.xlu1 %663  ;;  %v10584_v2 = vsub.f32 %v10487_v1, %v687_v58  ;;  %v749_v0 = vsel %vm373_vm1, %v717_v61, 0.0  ;;  %8153 = vmatprep.subr.bf16.mxu1 %v9245_v50 }
 0x2d0   :  { %v688_v40 = vmul.f32 0.03125, %v664_v62  ;;  %v718_v3 = vmul.f32 %v10578_v57, %v10578_v57  ;;  %750 = vadd.xlane.f32.xlu0 %v749_v0  ;;  %v667_v6 = vpop.xlane.xlu0 %666  ;;  %8154 = vmatpush3.bf16.msra.mxu1 %v9245_v50 }
 0x2d1   :  { %v689_v11 = vmul.f32 0.03125, %v667_v6  ;;  %v719_v14 = vmul.f32 %v10584_v2, %v10584_v2  ;;  %8155 = vmatprep.subr.bf16.mxu1 %v9246_v54 }
 0x2d2   :  { %v10590_v32 = vsub.f32 %v10497_v8, %v688_v40  ;;  %v752_v13 = vsel %vm373_vm1, %v718_v3, 0.0 }
 0x2d3   :  { %753 = vadd.xlane.f32.xlu1 %v752_v13  ;;  %v670_v19 = vpop.xlane.xlu1 %669  ;;  %v10596_v55 = vsub.f32 %v10501_v12, %v689_v11  ;;  %v755_v24 = vsel %vm373_vm1, %v719_v14, 0.0 }
 0x2d4   :  { %v690_v49 = vmul.f32 0.03125, %v670_v19  ;;  %v720_v25 = vmul.f32 %v10590_v32, %v10590_v32  ;;  %756 = vadd.xlane.f32.xlu0 %v755_v24  ;;  %v673_v56 = vpop.xlane.xlu0 %672  ;;  %8156 = vmatpush3.bf16.msra.mxu1 %v9246_v54 }
 0x2d5   :  { %v691_v30 = vmul.f32 0.03125, %v673_v56  ;;  %v721_v4 = vmul.f32 %v10596_v55, %v10596_v55 }
 0x2d6   :  { %v10602_v29 = vsub.f32 %v10511_v21, %v690_v49  ;;  %v758_v31 = vsel %vm373_vm1, %v720_v25, 0.0 }
 0x2d7   :  { %759 = vadd.xlane.f32.xlu1 %v758_v31  ;;  %v676_v60 = vpop.xlane.xlu1 %675  ;;  %v10608_v27 = vsub.f32 %v10515_v28, %v691_v30  ;;  %v761_v38 = vsel %vm373_vm1, %v721_v4, 0.0 }
 0x2d8   :  { %v692_v16 = vmul.f32 0.03125, %v676_v60  ;;  %v722_v41 = vmul.f32 %v10602_v29, %v10602_v29  ;;  %762 = vadd.xlane.f32.xlu0 %v761_v38 }
 0x2d9   :  { %v723_v45 = vmul.f32 %v10608_v27, %v10608_v27 }
 0x2da   :  { %v10614_v42 = vsub.f32 %v10523_v59, %v692_v16  ;;  %v764_v43 = vsel %vm373_vm1, %v722_v41, 0.0 }
 0x2db   :  { %765 = vadd.xlane.f32.xlu1 %v764_v43  ;;  %v767_v46 = vsel %vm373_vm1, %v723_v45, 0.0  ;;  %v10633_v43 = vld [vmem:[%s14581_s9] ss:$0 sm:$0xff] }
 0x2dc   :  { %v724_v26 = vmul.f32 %v10614_v42, %v10614_v42  ;;  %768 = vadd.xlane.f32.xlu0 %v767_v46 }
 0x2de   :  { %v770_v48 = vsel %vm373_vm1, %v724_v26, 0.0 }
 0x2df   :  { %771 = vadd.xlane.f32.xlu1 %v770_v48 }
 0x34c   :  { %v727_v36 = vpop.xlane.xlu0 %726 }
 0x34d   :  { %v773_v20 = vmul.f32 0.03125, %v727_v36 }
 0x34f   :  { %v789_v58 = vadd.f32 1e-05, %v773_v20 }
 0x350   :  { %v730_v5 = vpop.xlane.xlu1 %729 }
 0x351   :  { %9307 = vrsqrt.f32 %v789_v58  ;;  %v774_v61 = vmul.f32 0.03125, %v730_v5  ;;  %v733_v62 = vpop.xlane.xlu0 %732  ;;  %v10640_v5 = vld [vmem:[%s14582_s10] ss:$0 sm:$0xff] }
 0x352   :  { %v775_v40 = vmul.f32 0.03125, %v733_v62 }
 0x353   :  { %v790_v0 = vadd.f32 1e-05, %v774_v61 }
 0x354   :  { %v791_v3 = vadd.f32 1e-05, %v775_v40  ;;  %v736_v6 = vpop.xlane.xlu1 %735 }
 0x355   :  { %9309 = vrsqrt.f32 %v790_v0  ;;  %v776_v11 = vmul.f32 0.03125, %v736_v6  ;;  %v739_v13 = vpop.xlane.xlu0 %738 }
 0x356   :  { %9311 = vrsqrt.f32 %v791_v3  ;;  %v777_v19 = vmul.f32 0.03125, %v739_v13 }
 0x357   :  { %v792_v14 = vadd.f32 1e-05, %v776_v11 }
 0x358   :  { %v742_v49 = vpop.xlane.xlu1 %741  ;;  %v793_v24 = vadd.f32 1e-05, %v777_v19 }
 0x359   :  { %9313 = vrsqrt.f32 %v792_v14  ;;  %v778_v25 = vmul.f32 0.03125, %v742_v49  ;;  %v745_v56 = vpop.xlane.xlu0 %744 }
 0x35a   :  { %9315 = vrsqrt.f32 %v793_v24  ;;  %v779_v4 = vmul.f32 0.03125, %v745_v56 }
 0x35b   :  { %v9308_v30 = vpop.eup %9307  ;;  %v794_v31 = vadd.f32 1e-05, %v778_v25 }
 0x35c   :  { %v748_v60 = vpop.xlane.xlu1 %747  ;;  %v821_v16 = vmul.f32 %v9308_v30, %v10528_v47  ;;  %v795_v38 = vadd.f32 1e-05, %v779_v4 }
 0x35d   :  { %9317 = vrsqrt.f32 %v794_v31  ;;  %v780_v41 = vmul.f32 0.03125, %v748_v60  ;;  %v751_v45 = vpop.xlane.xlu0 %750 }
 0x35e   :  { %9319 = vrsqrt.f32 %v795_v38  ;;  %v781_v48 = vmul.f32 0.03125, %v751_v45  ;;  %v843_v20 = vmul.f32 %v10633_v43, %v821_v16 }
 0x35f   :  { %v9310_v46 = vpop.eup %9309  ;;  %v796_v26 = vadd.f32 1e-05, %v780_v41 }
 0x360   :  { %v9312_v50 = vpop.eup %9311  ;;  %v754_v54 = vpop.xlane.xlu1 %753  ;;  %v822_v36 = vmul.f32 %v9310_v46, %v10533_v9  ;;  %v797_v47 = vadd.f32 1e-05, %v781_v48  ;;  %v865_v11 = vadd.f32 %v10640_v5, %v843_v20 }
 0x361   :  { %9321 = vrsqrt.f32 %v796_v26  ;;  %v782_v58 = vmul.f32 0.03125, %v754_v54  ;;  %v823_v61 = vmul.f32 %v9312_v50, %v10537_v10  ;;  %v757_v62 = vpop.xlane.xlu0 %756 }
 0x362   :  { %v844_v40 = vmul.f32 %v10633_v43, %v822_v36  ;;  %9323 = vrsqrt.f32 %v797_v47  ;;  %v783_v6 = vmul.f32 0.03125, %v757_v62 }
 0x363   :  { %v9314_v0 = vpop.eup %9313  ;;  %v798_v3 = vadd.f32 1e-05, %v782_v58  ;;  %v845_v19 = vmul.f32 %v10633_v43, %v823_v61 }
 0x364   :  { %v760_v9 = vpop.xlane.xlu1 %759  ;;  %v866_v13 = vadd.f32 %v10640_v5, %v844_v40  ;;  %v824_v14 = vmul.f32 %v9314_v0, %v10544_v17  ;;  %v9316_v49 = vpop.eup %9315  ;;  %v799_v24 = vadd.f32 1e-05, %v783_v6 }
 0x365   :  { %9325 = vrsqrt.f32 %v798_v3  ;;  %v784_v10 = vmul.f32 0.03125, %v760_v9  ;;  %v763_v25 = vpop.xlane.xlu0 %762  ;;  %v825_v31 = vmul.f32 %v9316_v49, %v10549_v18  ;;  %v867_v17 = vadd.f32 %v10640_v5, %v845_v19 }
 0x366   :  { %v881_v56 = vpack.c.bf16 %v866_v13, %v865_v11  ;;  %v846_v30 = vmul.f32 %v10633_v43, %v824_v14  ;;  %9327 = vrsqrt.f32 %v799_v24  ;;  %v785_v16 = vmul.f32 0.03125, %v763_v25 }
 0x367   :  { %v9318_v4 = vpop.eup %9317  ;;  %v800_v60 = vadd.f32 1e-05, %v784_v10  ;;  %v847_v46 = vmul.f32 %v10633_v43, %v825_v31 }
 0x368   :  { %v766_v38 = vpop.xlane.xlu1 %765  ;;  %8157 = vmatprep.mubr.msk.bf16.mxu1 %vm373_vm1, %v881_v56  ;;  %v868_v41 = vadd.f32 %v10640_v5, %v846_v30  ;;  %v826_v45 = vmul.f32 %v9318_v4, %v10554_v33  ;;  %v9320_v26 = vpop.eup %9319  ;;  %v801_v48 = vadd.f32 1e-05, %v785_v16 }
 0x369   :  { %9329 = vrsqrt.f32 %v800_v60  ;;  %v786_v50 = vmul.f32 0.03125, %v766_v38  ;;  %v769_v18 = vpop.xlane.xlu0 %768  ;;  %v827_v20 = vmul.f32 %v9320_v26, %v10560_v35  ;;  %v869_v33 = vadd.f32 %v10640_v5, %v847_v46 }
 0x36a   :  { %v882_v54 = vpack.c.bf16 %v868_v41, %v867_v17  ;;  %v848_v36 = vmul.f32 %v10633_v43, %v826_v45  ;;  %9331 = vrsqrt.f32 %v801_v48  ;;  %v787_v61 = vmul.f32 0.03125, %v769_v18 }
 0x36b   :  { %v9322_v47 = vpop.eup %9321  ;;  %v802_v58 = vadd.f32 1e-05, %v786_v50  ;;  %v849_v3 = vmul.f32 %v10633_v43, %v827_v20 }
 0x36c   :  { %v772_v62 = vpop.xlane.xlu1 %771  ;;  %8158 = vmatmul.mubr.msk.bf16.vlgmr.msra.gmra.mrb[0].mxu1 %vm373_vm1, %v882_v54  ;;  %v870_v40 = vadd.f32 %v10640_v5, %v848_v36  ;;  %v828_v0 = vmul.f32 %v9322_v47, %v10566_v44  ;;  %v9324_v6 = vpop.eup %9323  ;;  %v803_v9 = vadd.f32 1e-05, %v787_v61 }
 0x36d   :  { %9333 = vrsqrt.f32 %v802_v58  ;;  %v788_v11 = vmul.f32 0.03125, %v772_v62  ;;  %v829_v14 = vmul.f32 %v9324_v6, %v10572_v37  ;;  %v871_v24 = vadd.f32 %v10640_v5, %v849_v3  ;;  %v7556_v6 = vld [vmem:[%s14578_s6] ss:$0 sm:$0xff] }
 0x36e   :  { %v883_v35 = vpack.c.bf16 %v870_v40, %v869_v33  ;;  %v850_v13 = vmul.f32 %v10633_v43, %v828_v0  ;;  %9335 = vrsqrt.f32 %v803_v9 }
 0x36f   :  { %v9326_v19 = vpop.eup %9325  ;;  %v804_v49 = vadd.f32 1e-05, %v788_v11  ;;  %v851_v25 = vmul.f32 %v10633_v43, %v829_v14 }
 0x370   :  { %8161 = vmatprep.mubr.msk.bf16.mxu1 %vm373_vm1, %v883_v35  ;;  %v872_v44 = vadd.f32 %v10640_v5, %v850_v13  ;;  %v830_v10 = vmul.f32 %v9326_v19, %v10578_v57  ;;  %v9328_v56 = vpop.eup %9327 }
 0x371   :  { %9337 = vrsqrt.f32 %v804_v49  ;;  %v831_v37 = vmul.f32 %v9328_v56, %v10584_v2  ;;  %v873_v60 = vadd.f32 %v10640_v5, %v851_v25 }
 0x372   :  { %v884_v30 = vpack.c.bf16 %v872_v44, %v871_v24  ;;  %v852_v31 = vmul.f32 %v10633_v43, %v830_v10 }
 0x373   :  { %v9330_v4 = vpop.eup %9329  ;;  %v853_v57 = vmul.f32 %v10633_v43, %v831_v37 }
 0x374   :  { %8162 = vmatmul.mubr.msk.bf16.gmra.mrb[4].mxu1 %vm373_vm1, %v884_v30  ;;  %v874_v16 = vadd.f32 %v10640_v5, %v852_v31  ;;  %v832_v38 = vmul.f32 %v9330_v4, %v10590_v32  ;;  %v9332_v17 = vpop.eup %9331 }
 0x375   :  { %v833_v46 = vmul.f32 %v9332_v17, %v10596_v55  ;;  %v875_v2 = vadd.f32 %v10640_v5, %v853_v57 }
 0x376   :  { %v885_v41 = vpack.c.bf16 %v874_v16, %v873_v60  ;;  %v854_v45 = vmul.f32 %v10633_v43, %v832_v38 }
 0x377   :  { %v9334_v26 = vpop.eup %9333  ;;  %v855_v18 = vmul.f32 %v10633_v43, %v833_v46 }
 0x378   :  { %8165 = vmatprep.mubr.msk.bf16.mxu1 %vm373_vm1, %v885_v41  ;;  %v876_v48 = vadd.f32 %v10640_v5, %v854_v45  ;;  %v834_v50 = vmul.f32 %v9334_v26, %v10602_v29  ;;  %v9336_v32 = vpop.eup %9335 }
 0x379   :  { %v835_v20 = vmul.f32 %v9336_v32, %v10608_v27  ;;  %v877_v55 = vadd.f32 %v10640_v5, %v855_v18 }
 0x37a   :  { %v886_v54 = vpack.c.bf16 %v876_v48, %v875_v2  ;;  %v856_v36 = vmul.f32 %v10633_v43, %v834_v50 }
 0x37b   :  { %v9338_v47 = vpop.eup %9337  ;;  %v857_v62 = vmul.f32 %v10633_v43, %v835_v20 }
 0x37c   :  { %8166 = vmatmul.mubr.msk.bf16.gmra.mrb[8].mxu1 %vm373_vm1, %v886_v54  ;;  %v878_v58 = vadd.f32 %v10640_v5, %v856_v36  ;;  %v836_v61 = vmul.f32 %v9338_v47, %v10614_v42 }
 0x37d   :  { %v879_v40 = vadd.f32 %v10640_v5, %v857_v62 }
 0x37e   :  { %v887_v29 = vpack.c.bf16 %v878_v58, %v877_v55  ;;  %v858_v33 = vmul.f32 %v10633_v43, %v836_v61 }
 0x380   :  { %8169 = vmatprep.mubr.msk.bf16.mxu1 %vm373_vm1, %v887_v29  ;;  %v880_v27 = vadd.f32 %v10640_v5, %v858_v33 }
 0x382   :  { %v888_v0 = vpack.c.bf16 %v880_v27, %v879_v40 }
 0x384   :  { %8170 = vmatmul.mubr.msk.bf16.gmra.mrb[12].mxu1 %vm373_vm1, %v888_v0 }
 0x43f   :  { %v8159_v3 = vpop.f32.mrb[0].mxu1 }
 0x440   :  { %v970_v42 = vpop.f32.mrb[1].mxu1  ;;  %v979_v11 = vadd.f32 %v8159_v3, %v7556_v6 }
 0x441   :  { %v8160_v9 = vpop.f32.mrb[2].mxu1  ;;  %v971_v43 = vadd.f32 %v7556_v6, %v970_v42 }
 0x442   :  { %v982_v35 = vadd.f32 %v8160_v9, %v7556_v6  ;;  %v973_v13 = vpop.f32.mrb[3].mxu1 }
 0x443   :  { %v974_v14 = vadd.f32 %v7556_v6, %v973_v13 }
 0x444   :  { %v10698_v19 = vpack.c.bf16 %v982_v35, %v979_v11 }
 0x445   :  { %v10700_v49 = vpack.c.bf16 %v974_v14, %v971_v43 }
 0x446   :  { %1051 = vrot.lane.b32.xlu1 %v10698_v19, %s10037_s1 }
 0x447   :  { %1049 = vrot.lane.b32.xlu0 %v10700_v49, %s10037_s1  ;;  %v8163_v5 = vpop.f32.mrb[4].mxu1  ;;  %8189 = vmatprep.mubr.msk.bf16.mxu1 %vm1113_vm2, %v10700_v49 }
 0x448   :  { %v986_v24 = vpop.f32.mrb[5].mxu1  ;;  %v995_v10 = vadd.f32 %v8163_v5, %v7556_v6 }
 0x449   :  { %v8164_v44 = vpop.f32.mrb[6].mxu1  ;;  %v987_v30 = vadd.f32 %v7556_v6, %v986_v24 }
 0x44a   :  { %v998_v25 = vadd.f32 %v8164_v44, %v7556_v6  ;;  %v989_v56 = vpop.f32.mrb[7].mxu1 }
 0x44b   :  { %v990_v31 = vadd.f32 %v7556_v6, %v989_v56 }
 0x44c   :  { %v10708_v37 = vpack.c.bf16 %v998_v25, %v995_v10 }
 0x44d   :  { %v10710_v4 = vpack.c.bf16 %v990_v31, %v987_v30 }
 0x44f   :  { %1053 = vrot.lane.b32.xlu1 %v10710_v4, %s10037_s1  ;;  %v8167_v60 = vpop.f32.mrb[8].mxu1 }
 0x450   :  { %v1002_v16 = vpop.f32.mrb[9].mxu1  ;;  %v1011_v57 = vadd.f32 %v8167_v60, %v7556_v6 }
 0x451   :  { %v8168_v38 = vpop.f32.mrb[10].mxu1  ;;  %v1003_v45 = vadd.f32 %v7556_v6, %v1002_v16 }
 0x452   :  { %v1014_v17 = vadd.f32 %v8168_v38, %v7556_v6  ;;  %v1005_v41 = vpop.f32.mrb[11].mxu1 }
 0x453   :  { %v1006_v46 = vadd.f32 %v7556_v6, %v1005_v41  ;;  %1055 = vrot.lane.b32.xlu1 %v10708_v37, %s10037_s1 }
 0x454   :  { %v10716_v26 = vpack.c.bf16 %v1014_v17, %v1011_v57 }
 0x455   :  { %v10718_v2 = vpack.c.bf16 %v1006_v46, %v1003_v45 }
 0x457   :  { %1059 = vrot.lane.b32.xlu1 %v10716_v26, %s10037_s1  ;;  %1057 = vrot.lane.b32.xlu0 %v10718_v2, %s10037_s1  ;;  %v8171_v48 = vpop.f32.mrb[12].mxu1 }
 0x458   :  { %v1018_v50 = vpop.f32.mrb[13].mxu1  ;;  %v1027_v32 = vadd.f32 %v8171_v48, %v7556_v6 }
 0x459   :  { %v8172_v18 = vpop.f32.mrb[14].mxu1  ;;  %v1019_v20 = vadd.f32 %v7556_v6, %v1018_v50 }
 0x45a   :  { %v1030_v54 = vadd.f32 %v8172_v18, %v7556_v6  ;;  %v1021_v36 = vpop.f32.mrb[15].mxu1 }
 0x45b   :  { %v1022_v47 = vadd.f32 %v7556_v6, %v1021_v36 }
 0x45c   :  { %v10724_v55 = vpack.c.bf16 %v1030_v54, %v1027_v32 }
 0x45d   :  { %v10726_v58 = vpack.c.bf16 %v1022_v47, %v1019_v20 }
 0x45e   :  { %1063 = vrot.lane.b32.xlu1 %v10724_v55, %s10037_s1 }
 0x45f   :  { %1061 = vrot.lane.b32.xlu0 %v10726_v58, %s10037_s1 }
 0x463   :  { %1097 = vrot.lane.b32.xlu0 %v10700_v49, %s10038_s22 }
 0x467   :  { %1065 = vrot.lane.b32.xlu0 %v10700_v49, %s10039_s26 }
 0x46b   :  { %1099 = vrot.lane.b32.xlu0 %v10698_v19, %s10038_s22 }
 0x46f   :  { %1067 = vrot.lane.b32.xlu0 %v10698_v19, %s10039_s26 }
 0x473   :  { %1101 = vrot.lane.b32.xlu0 %v10710_v4, %s10038_s22 }
 0x477   :  { %1069 = vrot.lane.b32.xlu0 %v10710_v4, %s10039_s26 }
 0x47b   :  { %1103 = vrot.lane.b32.xlu0 %v10708_v37, %s10038_s22 }
 0x47f   :  { %1071 = vrot.lane.b32.xlu0 %v10708_v37, %s10039_s26 }
 0x483   :  { %1105 = vrot.lane.b32.xlu0 %v10718_v2, %s10038_s22 }
 0x487   :  { %1073 = vrot.lane.b32.xlu0 %v10718_v2, %s10039_s26 }
 0x48b   :  { %1107 = vrot.lane.b32.xlu0 %v10716_v26, %s10038_s22 }
 0x48f   :  { %1075 = vrot.lane.b32.xlu0 %v10716_v26, %s10039_s26 }
 0x493   :  { %1109 = vrot.lane.b32.xlu0 %v10726_v58, %s10038_s22 }
 0x497   :  { %1077 = vrot.lane.b32.xlu0 %v10726_v58, %s10039_s26 }
 0x49b   :  { %1111 = vrot.lane.b32.xlu0 %v10724_v55, %s10038_s22 }
 0x49f   :  { %1079 = vrot.lane.b32.xlu0 %v10724_v55, %s10039_s26 }
 0x4b8   :  { %v10772_v62 = vpop.permute.xlu1 %1051 }
 0x4b9   :  { %v10764_v61 = vpop.permute.xlu0 %1049 }
 0x4ba   :  { %8221 = vmatprep.mubr.msk.bf16.mxu0 %vm1113_vm2, %v10764_v61  ;;  %1259 = vrot.lane.b32.xlu1 %v10764_v61, %s10038_s22 }
 0x4be   :  { %1081 = vrot.lane.b32.xlu1 %v10700_v49, %s10040_s23 }
 0x4c1   :  { %v10778_v29 = vpop.permute.xlu1 %1053 }
 0x4c2   :  { %1261 = vrot.lane.b32.xlu1 %v10772_v62, %s10038_s22 }
 0x4c5   :  { %v10786_v40 = vpop.permute.xlu1 %1055 }
 0x4c6   :  { %1083 = vrot.lane.b32.xlu1 %v10698_v19, %s10040_s23 }
 0x4c9   :  { %v10782_v33 = vpop.permute.xlu0 %1057  ;;  %v10806_v11 = vpop.permute.xlu1 %1059 }
 0x4ca   :  { %1263 = vrot.lane.b32.xlu1 %v10778_v29, %s10038_s22 }
 0x4ce   :  { %1085 = vrot.lane.b32.xlu1 %v10710_v4, %s10040_s23 }
 0x4d0   :  { %v10828_v44 = vpop.permute.xlu1 %1063 }
 0x4d1   :  { %v10788_v27 = vpop.permute.xlu0 %1061 }
 0x4d2   :  { %1265 = vrot.lane.b32.xlu1 %v10786_v40, %s10038_s22 }
 0x4d5   :  { %v1098_v0 = vpop.permute.xlu0 %1097 }
 0x4d6   :  { %1087 = vrot.lane.b32.xlu1 %v10708_v37, %s10040_s23  ;;  %8916 = vmatprep.subr.msk.bf16.mxu1 %vm1113_vm2, %v1098_v0  ;;  %v1139_v3 = vsel %vm1113_vm2, %v1098_v0, 0 }
 0x4d7   :  { %8174 = vmatpush3.bf16.xpose.msra.mxu1 %v1139_v3 }
 0x4d9   :  { %v10796_v6 = vpop.permute.xlu0 %1065 }
 0x4da   :  { %1267 = vrot.lane.b32.xlu1 %v10782_v33, %s10038_s22  ;;  %1420 = vrot.lane.b32.xlu0 %v10796_v6, %s10038_s22 }
 0x4dd   :  { %v1100_v42 = vpop.permute.xlu0 %1099 }
 0x4de   :  { %1089 = vrot.lane.b32.xlu1 %v10718_v2, %s10040_s23  ;;  %8917 = vmatprep.subr.msk.bf16.mxu1 %vm1113_vm2, %v1100_v42  ;;  %v1142_v9 = vsel %vm1113_vm2, %v1100_v42, 0 }
 0x4df   :  { %8176 = vmatpush3.bf16.xpose.msra.mxu1 %v1142_v9 }
 0x4e1   :  { %v10808_v35 = vpop.permute.xlu0 %1067 }
 0x4e2   :  { %1269 = vrot.lane.b32.xlu1 %v10806_v11, %s10038_s22  ;;  %1422 = vrot.lane.b32.xlu0 %v10808_v35, %s10038_s22 }
 0x4e5   :  { %v1102_v13 = vpop.permute.xlu0 %1101 }
 0x4e6   :  { %1091 = vrot.lane.b32.xlu1 %v10716_v26, %s10040_s23  ;;  %8918 = vmatprep.subr.msk.bf16.mxu1 %vm1113_vm2, %v1102_v13  ;;  %v1145_v43 = vsel %vm1113_vm2, %v1102_v13, 0 }
 0x4e7   :  { %8178 = vmatpush3.bf16.xpose.msra.mxu1 %v1145_v43 }
 0x4e9   :  { %v10818_v14 = vpop.permute.xlu0 %1069 }
 0x4ea   :  { %1271 = vrot.lane.b32.xlu1 %v10788_v27, %s10038_s22  ;;  %1424 = vrot.lane.b32.xlu0 %v10818_v14, %s10038_s22 }
 0x4ed   :  { %v1104_v5 = vpop.permute.xlu0 %1103 }
 0x4ee   :  { %1093 = vrot.lane.b32.xlu1 %v10726_v58, %s10040_s23  ;;  %8919 = vmatprep.subr.msk.bf16.mxu1 %vm1113_vm2, %v1104_v5  ;;  %v1148_v24 = vsel %vm1113_vm2, %v1104_v5, 0 }
 0x4ef   :  { %8180 = vmatpush3.bf16.xpose.msra.mxu1 %v1148_v24 }
 0x4f1   :  { %v10830_v10 = vpop.permute.xlu0 %1071 }
 0x4f2   :  { %1273 = vrot.lane.b32.xlu1 %v10828_v44, %s10038_s22  ;;  %1426 = vrot.lane.b32.xlu0 %v10830_v10, %s10038_s22 }
 0x4f5   :  { %v1106_v25 = vpop.permute.xlu0 %1105 }
 0x4f6   :  { %1095 = vrot.lane.b32.xlu1 %v10724_v55, %s10040_s23  ;;  %8920 = vmatprep.subr.msk.bf16.mxu1 %vm1113_vm2, %v1106_v25  ;;  %v1151_v56 = vsel %vm1113_vm2, %v1106_v25, 0 }
 0x4f7   :  { %8182 = vmatpush3.bf16.xpose.msra.mxu1 %v1151_v56 }
 0x4f9   :  { %v10840_v30 = vpop.permute.xlu0 %1073 }
 0x4fa   :  { %1428 = vrot.lane.b32.xlu0 %v10840_v30, %s10038_s22 }
 0x4fd   :  { %v1108_v31 = vpop.permute.xlu0 %1107 }
 0x4fe   :  { %8921 = vmatprep.subr.msk.bf16.mxu1 %vm1113_vm2, %v1108_v31  ;;  %v1154_v60 = vsel %vm1113_vm2, %v1108_v31, 0 }
 0x4ff   :  { %8184 = vmatpush3.bf16.xpose.msra.mxu1 %v1154_v60 }
 0x501   :  { %v10846_v16 = vpop.permute.xlu0 %1075 }
 0x502   :  { %1430 = vrot.lane.b32.xlu0 %v10846_v16, %s10038_s22 }
 0x505   :  { %v1110_v38 = vpop.permute.xlu0 %1109 }
 0x506   :  { %8922 = vmatprep.subr.msk.bf16.mxu1 %vm1113_vm2, %v1110_v38  ;;  %v1157_v57 = vsel %vm1113_vm2, %v1110_v38, 0 }
 0x507   :  { %8186 = vmatpush3.bf16.xpose.msra.mxu1 %v1157_v57 }
 0x509   :  { %v10852_v17 = vpop.permute.xlu0 %1077 }
 0x50a   :  { %1432 = vrot.lane.b32.xlu0 %v10852_v17, %s10038_s22 }
 0x50d   :  { %v1112_v41 = vpop.permute.xlu0 %1111 }
 0x50e   :  { %8923 = vmatprep.subr.msk.bf16.mxu1 %vm1113_vm2, %v1112_v41  ;;  %v1160_v45 = vsel %vm1113_vm2, %v1112_v41, 0 }
 0x50f   :  { %8188 = vmatpush3.bf16.xpose.msra.mxu1 %v1160_v45 }
 0x511   :  { %v10858_v46 = vpop.permute.xlu0 %1079 }
 0x512   :  { %14783 = vst [vmem:[#allocation21_spill] sm:$0xff] %v10858_v46  ;;  %1434 = vrot.lane.b32.xlu0 %v10858_v46, %s10038_s22 }
 0x516   :  { %8190 = vmatmul.mubr.msk.bf16.vlgmr.msra.gmra.mrb[16].mxu1 %vm1113_vm2, %v10698_v19  ;;  %2350 = vrot.lane.b32.xlu0 %v10700_v49, %s10041_s24 }
 0x517   :  { %8193 = vmatprep.mubr.msk.bf16.mxu1 %vm1113_vm2, %v10710_v4 }
 0x51a   :  { %2352 = vrot.lane.b32.xlu0 %v10698_v19, %s10041_s24 }
 0x51e   :  { %8194 = vmatmul.mubr.msk.bf16.gmra.mrb[20].mxu1 %vm1113_vm2, %v10708_v37  ;;  %2356 = vrot.lane.b32.xlu0 %v10708_v37, %s10041_s24 }
 0x51f   :  { %8197 = vmatprep.mubr.msk.bf16.mxu1 %vm1113_vm2, %v10718_v2 }
 0x522   :  { %2360 = vrot.lane.b32.xlu0 %v10716_v26, %s10041_s24 }
 0x526   :  { %8198 = vmatmul.mubr.msk.bf16.gmra.mrb[24].mxu1 %vm1113_vm2, %v10716_v26  ;;  %2364 = vrot.lane.b32.xlu0 %v10724_v55, %s10041_s24 }
 0x527   :  { %8201 = vmatprep.mubr.msk.bf16.mxu1 %vm1113_vm2, %v10726_v58 }
 0x52a   :  { %2594 = vrot.lane.b32.xlu0 %v10808_v35, %s10041_s24 }
 0x52c   :  { %v1260_v19 = vpop.permute.xlu1 %1259 }
 0x52d   :  { %8924 = vmatprep.subr.msk.bf16.mxu0 %vm1113_vm2, %v1260_v19  ;;  %v1300_v49 = vsel %vm1113_vm2, %v1260_v19, 0 }
 0x52e   :  { %8202 = vmatmul.mubr.msk.bf16.gmra.mrb[28].mxu1 %vm1113_vm2, %v10724_v55  ;;  %8206 = vmatpush3.bf16.xpose.msra.mxu0 %v1300_v49 }
 0x52f   :  { %2598 = vrot.lane.b32.xlu0 %v10830_v10, %s10041_s24  ;;  %8253 = vmatprep.mubr.msk.bf16.mxu1 %vm1113_vm2, %v10796_v6 }
 0x530   :  { %v10894_v37 = vpop.permute.xlu1 %1081 }
 0x531   :  { %1581 = vrot.lane.b32.xlu1 %v10894_v37, %s10038_s22 }
 0x533   :  { %2600 = vrot.lane.b32.xlu0 %v10840_v30, %s10041_s24 }
 0x534   :  { %v1262_v26 = vpop.permute.xlu1 %1261 }
 0x535   :  { %8925 = vmatprep.subr.msk.bf16.mxu0 %vm1113_vm2, %v1262_v26  ;;  %v1303_v48 = vsel %vm1113_vm2, %v1262_v26, 0 }
 0x536   :  { %8208 = vmatpush3.bf16.xpose.msra.mxu0 %v1303_v48 }
 0x537   :  { %2602 = vrot.lane.b32.xlu0 %v10846_v16, %s10041_s24 }
 0x538   :  { %v10904_v50 = vpop.permute.xlu1 %1083 }
 0x539   :  { %1583 = vrot.lane.b32.xlu1 %v10904_v50, %s10038_s22 }
 0x53c   :  { %v1264_v18 = vpop.permute.xlu1 %1263 }
 0x53d   :  { %8926 = vmatprep.subr.msk.bf16.mxu0 %vm1113_vm2, %v1264_v18  ;;  %v1306_v32 = vsel %vm1113_vm2, %v1264_v18, 0 }
 0x53e   :  { %8210 = vmatpush3.bf16.xpose.msra.mxu0 %v1306_v32 }
 0x540   :  { %v10910_v54 = vpop.permute.xlu1 %1085 }
 0x541   :  { %1585 = vrot.lane.b32.xlu1 %v10910_v54, %s10038_s22 }
 0x544   :  { %v1266_v36 = vpop.permute.xlu1 %1265 }
 0x545   :  { %8927 = vmatprep.subr.msk.bf16.mxu0 %vm1113_vm2, %v1266_v36  ;;  %v1309_v20 = vsel %vm1113_vm2, %v1266_v36, 0 }
 0x546   :  { %8212 = vmatpush3.bf16.xpose.msra.mxu0 %v1309_v20 }
 0x548   :  { %v10916_v47 = vpop.permute.xlu1 %1087 }
 0x549   :  { %1587 = vrot.lane.b32.xlu1 %v10916_v47, %s10038_s22 }
 0x54c   :  { %v1268_v55 = vpop.permute.xlu1 %1267  ;;  %v1421_v0 = vpop.permute.xlu0 %1420 }
 0x54d   :  { %8928 = vmatprep.subr.msk.bf16.mxu0 %vm1113_vm2, %v1268_v55  ;;  %8932 = vmatprep.subr.msk.bf16.mxu1 %vm1113_vm2, %v1421_v0  ;;  %v1312_v3 = vsel %vm1113_vm2, %v1268_v55, 0  ;;  %v1461_v42 = vsel %vm1113_vm2, %v1421_v0, 0 }
 0x54e   :  { %8214 = vmatpush3.bf16.xpose.msra.mxu0 %v1312_v3  ;;  %8238 = vmatpush3.bf16.xpose.msra.mxu1 %v1461_v42 }
 0x550   :  { %v10924_v9 = vpop.permute.xlu1 %1089 }
 0x551   :  { %1589 = vrot.lane.b32.xlu1 %v10924_v9, %s10038_s22 }
 0x554   :  { %v1270_v13 = vpop.permute.xlu1 %1269  ;;  %v1423_v43 = vpop.permute.xlu0 %1422 }
 0x555   :  { %8929 = vmatprep.subr.msk.bf16.mxu0 %vm1113_vm2, %v1270_v13  ;;  %8933 = vmatprep.subr.msk.bf16.mxu1 %vm1113_vm2, %v1423_v43  ;;  %v1315_v5 = vsel %vm1113_vm2, %v1270_v13, 0  ;;  %v1464_v24 = vsel %vm1113_vm2, %v1423_v43, 0 }
 0x556   :  { %8216 = vmatpush3.bf16.xpose.msra.mxu0 %v1315_v5  ;;  %8240 = vmatpush3.bf16.xpose.msra.mxu1 %v1464_v24 }
 0x558   :  { %v10932_v25 = vpop.permute.xlu1 %1091 }
 0x559   :  { %1591 = vrot.lane.b32.xlu1 %v10932_v25, %s10038_s22 }
 0x55c   :  { %v1272_v56 = vpop.permute.xlu1 %1271  ;;  %v1425_v31 = vpop.permute.xlu0 %1424 }
 0x55d   :  { %8930 = vmatprep.subr.msk.bf16.mxu0 %vm1113_vm2, %v1272_v56  ;;  %8934 = vmatprep.subr.msk.bf16.mxu1 %vm1113_vm2, %v1425_v31  ;;  %v1318_v60 = vsel %vm1113_vm2, %v1272_v56, 0  ;;  %v1467_v38 = vsel %vm1113_vm2, %v1425_v31, 0 }
 0x55e   :  { %8218 = vmatpush3.bf16.xpose.msra.mxu0 %v1318_v60  ;;  %8242 = vmatpush3.bf16.xpose.msra.mxu1 %v1467_v38 }
 0x560   :  { %v10940_v57 = vpop.permute.xlu1 %1093 }
 0x561   :  { %1593 = vrot.lane.b32.xlu1 %v10940_v57, %s10038_s22 }
 0x564   :  { %v1274_v41 = vpop.permute.xlu1 %1273  ;;  %v1427_v45 = vpop.permute.xlu0 %1426 }
 0x565   :  { %8931 = vmatprep.subr.msk.bf16.mxu0 %vm1113_vm2, %v1274_v41  ;;  %8935 = vmatprep.subr.msk.bf16.mxu1 %vm1113_vm2, %v1427_v45  ;;  %v1321_v19 = vsel %vm1113_vm2, %v1274_v41, 0  ;;  %v1470_v49 = vsel %vm1113_vm2, %v1427_v45, 0 }
 0x566   :  { %8220 = vmatpush3.bf16.xpose.msra.mxu0 %v1321_v19  ;;  %8244 = vmatpush3.bf16.xpose.msra.mxu1 %v1470_v49 }
 0x568   :  { %v10948_v26 = vpop.permute.xlu1 %1095 }
 0x569   :  { %14784 = vst [vmem:[#allocation22_spill] sm:$0xff] %v10948_v26  ;;  %1595 = vrot.lane.b32.xlu1 %v10948_v26, %s10038_s22 }
 0x56c   :  { %v1429_v48 = vpop.permute.xlu0 %1428 }
 0x56d   :  { %8222 = vmatmul.mubr.msk.bf16.vlgmr.msra.gmra.mrb[16].mxu0 %vm1113_vm2, %v10772_v62  ;;  %2471 = vrot.lane.b32.xlu1 %v10764_v61, %s10041_s24  ;;  %v1473_v18 = vsel %vm1113_vm2, %v1429_v48, 0 }
 0x56e   :  { %8936 = vmatprep.subr.msk.bf16.mxu1 %vm1113_vm2, %v1429_v48  ;;  %8225 = vmatprep.mubr.msk.bf16.mxu0 %vm1113_vm2, %v10778_v29 }
 0x56f   :  { %8246 = vmatpush3.bf16.xpose.msra.mxu1 %v1473_v18 }
 0x571   :  { %2473 = vrot.lane.b32.xlu1 %v10772_v62, %s10041_s24 }
 0x574   :  { %v1431_v32 = vpop.permute.xlu0 %1430 }
 0x575   :  { %8226 = vmatmul.mubr.msk.bf16.gmra.mrb[20].mxu0 %vm1113_vm2, %v10786_v40  ;;  %2354 = vrot.lane.b32.xlu1 %v10710_v4, %s10041_s24  ;;  %v1476_v61 = vsel %vm1113_vm2, %v1431_v32, 0 }
 0x576   :  { %8937 = vmatprep.subr.msk.bf16.mxu1 %vm1113_vm2, %v1431_v32  ;;  %8229 = vmatprep.mubr.msk.bf16.mxu0 %vm1113_vm2, %v10782_v33 }
 0x577   :  { %8248 = vmatpush3.bf16.xpose.msra.mxu1 %v1476_v61 }
 0x579   :  { %2475 = vrot.lane.b32.xlu1 %v10778_v29, %s10041_s24 }
 0x57c   :  { %v1433_v36 = vpop.permute.xlu0 %1432 }
 0x57d   :  { %8230 = vmatmul.mubr.msk.bf16.gmra.mrb[24].mxu0 %vm1113_vm2, %v10806_v11  ;;  %2477 = vrot.lane.b32.xlu1 %v10786_v40, %s10041_s24  ;;  %v1479_v4 = vsel %vm1113_vm2, %v1433_v36, 0 }
 0x57e   :  { %8938 = vmatprep.subr.msk.bf16.mxu1 %vm1113_vm2, %v1433_v36  ;;  %8233 = vmatprep.mubr.msk.bf16.mxu0 %vm1113_vm2, %v10788_v27 }
 0x57f   :  { %8250 = vmatpush3.bf16.xpose.msra.mxu1 %v1479_v4 }
 0x581   :  { %2358 = vrot.lane.b32.xlu1 %v10718_v2, %s10041_s24 }
 0x584   :  { %v1435_v62 = vpop.permute.xlu0 %1434 }
 0x585   :  { %8234 = vmatmul.mubr.msk.bf16.gmra.mrb[28].mxu0 %vm1113_vm2, %v10828_v44  ;;  %2479 = vrot.lane.b32.xlu1 %v10782_v33, %s10041_s24  ;;  %v1482_v29 = vsel %vm1113_vm2, %v1435_v62, 0 }
 0x586   :  { %8939 = vmatprep.subr.msk.bf16.mxu1 %vm1113_vm2, %v1435_v62  ;;  %8285 = vmatprep.mubr.msk.bf16.mxu0 %vm1113_vm2, %v10894_v37  ;;  %v10042_v62 = vmov -1e+30  }
 0x587   :  { %8252 = vmatpush3.bf16.xpose.msra.mxu1 %v1482_v29 }
 0x588   :  { %v2351_v40 = vpop.permute.xlu0 %2350 }
 0x589   :  { %2481 = vrot.lane.b32.xlu1 %v10806_v11, %s10041_s24  ;;  %8301 = vmatprep.subr.bf16.mxu1 %v2351_v40 }
 0x58c   :  { %v2353_v2 = vpop.permute.xlu0 %2352 }
 0x58d   :  { %2362 = vrot.lane.b32.xlu1 %v10726_v58, %s10041_s24 }
 0x58e   :  { %8254 = vmatmul.mubr.msk.bf16.vlgmr.msra.gmra.mrb[32].mxu1 %vm1113_vm2, %v10808_v35 }
 0x58f   :  { %8257 = vmatprep.mubr.msk.bf16.mxu1 %vm1113_vm2, %v10818_v14  ;;  %8302 = vmatpush3.bf16.msra.mxu1 %v2351_v40 }
 0x590   :  { %8303 = vmatprep.subr.bf16.mxu1 %v2353_v2 }
 0x591   :  { %2485 = vrot.lane.b32.xlu1 %v10828_v44, %s10041_s24 }
 0x593   :  { %8304 = vmatpush3.bf16.msra.mxu1 %v2353_v2  ;;  %v2357_v2 = vpop.permute.xlu0 %2356 }
 0x595   :  { %2592 = vrot.lane.b32.xlu1 %v10796_v6, %s10041_s24 }
 0x596   :  { %8258 = vmatmul.mubr.msk.bf16.gmra.mrb[36].mxu1 %vm1113_vm2, %v10830_v10 }
 0x597   :  { %8261 = vmatprep.mubr.msk.bf16.mxu1 %vm1113_vm2, %v10840_v30 }
 0x599   :  { %2713 = vrot.lane.b32.xlu1 %v10894_v37, %s10041_s24 }
 0x59d   :  { %2715 = vrot.lane.b32.xlu1 %v10904_v50, %s10041_s24 }
 0x59e   :  { %8262 = vmatmul.mubr.msk.bf16.gmra.mrb[40].mxu1 %vm1113_vm2, %v10846_v16 }
 0x59f   :  { %8265 = vmatprep.mubr.msk.bf16.mxu1 %vm1113_vm2, %v10852_v17 }
 0x5a1   :  { %2596 = vrot.lane.b32.xlu1 %v10818_v14, %s10041_s24 }
 0x5a3   :  { %v1582_v58 = vpop.permute.xlu1 %1581 }
 0x5a4   :  { %8940 = vmatprep.subr.msk.bf16.mxu0 %vm1113_vm2, %v1582_v58  ;;  %v1622_v33 = vsel %vm1113_vm2, %v1582_v58, 0 }
 0x5a5   :  { %8270 = vmatpush3.bf16.xpose.msra.mxu0 %v1622_v33  ;;  %2717 = vrot.lane.b32.xlu1 %v10910_v54, %s10041_s24 }
 0x5a6   :  { %8266 = vmatmul.mubr.msk.bf16.gmra.mrb[44].mxu1 %vm1113_vm2, %v10858_v46 }
 0x5a9   :  { %2719 = vrot.lane.b32.xlu1 %v10916_v47, %s10041_s24 }
 0x5ab   :  { %v1584_v6 = vpop.permute.xlu1 %1583 }
 0x5ac   :  { %8941 = vmatprep.subr.msk.bf16.mxu0 %vm1113_vm2, %v1584_v6  ;;  %v1625_v11 = vsel %vm1113_vm2, %v1584_v6, 0 }
 0x5ad   :  { %8272 = vmatpush3.bf16.xpose.msra.mxu0 %v1625_v11  ;;  %2721 = vrot.lane.b32.xlu1 %v10924_v9, %s10041_s24 }
 0x5b1   :  { %2723 = vrot.lane.b32.xlu1 %v10932_v25, %s10041_s24 }
 0x5b3   :  { %v1586_v35 = vpop.permute.xlu1 %1585 }
 0x5b4   :  { %8942 = vmatprep.subr.msk.bf16.mxu0 %vm1113_vm2, %v1586_v35  ;;  %v1628_v14 = vsel %vm1113_vm2, %v1586_v35, 0 }
 0x5b5   :  { %8274 = vmatpush3.bf16.xpose.msra.mxu0 %v1628_v14  ;;  %2483 = vrot.lane.b32.xlu1 %v10788_v27, %s10041_s24 }
 0x5b9   :  { %2604 = vrot.lane.b32.xlu1 %v10852_v17, %s10041_s24  ;;  %v67_v17 = vlaneseq }
 0x5bb   :  { %v1588_v44 = vpop.permute.xlu1 %1587  ;;  %v11046_v0 = vshrl.u32 %v67_v17, 7  ;;  %v11049_v42 = vand.u32 127, %v67_v17 }
 0x5bc   :  { %8943 = vmatprep.subr.msk.bf16.mxu0 %vm1113_vm2, %v1588_v44  ;;  %v1631_v10 = vsel %vm1113_vm2, %v1588_v44, 0 }
 0x5bd   :  { %8276 = vmatpush3.bf16.xpose.msra.mxu0 %v1631_v10  ;;  %2725 = vrot.lane.b32.xlu1 %v10940_v57, %s10041_s24  ;;  %14785 = vst [vmem:[#allocation23_spill] sm:$0xff] %v11046_v0  ;;  %v70_v3 = vadd.s32 16, %v11046_v0  ;;  %14786 = vst [vmem:[#allocation24_spill] sm:$0xff] %v11049_v42  ;;  %v69_v5 = vadd.s32 8, %v11046_v0  ;;  %v11055_v56 = vshra.s32 %v11049_v42, 5  ;;  %v119_v31 = vand.u32 31, %v11049_v42 }
 0x5be   :  { %v71_v19 = vadd.s32 24, %v11046_v0  ;;  %v86_v49 = vshra.s32 %v11046_v0, 5  ;;  %v75_v18 = vadd.s32 56, %v11046_v0  ;;  %v73_v40 = vadd.s32 40, %v11046_v0 }
 0x5bf   :  { %v88_v24 = vshra.s32 %v70_v3, 5  ;;  %v87_v38 = vshra.s32 %v69_v5, 5  ;;  %vm11063_vm4 = vcmp.lt.s32.totalorder %v119_v31, 17  ;;  %v72_v44 = vadd.s32 32, %v11046_v0 }
 0x5c0   :  { %v89_v61 = vshra.s32 %v71_v19, 5  ;;  %vm11084_vm7 = vcmp.eq.s32.totalorder %v86_v49, %v11055_v56  ;;  %v77_v31 = vadd.s32 72, %v11046_v0 }
 0x5c1   :  { %vm11059_vm3 = vcmp.eq.s32.totalorder %v88_v24, %v11055_v56  ;;  %vm11077_vm6 = vcmp.eq.s32.totalorder %v87_v38, %v11055_v56  ;;  %vm121_vm9 = vmand %vm11084_vm7, %vm11063_vm4 }
 0x5c2   :  { %vm123_vm5 = vmand %vm11059_vm3, %vm11063_vm4  ;;  %vm11102_vm10 = vcmp.eq.s32.totalorder %v89_v61, %v11055_v56  ;;  %v11120_v17 = vsel %vm121_vm9, 0.0, %v10042_v62 }
 0x5c3   :  { %v1590_v30 = vpop.permute.xlu1 %1589  ;;  %v11090_v29 = vsel %vm123_vm5, 0.0, %v10042_v62  ;;  %vm122_vm8 = vmand %vm11077_vm6, %vm11063_vm4  ;;  %14801 = vst [vmem:[#allocation27_spill] sm:$0xff] %v11120_v17 }
 0x5c4   :  { %8944 = vmatprep.subr.msk.bf16.mxu0 %vm1113_vm2, %v1590_v30  ;;  %v1634_v16 = vsel %vm1113_vm2, %v1590_v30, 0  ;;  %14795 = vst [vmem:[#allocation25_spill] sm:$0xff] %v11090_v29  ;;  %v11110_v35 = vsel %vm122_vm8, 0.0, %v10042_v62  ;;  %vm124_vm12 = vmand %vm11102_vm10, %vm11063_vm4 }
 0x5c5   :  { %8278 = vmatpush3.bf16.xpose.msra.mxu0 %v1634_v16  ;;  %14798 = vst [vmem:[#allocation26_spill] sm:$0xff] %v11110_v35 }
 0x5cb   :  { %v1592_v37 = vpop.permute.xlu1 %1591 }
 0x5cc   :  { %8945 = vmatprep.subr.msk.bf16.mxu0 %vm1113_vm2, %v1592_v37  ;;  %v1637_v27 = vsel %vm1113_vm2, %v1592_v37, 0  ;;  %v91_v37 = vshra.s32 %v73_v40, 5 }
 0x5cd   :  { %8280 = vmatpush3.bf16.xpose.msra.mxu0 %v1637_v27  ;;  %v79_v27 = vadd.s32 88, %v11046_v0 }
 0x5ce   :  { %vm11149_vm15 = vcmp.eq.s32.totalorder %v91_v37, %v11055_v56  ;;  %v81_v37 = vadd.s32 104, %v11046_v0 }
 0x5cf   :  { %v97_v24 = vshra.s32 %v79_v27, 5  ;;  %vm126_vm5 = vmand %vm11149_vm15, %vm11063_vm4 }
 0x5d0   :  { %v11207_v33 = vsel %vm126_vm5, 0.0, %v10042_v62 }
 0x5d1   :  { %vm11184_vm6 = vcmp.eq.s32.totalorder %v97_v24, %v11055_v56  ;;  %14813 = vst [vmem:[#allocation31_spill] sm:$0xff] %v11207_v33  ;;  %v80_v24 = vadd.s32 96, %v11046_v0 }
 0x5d2   :  { %vm132_vm9 = vmand %vm11184_vm6, %vm11063_vm4 }
 0x5d3   :  { %v1594_v20 = vpop.permute.xlu1 %1593 }
 0x5d4   :  { %8946 = vmatprep.subr.msk.bf16.mxu0 %vm1113_vm2, %v1594_v20  ;;  %v1640_v55 = vsel %vm1113_vm2, %v1594_v20, 0 }
 0x5d5   :  { %8282 = vmatpush3.bf16.xpose.msra.mxu0 %v1640_v55 }
 0x5db   :  { %v1596_v13 = vpop.permute.xlu1 %1595 }
 0x5dc   :  { %8947 = vmatprep.subr.msk.bf16.mxu0 %vm1113_vm2, %v1596_v13  ;;  %v1643_v43 = vsel %vm1113_vm2, %v1596_v13, 0  ;;  %v78_v13 = vadd.s32 80, %v11046_v0 }
 0x5dd   :  { %8284 = vmatpush3.bf16.xpose.msra.mxu0 %v1643_v43 }
 0x5df   :  { %v2472_v60 = vpop.permute.xlu1 %2471 }
 0x5e0   :  { %8333 = vmatprep.subr.bf16.mxu0 %v2472_v60 }
 0x5e3   :  { %v2474_v48 = vpop.permute.xlu1 %2473 }
 0x5e4   :  { %8286 = vmatmul.mubr.msk.bf16.vlgmr.msra.gmra.mrb[32].mxu0 %vm1113_vm2, %v10904_v50  ;;  %v74_v50 = vadd.s32 48, %v11046_v0 }
 0x5e5   :  { %8289 = vmatprep.mubr.msk.bf16.mxu0 %vm1113_vm2, %v10910_v54  ;;  %8334 = vmatpush3.bf16.msra.mxu0 %v2472_v60  ;;  %v93_v54 = vshra.s32 %v75_v18, 5  ;;  %v11160_v60 = vsel %vm124_vm12, 0.0, %v10042_v62  ;;  %v76_v18 = vadd.s32 64, %v11046_v0 }
 0x5e6   :  { %8335 = vmatprep.subr.bf16.mxu0 %v2474_v48  ;;  %v92_v14 = vshra.s32 %v74_v50, 5  ;;  %14806 = vst [vmem:[#allocation28_spill] sm:$0xff] %v11160_v60 }
 0x5e7   :  { %v2355_v4 = vpop.permute.xlu1 %2354  ;;  %vm11114_vm11 = vcmp.eq.s32.totalorder %v93_v54, %v11055_v56  ;;  %v83_v54 = vadd.s32 120, %v11046_v0 }
 0x5e8   :  { %8305 = vmatprep.subr.bf16.mxu1 %v2355_v4  ;;  %vm11135_vm13 = vcmp.eq.s32.totalorder %v92_v14, %v11055_v56  ;;  %vm128_vm14 = vmand %vm11114_vm11, %vm11063_vm4  ;;  %v94_v14 = vshra.s32 %v76_v18, 5  ;;  %v99_v18 = vshra.s32 %v81_v37, 5 }
 0x5e9   :  { %v8191_v58 = vpop.f32.mrb[16].mxu1  ;;  %8306 = vmatpush3.bf16.msra.mxu1 %v2355_v4  ;;  %8336 = vmatpush3.bf16.msra.mxu0 %v2474_v48  ;;  %vm127_vm0 = vmand %vm11135_vm13, %vm11063_vm4  ;;  %v11168_v41 = vsel %vm128_vm14, 0.0, %v10042_v62  ;;  %v96_v48 = vshra.s32 %v78_v13, 5  ;;  %v95_v4 = vshra.s32 %v77_v31, 5  ;;  %v101_v16 = vshra.s32 %v83_v54, 5 }
 0x5ea   :  { %v11107_v6 = vadd.f32 %v8191_v58, %v11090_v29  ;;  %v1196_v11 = vpop.f32.mrb[17].mxu1  ;;  %8307 = vmatprep.subr.bf16.mxu1 %v2357_v2  ;;  %14807 = vst [vmem:[#allocation29_spill] sm:$0xff] %v11168_v41  ;;  %v11190_v40 = vsel %vm127_vm0, 0.0, %v10042_v62  ;;  %vm11252_vm12 = vcmp.eq.s32.totalorder %v94_v14, %v11055_v56  ;;  %v98_v54 = vshra.s32 %v80_v24, 5 }
 0x5eb   :  { %v2476_v10 = vpop.permute.xlu1 %2475  ;;  %v8192_v30 = vpop.f32.mrb[18].mxu1  ;;  %v11145_v43 = vadd.f32 %v1196_v11, %v11120_v17  ;;  %14812 = vst [vmem:[#allocation30_spill] sm:$0xff] %v11190_v40  ;;  %vm11214_vm8 = vcmp.eq.s32.totalorder %v96_v48, %v11055_v56  ;;  %vm11227_vm10 = vcmp.eq.s32.totalorder %v95_v4, %v11055_v56  ;;  %vm11266_vm14 = vcmp.eq.s32.totalorder %v101_v16, %v11055_v56  ;;  %vm129_vm15 = vmand %vm11252_vm12, %vm11063_vm4 }
 0x5ec   :  { %v1199_v20 = vpop.f32.mrb[19].mxu1  ;;  %8290 = vmatmul.mubr.msk.bf16.gmra.mrb[36].mxu0 %vm1113_vm2, %v10916_v47  ;;  %8337 = vmatprep.subr.bf16.mxu0 %v2476_v10  ;;  %v90_v47 = vshra.s32 %v72_v44, 5  ;;  %v11181_v32 = vadd.f32 %v8192_v30, %v11160_v60  ;;  %v82_v44 = vadd.s32 112, %v11046_v0  ;;  %vm131_vm11 = vmand %vm11214_vm8, %vm11063_vm4  ;;  %vm11305_vm5 = vcmp.eq.s32.totalorder %v99_v18, %v11055_v56 }
 0x5ed   :  { %v11129_v55 = vadd.f32 %v1199_v20, %v11110_v35  ;;  %1746 = vmax.xlane.f32.xlu0 %v11107_v6  ;;  %8293 = vmatprep.mubr.msk.bf16.mxu0 %vm1113_vm2, %v10924_v9  ;;  %vm130_vm13 = vmand %vm11227_vm10, %vm11063_vm4  ;;  %v11310_v14 = vsel %vm129_vm15, 0.0, %v10042_v62  ;;  %vm3059_vm10 = vcmask 195584   ;;  %vm7429_vm12 = vcmask 257024  }
 0x5ee   :  { %8308 = vmatpush3.bf16.msra.mxu1 %v2357_v2  ;;  %8338 = vmatpush3.bf16.msra.mxu0 %v2476_v10  ;;  %vm11171_vm3 = vcmp.eq.s32.totalorder %v90_v47, %v11055_v56  ;;  %v11249_v47 = vsel %vm132_vm9, 0.0, %v10042_v62  ;;  %v100_v9 = vshra.s32 %v82_v44, 5  ;;  %v11288_v50 = vsel %vm130_vm13, 0.0, %v10042_v62  ;;  %14830 = vst [vmem:[#allocation36_spill] sm:$0xff] %v11310_v14  ;;  %vm134_vm8 = vmand %vm11305_vm5, %vm11063_vm4 }
 0x5ef   :  { %v2478_v5 = vpop.permute.xlu1 %2477  ;;  %1744 = vmax.xlane.f32.xlu1 %v11129_v55  ;;  %vm125_vm7 = vmand %vm11171_vm3, %vm11063_vm4  ;;  %14819 = vst [vmem:[#allocation33_spill] sm:$0xff] %v11249_v47  ;;  %v11347_v48 = vsel %vm134_vm8, 0.0, %v10042_v62  ;;  %vm7517_vm13 = vcmask 125952  }
 0x5f0   :  { %8339 = vmatprep.subr.bf16.mxu0 %v2478_v5  ;;  %v11238_v27 = vsel %vm125_vm7, 0.0, %v10042_v62  ;;  %14825 = vst [vmem:[#allocation35_spill] sm:$0xff] %v11288_v50  ;;  %vm11293_vm0 = vcmp.eq.s32.totalorder %v100_v9, %v11055_v56  ;;  %vm136_vm3 = vmand %vm11266_vm14, %vm11063_vm4  ;;  %vm11324_vm7 = vcmp.eq.s32.totalorder %v98_v54, %v11055_v56 }
 0x5f1   :  { %1742 = vmax.xlane.f32.xlu0 %v11145_v43  ;;  %v8195_v38 = vpop.f32.mrb[20].mxu1  ;;  %14818 = vst [vmem:[#allocation32_spill] sm:$0xff] %v11238_v27  ;;  %vm135_vm6 = vmand %vm11293_vm0, %vm11063_vm4  ;;  %v11321_v16 = vsel %vm136_vm3, 0.0, %v10042_v62 }
 0x5f2   :  { %8340 = vmatpush3.bf16.msra.mxu0 %v2478_v5  ;;  %v1212_v49 = vpop.f32.mrb[21].mxu1  ;;  %v11224_v10 = vadd.f32 %v8195_v38, %v11190_v40  ;;  %14831 = vst [vmem:[#allocation37_spill] sm:$0xff] %v11321_v16  ;;  %vm133_vm9 = vmand %vm11324_vm7, %vm11063_vm4  ;;  %vm3042_vm4 = vcmask 130048  }
 0x5f3   :  { %v2359_v61 = vpop.permute.xlu1 %2358  ;;  %v8196_v36 = vpop.f32.mrb[22].mxu1  ;;  %v11263_v31 = vadd.f32 %v1212_v49, %v11238_v27  ;;  %14835 = vst [vmem:[#allocation39_spill] sm:$0xff] %v11347_v48 }
 0x5f4   :  { %v11193_v2 = vadd.f32 %v8196_v36, %v11168_v41  ;;  %v1215_v58 = vpop.f32.mrb[23].mxu1  ;;  %8294 = vmatmul.mubr.msk.bf16.gmra.mrb[40].mxu0 %vm1113_vm2, %v10932_v25  ;;  %8309 = vmatprep.subr.bf16.mxu1 %v2359_v61  ;;  %v2361_v25 = vpop.permute.xlu0 %2360 }
 0x5f5   :  { %1748 = vmax.xlane.f32.xlu0 %v11181_v32  ;;  %8297 = vmatprep.mubr.msk.bf16.mxu0 %vm1113_vm2, %v10940_v57  ;;  %v11241_v20 = vadd.f32 %v1215_v58, %v11207_v33 }
 0x5f6   :  { %8310 = vmatpush3.bf16.msra.mxu1 %v2359_v61  ;;  %1756 = vmax.xlane.f32.xlu1 %v11193_v2  ;;  %v11276_v61 = vsel %vm131_vm11, 0.0, %v10042_v62 }
 0x5f7   :  { %8311 = vmatprep.subr.bf16.mxu1 %v2361_v25  ;;  %v2480_v57 = vpop.permute.xlu1 %2479  ;;  %14824 = vst [vmem:[#allocation34_spill] sm:$0xff] %v11276_v61 }
 0x5f8   :  { %8341 = vmatprep.subr.bf16.mxu0 %v2480_v57 }
 0x5f9   :  { %1754 = vmax.xlane.f32.xlu0 %v11224_v10  ;;  %v8199_v3 = vpop.f32.mrb[24].mxu1  ;;  %8342 = vmatpush3.bf16.msra.mxu0 %v2480_v57  ;;  %v2365_v57 = vpop.permute.xlu0 %2364 }
 0x5fa   :  { %8312 = vmatpush3.bf16.msra.mxu1 %v2361_v25  ;;  %v1228_v5 = vpop.f32.mrb[25].mxu1  ;;  %1752 = vmax.xlane.f32.xlu1 %v11241_v20  ;;  %v11302_v58 = vadd.f32 %v8199_v3, %v11276_v61 }
 0x5fb   :  { %v2482_v38 = vpop.permute.xlu1 %2481  ;;  %v8200_v19 = vpop.f32.mrb[26].mxu1  ;;  %v11334_v13 = vadd.f32 %v1228_v5, %v11310_v14 }
 0x5fc   :  { %v11279_v36 = vadd.f32 %v8200_v19, %v11249_v47  ;;  %v1231_v49 = vpop.f32.mrb[27].mxu1  ;;  %8298 = vmatmul.mubr.msk.bf16.gmra.mrb[44].mxu0 %vm1113_vm2, %v10948_v26  ;;  %8343 = vmatprep.subr.bf16.mxu0 %v2482_v38 }
 0x5fd   :  { %1750 = vmax.xlane.f32.xlu0 %v11263_v31  ;;  %8344 = vmatpush3.bf16.msra.mxu0 %v2482_v38  ;;  %v11313_v44 = vadd.f32 %v1231_v49, %v11288_v50  ;;  %v11337_v38 = vsel %vm135_vm6, 0.0, %v10042_v62  ;;  %v11357_v49 = vsel %vm133_vm9, 0.0, %v10042_v62 }
 0x5fe   :  { %1764 = vmax.xlane.f32.xlu1 %v11279_v36  ;;  %14834 = vst [vmem:[#allocation38_spill] sm:$0xff] %v11337_v38  ;;  %14837 = vst [vmem:[#allocation41_spill] sm:$0xff] %v11357_v49 }
 0x5ff   :  { %v2363_v25 = vpop.permute.xlu1 %2362 }
 0x600   :  { %8313 = vmatprep.subr.bf16.mxu1 %v2363_v25 }
 0x601   :  { %1762 = vmax.xlane.f32.xlu0 %v11302_v58  ;;  %v8203_v30 = vpop.f32.mrb[28].mxu1  ;;  %8314 = vmatpush3.bf16.msra.mxu1 %v2363_v25 }
 0x602   :  { %v1244_v3 = vpop.f32.mrb[29].mxu1  ;;  %8315 = vmatprep.subr.bf16.mxu1 %v2365_v57  ;;  %1760 = vmax.xlane.f32.xlu1 %v11313_v44  ;;  %v11352_v5 = vadd.f32 %v8203_v30, %v11337_v38 }
 0x603   :  { %v2486_v9 = vpop.permute.xlu1 %2485  ;;  %v8204_v24 = vpop.f32.mrb[30].mxu1  ;;  %v11366_v4 = vadd.f32 %v1244_v3, %v11357_v49 }
 0x604   :  { %v11340_v56 = vadd.f32 %v8204_v24, %v11321_v16  ;;  %v1247_v19 = vpop.f32.mrb[31].mxu1 }
 0x605   :  { %1758 = vmax.xlane.f32.xlu0 %v11334_v13  ;;  %8316 = vmatpush3.bf16.msra.mxu1 %v2365_v57  ;;  %v11360_v45 = vadd.f32 %v1247_v19, %v11347_v48 }
 0x606   :  { %1772 = vmax.xlane.f32.xlu1 %v11340_v56 }
 0x607   :  { %v11354_v18 = vpop.permute.xlu1 %2592 }
 0x608   :  { %14836 = vst [vmem:[#allocation40_spill] sm:$0xff] %v11354_v18  ;;  %8365 = vmatprep.subr.bf16.mxu1 %v11354_v18 }
 0x609   :  { %1770 = vmax.xlane.f32.xlu0 %v11352_v5 }
 0x60a   :  { %1768 = vmax.xlane.f32.xlu1 %v11360_v45 }
 0x60b   :  { %v11368_v54 = vpop.permute.xlu1 %2713 }
 0x60c   :  { %14838 = vst [vmem:[#allocation42_spill] sm:$0xff] %v11368_v54 }
 0x60d   :  { %1766 = vmax.xlane.f32.xlu0 %v11366_v4 }
 0x60f   :  { %v11371_v25 = vpop.permute.xlu1 %2715 }
 0x610   :  { %14839 = vst [vmem:[#allocation43_spill] sm:$0xff] %v11371_v25 }
 0x613   :  { %v11373_v62 = vpop.permute.xlu1 %2596 }
 0x614   :  { %14840 = vst [vmem:[#allocation44_spill] sm:$0xff] %v11373_v62 }
 0x617   :  { %v11375_v11 = vpop.permute.xlu1 %2717 }
 0x618   :  { %14841 = vst [vmem:[#allocation45_spill] sm:$0xff] %v11375_v11 }
 0x61b   :  { %v11377_v57 = vpop.permute.xlu1 %2719 }
 0x61c   :  { %14842 = vst [vmem:[#allocation46_spill] sm:$0xff] %v11377_v57 }
 0x61f   :  { %v11379_v30 = vpop.permute.xlu1 %2721 }
 0x620   :  { %14843 = vst [vmem:[#allocation47_spill] sm:$0xff] %v11379_v30  ;;  %v11415_v30 = vpop.permute.xlu0 %2594 }
 0x621   :  { %14845 = vst [vmem:[#allocation49_spill] sm:$0xff] %v11415_v30 }
 0x623   :  { %v11381_v37 = vpop.permute.xlu1 %2723 }
 0x624   :  { %14844 = vst [vmem:[#allocation48_spill] sm:$0xff] %v11381_v37  ;;  %v11429_v26 = vpop.permute.xlu0 %2598 }
 0x625   :  { %14847 = vst [vmem:[#allocation51_spill] sm:$0xff] %v11429_v26 }
 0x627   :  { %v2484_v24 = vpop.permute.xlu1 %2483 }
 0x628   :  { %8345 = vmatprep.subr.bf16.mxu0 %v2484_v24  ;;  %v11443_v18 = vpop.permute.xlu0 %2600 }
 0x629   :  { %8346 = vmatpush3.bf16.msra.mxu0 %v2484_v24  ;;  %14851 = vst [vmem:[#allocation55_spill] sm:$0xff] %v11443_v18 }
 0x62a   :  { %8347 = vmatprep.subr.bf16.mxu0 %v2486_v9 }
 0x62c   :  { %v11459_v18 = vpop.permute.xlu0 %2602 }
 0x62d   :  { %8348 = vmatpush3.bf16.msra.mxu0 %v2486_v9  ;;  %14855 = vst [vmem:[#allocation59_spill] sm:$0xff] %v11459_v18 }
 0x62e   :  { %8397 = vmatprep.subr.bf16.mxu0 %v11368_v54 }
 0x640   :  { %v8223_v3 = vpop.f32.mrb[16].mxu0 }
 0x641   :  { %v11385_v19 = vadd.f32 %v8223_v3, %v11090_v29  ;;  %v1357_v42 = vpop.f32.mrb[17].mxu0 }
 0x642   :  { %v8224_v0 = vpop.f32.mrb[18].mxu0  ;;  %v11412_v37 = vadd.f32 %v1357_v42, %v11120_v17 }
 0x643   :  { %v11388_v59 = vadd.f32 %v8224_v0, %v11160_v60  ;;  %v1360_v21 = vpop.f32.mrb[19].mxu0  ;;  %1778 = vmax.xlane.f32.xlu0 %v11385_v19 }
 0x644   :  { %v11418_v57 = vadd.f32 %v1360_v21, %v11110_v35 }
 0x645   :  { %1780 = vmax.xlane.f32.xlu1 %v11388_v59 }
 0x648   :  { %v8227_v28 = vpop.f32.mrb[20].mxu0 }
 0x649   :  { %v1373_v24 = vpop.f32.mrb[21].mxu0  ;;  %v11432_v21 = vadd.f32 %v8227_v28, %v11190_v40 }
 0x64a   :  { %v8228_v12 = vpop.f32.mrb[22].mxu0 }
 0x64b   :  { %v1376_v9 = vpop.f32.mrb[23].mxu0  ;;  %14848 = vst [vmem:[#allocation52_spill] sm:$0xff] %v11432_v21 }
 0x650   :  { %v8231_v8 = vpop.f32.mrb[24].mxu0 }
 0x651   :  { %v11392_v23 = vpop.f32.mrb[25].mxu0 }
 0x652   :  { %v8232_v1 = vpop.f32.mrb[26].mxu0 }
 0x653   :  { %v11394_v3 = vpop.f32.mrb[27].mxu0 }
 0x658   :  { %v11396_v15 = vpop.f32.mrb[28].mxu0 }
 0x659   :  { %v11398_v63 = vpop.f32.mrb[29].mxu0 }
 0x65a   :  { %v11400_v0 = vpop.f32.mrb[30].mxu0 }
 0x65b   :  { %v11402_v53 = vpop.f32.mrb[31].mxu0 }
 0x661   :  { %v8255_v52 = vpop.f32.mrb[32].mxu1 }
 0x662   :  { %v11405_v39 = vadd.f32 %v8255_v52, %v11090_v29  ;;  %v1518_v51 = vpop.f32.mrb[33].mxu1 }
 0x663   :  { %v8256_v34 = vpop.f32.mrb[34].mxu1  ;;  %v11422_v11 = vadd.f32 %v1518_v51, %v11120_v17  ;;  %v11436_v51 = vadd.f32 %v8228_v12, %v11168_v41  ;;  %v11450_v12 = vadd.f32 %v1373_v24, %v11238_v27 }
 0x664   :  { %v11408_v7 = vadd.f32 %v8256_v34, %v11160_v60  ;;  %v1521_v22 = vpop.f32.mrb[35].mxu1  ;;  %1810 = vmax.xlane.f32.xlu0 %v11405_v39 }
 0x665   :  { %v11426_v42 = vadd.f32 %v1521_v22, %v11110_v35  ;;  %14849 = vst [vmem:[#allocation53_spill] sm:$0xff] %v11436_v51  ;;  %14853 = vst [vmem:[#allocation57_spill] sm:$0xff] %v11450_v12 }
 0x666   :  { %1812 = vmax.xlane.f32.xlu1 %v11408_v7 }
 0x667   :  { %14846 = vst [vmem:[#allocation50_spill] sm:$0xff] %v11426_v42 }
 0x668   :  { %1774 = vmax.xlane.f32.xlu0 %v11412_v37 }
 0x669   :  { %v8259_v52 = vpop.f32.mrb[36].mxu1 }
 0x66a   :  { %v1534_v34 = vpop.f32.mrb[37].mxu1  ;;  %1776 = vmax.xlane.f32.xlu1 %v11418_v57  ;;  %v11440_v62 = vadd.f32 %v8259_v52, %v11190_v40  ;;  %v11456_v52 = vadd.f32 %v1376_v9, %v11207_v33 }
 0x66b   :  { %v8260_v25 = vpop.f32.mrb[38].mxu1 }
 0x66c   :  { %v1537_v54 = vpop.f32.mrb[39].mxu1  ;;  %1806 = vmax.xlane.f32.xlu0 %v11422_v11  ;;  %14850 = vst [vmem:[#allocation54_spill] sm:$0xff] %v11440_v62  ;;  %v11446_v28 = vadd.f32 %v8260_v25, %v11168_v41  ;;  %v11462_v25 = vadd.f32 %v1534_v34, %v11238_v27  ;;  %v11476_v34 = vadd.f32 %v8232_v1, %v11249_v47 }
 0x66e   :  { %1808 = vmax.xlane.f32.xlu1 %v11426_v42  ;;  %14852 = vst [vmem:[#allocation56_spill] sm:$0xff] %v11446_v28  ;;  %14856 = vst [vmem:[#allocation60_spill] sm:$0xff] %v11462_v25 }
 0x670   :  { %1786 = vmax.xlane.f32.xlu0 %v11432_v21  ;;  %v11453_v21 = vpop.permute.xlu1 %2604 }
 0x671   :  { %v8263_v46 = vpop.f32.mrb[40].mxu1  ;;  %14854 = vst [vmem:[#allocation58_spill] sm:$0xff] %v11453_v21  ;;  %v11472_v21 = vadd.f32 %v8231_v8, %v11276_v61  ;;  %v11489_v8 = vadd.f32 %v11392_v23, %v11310_v14 }
 0x672   :  { %v1550_v22 = vpop.f32.mrb[41].mxu1  ;;  %1788 = vmax.xlane.f32.xlu1 %v11436_v51  ;;  %v11480_v18 = vadd.f32 %v8263_v46, %v11276_v61  ;;  %v11494_v46 = vadd.f32 %v11394_v3, %v11288_v50  ;;  %v11508_v3 = vadd.f32 %v11396_v15, %v11337_v38 }
 0x673   :  { %v8264_v30 = vpop.f32.mrb[42].mxu1  ;;  %14858 = vst [vmem:[#allocation62_spill] sm:$0xff] %v11472_v21  ;;  %14861 = vst [vmem:[#allocation65_spill] sm:$0xff] %v11489_v8 }
 0x674   :  { %v1553_v26 = vpop.f32.mrb[43].mxu1  ;;  %1818 = vmax.xlane.f32.xlu0 %v11440_v62  ;;  %v11466_v62 = vadd.f32 %v1537_v54, %v11207_v33  ;;  %v11469_v9 = vpop.permute.xlu1 %2725  ;;  %14859 = vst [vmem:[#allocation63_spill] sm:$0xff] %v11480_v18  ;;  %14862 = vst [vmem:[#allocation66_spill] sm:$0xff] %v11494_v46 }
 0x675   :  { %14857 = vst [vmem:[#allocation61_spill] sm:$0xff] %v11469_v9 }
 0x676   :  { %1820 = vmax.xlane.f32.xlu1 %v11446_v28 }
 0x678   :  { %1782 = vmax.xlane.f32.xlu0 %v11450_v12 }
 0x679   :  { %v8267_v51 = vpop.f32.mrb[44].mxu1 }
 0x67a   :  { %v1566_v42 = vpop.f32.mrb[45].mxu1  ;;  %1784 = vmax.xlane.f32.xlu1 %v11456_v52  ;;  %v1747_v12 = vpop.xlane.xlu0 %1746 }
 0x67b   :  { %v8268_v24 = vpop.f32.mrb[46].mxu1 }
 0x67c   :  { %v1569_v28 = vpop.f32.mrb[47].mxu1  ;;  %1814 = vmax.xlane.f32.xlu0 %v11462_v25  ;;  %v1745_v54 = vpop.xlane.xlu1 %1744  ;;  %v11484_v25 = vadd.f32 %v8264_v30, %v11249_v47 }
 0x67e   :  { %1816 = vmax.xlane.f32.xlu1 %v11466_v62  ;;  %14860 = vst [vmem:[#allocation64_spill] sm:$0xff] %v11484_v25  ;;  %v1743_v9 = vpop.xlane.xlu0 %1742 }
 0x680   :  { %1794 = vmax.xlane.f32.xlu0 %v11472_v21  ;;  %v11498_v21 = vadd.f32 %v1550_v22, %v11310_v14  ;;  %v1870_v22 = vsub.f32 %v11145_v43, %v1743_v9  ;;  %v11524_v43 = vadd.f32 %v8268_v24, %v11321_v16  ;;  %v11536_v24 = vadd.f32 %v11402_v53, %v11347_v48 }
 0x682   :  { %1796 = vmax.xlane.f32.xlu1 %v11476_v34  ;;  %14863 = vst [vmem:[#allocation67_spill] sm:$0xff] %v11498_v21  ;;  %v1749_v30 = vpop.xlane.xlu0 %1748  ;;  %v1934_v15 = vmul.f32 1.442695, %v1870_v22  ;;  %14866 = vst [vmem:[#allocation70_spill] sm:$0xff] %v11524_v43 }
 0x683   :  { %v1757_v1 = vpop.xlane.xlu1 %1756 }
 0x684   :  { %1826 = vmax.xlane.f32.xlu0 %v11480_v18  ;;  %v11502_v18 = vadd.f32 %v1553_v26, %v11288_v50 }
 0x686   :  { %1828 = vmax.xlane.f32.xlu1 %v11484_v25  ;;  %14864 = vst [vmem:[#allocation68_spill] sm:$0xff] %v11502_v18  ;;  %v1872_v25 = vsub.f32 %v11107_v6, %v1747_v12  ;;  %v11519_v6 = vadd.f32 %v8267_v51, %v11337_v38 }
 0x687   :  { %v1753_v23 = vpop.xlane.xlu1 %1752 }
 0x688   :  { %1790 = vmax.xlane.f32.xlu0 %v11489_v8  ;;  %v11514_v8 = vadd.f32 %v11400_v0, %v11321_v16  ;;  %v1938_v26 = vmul.f32 1.442695, %v1872_v25  ;;  %14865 = vst [vmem:[#allocation69_spill] sm:$0xff] %v11519_v6 }
 0x68a   :  { %1792 = vmax.xlane.f32.xlu1 %v11494_v46  ;;  %v1755_v46 = vpop.xlane.xlu0 %1754  ;;  %9339 = vpow2.f32 %v1938_v26 }
 0x68b   :  { %v1765_v12 = vpop.xlane.xlu1 %1764  ;;  %v1876_v25 = vsub.f32 %v11224_v10, %v1755_v46  ;;  %9341 = vpow2.f32 %v1934_v15  ;;  %v11546_v46 = vadd.f32 %v1569_v28, %v11347_v48 }
 0x68c   :  { %1822 = vmax.xlane.f32.xlu0 %v11498_v21  ;;  %v1871_v21 = vsub.f32 %v11129_v55, %v1745_v54  ;;  %v11530_v55 = vadd.f32 %v11398_v63, %v11357_v49  ;;  %v11541_v63 = vadd.f32 %v1566_v42, %v11357_v49 }
 0x68d   :  { %v1946_v10 = vmul.f32 1.442695, %v1876_v25 }
 0x68e   :  { %1824 = vmax.xlane.f32.xlu1 %v11502_v18  ;;  %v1873_v18 = vsub.f32 %v11181_v32, %v1749_v30  ;;  %v1936_v0 = vmul.f32 1.442695, %v1871_v21  ;;  %v1751_v51 = vpop.xlane.xlu0 %1750  ;;  %v1875_v32 = vsub.f32 %v11241_v20, %v1753_v23  ;;  %14867 = vst [vmem:[#allocation71_spill] sm:$0xff] %v11541_v63  ;;  %v1877_v30 = vsub.f32 %v11193_v2, %v1757_v1 }
 0x68f   :  { %v1761_v54 = vpop.xlane.xlu1 %1760  ;;  %v1874_v21 = vsub.f32 %v11263_v31, %v1751_v51 }
 0x690   :  { %1802 = vmax.xlane.f32.xlu0 %v11508_v3  ;;  %v1940_v9 = vmul.f32 1.442695, %v1873_v18  ;;  %9343 = vpow2.f32 %v1936_v0  ;;  %v1944_v18 = vmul.f32 1.442695, %v1875_v32  ;;  %v1879_v20 = vsub.f32 %v11313_v44, %v1761_v54 }
 0x691   :  { %v1942_v23 = vmul.f32 1.442695, %v1874_v21  ;;  %v1948_v44 = vmul.f32 1.442695, %v1877_v30 }
 0x692   :  { %1804 = vmax.xlane.f32.xlu1 %v11514_v8  ;;  %9345 = vpow2.f32 %v1940_v9  ;;  %v1763_v53 = vpop.xlane.xlu0 %1762  ;;  %v1952_v42 = vmul.f32 1.442695, %v1879_v20  ;;  %v1881_v9 = vsub.f32 %v11279_v36, %v1765_v12 }
 0x693   :  { %9347 = vpow2.f32 %v1946_v10  ;;  %v1880_v28 = vsub.f32 %v11302_v58, %v1763_v53  ;;  %v1773_v51 = vpop.xlane.xlu1 %1772 }
 0x694   :  { %1834 = vmax.xlane.f32.xlu0 %v11519_v6  ;;  %v11551_v31 = vpop.eup %9339  ;;  %9349 = vpow2.f32 %v1944_v18  ;;  %v1956_v10 = vmul.f32 1.442695, %v1881_v9 }
 0x695   :  { %v11554_v22 = vpop.eup %9341  ;;  %9351 = vpow2.f32 %v1942_v23  ;;  %v1954_v15 = vmul.f32 1.442695, %v1880_v28 }
 0x696   :  { %1836 = vmax.xlane.f32.xlu1 %v11524_v43  ;;  %v1759_v26 = vpop.xlane.xlu0 %1758  ;;  %9353 = vpow2.f32 %v1952_v42 }
 0x697   :  { %9355 = vpow2.f32 %v1948_v44  ;;  %v1878_v0 = vsub.f32 %v11334_v13, %v1759_v26  ;;  %v1769_v21 = vpop.xlane.xlu1 %1768 }
 0x698   :  { %1798 = vmax.xlane.f32.xlu0 %v11530_v55  ;;  %9357 = vpow2.f32 %v1954_v15  ;;  %v1883_v36 = vsub.f32 %v11360_v45, %v1769_v21 }
 0x699   :  { %v1950_v32 = vmul.f32 1.442695, %v1878_v0 }
 0x69a   :  { %1800 = vmax.xlane.f32.xlu1 %v11536_v24  ;;  %v11558_v2 = vpop.eup %9343  ;;  %v1771_v20 = vpop.xlane.xlu0 %1770  ;;  %v1960_v30 = vmul.f32 1.442695, %v1883_v36 }
 0x69b   :  { %9359 = vpow2.f32 %v1950_v32  ;;  %v1884_v53 = vsub.f32 %v11352_v5, %v1771_v20  ;;  %v1885_v5 = vsub.f32 %v11340_v56, %v1773_v51 }
 0x69c   :  { %1830 = vmax.xlane.f32.xlu0 %v11541_v63  ;;  %v11561_v1 = vpop.eup %9345  ;;  %9361 = vpow2.f32 %v1956_v10 }
 0x69d   :  { %v11565_v25 = vpop.eup %9347  ;;  %v1962_v26 = vmul.f32 1.442695, %v1884_v53  ;;  %9363 = vpow2.f32 %v1960_v30  ;;  %v1964_v53 = vmul.f32 1.442695, %v1885_v5 }
 0x69e   :  { %1832 = vmax.xlane.f32.xlu1 %v11546_v46  ;;  %v11568_v58 = vpop.eup %9349  ;;  %v1767_v23 = vpop.xlane.xlu0 %1766 }
 0x69f   :  { %v11572_v54 = vpop.eup %9351  ;;  %v1882_v15 = vsub.f32 %v11366_v4, %v1767_v23  ;;  %9365 = vpow2.f32 %v1962_v26 }
 0x6a0   :  { %2066 = vadd.xlane.f32.xlu0 %v11551_v31  ;;  %v11575_v13 = vpop.eup %9353 }
 0x6a1   :  { %v11578_v18 = vpop.eup %9355  ;;  %v1958_v10 = vmul.f32 1.442695, %v1882_v15 }
 0x6a2   :  { %2062 = vadd.xlane.f32.xlu1 %v11554_v22  ;;  %v11582_v12 = vpop.eup %9357 }
 0x6a3   :  { %9367 = vpow2.f32 %v1958_v10 }
 0x6a4   :  { %2064 = vadd.xlane.f32.xlu0 %v11558_v2  ;;  %9369 = vpow2.f32 %v1964_v53 }
 0x6a5   :  { %v11586_v42 = vpop.eup %9359 }
 0x6a6   :  { %2068 = vadd.xlane.f32.xlu1 %v11561_v1  ;;  %v11593_v32 = vpop.eup %9361 }
 0x6a7   :  { %v11609_v51 = vpop.eup %9363 }
 0x6a8   :  { %2074 = vadd.xlane.f32.xlu0 %v11565_v25 }
 0x6a9   :  { %v11616_v26 = vpop.eup %9365 }
 0x6aa   :  { %2072 = vadd.xlane.f32.xlu1 %v11568_v58 }
 0x6ac   :  { %2070 = vadd.xlane.f32.xlu0 %v11572_v54 }
 0x6ad   :  { %v11623_v10 = vpop.eup %9367 }
 0x6ae   :  { %2080 = vadd.xlane.f32.xlu1 %v11575_v13 }
 0x6b0   :  { %2076 = vadd.xlane.f32.xlu0 %v11578_v18 }
 0x6b4   :  { %2082 = vadd.xlane.f32.xlu0 %v11582_v12 }
 0x6b7   :  { %v8287_v44 = vpop.f32.mrb[32].mxu0 }
 0x6b8   :  { %2078 = vadd.xlane.f32.xlu0 %v11586_v42  ;;  %v1679_v28 = vpop.f32.mrb[33].mxu0  ;;  %v11599_v21 = vadd.f32 %v8287_v44, %v11090_v29 }
 0x6b9   :  { %v8288_v0 = vpop.f32.mrb[34].mxu0  ;;  %v11607_v23 = vadd.f32 %v1679_v28, %v11120_v17 }
 0x6ba   :  { %v11591_v45 = vadd.f32 %v8288_v0, %v11160_v60  ;;  %v1682_v9 = vpop.f32.mrb[35].mxu0 }
 0x6bb   :  { %v11602_v4 = vadd.f32 %v1682_v9, %v11110_v35 }
 0x6bc   :  { %2084 = vadd.xlane.f32.xlu0 %v11593_v32  ;;  %1844 = vmax.xlane.f32.xlu1 %v11591_v45 }
 0x6bf   :  { %v8291_v20 = vpop.f32.mrb[36].mxu0 }
 0x6c0   :  { %1842 = vmax.xlane.f32.xlu0 %v11599_v21  ;;  %v1695_v36 = vpop.f32.mrb[37].mxu0  ;;  %1840 = vmax.xlane.f32.xlu1 %v11602_v4 }
 0x6c1   :  { %v8292_v30 = vpop.f32.mrb[38].mxu0  ;;  %v11644_v6 = vadd.f32 %v1695_v36, %v11238_v27 }
 0x6c2   :  { %v1698_v56 = vpop.f32.mrb[39].mxu0  ;;  %v11614_v44 = vadd.f32 %v8292_v30, %v11168_v41  ;;  %v11630_v30 = vpop.eup %9369 }
 0x6c3   :  { %v11621_v9 = vadd.f32 %v1698_v56, %v11207_v33  ;;  %v11635_v33 = vadd.f32 %v8291_v20, %v11190_v40 }
 0x6c4   :  { %1838 = vmax.xlane.f32.xlu0 %v11607_v23  ;;  %2088 = vadd.xlane.f32.xlu1 %v11609_v51 }
 0x6c7   :  { %v8295_v15 = vpop.f32.mrb[40].mxu0 }
 0x6c8   :  { %2090 = vadd.xlane.f32.xlu0 %v11616_v26  ;;  %v1711_v0 = vpop.f32.mrb[41].mxu0  ;;  %1852 = vmax.xlane.f32.xlu1 %v11614_v44 }
 0x6c9   :  { %v8296_v28 = vpop.f32.mrb[42].mxu0 }
 0x6ca   :  { %v1714_v5 = vpop.f32.mrb[43].mxu0  ;;  %v11628_v53 = vadd.f32 %v8296_v28, %v11249_v47 }
 0x6cb   :  { %v11638_v17 = vadd.f32 %v1714_v5, %v11288_v50  ;;  %v11661_v5 = vadd.f32 %v1711_v0, %v11310_v14 }
 0x6cc   :  { %2086 = vadd.xlane.f32.xlu0 %v11623_v10  ;;  %1848 = vmax.xlane.f32.xlu1 %v11621_v9 }
 0x6cf   :  { %v8299_v41 = vpop.f32.mrb[44].mxu0 }
 0x6d0   :  { %2092 = vadd.xlane.f32.xlu0 %v11630_v30  ;;  %v1727_v60 = vpop.f32.mrb[45].mxu0  ;;  %1860 = vmax.xlane.f32.xlu1 %v11628_v53  ;;  %v1779_v63 = vpop.xlane.xlu0 %1778 }
 0x6d1   :  { %v8300_v56 = vpop.f32.mrb[46].mxu0  ;;  %v1888_v20 = vsub.f32 %v11385_v19, %v1779_v63  ;;  %v11667_v19 = vadd.f32 %v8299_v41, %v11337_v38 }
 0x6d2   :  { %v1730_v35 = vpop.f32.mrb[47].mxu0  ;;  %v1781_v29 = vpop.xlane.xlu1 %1780  ;;  %v11647_v43 = vadd.f32 %v8300_v56, %v11321_v16 }
 0x6d3   :  { %v1889_v28 = vsub.f32 %v11388_v59, %v1781_v29  ;;  %v11653_v59 = vadd.f32 %v8295_v15, %v11276_v61  ;;  %v11656_v29 = vadd.f32 %v1730_v35, %v11347_v48  ;;  %v1970_v36 = vmul.f32 1.442695, %v1888_v20 }
 0x6d4   :  { %1850 = vmax.xlane.f32.xlu0 %v11635_v33  ;;  %1856 = vmax.xlane.f32.xlu1 %v11638_v17  ;;  %v11672_v35 = vadd.f32 %v1727_v60, %v11357_v49 }
 0x6d5   :  { %v1972_v47 = vmul.f32 1.442695, %v1889_v28 }
 0x6d7   :  { %9371 = vpow2.f32 %v1972_v47 }
 0x6d8   :  { %1846 = vmax.xlane.f32.xlu0 %v11644_v6  ;;  %1868 = vmax.xlane.f32.xlu1 %v11647_v43  ;;  %9373 = vpow2.f32 %v1970_v36 }
 0x6dc   :  { %1858 = vmax.xlane.f32.xlu0 %v11653_v59  ;;  %1864 = vmax.xlane.f32.xlu1 %v11656_v29 }
 0x6e0   :  { %1854 = vmax.xlane.f32.xlu0 %v11661_v5 }
 0x6e1   :  { %v11664_v47 = vpop.eup %9371 }
 0x6e2   :  { %2100 = vadd.xlane.f32.xlu1 %v11664_v47  ;;  %v11675_v63 = vpop.eup %9373 }
 0x6e4   :  { %1866 = vmax.xlane.f32.xlu0 %v11667_v19 }
 0x6e8   :  { %1862 = vmax.xlane.f32.xlu0 %v11672_v35 }
 0x6ec   :  { %2098 = vadd.xlane.f32.xlu0 %v11675_v63 }
 0x6f1   :  { %v1811_v15 = vpop.xlane.xlu0 %1810 }
 0x6f2   :  { %v1904_v0 = vsub.f32 %v11405_v39, %v1811_v15  ;;  %v14868_v15 = vld [vmem:[#allocation50_spill] sm:$0xff] }
 0x6f3   :  { %v1813_v56 = vpop.xlane.xlu1 %1812 }
 0x6f4   :  { %v2002_v28 = vmul.f32 1.442695, %v1904_v0  ;;  %v1905_v38 = vsub.f32 %v11408_v7, %v1813_v56  ;;  %v14871_v7 = vld [vmem:[#allocation53_spill] sm:$0xff] }
 0x6f5   :  { %v1775_v41 = vpop.xlane.xlu0 %1774 }
 0x6f6   :  { %9375 = vpow2.f32 %v2002_v28  ;;  %v1886_v20 = vsub.f32 %v11412_v37, %v1775_v41  ;;  %v2004_v28 = vmul.f32 1.442695, %v1905_v38  ;;  %v14869_v41 = vld [vmem:[#allocation52_spill] sm:$0xff] }
 0x6f7   :  { %v1777_v36 = vpop.xlane.xlu1 %1776 }
 0x6f8   :  { %v1966_v48 = vmul.f32 1.442695, %v1886_v20  ;;  %v1887_v60 = vsub.f32 %v11418_v57, %v1777_v36 }
 0x6f9   :  { %v1807_v49 = vpop.xlane.xlu0 %1806 }
 0x6fa   :  { %9377 = vpow2.f32 %v1966_v48  ;;  %v1968_v16 = vmul.f32 1.442695, %v1887_v60  ;;  %v1902_v14 = vsub.f32 %v11422_v11, %v1807_v49  ;;  %v14872_v49 = vld [vmem:[#allocation54_spill] sm:$0xff] }
 0x6fb   :  { %v1809_v50 = vpop.xlane.xlu1 %1808 }
 0x6fc   :  { %9379 = vpow2.f32 %v1968_v16  ;;  %v1998_v39 = vmul.f32 1.442695, %v1902_v14  ;;  %v1903_v0 = vsub.f32 %v14868_v15, %v1809_v50 }
 0x6fd   :  { %v1787_v61 = vpop.xlane.xlu0 %1786 }
 0x6fe   :  { %9381 = vpow2.f32 %v1998_v39  ;;  %v2000_v37 = vmul.f32 1.442695, %v1903_v0  ;;  %v1892_v20 = vsub.f32 %v14869_v41, %v1787_v61 }
 0x6ff   :  { %v1789_v27 = vpop.xlane.xlu1 %1788 }
 0x700   :  { %v11685_v57 = vpop.eup %9375  ;;  %9383 = vpow2.f32 %v2000_v37  ;;  %v1893_v48 = vsub.f32 %v14871_v7, %v1789_v27  ;;  %v1978_v16 = vmul.f32 1.442695, %v1892_v20  ;;  %v14873_v27 = vld [vmem:[#allocation57_spill] sm:$0xff] }
 0x701   :  { %14870 = vst [vmem:[#allocation50_spill] sm:$0xff] %v11685_v57  ;;  %v1819_v56 = vpop.xlane.xlu0 %1818  ;;  %2130 = vadd.xlane.f32.xlu0 %v11685_v57  ;;  %9385 = vpow2.f32 %v2004_v28 }
 0x702   :  { %v1980_v14 = vmul.f32 1.442695, %v1893_v48  ;;  %v1908_v50 = vsub.f32 %v14872_v49, %v1819_v56  ;;  %v14874_v48 = vld [vmem:[#allocation60_spill] sm:$0xff] }
 0x703   :  { %v1821_v11 = vpop.xlane.xlu1 %1820 }
 0x704   :  { %v11690_v38 = vpop.eup %9377  ;;  %9387 = vpow2.f32 %v1980_v14  ;;  %v2010_v60 = vmul.f32 1.442695, %v1908_v50 }
 0x705   :  { %v1783_v36 = vpop.xlane.xlu0 %1782  ;;  %2094 = vadd.xlane.f32.xlu0 %v11690_v38  ;;  %9389 = vpow2.f32 %v1978_v16 }
 0x706   :  { %v11693_v61 = vpop.eup %9379  ;;  %v1890_v39 = vsub.f32 %v14873_v27, %v1783_v36  ;;  %9391 = vpow2.f32 %v2010_v60  ;;  %v14877_v36 = vld [vmem:[#allocation56_spill] sm:$0xff] }
 0x707   :  { %2096 = vadd.xlane.f32.xlu1 %v11693_v61  ;;  %v1785_v15 = vpop.xlane.xlu1 %1784  ;;  %v1909_v27 = vsub.f32 %v14877_v36, %v1821_v11 }
 0x708   :  { %v11697_v0 = vpop.eup %9381  ;;  %v1891_v28 = vsub.f32 %v11456_v52, %v1785_v15  ;;  %v1974_v20 = vmul.f32 1.442695, %v1890_v39 }
 0x709   :  { %v1815_v37 = vpop.xlane.xlu0 %1814  ;;  %2126 = vadd.xlane.f32.xlu0 %v11697_v0 }
 0x70a   :  { %v11701_v41 = vpop.eup %9383  ;;  %v1976_v7 = vmul.f32 1.442695, %v1891_v28  ;;  %v1906_v56 = vsub.f32 %v14874_v48, %v1815_v37  ;;  %v14879_v48 = vld [vmem:[#allocation62_spill] sm:$0xff] }
 0x70b   :  { %2128 = vadd.xlane.f32.xlu1 %v11701_v41  ;;  %v1817_v16 = vpop.xlane.xlu1 %1816  ;;  %v11705_v14 = vpop.eup %9385 }
 0x70c   :  { %14875 = vst [vmem:[#allocation52_spill] sm:$0xff] %v11705_v14  ;;  %9393 = vpow2.f32 %v1976_v7  ;;  %v1907_v49 = vsub.f32 %v11466_v62, %v1817_v16  ;;  %v2006_v60 = vmul.f32 1.442695, %v1906_v56  ;;  %v2012_v62 = vmul.f32 1.442695, %v1909_v27 }
 0x70d   :  { %v1795_v50 = vpop.xlane.xlu0 %1794  ;;  %2132 = vadd.xlane.f32.xlu0 %v11705_v14  ;;  %9395 = vpow2.f32 %v1974_v20 }
 0x70e   :  { %v11709_v52 = vpop.eup %9387  ;;  %v2008_v39 = vmul.f32 1.442695, %v1907_v49  ;;  %v1896_v16 = vsub.f32 %v14879_v48, %v1795_v50  ;;  %v14883_v50 = vld [vmem:[#allocation66_spill] sm:$0xff] }
 0x70f   :  { %14876 = vst [vmem:[#allocation53_spill] sm:$0xff] %v11709_v52  ;;  %2108 = vadd.xlane.f32.xlu1 %v11709_v52  ;;  %v1797_v15 = vpop.xlane.xlu1 %1796  ;;  %v11713_v28 = vpop.eup %9389 }
 0x710   :  { %14878 = vst [vmem:[#allocation54_spill] sm:$0xff] %v11713_v28  ;;  %9397 = vpow2.f32 %v2008_v39  ;;  %v1897_v37 = vsub.f32 %v11476_v34, %v1797_v15  ;;  %v11722_v56 = vpop.eup %9391  ;;  %v1986_v34 = vmul.f32 1.442695, %v1896_v16  ;;  %v14882_v39 = vld [vmem:[#allocation65_spill] sm:$0xff] }
 0x711   :  { %v11716_v7 = vpop.xlane.xlu0 %1826  ;;  %2106 = vadd.xlane.f32.xlu0 %v11713_v28  ;;  %9399 = vpow2.f32 %v2006_v60  ;;  %14880 = vst [vmem:[#allocation57_spill] sm:$0xff] %v11722_v56 }
 0x712   :  { %v1988_v11 = vmul.f32 1.442695, %v1897_v37 }
 0x713   :  { %v11720_v20 = vpop.xlane.xlu1 %1828 }
 0x714   :  { %9401 = vpow2.f32 %v1988_v11 }
 0x715   :  { %v1791_v49 = vpop.xlane.xlu0 %1790  ;;  %2138 = vadd.xlane.f32.xlu0 %v11722_v56  ;;  %9403 = vpow2.f32 %v2012_v62 }
 0x716   :  { %v11725_v36 = vpop.eup %9393  ;;  %v1894_v15 = vsub.f32 %v14882_v39, %v1791_v49  ;;  %9405 = vpow2.f32 %v1986_v34 }
 0x717   :  { %14881 = vst [vmem:[#allocation60_spill] sm:$0xff] %v11725_v36  ;;  %2104 = vadd.xlane.f32.xlu1 %v11725_v36  ;;  %v1793_v27 = vpop.xlane.xlu1 %1792  ;;  %v11729_v60 = vpop.eup %9395 }
 0x718   :  { %v1895_v37 = vsub.f32 %v14883_v50, %v1793_v27  ;;  %v1982_v40 = vmul.f32 1.442695, %v1894_v15 }
 0x719   :  { %v11732_v48 = vpop.xlane.xlu0 %1822  ;;  %2102 = vadd.xlane.f32.xlu0 %v11729_v60 }
 0x71a   :  { %v11735_v11 = vpop.eup %9397  ;;  %v1984_v56 = vmul.f32 1.442695, %v1895_v37 }
 0x71b   :  { %14884 = vst [vmem:[#allocation56_spill] sm:$0xff] %v11735_v11  ;;  %2136 = vadd.xlane.f32.xlu1 %v11735_v11  ;;  %v11738_v62 = vpop.xlane.xlu1 %1824  ;;  %v11740_v16 = vpop.eup %9399 }
 0x71c   :  { %14885 = vst [vmem:[#allocation62_spill] sm:$0xff] %v11740_v16  ;;  %9407 = vpow2.f32 %v1984_v56 }
 0x71d   :  { %v1803_v49 = vpop.xlane.xlu0 %1802  ;;  %2134 = vadd.xlane.f32.xlu0 %v11740_v16  ;;  %9409 = vpow2.f32 %v1982_v40 }
 0x71e   :  { %v11743_v39 = vpop.eup %9401  ;;  %v1900_v27 = vsub.f32 %v11508_v3, %v1803_v49 }
 0x71f   :  { %14886 = vst [vmem:[#allocation65_spill] sm:$0xff] %v11743_v39  ;;  %2116 = vadd.xlane.f32.xlu1 %v11743_v39  ;;  %v1805_v34 = vpop.xlane.xlu1 %1804  ;;  %v11747_v15 = vpop.eup %9403 }
 0x720   :  { %14887 = vst [vmem:[#allocation66_spill] sm:$0xff] %v11747_v15  ;;  %v1994_v50 = vmul.f32 1.442695, %v1900_v27  ;;  %v1901_v37 = vsub.f32 %v11514_v8, %v1805_v34  ;;  %v11755_v16 = vpop.eup %9405 }
 0x721   :  { %v11750_v11 = vpop.xlane.xlu0 %1834  ;;  %2140 = vadd.xlane.f32.xlu0 %v11747_v15  ;;  %14888 = vst [vmem:[#allocation72_spill] sm:$0xff] %v11755_v16 }
 0x722   :  { %9411 = vpow2.f32 %v1994_v50  ;;  %v1996_v56 = vmul.f32 1.442695, %v1901_v37 }
 0x723   :  { %v11753_v57 = vpop.xlane.xlu1 %1836 }
 0x724   :  { %9413 = vpow2.f32 %v1996_v56 }
 0x725   :  { %v1799_v40 = vpop.xlane.xlu0 %1798  ;;  %2114 = vadd.xlane.f32.xlu0 %v11755_v16 }
 0x726   :  { %v11758_v3 = vpop.eup %9407  ;;  %v1898_v49 = vsub.f32 %v11530_v55, %v1799_v40 }
 0x727   :  { %14889 = vst [vmem:[#allocation73_spill] sm:$0xff] %v11758_v3  ;;  %2112 = vadd.xlane.f32.xlu1 %v11758_v3  ;;  %v1801_v8 = vpop.xlane.xlu1 %1800  ;;  %v11762_v27 = vpop.eup %9409 }
 0x728   :  { %14890 = vst [vmem:[#allocation74_spill] sm:$0xff] %v11762_v27  ;;  %v1990_v34 = vmul.f32 1.442695, %v1898_v49  ;;  %v1899_v50 = vsub.f32 %v11536_v24, %v1801_v8 }
 0x729   :  { %v11765_v37 = vpop.xlane.xlu0 %1830  ;;  %2110 = vadd.xlane.f32.xlu0 %v11762_v27 }
 0x72a   :  { %9415 = vpow2.f32 %v1990_v34  ;;  %v1992_v56 = vmul.f32 1.442695, %v1899_v50 }
 0x72b   :  { %v11768_v15 = vpop.xlane.xlu1 %1832 }
 0x72c   :  { %v11770_v14 = vpop.eup %9411  ;;  %9417 = vpow2.f32 %v1992_v56 }
 0x72d   :  { %14891 = vst [vmem:[#allocation75_spill] sm:$0xff] %v11770_v14  ;;  %v2067_v55 = vpop.xlane.xlu0 %2066  ;;  %2122 = vadd.xlane.f32.xlu0 %v11770_v14 }
 0x72e   :  { %v11773_v40 = vpop.eup %9413  ;;  %9419 = vrcp.f32 %v2067_v55 }
 0x72f   :  { %14892 = vst [vmem:[#allocation76_spill] sm:$0xff] %v11773_v40  ;;  %2124 = vadd.xlane.f32.xlu1 %v11773_v40  ;;  %v2063_v49 = vpop.xlane.xlu1 %2062 }
 0x730   :  { %9421 = vrcp.f32 %v2063_v49 }
 0x731   :  { %v2065_v24 = vpop.xlane.xlu0 %2064 }
 0x732   :  { %9423 = vrcp.f32 %v2065_v24 }
 0x733   :  { %v2069_v8 = vpop.xlane.xlu1 %2068 }
 0x734   :  { %v11776_v34 = vpop.eup %9415  ;;  %9425 = vrcp.f32 %v2069_v8 }
 0x735   :  { %14893 = vst [vmem:[#allocation77_spill] sm:$0xff] %v11776_v34  ;;  %v2075_v50 = vpop.xlane.xlu0 %2074  ;;  %2118 = vadd.xlane.f32.xlu0 %v11776_v34 }
 0x736   :  { %v11779_v56 = vpop.eup %9417 }
 0x737   :  { %14894 = vst [vmem:[#allocation78_spill] sm:$0xff] %v11779_v56  ;;  %2120 = vadd.xlane.f32.xlu1 %v11779_v56  ;;  %v2073_v14 = vpop.xlane.xlu1 %2072 }
 0x738   :  { %9427 = vrcp.f32 %v2073_v14  ;;  %v9420_v40 = vpop.eup %9419 }
 0x739   :  { %v2071_v39 = vpop.xlane.xlu0 %2070  ;;  %v2195_v34 = vmul.f32 %v9420_v40, %v11551_v31 }
 0x73a   :  { %9429 = vrcp.f32 %v2071_v39  ;;  %v9422_v55 = vpop.eup %9421 }
 0x73b   :  { %9431 = vrcp.f32 %v2075_v50  ;;  %v2191_v3 = vmul.f32 %v9422_v55, %v11554_v22  ;;  %v2081_v52 = vpop.xlane.xlu1 %2080  ;;  %v14895_v50 = vld [vmem:[#allocation40_spill] sm:$0xff]  ;;  %v14896_v22 = vld [vmem:[#allocation49_spill] sm:$0xff] }
 0x73c   :  { %v9424_v49 = vpop.eup %9423 }
 0x73d   :  { %v2077_v24 = vpop.xlane.xlu0 %2076  ;;  %v2193_v8 = vmul.f32 %v9424_v49, %v11558_v2 }
 0x73e   :  { %v9426_v27 = vpop.eup %9425  ;;  %9433 = vrcp.f32 %v2077_v24 }
 0x73f   :  { %v2197_v16 = vmul.f32 %v9426_v27, %v11561_v1  ;;  %v2318_v56 = vpack.c.bf16 %v2193_v8, %v2191_v3  ;;  %9435 = vrcp.f32 %v2081_v52 }
 0x741   :  { %v2083_v14 = vpop.xlane.xlu0 %2082  ;;  %8317 = vmatprep.mubr.bf16.mxu1 %v2318_v56  ;;  %v2319_v28 = vpack.c.bf16 %v2197_v16, %v2195_v34  ;;  %v14897_v16 = vld [vmem:[#allocation44_spill] sm:$0xff]  ;;  %v14898_v56 = vld [vmem:[#allocation51_spill] sm:$0xff] }
 0x742   :  { %v9428_v39 = vpop.eup %9427 }
 0x743   :  { %8318 = vmatmul.mubr.bf16.vlgmr.msra.gmra.mrb[48].mxu1 %v2319_v28  ;;  %v2201_v31 = vmul.f32 %v9428_v39, %v11568_v58 }
 0x744   :  { %v9430_v36 = vpop.eup %9429  ;;  %8366 = vmatpush3.bf16.msra.mxu1 %v14895_v50 }
 0x745   :  { %8367 = vmatprep.subr.bf16.mxu1 %v14896_v22  ;;  %v2079_v2 = vpop.xlane.xlu0 %2078  ;;  %v2199_v55 = vmul.f32 %v9430_v36, %v11572_v54  ;;  %v9432_v40 = vpop.eup %9431 }
 0x746   :  { %9437 = vrcp.f32 %v2079_v2  ;;  %v2203_v27 = vmul.f32 %v9432_v40, %v11565_v25 }
 0x747   :  { %v2320_v1 = vpack.c.bf16 %v2201_v31, %v2199_v55  ;;  %9439 = vrcp.f32 %v2083_v14 }
 0x748   :  { %v9434_v3 = vpop.eup %9433  ;;  %8368 = vmatpush3.bf16.msra.mxu1 %v14896_v22 }
 0x749   :  { %8369 = vmatprep.subr.bf16.mxu1 %v14897_v16  ;;  %v2085_v28 = vpop.xlane.xlu0 %2084  ;;  %8321 = vmatprep.mubr.bf16.mxu1 %v2320_v1  ;;  %v1845_v52 = vpop.xlane.xlu1 %1844  ;;  %v2205_v34 = vmul.f32 %v9434_v3, %v11578_v18 }
 0x74a   :  { %9441 = vrcp.f32 %v2085_v28  ;;  %v1921_v54 = vsub.f32 %v11591_v45, %v1845_v52  ;;  %v9436_v8 = vpop.eup %9435  ;;  %v14899_v45 = vld [vmem:[#allocation55_spill] sm:$0xff] }
 0x74b   :  { %v2321_v58 = vpack.c.bf16 %v2205_v34, %v2203_v27  ;;  %v2209_v31 = vmul.f32 %v9436_v8, %v11575_v13 }
 0x74c   :  { %v2036_v36 = vmul.f32 1.442695, %v1921_v54  ;;  %8370 = vmatpush3.bf16.msra.mxu1 %v14897_v16  ;;  %v14900_v16 = vld [vmem:[#allocation59_spill] sm:$0xff] }
 0x74d   :  { %8371 = vmatprep.subr.bf16.mxu1 %v14898_v56  ;;  %v1843_v49 = vpop.xlane.xlu0 %1842  ;;  %8322 = vmatmul.mubr.bf16.gmra.mrb[52].mxu1 %v2321_v58  ;;  %v1841_v24 = vpop.xlane.xlu1 %1840  ;;  %v14901_v58 = vld [vmem:[#allocation58_spill] sm:$0xff] }
 0x74e   :  { %9443 = vpow2.f32 %v2036_v36  ;;  %v1920_v14 = vsub.f32 %v11599_v21, %v1843_v49  ;;  %v1919_v25 = vsub.f32 %v11602_v4, %v1841_v24 }
 0x750   :  { %v9438_v39 = vpop.eup %9437  ;;  %v2034_v18 = vmul.f32 1.442695, %v1920_v14  ;;  %v2032_v50 = vmul.f32 1.442695, %v1919_v25  ;;  %8372 = vmatpush3.bf16.msra.mxu1 %v14898_v56 }
 0x751   :  { %8373 = vmatprep.subr.bf16.mxu1 %v14899_v45  ;;  %v1839_v22 = vpop.xlane.xlu0 %1838  ;;  %v2089_v2 = vpop.xlane.xlu1 %2088  ;;  %v2207_v55 = vmul.f32 %v9438_v39, %v11586_v42 }
 0x752   :  { %v9440_v40 = vpop.eup %9439  ;;  %9445 = vpow2.f32 %v2034_v18  ;;  %v1918_v1 = vsub.f32 %v11607_v23, %v1839_v22 }
 0x753   :  { %9447 = vpow2.f32 %v2032_v50  ;;  %v2322_v21 = vpack.c.bf16 %v2209_v31, %v2207_v55  ;;  %v2211_v27 = vmul.f32 %v9440_v40, %v11582_v12 }
 0x754   :  { %v9442_v4 = vpop.eup %9441  ;;  %v2030_v3 = vmul.f32 1.442695, %v1918_v1  ;;  %8374 = vmatpush3.bf16.msra.mxu1 %v14899_v45 }
 0x755   :  { %8375 = vmatprep.subr.bf16.mxu1 %v14900_v16  ;;  %v2091_v28 = vpop.xlane.xlu0 %2090  ;;  %8325 = vmatprep.mubr.bf16.mxu1 %v2322_v21  ;;  %v1853_v52 = vpop.xlane.xlu1 %1852  ;;  %v2213_v42 = vmul.f32 %v9442_v4, %v11593_v32 }
 0x756   :  { %9449 = vpow2.f32 %v2030_v3  ;;  %v1925_v13 = vsub.f32 %v11614_v44, %v1853_v52 }
 0x757   :  { %v2323_v34 = vpack.c.bf16 %v2213_v42, %v2211_v27  ;;  %9451 = vrcp.f32 %v2089_v2 }
 0x758   :  { %v11809_v23 = vpop.eup %9443  ;;  %v2044_v54 = vmul.f32 1.442695, %v1925_v13  ;;  %8376 = vmatpush3.bf16.msra.mxu1 %v14900_v16  ;;  %v14903_v16 = vld [vmem:[#allocation22_spill] sm:$0xff] }
 0x759   :  { %8377 = vmatprep.subr.bf16.mxu1 %v14901_v58  ;;  %v2087_v36 = vpop.xlane.xlu0 %2086  ;;  %8326 = vmatmul.mubr.bf16.gmra.mrb[56].mxu1 %v2323_v34  ;;  %v1849_v56 = vpop.xlane.xlu1 %1848 }
 0x75a   :  { %9453 = vpow2.f32 %v2044_v54  ;;  %2164 = vadd.xlane.f32.xlu1 %v11809_v23  ;;  %v1923_v12 = vsub.f32 %v11621_v9, %v1849_v56  ;;  %v14906_v56 = vld [vmem:[#allocation68_spill] sm:$0xff] }
 0x75b   :  { %9455 = vrcp.f32 %v2087_v36 }
 0x75c   :  { %v11815_v32 = vpop.eup %9445  ;;  %v2040_v44 = vmul.f32 1.442695, %v1923_v12  ;;  %8378 = vmatpush3.bf16.msra.mxu1 %v14901_v58  ;;  %9457 = vrcp.f32 %v2091_v28  ;;  %v14905_v58 = vld [vmem:[#allocation67_spill] sm:$0xff]  ;;  %v1911_v12 = vsub.f32 %v14906_v56, %v11738_v62 }
 0x75d   :  { %v11818_v49 = vpop.eup %9447  ;;  %v2093_v24 = vpop.xlane.xlu0 %2092  ;;  %2162 = vadd.xlane.f32.xlu0 %v11815_v32  ;;  %v1910_v36 = vsub.f32 %v14905_v58, %v11732_v48 }
 0x75e   :  { %9459 = vpow2.f32 %v2040_v44  ;;  %2160 = vadd.xlane.f32.xlu1 %v11818_v49  ;;  %v1861_v3 = vpop.xlane.xlu1 %1860 }
 0x75f   :  { %9461 = vrcp.f32 %v2093_v24 }
 0x760   :  { %v11822_v8 = vpop.eup %9449 }
 0x761   :  { %2158 = vadd.xlane.f32.xlu0 %v11822_v8  ;;  %v9452_v9 = vpop.eup %9451  ;;  %v1851_v39 = vpop.xlane.xlu0 %1850 }
 0x762   :  { %v2217_v50 = vmul.f32 %v9452_v9, %v11609_v51  ;;  %v1857_v52 = vpop.xlane.xlu1 %1856  ;;  %v2014_v9 = vmul.f32 1.442695, %v1910_v36 }
 0x764   :  { %v11825_v14 = vpop.eup %9453 }
 0x765   :  { %v9456_v25 = vpop.eup %9455  ;;  %2172 = vadd.xlane.f32.xlu1 %v11825_v14  ;;  %v1847_v1 = vpop.xlane.xlu0 %1846 }
 0x766   :  { %v2215_v18 = vmul.f32 %v9456_v25, %v11623_v10  ;;  %v9458_v45 = vpop.eup %9457  ;;  %v14902_v10 = vld [vmem:[#allocation21_spill] sm:$0xff]  ;;  %v11848_v13 = vpop.xlane.xlu1 %1868  ;;  %v1922_v54 = vsub.f32 %v11644_v6, %v1847_v1 }
 0x767   :  { %v2219_v31 = vmul.f32 %v9458_v45, %v11616_v26  ;;  %v1924_v26 = vsub.f32 %v11635_v33, %v1851_v39  ;;  %v2016_v39 = vmul.f32 1.442695, %v1911_v12 }
 0x768   :  { %v11830_v22 = vpop.eup %9459  ;;  %v2324_v2 = vpack.c.bf16 %v2217_v50, %v2215_v18  ;;  %v2038_v33 = vmul.f32 1.442695, %v1922_v54  ;;  %v14907_v50 = vld [vmem:[#allocation64_spill] sm:$0xff] }
 0x769   :  { %v9462_v55 = vpop.eup %9461  ;;  %2168 = vadd.xlane.f32.xlu1 %v11830_v22  ;;  %v11835_v4 = vpop.xlane.xlu0 %1858  ;;  %v2042_v34 = vmul.f32 1.442695, %v1924_v26  ;;  %v1913_v45 = vsub.f32 %v14907_v50, %v11720_v20  ;;  %v1915_v20 = vsub.f32 %v11546_v46, %v11768_v15 }
 0x76a   :  { %8329 = vmatprep.mubr.bf16.mxu1 %v2324_v2  ;;  %v2221_v40 = vmul.f32 %v9462_v55, %v11630_v30  ;;  %v14904_v30 = vld [vmem:[#allocation63_spill] sm:$0xff]  ;;  %v11855_v25 = vpop.xlane.xlu1 %1864  ;;  %v1929_v2 = vsub.f32 %v11628_v53, %v1861_v3  ;;  %v1928_v46 = vsub.f32 %v11653_v59, %v11835_v4 }
 0x76b   :  { %v1912_v42 = vsub.f32 %v14904_v30, %v11716_v7  ;;  %9463 = vpow2.f32 %v2042_v34  ;;  %v1927_v7 = vsub.f32 %v11638_v17, %v1857_v52  ;;  %v14909_v30 = vld [vmem:[#allocation71_spill] sm:$0xff]  ;;  %v2024_v54 = vmul.f32 1.442695, %v1915_v20 }
 0x76c   :  { %v2325_v21 = vpack.c.bf16 %v2221_v40, %v2219_v31  ;;  %v2020_v40 = vmul.f32 1.442695, %v1913_v45  ;;  %v1931_v59 = vsub.f32 %v11656_v29, %v11855_v25  ;;  %v14910_v29 = vld [vmem:[#allocation69_spill] sm:$0xff] }
 0x76d   :  { %v1855_v51 = vpop.xlane.xlu0 %1854  ;;  %v2018_v44 = vmul.f32 1.442695, %v1912_v42  ;;  %v2048_v48 = vmul.f32 1.442695, %v1927_v7  ;;  %v1914_v42 = vsub.f32 %v14909_v30, %v11765_v37  ;;  %v1916_v25 = vsub.f32 %v14910_v29, %v11750_v11  ;;  %v14911_v11 = vld [vmem:[#allocation42_spill] sm:$0xff]  ;;  %v14913_v30 = vld [vmem:[#allocation45_spill] sm:$0xff] }
 0x76e   :  { %8330 = vmatmul.mubr.bf16.gmra.mrb[60].mxu1 %v2325_v21  ;;  %v1926_v1 = vsub.f32 %v11661_v5, %v1855_v51  ;;  %v2056_v50 = vmul.f32 1.442695, %v1931_v59  ;;  %v14916_v59 = vld [vmem:[#allocation54_spill] sm:$0xff] }
 0x76f   :  { %9465 = vpow2.f32 %v2018_v44  ;;  %v2101_v6 = vpop.xlane.xlu1 %2100  ;;  %v2022_v56 = vmul.f32 1.442695, %v1914_v42  ;;  %v2050_v44 = vmul.f32 1.442695, %v1928_v46  ;;  %v2026_v20 = vmul.f32 1.442695, %v1916_v25 }
 0x770   :  { %9467 = vpow2.f32 %v2038_v33  ;;  %v2046_v15 = vmul.f32 1.442695, %v1926_v1 }
 0x771   :  { %v11841_v28 = vpop.xlane.xlu0 %1866  ;;  %9469 = vpow2.f32 %v2014_v9 }
 0x772   :  { %9471 = vpow2.f32 %v2016_v39 }
 0x775   :  { %v11844_v27 = vpop.xlane.xlu0 %1862  ;;  %v11863_v31 = vpop.eup %9463 }
 0x777   :  { %2606 = vrot.lane.b32.xlu0 %v14902_v10, %s10041_s24  ;;  %v2052_v10 = vmul.f32 1.442695, %v1929_v2 }
 0x779   :  { %v2099_v24 = vpop.xlane.xlu0 %2098  ;;  %v11867_v21 = vpop.eup %9465 }
 0x77a   :  { %2727 = vrot.lane.b32.xlu1 %v14903_v16, %s10041_s24  ;;  %9473 = vrcp.f32 %v2099_v24  ;;  %v11871_v3 = vpop.eup %9467  ;;  %v14908_v16 = vld [vmem:[#allocation70_spill] sm:$0xff] }
 0x77b   :  { %v1917_v52 = vsub.f32 %v14908_v16, %v11753_v57  ;;  %v11875_v26 = vpop.eup %9469 }
 0x77c   :  { %v11882_v51 = vpop.eup %9471 }
 0x77d   :  { %v2028_v58 = vmul.f32 1.442695, %v1917_v52 }
 0x784   :  { %v9474_v34 = vpop.eup %9473 }
 0x785   :  { %v2227_v24 = vmul.f32 %v9474_v34, %v11675_v63 }
 0x78e   :  { %v11858_v18 = vpop.xlane.xlu0 %2130 }
 0x792   :  { %v2095_v62 = vpop.xlane.xlu0 %2094 }
 0x793   :  { %9475 = vrcp.f32 %v2095_v62 }
 0x794   :  { %9477 = vrcp.f32 %v2101_v6  ;;  %v2097_v55 = vpop.xlane.xlu1 %2096 }
 0x795   :  { %9479 = vrcp.f32 %v2097_v55  ;;  %v1933_v55 = vsub.f32 %v11647_v43, %v11848_v13 }
 0x796   :  { %9481 = vpow2.f32 %v2048_v48  ;;  %v2127_v17 = vpop.xlane.xlu0 %2126  ;;  %2170 = vadd.xlane.f32.xlu0 %v11863_v31 }
 0x797   :  { %9483 = vrcp.f32 %v2127_v17  ;;  %v2060_v13 = vmul.f32 1.442695, %v1933_v55 }
 0x798   :  { %v2129_v53 = vpop.xlane.xlu1 %2128 }
 0x799   :  { %9485 = vrcp.f32 %v2129_v53 }
 0x79a   :  { %v11879_v5 = vpop.xlane.xlu0 %2132  ;;  %2166 = vadd.xlane.f32.xlu0 %v11871_v3  ;;  %9487 = vpow2.f32 %v2020_v40 }
 0x79b   :  { %9489 = vpow2.f32 %v2052_v10 }
 0x79c   :  { %9491 = vpow2.f32 %v2046_v15  ;;  %v2109_v4 = vpop.xlane.xlu1 %2108 }
 0x79d   :  { %v9476_v57 = vpop.eup %9475  ;;  %9493 = vpow2.f32 %v2024_v54 }
 0x79e   :  { %v9478_v36 = vpop.eup %9477  ;;  %v2107_v12 = vpop.xlane.xlu0 %2106  ;;  %2142 = vadd.xlane.f32.xlu0 %v11875_v26  ;;  %2144 = vadd.xlane.f32.xlu1 %v11882_v51  ;;  %v2223_v9 = vmul.f32 %v9476_v57, %v11690_v38  ;;  %9495 = vpow2.f32 %v2028_v58 }
 0x79f   :  { %v9480_v37 = vpop.eup %9479  ;;  %v2229_v6 = vmul.f32 %v9478_v36, %v11664_v47  ;;  %9497 = vpow2.f32 %v2022_v56 }
 0x7a0   :  { %v11889_v33 = vpop.eup %9481  ;;  %v2225_v39 = vmul.f32 %v9480_v37, %v11693_v61  ;;  %9499 = vpow2.f32 %v2050_v44  ;;  %v14915_v44 = vld [vmem:[#allocation60_spill] sm:$0xff] }
 0x7a1   :  { %v9484_v7 = vpop.eup %9483  ;;  %v2327_v38 = vpack.c.bf16 %v2229_v6, %v2227_v24  ;;  %9501 = vrcp.f32 %v2107_v12  ;;  %v14918_v6 = vld [vmem:[#allocation53_spill] sm:$0xff] }
 0x7a2   :  { %v11896_v48 = vpop.xlane.xlu0 %2138  ;;  %2146 = vadd.xlane.f32.xlu0 %v11867_v21  ;;  %2176 = vadd.xlane.f32.xlu1 %v11889_v33  ;;  %v2326_v63 = vpack.c.bf16 %v2225_v39, %v2223_v9  ;;  %v2255_v47 = vmul.f32 %v9484_v7, %v11697_v0  ;;  %v1930_v0 = vsub.f32 %v11672_v35, %v11844_v27  ;;  %v14917_v9 = vld [vmem:[#allocation47_spill] sm:$0xff] }
 0x7a3   :  { %v9486_v62 = vpop.eup %9485  ;;  %v1932_v27 = vsub.f32 %v11667_v19, %v11841_v28  ;;  %v14914_v19 = vld [vmem:[#allocation46_spill] sm:$0xff] }
 0x7a4   :  { %8349 = vmatprep.mubr.bf16.mxu0 %v2326_v63  ;;  %v2105_v61 = vpop.xlane.xlu1 %2104  ;;  %v2257_v45 = vmul.f32 %v9486_v62, %v11701_v41  ;;  %v11904_v2 = vpop.eup %9487  ;;  %v14912_v41 = vld [vmem:[#allocation43_spill] sm:$0xff]  ;;  %v2054_v52 = vmul.f32 1.442695, %v1930_v0  ;;  %v14921_v0 = vld [vmem:[#allocation72_spill] sm:$0xff] }
 0x7a5   :  { %9503 = vrcp.f32 %v2105_v61  ;;  %8350 = vmatmul.mubr.bf16.vlgmr.msra.gmra.mrb[48].mxu0 %v2327_v38  ;;  %v11908_v17 = vpop.eup %9489  ;;  %v2058_v57 = vmul.f32 1.442695, %v1932_v27  ;;  %v14919_v38 = vld [vmem:[#allocation48_spill] sm:$0xff]  ;;  %v14920_v61 = vld [vmem:[#allocation61_spill] sm:$0xff]  ;;  %v14922_v27 = vld [vmem:[#allocation74_spill] sm:$0xff] }
 0x7a6   :  { %9505 = vrcp.f32 %v2109_v4  ;;  %8398 = vmatpush3.bf16.msra.mxu0 %v14911_v11  ;;  %v2103_v40 = vpop.xlane.xlu0 %2102  ;;  %2148 = vadd.xlane.f32.xlu0 %v11904_v2  ;;  %v2334_v1 = vpack.c.bf16 %v2257_v45, %v2255_v47  ;;  %v11916_v43 = vpop.eup %9491 }
 0x7a7   :  { %9507 = vrcp.f32 %v2103_v40  ;;  %8399 = vmatprep.subr.bf16.mxu0 %v14912_v41  ;;  %2180 = vadd.xlane.f32.xlu1 %v11908_v17  ;;  %v11918_v10 = vpop.eup %9493 }
 0x7a8   :  { %9509 = vpow2.f32 %v2056_v50  ;;  %8381 = vmatprep.mubr.bf16.mxu1 %v2334_v1  ;;  %v11920_v53 = vpop.xlane.xlu1 %2136  ;;  %v11926_v35 = vpop.eup %9495 }
 0x7a9   :  { %9511 = vpow2.f32 %v2026_v20  ;;  %v11932_v42 = vpop.eup %9497 }
 0x7aa   :  { %8400 = vmatpush3.bf16.msra.mxu0 %v14912_v41  ;;  %v11923_v16 = vpop.xlane.xlu0 %2134  ;;  %2174 = vadd.xlane.f32.xlu0 %v11916_v43  ;;  %v11934_v46 = vpop.eup %9499  ;;  %9513 = vpow2.f32 %v2060_v13 }
 0x7ab   :  { %8401 = vmatprep.subr.bf16.mxu0 %v14913_v30  ;;  %2152 = vadd.xlane.f32.xlu1 %v11918_v10  ;;  %v9502_v15 = vpop.eup %9501  ;;  %9515 = vpow2.f32 %v2054_v52 }
 0x7ac   :  { %v2117_v58 = vpop.xlane.xlu1 %2116  ;;  %v2235_v4 = vmul.f32 %v9502_v15, %v14916_v59  ;;  %9517 = vpow2.f32 %v2058_v57 }
 0x7ae   :  { %8402 = vmatpush3.bf16.msra.mxu0 %v14913_v30  ;;  %v11937_v34 = vpop.xlane.xlu0 %2140  ;;  %2178 = vadd.xlane.f32.xlu0 %v11934_v46  ;;  %v14923_v30 = vld [vmem:[#allocation73_spill] sm:$0xff] }
 0x7af   :  { %v9504_v54 = vpop.eup %9503  ;;  %8403 = vmatprep.subr.bf16.mxu0 %v14914_v19  ;;  %2156 = vadd.xlane.f32.xlu1 %v11926_v35 }
 0x7b0   :  { %v9506_v28 = vpop.eup %9505  ;;  %v2233_v24 = vmul.f32 %v9504_v54, %v14915_v44  ;;  %v14924_v54 = vld [vmem:[#allocation65_spill] sm:$0xff] }
 0x7b1   :  { %v9508_v36 = vpop.eup %9507  ;;  %v2237_v63 = vmul.f32 %v9506_v28, %v14918_v6  ;;  %v14928_v6 = vld [vmem:[#allocation75_spill] sm:$0xff] }
 0x7b2   :  { %v11942_v56 = vpop.eup %9509  ;;  %8404 = vmatpush3.bf16.msra.mxu0 %v14914_v19  ;;  %v2115_v12 = vpop.xlane.xlu0 %2114  ;;  %2150 = vadd.xlane.f32.xlu0 %v11932_v42  ;;  %v2231_v37 = vmul.f32 %v9508_v36, %v11729_v60 }
 0x7b3   :  { %8405 = vmatprep.subr.bf16.mxu0 %v14917_v9  ;;  %2184 = vadd.xlane.f32.xlu1 %v11942_v56  ;;  %9519 = vrcp.f32 %v2115_v12  ;;  %v11952_v62 = vpop.eup %9511  ;;  %v2329_v29 = vpack.c.bf16 %v2237_v63, %v2235_v4  ;;  %v14926_v4 = vld [vmem:[#allocation77_spill] sm:$0xff] }
 0x7b4   :  { %v2113_v39 = vpop.xlane.xlu1 %2112  ;;  %v2328_v7 = vpack.c.bf16 %v2233_v24, %v2231_v37  ;;  %v11956_v25 = vpop.eup %9513  ;;  %v14925_v24 = vld [vmem:[#allocation76_spill] sm:$0xff] }
 0x7b5   :  { %9521 = vrcp.f32 %v2113_v39  ;;  %v11960_v50 = vpop.eup %9515  ;;  %v14927_v39 = vld [vmem:[#allocation78_spill] sm:$0xff] }
 0x7b6   :  { %9523 = vrcp.f32 %v2117_v58  ;;  %8406 = vmatpush3.bf16.msra.mxu0 %v14917_v9  ;;  %v2111_v60 = vpop.xlane.xlu0 %2110  ;;  %2154 = vadd.xlane.f32.xlu0 %v11952_v62  ;;  %v11965_v47 = vpop.eup %9517 }
 0x7b7   :  { %9525 = vrcp.f32 %v2111_v60  ;;  %8353 = vmatprep.mubr.bf16.mxu0 %v2328_v7  ;;  %8407 = vmatprep.subr.bf16.mxu0 %v14919_v38 }
 0x7b8   :  { %2188 = vadd.xlane.f32.xlu1 %v11956_v25  ;;  %8354 = vmatmul.mubr.bf16.gmra.mrb[52].mxu0 %v2329_v29 }
 0x7ba   :  { %8408 = vmatpush3.bf16.msra.mxu0 %v14919_v38  ;;  %2182 = vadd.xlane.f32.xlu0 %v11960_v50  ;;  %v2123_v55 = vpop.xlane.xlu0 %2122 }
 0x7bb   :  { %8409 = vmatprep.subr.bf16.mxu0 %v14920_v61 }
 0x7bc   :  { %v2125_v40 = vpop.xlane.xlu1 %2124 }
 0x7bd   :  { %v9520_v45 = vpop.eup %9519  ;;  %9527 = vrcp.f32 %v2125_v40 }
 0x7be   :  { %8410 = vmatpush3.bf16.msra.mxu0 %v14920_v61  ;;  %2186 = vadd.xlane.f32.xlu0 %v11965_v47  ;;  %v2243_v41 = vmul.f32 %v9520_v45, %v14921_v0  ;;  %v14930_v0 = vld [vmem:[#allocation62_spill] sm:$0xff] }
 0x7bf   :  { %v9522_v11 = vpop.eup %9521 }
 0x7c0   :  { %v9524_v1 = vpop.eup %9523  ;;  %v2241_v15 = vmul.f32 %v9522_v11, %v14923_v30 }
 0x7c1   :  { %v9526_v20 = vpop.eup %9525  ;;  %v2245_v57 = vmul.f32 %v9524_v1, %v14924_v54  ;;  %v14929_v1 = vld [vmem:[#allocation52_spill] sm:$0xff] }
 0x7c2   :  { %v2119_v13 = vpop.xlane.xlu0 %2118  ;;  %v2239_v52 = vmul.f32 %v9526_v20, %v14922_v27  ;;  %v14932_v27 = vld [vmem:[#allocation56_spill] sm:$0xff] }
 0x7c3   :  { %9529 = vrcp.f32 %v2119_v13  ;;  %v2331_v58 = vpack.c.bf16 %v2245_v57, %v2243_v41 }
 0x7c4   :  { %9531 = vrcp.f32 %v2123_v55  ;;  %v2121_v19 = vpop.xlane.xlu1 %2120  ;;  %v2330_v28 = vpack.c.bf16 %v2241_v15, %v2239_v52 }
 0x7c5   :  { %9533 = vrcp.f32 %v2121_v19 }
 0x7c6   :  { %8357 = vmatprep.mubr.bf16.mxu0 %v2330_v28  ;;  %9535 = vrcp.f32 %v11879_v5 }
 0x7c7   :  { %8358 = vmatmul.mubr.bf16.gmra.mrb[56].mxu0 %v2331_v58  ;;  %v9528_v36 = vpop.eup %9527  ;;  %9537 = vrcp.f32 %v11923_v16 }
 0x7c8   :  { %v2253_v59 = vmul.f32 %v9528_v36, %v14925_v24  ;;  %9539 = vrcp.f32 %v11858_v18 }
 0x7c9   :  { %9541 = vrcp.f32 %v11920_v53 }
 0x7ca   :  { %9543 = vrcp.f32 %v11896_v48  ;;  %v14931_v48 = vld [vmem:[#allocation50_spill] sm:$0xff] }
 0x7cb   :  { %9545 = vrcp.f32 %v11937_v34 }
 0x7cd   :  { %v9530_v12 = vpop.eup %9529 }
 0x7ce   :  { %v9532_v37 = vpop.eup %9531  ;;  %v2247_v9 = vmul.f32 %v9530_v12, %v14926_v4 }
 0x7cf   :  { %v9534_v44 = vpop.eup %9533  ;;  %v2251_v63 = vmul.f32 %v9532_v37, %v14928_v6  ;;  %v14933_v37 = vld [vmem:[#allocation66_spill] sm:$0xff] }
 0x7d0   :  { %v2249_v7 = vmul.f32 %v9534_v44, %v14927_v39  ;;  %v9536_v55 = vpop.eup %9535  ;;  %v14934_v39 = vld [vmem:[#allocation57_spill] sm:$0xff] }
 0x7d1   :  { %v2333_v29 = vpack.c.bf16 %v2253_v59, %v2251_v63  ;;  %v9538_v40 = vpop.eup %9537  ;;  %v2261_v18 = vmul.f32 %v9536_v55, %v14929_v1 }
 0x7d2   :  { %v2332_v60 = vpack.c.bf16 %v2249_v7, %v2247_v9  ;;  %v9540_v5 = vpop.eup %9539  ;;  %v2263_v41 = vmul.f32 %v9538_v40, %v14930_v0 }
 0x7d3   :  { %v9542_v16 = vpop.eup %9541  ;;  %v2259_v13 = vmul.f32 %v9540_v5, %v14931_v48 }
 0x7d4   :  { %8361 = vmatprep.mubr.bf16.mxu0 %v2332_v60  ;;  %v9544_v34 = vpop.eup %9543  ;;  %v2265_v52 = vmul.f32 %v9542_v16, %v14932_v27 }
 0x7d5   :  { %8362 = vmatmul.mubr.bf16.gmra.mrb[60].mxu0 %v2333_v29  ;;  %v9546_v30 = vpop.eup %9545  ;;  %v2335_v15 = vpack.c.bf16 %v2261_v18, %v2259_v13  ;;  %v2267_v7 = vmul.f32 %v9544_v34, %v14934_v39 }
 0x7d6   :  { %v2336_v19 = vpack.c.bf16 %v2265_v52, %v2263_v41  ;;  %v2269_v44 = vmul.f32 %v9546_v30, %v14933_v37 }
 0x7d8   :  { %v2337_v63 = vpack.c.bf16 %v2269_v44, %v2267_v7 }
 0x7e7   :  { %v2165_v38 = vpop.xlane.xlu1 %2164 }
 0x7ea   :  { %v2163_v61 = vpop.xlane.xlu0 %2162 }
 0x7eb   :  { %v2161_v45 = vpop.xlane.xlu1 %2160  ;;  %9547 = vrcp.f32 %v2163_v61 }
 0x7ec   :  { %9549 = vrcp.f32 %v2161_v45 }
 0x7ed   :  { %9551 = vrcp.f32 %v2165_v38 }
 0x7ee   :  { %v2159_v11 = vpop.xlane.xlu0 %2158 }
 0x7ef   :  { %9553 = vrcp.f32 %v2159_v11 }
 0x7f2   :  { %v2607_v20 = vpop.permute.xlu0 %2606  ;;  %v2173_v53 = vpop.xlane.xlu1 %2172 }
 0x7f3   :  { %8379 = vmatprep.subr.bf16.mxu1 %v2607_v20 }
 0x7f4   :  { %8380 = vmatpush3.bf16.msra.mxu1 %v2607_v20 }
 0x7f5   :  { %v9548_v54 = vpop.eup %9547 }
 0x7f6   :  { %v2169_v57 = vpop.xlane.xlu1 %2168  ;;  %v9550_v28 = vpop.eup %9549  ;;  %v2291_v12 = vmul.f32 %v9548_v54, %v11815_v32 }
 0x7f7   :  { %8382 = vmatmul.mubr.bf16.vlgmr.msra.gmra.mrb[64].mxu1 %v2335_v15  ;;  %v9552_v58 = vpop.eup %9551  ;;  %v2289_v4 = vmul.f32 %v9550_v28, %v11818_v49 }
 0x7f8   :  { %8385 = vmatprep.mubr.bf16.mxu1 %v2336_v19  ;;  %v2293_v9 = vmul.f32 %v9552_v58, %v11809_v23 }
 0x7f9   :  { %v9554_v36 = vpop.eup %9553 }
 0x7fa   :  { %v2728_v24 = vpop.permute.xlu1 %2727  ;;  %v2287_v59 = vmul.f32 %v9554_v36, %v11822_v8  ;;  %v2343_v60 = vpack.c.bf16 %v2293_v9, %v2291_v12 }
 0x7fb   :  { %8411 = vmatprep.subr.bf16.mxu0 %v2728_v24 }
 0x7fc   :  { %8412 = vmatpush3.bf16.msra.mxu0 %v2728_v24  ;;  %v2342_v6 = vpack.c.bf16 %v2289_v4, %v2287_v59 }
 0x7fe   :  { %8413 = vmatprep.mubr.bf16.mxu0 %v2342_v6 }
 0x7ff   :  { %8386 = vmatmul.mubr.bf16.gmra.mrb[68].mxu1 %v2337_v63  ;;  %8414 = vmatmul.mubr.bf16.vlgmr.msra.gmra.mrb[64].mxu0 %v2343_v60 }
 0x816   :  { %v11993_v32 = vpop.f32.mrb[48].mxu1 }
 0x817   :  { %v11995_v29 = vpop.f32.mrb[49].mxu1 }
 0x818   :  { %v11997_v38 = vpop.f32.mrb[50].mxu1 }
 0x819   :  { %v11999_v8 = vpop.f32.mrb[51].mxu1 }
 0x820   :  { %v12001_v49 = vpop.f32.mrb[52].mxu1 }
 0x821   :  { %v12003_v23 = vpop.f32.mrb[53].mxu1 }
 0x822   :  { %v12005_v61 = vpop.f32.mrb[54].mxu1 }
 0x823   :  { %v2171_v45 = vpop.xlane.xlu0 %2170  ;;  %v12007_v55 = vpop.f32.mrb[55].mxu1 }
 0x824   :  { %9555 = vrcp.f32 %v2171_v45 }
 0x825   :  { %9557 = vrcp.f32 %v2169_v57 }
 0x826   :  { %9559 = vrcp.f32 %v2173_v53 }
 0x827   :  { %v2167_v11 = vpop.xlane.xlu0 %2166 }
 0x828   :  { %9561 = vrcp.f32 %v2167_v11 }
 0x82b   :  { %v2143_v40 = vpop.xlane.xlu0 %2142  ;;  %v2145_v5 = vpop.xlane.xlu1 %2144 }
 0x82c   :  { %9563 = vrcp.f32 %v2143_v40  ;;  %v12009_v16 = vpop.f32.mrb[56].mxu1 }
 0x82d   :  { %9565 = vrcp.f32 %v2145_v5  ;;  %v12011_v1 = vpop.f32.mrb[57].mxu1 }
 0x82e   :  { %v12013_v18 = vpop.f32.mrb[58].mxu1  ;;  %v9556_v20 = vpop.eup %9555 }
 0x82f   :  { %v2147_v0 = vpop.xlane.xlu0 %2146  ;;  %v12015_v41 = vpop.f32.mrb[59].mxu1  ;;  %v2299_v27 = vmul.f32 %v9556_v20, %v11863_v31 }
 0x830   :  { %v9558_v48 = vpop.eup %9557  ;;  %v2177_v13 = vpop.xlane.xlu1 %2176  ;;  %9567 = vrcp.f32 %v2147_v0 }
 0x831   :  { %v9560_v34 = vpop.eup %9559  ;;  %v2297_v15 = vmul.f32 %v9558_v48, %v11830_v22 }
 0x832   :  { %v9562_v53 = vpop.eup %9561  ;;  %v2301_v57 = vmul.f32 %v9560_v34, %v11825_v14 }
 0x833   :  { %v2149_v52 = vpop.xlane.xlu0 %2148  ;;  %v2295_v30 = vmul.f32 %v9562_v53, %v11871_v3 }
 0x834   :  { %9569 = vrcp.f32 %v2149_v52  ;;  %v2181_v54 = vpop.xlane.xlu1 %2180  ;;  %v2345_v58 = vpack.c.bf16 %v2301_v57, %v2299_v27 }
 0x835   :  { %v2344_v19 = vpack.c.bf16 %v2297_v15, %v2295_v30  ;;  %9571 = vrcp.f32 %v2177_v13 }
 0x836   :  { %v9564_v28 = vpop.eup %9563 }
 0x837   :  { %v9566_v36 = vpop.eup %9565  ;;  %v2175_v12 = vpop.xlane.xlu0 %2174  ;;  %8417 = vmatprep.mubr.bf16.mxu0 %v2344_v19  ;;  %v2271_v37 = vmul.f32 %v9564_v28, %v11875_v26 }
 0x838   :  { %9573 = vrcp.f32 %v2175_v12  ;;  %8418 = vmatmul.mubr.bf16.gmra.mrb[68].mxu0 %v2345_v58  ;;  %v2153_v31 = vpop.xlane.xlu1 %2152  ;;  %v2273_v3 = vmul.f32 %v9566_v36, %v11882_v51 }
 0x839   :  { %9575 = vrcp.f32 %v2181_v54 }
 0x83a   :  { %v2338_v22 = vpack.c.bf16 %v2273_v3, %v2271_v37  ;;  %v9568_v24 = vpop.eup %9567 }
 0x83b   :  { %v2179_v44 = vpop.xlane.xlu0 %2178  ;;  %v2275_v9 = vmul.f32 %v9568_v24, %v11867_v21 }
 0x83c   :  { %9577 = vrcp.f32 %v2179_v44  ;;  %8389 = vmatprep.mubr.bf16.mxu1 %v2338_v22  ;;  %v2157_v14 = vpop.xlane.xlu1 %2156 }
 0x83d   :  { %9579 = vrcp.f32 %v2153_v31 }
 0x83e   :  { %v9570_v59 = vpop.eup %9569 }
 0x83f   :  { %v2151_v4 = vpop.xlane.xlu0 %2150  ;;  %v2277_v39 = vmul.f32 %v9570_v59, %v11904_v2  ;;  %v9572_v26 = vpop.eup %9571 }
 0x840   :  { %9581 = vrcp.f32 %v2151_v4  ;;  %v2185_v6 = vpop.xlane.xlu1 %2184  ;;  %v2305_v21 = vmul.f32 %v9572_v26, %v11889_v33 }
 0x841   :  { %v12025_v7 = vpop.f32.mrb[60].mxu1  ;;  %v2339_v51 = vpack.c.bf16 %v2277_v39, %v2275_v9  ;;  %9583 = vrcp.f32 %v2157_v14 }
 0x842   :  { %v9574_v63 = vpop.eup %9573  ;;  %v12027_v60 = vpop.f32.mrb[61].mxu1 }
 0x843   :  { %v12029_v45 = vpop.f32.mrb[62].mxu1  ;;  %v2155_v11 = vpop.xlane.xlu0 %2154  ;;  %8390 = vmatmul.mubr.bf16.gmra.mrb[72].mxu1 %v2339_v51  ;;  %v2303_v40 = vmul.f32 %v9574_v63, %v11916_v43 }
 0x844   :  { %v9576_v5 = vpop.eup %9575  ;;  %9585 = vrcp.f32 %v2155_v11  ;;  %v12033_v2 = vpop.f32.mrb[63].mxu1 }
 0x845   :  { %v2346_v20 = vpack.c.bf16 %v2305_v21, %v2303_v40  ;;  %9587 = vrcp.f32 %v2185_v6  ;;  %v2189_v48 = vpop.xlane.xlu1 %2188  ;;  %v2309_v53 = vmul.f32 %v9576_v5, %v11908_v17 }
 0x846   :  { %v9578_v0 = vpop.eup %9577 }
 0x847   :  { %v2183_v13 = vpop.xlane.xlu0 %2182  ;;  %8421 = vmatprep.mubr.bf16.mxu0 %v2346_v20  ;;  %v2307_v34 = vmul.f32 %v9578_v0, %v11934_v46  ;;  %v9580_v27 = vpop.eup %9579 }
 0x848   :  { %9589 = vrcp.f32 %v2183_v13  ;;  %v2281_v15 = vmul.f32 %v9580_v27, %v11918_v10 }
 0x849   :  { %v2347_v52 = vpack.c.bf16 %v2309_v53, %v2307_v34  ;;  %9591 = vrcp.f32 %v2189_v48  ;;  %v9247_v34 = vld [vmem:[%s14579_s7] sm:$0xff]  }
 0x84a   :  { %v9582_v43 = vpop.eup %9581  ;;  %8429 = vmatprep.subr.bf16.mxu1 %v9247_v34 }
 0x84b   :  { %v2187_v33 = vpop.xlane.xlu0 %2186  ;;  %8422 = vmatmul.mubr.bf16.gmra.mrb[72].mxu0 %v2347_v52  ;;  %v2279_v30 = vmul.f32 %v9582_v43, %v11932_v42  ;;  %v9584_v54 = vpop.eup %9583  ;;  %8430 = vmatpush3.bf16.msra.mxu1 %v9247_v34 }
 0x84c   :  { %9593 = vrcp.f32 %v2187_v33  ;;  %v2285_v17 = vmul.f32 %v9584_v54, %v11926_v35 }
 0x84d   :  { %v2340_v57 = vpack.c.bf16 %v2281_v15, %v2279_v30  ;;  %v9248_v30 = vld [vmem:[%s14579_s7 + $0x8] sm:$0xff]  }
 0x84e   :  { %v9586_v19 = vpop.eup %9585  ;;  %8431 = vmatprep.subr.bf16.mxu1 %v9248_v30 }
 0x84f   :  { %8393 = vmatprep.mubr.bf16.mxu1 %v2340_v57  ;;  %v2283_v46 = vmul.f32 %v9586_v19, %v11952_v62  ;;  %v9588_v28 = vpop.eup %9587  ;;  %8432 = vmatpush3.bf16.msra.mxu1 %v9248_v30 }
 0x850   :  { %v2313_v37 = vmul.f32 %v9588_v28, %v11942_v56 }
 0x851   :  { %v2341_v58 = vpack.c.bf16 %v2285_v17, %v2283_v46 }
 0x852   :  { %v9590_v36 = vpop.eup %9589 }
 0x853   :  { %8394 = vmatmul.mubr.bf16.gmra.mrb[76].mxu1 %v2341_v58  ;;  %v2311_v12 = vmul.f32 %v9590_v36, %v11960_v50  ;;  %v9592_v42 = vpop.eup %9591 }
 0x854   :  { %v2317_v22 = vmul.f32 %v9592_v42, %v11956_v25 }
 0x855   :  { %v2348_v31 = vpack.c.bf16 %v2313_v37, %v2311_v12 }
 0x856   :  { %v9594_v10 = vpop.eup %9593 }
 0x857   :  { %8425 = vmatprep.mubr.bf16.mxu0 %v2348_v31  ;;  %v2315_v3 = vmul.f32 %v9594_v10, %v11965_v47 }
 0x859   :  { %v2349_v44 = vpack.c.bf16 %v2317_v22, %v2315_v3 }
 0x85b   :  { %8426 = vmatmul.mubr.bf16.gmra.mrb[76].mxu0 %v2349_v44 }
 0x878   :  { %v8351_v62 = vpop.f32.mrb[48].mxu0 }
 0x879   :  { %v2529_v35 = vpop.f32.mrb[49].mxu0 }
 0x87a   :  { %v8352_v24 = vpop.f32.mrb[50].mxu0 }
 0x87b   :  { %v8994_v14 = vpack.i.bf16 %v8352_v24, %v8351_v62  ;;  %v2532_v59 = vpop.f32.mrb[51].mxu0 }
 0x87c   :  { %v9004_v4 = vpack.i.bf16 %v2532_v59, %v2529_v35 }
 0x87d   :  { %8995 = vrot.lane.b32.xlu1 %v8994_v14, %s10043_s2 }
 0x87e   :  { %9005 = vrot.lane.b32.xlu0 %v9004_v4, %s10043_s2 }
 0x88b   :  { %v8355_v56 = vpop.f32.mrb[52].mxu0 }
 0x88c   :  { %v2545_v50 = vpop.f32.mrb[53].mxu0 }
 0x88d   :  { %v8356_v9 = vpop.f32.mrb[54].mxu0 }
 0x88e   :  { %v9029_v39 = vpack.i.bf16 %v8356_v9, %v8355_v56  ;;  %v2548_v47 = vpop.f32.mrb[55].mxu0 }
 0x88f   :  { %v9024_v26 = vpack.i.bf16 %v2548_v47, %v2545_v50 }
 0x89a   :  { %v8359_v25 = vpop.f32.mrb[56].mxu0 }
 0x89b   :  { %v2561_v6 = vpop.f32.mrb[57].mxu0 }
 0x89c   :  { %v8360_v51 = vpop.f32.mrb[58].mxu0 }
 0x89d   :  { %v9059_v63 = vpack.i.bf16 %v8360_v51, %v8359_v25  ;;  %v2564_v11 = vpop.f32.mrb[59].mxu0 }
 0x89e   :  { %v9054_v40 = vpack.i.bf16 %v2564_v11, %v2561_v6 }
 0x8a8   :  { %v12047_v21 = vpop.f32.mrb[60].mxu0 }
 0x8a9   :  { %v12049_v5 = vpop.f32.mrb[61].mxu0 }
 0x8aa   :  { %v12051_v20 = vpop.f32.mrb[62].mxu0 }
 0x8ab   :  { %v9089_v0 = vpack.i.bf16 %v12051_v20, %v12047_v21  ;;  %v12055_v48 = vpop.f32.mrb[63].mxu0 }
 0x8ac   :  { %v9084_v13 = vpack.i.bf16 %v12055_v48, %v12049_v5 }
 0x8ca   :  { %v8383_v53 = vpop.f32.mrb[64].mxu1 }
 0x8cb   :  { %v2650_v27 = vpop.f32.mrb[65].mxu1 }
 0x8cc   :  { %v8384_v52 = vpop.f32.mrb[66].mxu1 }
 0x8cd   :  { %v8999_v43 = vpack.i.bf16 %v8384_v52, %v8383_v53  ;;  %v2653_v33 = vpop.f32.mrb[67].mxu1 }
 0x8ce   :  { %v9009_v15 = vpack.i.bf16 %v2653_v33, %v2650_v27 }
 0x8cf   :  { %9000 = vrot.lane.b32.xlu1 %v8999_v43, %s10044_s4 }
 0x8d2   :  { %v8387_v54 = vpop.f32.mrb[68].mxu1  ;;  %v8415_v57 = vpop.f32.mrb[64].mxu0 }
 0x8d3   :  { %9010 = vrot.lane.b32.xlu1 %v9009_v15, %s10044_s4  ;;  %v2666_v19 = vpop.f32.mrb[69].mxu1  ;;  %v2771_v46 = vpop.f32.mrb[65].mxu0 }
 0x8d4   :  { %v8388_v17 = vpop.f32.mrb[70].mxu1  ;;  %v8416_v28 = vpop.f32.mrb[66].mxu0 }
 0x8d5   :  { %v9039_v58 = vpack.i.bf16 %v8388_v17, %v8387_v54  ;;  %v2669_v36 = vpop.f32.mrb[71].mxu1  ;;  %v9019_v12 = vpack.i.bf16 %v8416_v28, %v8415_v57  ;;  %v2774_v37 = vpop.f32.mrb[67].mxu0 }
 0x8d6   :  { %v9034_v42 = vpack.i.bf16 %v2669_v36, %v2666_v19  ;;  %v9014_v31 = vpack.i.bf16 %v2774_v37, %v2771_v46 }
 0x8d7   :  { %9020 = vrot.lane.b32.xlu1 %v9019_v12, %s14696_s29 }
 0x8d8   :  { %9015 = vrot.lane.b32.xlu0 %v9014_v31, %s14696_s29 }
 0x8db   :  { %9030 = vrot.lane.b32.xlu1 %v9029_v39, %s10043_s2 }
 0x8dc   :  { %9025 = vrot.lane.b32.xlu0 %v9024_v26, %s10043_s2 }
 0x8df   :  { %9040 = vrot.lane.b32.xlu1 %v9039_v58, %s10044_s4 }
 0x8e0   :  { %9035 = vrot.lane.b32.xlu0 %v9034_v42, %s10044_s4 }
 0x8ef   :  { %v8996_v5 = vpop.permute.xlu1 %8995 }
 0x8f0   :  { %v9006_v48 = vpop.permute.xlu0 %9005  ;;  %v8997_v30 = vunpack.i.l.bf16 %v8996_v5 }
 0x8f1   :  { %v9008_v54 = vunpack.i.h.bf16 %v9006_v48  ;;  %v9007_v57 = vunpack.i.l.bf16 %v9006_v48 }
 0x8f2   :  { %v3028_v36 = vsel %vm1113_vm2, %v11993_v32, %v8997_v30 }
 0x8f3   :  { %v3027_v37 = vsel %vm1113_vm2, %v11999_v8, %v9008_v54  ;;  %v3026_v42 = vsel %vm1113_vm2, %v11995_v29, %v9007_v57 }
 0x90b   :  { %v8419_v10 = vpop.f32.mrb[68].mxu0 }
 0x90c   :  { %v2787_v3 = vpop.f32.mrb[69].mxu0 }
 0x90d   :  { %v8420_v22 = vpop.f32.mrb[70].mxu0 }
 0x90e   :  { %v9049_v44 = vpack.i.bf16 %v8420_v22, %v8419_v10  ;;  %v2790_v62 = vpop.f32.mrb[71].mxu0 }
 0x90f   :  { %v9044_v35 = vpack.i.bf16 %v2790_v62, %v2787_v3 }
 0x910   :  { %9050 = vrot.lane.b32.xlu1 %v9049_v44, %s14696_s29 }
 0x911   :  { %9045 = vrot.lane.b32.xlu0 %v9044_v35, %s14696_s29 }
 0x914   :  { %9060 = vrot.lane.b32.xlu1 %v9059_v63, %s10043_s2 }
 0x915   :  { %9055 = vrot.lane.b32.xlu0 %v9054_v40, %s10043_s2 }
 0x916   :  { %v8391_v24 = vpop.f32.mrb[72].mxu1 }
 0x917   :  { %v2682_v14 = vpop.f32.mrb[73].mxu1 }
 0x918   :  { %v8392_v59 = vpop.f32.mrb[74].mxu1 }
 0x919   :  { %v9069_v4 = vpack.i.bf16 %v8392_v59, %v8391_v24  ;;  %v2685_v56 = vpop.f32.mrb[75].mxu1 }
 0x91a   :  { %v9064_v50 = vpack.i.bf16 %v2685_v56, %v2682_v14 }
 0x91b   :  { %9070 = vrot.lane.b32.xlu1 %v9069_v4, %s10044_s4 }
 0x91c   :  { %9065 = vrot.lane.b32.xlu0 %v9064_v50, %s10044_s4 }
 0x91e   :  { %v8423_v9 = vpop.f32.mrb[72].mxu0 }
 0x91f   :  { %v2803_v39 = vpop.f32.mrb[73].mxu0 }
 0x920   :  { %v8424_v47 = vpop.f32.mrb[74].mxu0 }
 0x921   :  { %v9079_v26 = vpack.i.bf16 %v8424_v47, %v8423_v9  ;;  %v2806_v25 = vpop.f32.mrb[75].mxu0 }
 0x922   :  { %v9074_v6 = vpack.i.bf16 %v2806_v25, %v2803_v39 }
 0x923   :  { %9080 = vrot.lane.b32.xlu1 %v9079_v26, %s14696_s29 }
 0x924   :  { %9075 = vrot.lane.b32.xlu0 %v9074_v6, %s14696_s29 }
 0x926   :  { %v8395_v51 = vpop.f32.mrb[76].mxu1 }
 0x927   :  { %9090 = vrot.lane.b32.xlu1 %v9089_v0, %s10043_s2  ;;  %v2698_v63 = vpop.f32.mrb[77].mxu1 }
 0x928   :  { %9085 = vrot.lane.b32.xlu0 %v9084_v13, %s10043_s2  ;;  %v8396_v11 = vpop.f32.mrb[78].mxu1  ;;  %v8998_v13 = vunpack.i.h.bf16 %v8996_v5 }
 0x929   :  { %v9099_v40 = vpack.i.bf16 %v8396_v11, %v8395_v51  ;;  %v2701_v34 = vpop.f32.mrb[79].mxu1 }
 0x92a   :  { %v9094_v53 = vpack.i.bf16 %v2701_v34, %v2698_v63  ;;  %v3029_v58 = vsel %vm1113_vm2, %v11997_v38, %v8998_v13 }
 0x92b   :  { %9100 = vrot.lane.b32.xlu1 %v9099_v40, %s10044_s4 }
 0x92c   :  { %9095 = vrot.lane.b32.xlu0 %v9094_v53, %s10044_s4 }
 0x92e   :  { %v8427_v27 = vpop.f32.mrb[76].mxu0 }
 0x92f   :  { %v2819_v52 = vpop.f32.mrb[77].mxu0 }
 0x930   :  { %v8428_v43 = vpop.f32.mrb[78].mxu0 }
 0x931   :  { %v9109_v33 = vpack.i.bf16 %v8428_v43, %v8427_v27  ;;  %v2822_v21 = vpop.f32.mrb[79].mxu0 }
 0x932   :  { %v9104_v20 = vpack.i.bf16 %v2822_v21, %v2819_v52 }
 0x933   :  { %9110 = vrot.lane.b32.xlu1 %v9109_v33, %s14696_s29 }
 0x934   :  { %9105 = vrot.lane.b32.xlu0 %v9104_v20, %s14696_s29 }
 0x941   :  { %v9001_v0 = vpop.permute.xlu1 %9000 }
 0x942   :  { %v9003_v19 = vunpack.i.h.bf16 %v9001_v0  ;;  %v9002_v46 = vunpack.i.l.bf16 %v9001_v0 }
 0x944   :  { %v3045_v22 = vsel %vm3042_vm4, %v3028_v36, %v9002_v46  ;;  %v3046_v44 = vsel %vm3042_vm4, %v3029_v58, %v9003_v19 }
 0x945   :  { %v9011_v15 = vpop.permute.xlu1 %9010 }
 0x946   :  { %v9013_v17 = vunpack.i.h.bf16 %v9011_v15  ;;  %v9012_v28 = vunpack.i.l.bf16 %v9011_v15 }
 0x948   :  { %v3044_v35 = vsel %vm3042_vm4, %v3027_v37, %v9013_v17  ;;  %v3043_v32 = vsel %vm3042_vm4, %v3026_v42, %v9012_v28 }
 0x949   :  { %v9021_v12 = vpop.permute.xlu1 %9020 }
 0x94a   :  { %v9023_v31 = vunpack.i.h.bf16 %v9021_v12  ;;  %v9022_v10 = vunpack.i.l.bf16 %v9021_v12  ;;  %v9016_v3 = vpop.permute.xlu0 %9015 }
 0x94b   :  { %v9018_v62 = vunpack.i.h.bf16 %v9016_v3  ;;  %v9017_v38 = vunpack.i.l.bf16 %v9016_v3 }
 0x94c   :  { %v3062_v24 = vsel %vm3059_vm10, %v3045_v22, %v9022_v10  ;;  %v3063_v8 = vsel %vm3059_vm10, %v3046_v44, %v9023_v31 }
 0x94d   :  { %v3077_v14 = vpack.c.bf16 %v3063_v8, %v3062_v24  ;;  %v3060_v29 = vsel %vm3059_vm10, %v3043_v32, %v9017_v38  ;;  %v3061_v59 = vsel %vm3059_vm10, %v3044_v35, %v9018_v62  ;;  %v9031_v56 = vpop.permute.xlu1 %9030 }
 0x94e   :  { %v3076_v4 = vpack.c.bf16 %v3061_v59, %v3060_v29  ;;  %v9026_v50 = vpop.permute.xlu0 %9025  ;;  %v9033_v39 = vunpack.i.h.bf16 %v9031_v56  ;;  %v9032_v47 = vunpack.i.l.bf16 %v9031_v56 }
 0x94f   :  { %v9028_v25 = vunpack.i.h.bf16 %v9026_v50  ;;  %v9027_v6 = vunpack.i.l.bf16 %v9026_v50 }
 0x950   :  { %8433 = vmatprep.mubr.msk.bf16.mxu1 %vm373_vm1, %v3076_v4  ;;  %v3033_v34 = vsel %vm1113_vm2, %v12005_v61, %v9033_v39  ;;  %v3032_v53 = vsel %vm1113_vm2, %v12001_v49, %v9032_v47 }
 0x951   :  { %8434 = vmatmul.mubr.msk.bf16.vlgmr.msra.gmra.mrb[80].mxu1 %vm373_vm1, %v3077_v14  ;;  %v9041_v9 = vpop.permute.xlu1 %9040  ;;  %v3031_v52 = vsel %vm1113_vm2, %v12007_v55, %v9028_v25  ;;  %v3030_v43 = vsel %vm1113_vm2, %v12003_v23, %v9027_v6 }
 0x952   :  { %v9036_v26 = vpop.permute.xlu0 %9035  ;;  %v9043_v51 = vunpack.i.h.bf16 %v9041_v9  ;;  %v9042_v63 = vunpack.i.l.bf16 %v9041_v9 }
 0x953   :  { %v9038_v11 = vunpack.i.h.bf16 %v9036_v26  ;;  %v9037_v40 = vunpack.i.l.bf16 %v9036_v26 }
 0x954   :  { %v3049_v5 = vsel %vm3042_vm4, %v3032_v53, %v9042_v63  ;;  %v3050_v0 = vsel %vm3042_vm4, %v3033_v34, %v9043_v51 }
 0x955   :  { %v3047_v61 = vsel %vm3042_vm4, %v3030_v43, %v9037_v40  ;;  %v3048_v49 = vsel %vm3042_vm4, %v3031_v52, %v9038_v11 }
 0x982   :  { %v9051_v27 = vpop.permute.xlu1 %9050 }
 0x983   :  { %v9053_v33 = vunpack.i.h.bf16 %v9051_v27  ;;  %v9052_v21 = vunpack.i.l.bf16 %v9051_v27  ;;  %v9046_v20 = vpop.permute.xlu0 %9045 }
 0x984   :  { %v9048_v48 = vunpack.i.h.bf16 %v9046_v20  ;;  %v9047_v13 = vunpack.i.l.bf16 %v9046_v20 }
 0x985   :  { %v3066_v30 = vsel %vm3059_vm10, %v3049_v5, %v9052_v21  ;;  %v3067_v55 = vsel %vm3059_vm10, %v3050_v0, %v9053_v33 }
 0x986   :  { %v3065_v15 = vsel %vm3059_vm10, %v3048_v49, %v9048_v48  ;;  %v3064_v23 = vsel %vm3059_vm10, %v3047_v61, %v9047_v13  ;;  %v3079_v54 = vpack.c.bf16 %v3067_v55, %v3066_v30  ;;  %v9061_v19 = vpop.permute.xlu1 %9060 }
 0x987   :  { %v3078_v57 = vpack.c.bf16 %v3065_v15, %v3064_v23  ;;  %v9056_v46 = vpop.permute.xlu0 %9055  ;;  %v9063_v28 = vunpack.i.h.bf16 %v9061_v19  ;;  %v9062_v58 = vunpack.i.l.bf16 %v9061_v19  ;;  %v12168_v19 = vld [vmem:[%s14580_s8] ss:$0 sm:$0xff] }
 0x988   :  { %v9058_v12 = vunpack.i.h.bf16 %v9056_v46  ;;  %v9057_v37 = vunpack.i.l.bf16 %v9056_v46 }
 0x989   :  { %8437 = vmatprep.mubr.msk.bf16.mxu1 %vm373_vm1, %v3078_v57  ;;  %v3037_v22 = vsel %vm1113_vm2, %v12013_v18, %v9063_v28  ;;  %v3036_v44 = vsel %vm1113_vm2, %v12009_v16, %v9062_v58 }
 0x98a   :  { %8438 = vmatmul.mubr.msk.bf16.gmra.mrb[84].mxu1 %vm373_vm1, %v3079_v54  ;;  %v3035_v38 = vsel %vm1113_vm2, %v12015_v41, %v9058_v12  ;;  %v3034_v35 = vsel %vm1113_vm2, %v12011_v1, %v9057_v37  ;;  %v14935_v37 = vld [vmem:[#allocation5_spill] sm:$0xff] }
 0x98d   :  { %v9071_v17 = vpop.permute.xlu1 %9070 }
 0x98e   :  { %v9066_v36 = vpop.permute.xlu0 %9065  ;;  %v9073_v42 = vunpack.i.h.bf16 %v9071_v17  ;;  %v9072_v31 = vunpack.i.l.bf16 %v9071_v17 }
 0x98f   :  { %v9068_v10 = vunpack.i.h.bf16 %v9066_v36  ;;  %v9067_v3 = vunpack.i.l.bf16 %v9066_v36 }
 0x990   :  { %v3053_v14 = vsel %vm3042_vm4, %v3036_v44, %v9072_v31  ;;  %v3054_v29 = vsel %vm3042_vm4, %v3037_v22, %v9073_v42  ;;  %v14937_v44 = vld [vmem:[#allocation6_spill] sm:$0xff] }
 0x991   :  { %v3052_v18 = vsel %vm3042_vm4, %v3035_v38, %v9068_v10  ;;  %v3051_v16 = vsel %vm3042_vm4, %v3034_v35, %v9067_v3  ;;  %v14936_v10 = vld [vmem:[#allocation7_spill] sm:$0xff] }
 0x995   :  { %v9081_v62 = vpop.permute.xlu1 %9080 }
 0x996   :  { %v9083_v32 = vunpack.i.h.bf16 %v9081_v62  ;;  %v9082_v24 = vunpack.i.l.bf16 %v9081_v62  ;;  %v9076_v8 = vpop.permute.xlu0 %9075 }
 0x997   :  { %v9078_v59 = vunpack.i.h.bf16 %v9076_v8  ;;  %v9077_v4 = vunpack.i.l.bf16 %v9076_v8 }
 0x998   :  { %v3070_v56 = vsel %vm3059_vm10, %v3053_v14, %v9082_v24  ;;  %v3071_v41 = vsel %vm3059_vm10, %v3054_v29, %v9083_v32  ;;  %v14938_v32 = vld [vmem:[#allocation8_spill] sm:$0xff] }
 0x999   :  { %v3069_v50 = vsel %vm3059_vm10, %v3052_v18, %v9078_v59  ;;  %v3068_v1 = vsel %vm3059_vm10, %v3051_v16, %v9077_v4  ;;  %v3081_v9 = vpack.c.bf16 %v3071_v41, %v3070_v56  ;;  %v9091_v39 = vpop.permute.xlu1 %9090  ;;  %v14939_v41 = vld [vmem:[#allocation9_spill] sm:$0xff] }
 0x99a   :  { %v3080_v47 = vpack.c.bf16 %v3069_v50, %v3068_v1  ;;  %v9086_v26 = vpop.permute.xlu0 %9085  ;;  %v9093_v6 = vunpack.i.h.bf16 %v9091_v39  ;;  %v9092_v51 = vunpack.i.l.bf16 %v9091_v39  ;;  %v14940_v39 = vld [vmem:[#allocation11_spill] sm:$0xff] }
 0x99b   :  { %v9088_v11 = vunpack.i.h.bf16 %v9086_v26  ;;  %v9087_v40 = vunpack.i.l.bf16 %v9086_v26  ;;  %v14941_v26 = vld [vmem:[#allocation10_spill] sm:$0xff] }
 0x99c   :  { %8441 = vmatprep.mubr.msk.bf16.mxu1 %vm373_vm1, %v3080_v47  ;;  %v3041_v43 = vsel %vm1113_vm2, %v12029_v45, %v9093_v6  ;;  %v3040_v33 = vsel %vm1113_vm2, %v12025_v7, %v9092_v51  ;;  %v14942_v51 = vld [vmem:[#allocation12_spill] sm:$0xff] }
 0x99d   :  { %8442 = vmatmul.mubr.msk.bf16.gmra.mrb[88].mxu1 %vm373_vm1, %v3081_v9  ;;  %v9101_v25 = vpop.permute.xlu1 %9100  ;;  %v3039_v20 = vsel %vm1113_vm2, %v12033_v2, %v9088_v11  ;;  %v3038_v5 = vsel %vm1113_vm2, %v12027_v60, %v9087_v40 }
 0x99e   :  { %v9096_v63 = vpop.permute.xlu0 %9095  ;;  %v9103_v34 = vunpack.i.h.bf16 %v9101_v25  ;;  %v9102_v53 = vunpack.i.l.bf16 %v9101_v25 }
 0x99f   :  { %v9098_v27 = vunpack.i.h.bf16 %v9096_v63  ;;  %v9097_v52 = vunpack.i.l.bf16 %v9096_v63 }
 0x9a0   :  { %v3057_v61 = vsel %vm3042_vm4, %v3040_v33, %v9102_v53  ;;  %v3058_v49 = vsel %vm3042_vm4, %v3041_v43, %v9103_v34 }
 0x9a1   :  { %v3056_v45 = vsel %vm3042_vm4, %v3039_v20, %v9098_v27  ;;  %v3055_v7 = vsel %vm3042_vm4, %v3038_v5, %v9097_v52  ;;  %v14943_v20 = vld [vmem:[#allocation13_spill] sm:$0xff] }
 0x9a5   :  { %v9111_v21 = vpop.permute.xlu1 %9110 }
 0x9a6   :  { %v9113_v0 = vunpack.i.h.bf16 %v9111_v21  ;;  %v9112_v48 = vunpack.i.l.bf16 %v9111_v21  ;;  %v9106_v13 = vpop.permute.xlu0 %9105 }
 0x9a7   :  { %v9108_v30 = vunpack.i.h.bf16 %v9106_v13  ;;  %v9107_v55 = vunpack.i.l.bf16 %v9106_v13  ;;  %v14944_v13 = vld [vmem:[#allocation15_spill] sm:$0xff] }
 0x9a8   :  { %v3074_v15 = vsel %vm3059_vm10, %v3057_v61, %v9112_v48  ;;  %v3075_v2 = vsel %vm3059_vm10, %v3058_v49, %v9113_v0  ;;  %v14945_v49 = vld [vmem:[#allocation14_spill] sm:$0xff] }
 0x9a9   :  { %v3073_v23 = vsel %vm3059_vm10, %v3056_v45, %v9108_v30  ;;  %v3072_v60 = vsel %vm3059_vm10, %v3055_v7, %v9107_v55  ;;  %v3083_v54 = vpack.c.bf16 %v3075_v2, %v3074_v15  ;;  %v14946_v45 = vld [vmem:[#allocation16_spill] sm:$0xff] }
 0x9aa   :  { %v3082_v57 = vpack.c.bf16 %v3073_v23, %v3072_v60 }
 0x9ac   :  { %8445 = vmatprep.mubr.msk.bf16.mxu1 %vm373_vm1, %v3082_v57 }
 0x9ad   :  { %8446 = vmatmul.mubr.msk.bf16.gmra.mrb[92].mxu1 %vm373_vm1, %v3083_v54 }
 0xa24   :  { %v8435_v46 = vpop.f32.mrb[80].mxu1 }
 0xa25   :  { %v3165_v17 = vpop.f32.mrb[81].mxu1  ;;  %v3174_v28 = vadd.f32 %v8435_v46, %v12168_v19 }
 0xa26   :  { %v3166_v58 = vadd.f32 %v12168_v19, %v3165_v17  ;;  %v8436_v36 = vpop.f32.mrb[82].mxu1 }
 0xa27   :  { %v3168_v12 = vpop.f32.mrb[83].mxu1  ;;  %v12177_v3 = vadd.f32 %v3174_v28, %v14936_v10  ;;  %v3177_v22 = vadd.f32 %v8436_v36, %v12168_v19 }
 0xa28   :  { %v12173_v42 = vadd.f32 %v3166_v58, %v14935_v37  ;;  %v3169_v31 = vadd.f32 %v12168_v19, %v3168_v12  ;;  %v14947_v58 = vld [vmem:[#allocation17_spill] sm:$0xff] }
 0xa29   :  { %v12188_v24 = vadd.f32 %v3177_v22, %v14938_v32  ;;  %v3252_v8 = vsel %vm373_vm1, %v12177_v3, 0.0  ;;  %v14949_v22 = vld [vmem:[#allocation18_spill] sm:$0xff] }
 0xa2a   :  { %v12181_v62 = vadd.f32 %v3169_v31, %v14937_v44  ;;  %v3246_v38 = vsel %vm373_vm1, %v12173_v42, 0.0  ;;  %v14948_v31 = vld [vmem:[#allocation19_spill] sm:$0xff] }
 0xa2b   :  { %3247 = vadd.xlane.f32.xlu0 %v3246_v38  ;;  %v3255_v14 = vsel %vm373_vm1, %v12188_v24, 0.0 }
 0xa2c   :  { %v3249_v35 = vsel %vm373_vm1, %v12181_v62, 0.0 }
 0xa2d   :  { %3250 = vadd.xlane.f32.xlu1 %v3249_v35  ;;  %v14950_v35 = vld [vmem:[#allocation20_spill] sm:$0xff] }
 0xa2f   :  { %3253 = vadd.xlane.f32.xlu0 %v3252_v8 }
 0xa33   :  { %3256 = vadd.xlane.f32.xlu0 %v3255_v14 }
 0xa5d   :  { %v8439_v29 = vpop.f32.mrb[84].mxu1 }
 0xa5e   :  { %v3181_v59 = vpop.f32.mrb[85].mxu1  ;;  %v3190_v4 = vadd.f32 %v8439_v29, %v12168_v19 }
 0xa5f   :  { %v3182_v18 = vadd.f32 %v12168_v19, %v3181_v59  ;;  %v8440_v16 = vpop.f32.mrb[86].mxu1 }
 0xa60   :  { %v3184_v56 = vpop.f32.mrb[87].mxu1  ;;  %v3193_v1 = vadd.f32 %v8440_v16, %v12168_v19  ;;  %v12202_v47 = vadd.f32 %v3190_v4, %v14940_v39 }
 0xa61   :  { %v12197_v50 = vadd.f32 %v3182_v18, %v14939_v41  ;;  %v3185_v9 = vadd.f32 %v12168_v19, %v3184_v56 }
 0xa62   :  { %v12210_v63 = vadd.f32 %v3193_v1, %v14942_v51  ;;  %v3264_v40 = vsel %vm373_vm1, %v12202_v47, 0.0 }
 0xa63   :  { %v12205_v25 = vadd.f32 %v3185_v9, %v14941_v26  ;;  %v3258_v6 = vsel %vm373_vm1, %v12197_v50, 0.0 }
 0xa64   :  { %3259 = vadd.xlane.f32.xlu0 %v3258_v6  ;;  %v3267_v34 = vsel %vm373_vm1, %v12210_v63, 0.0 }
 0xa65   :  { %v3261_v11 = vsel %vm373_vm1, %v12205_v25, 0.0 }
 0xa66   :  { %3262 = vadd.xlane.f32.xlu1 %v3261_v11 }
 0xa68   :  { %3265 = vadd.xlane.f32.xlu0 %v3264_v40 }
 0xa6a   :  { %3268 = vadd.xlane.f32.xlu1 %v3267_v34 }
 0xa70   :  { %v8443_v53 = vpop.f32.mrb[88].mxu1 }
 0xa71   :  { %v3197_v27 = vpop.f32.mrb[89].mxu1  ;;  %v3206_v52 = vadd.f32 %v8443_v53, %v12168_v19 }
 0xa72   :  { %v3198_v43 = vadd.f32 %v12168_v19, %v3197_v27  ;;  %v8444_v33 = vpop.f32.mrb[90].mxu1 }
 0xa73   :  { %v3200_v21 = vpop.f32.mrb[91].mxu1  ;;  %v3209_v0 = vadd.f32 %v8444_v33, %v12168_v19  ;;  %v12226_v61 = vadd.f32 %v3206_v52, %v14944_v13  ;;  %v9249_v33 = vld [vmem:[%s14585_s13] sm:$0xff]  }
 0xa74   :  { %v12221_v5 = vadd.f32 %v3198_v43, %v14943_v20  ;;  %v3201_v48 = vadd.f32 %v12168_v19, %v3200_v21  ;;  %8449 = vmatprep.subr.bf16.mxu0 %v9249_v33  ;;  %v9250_v21 = vld [vmem:[%s14585_s13 + $0x8] sm:$0xff]  }
 0xa75   :  { %v12234_v7 = vadd.f32 %v3209_v0, %v14946_v45  ;;  %v3276_v2 = vsel %vm373_vm1, %v12226_v61, 0.0  ;;  %8450 = vmatpush3.bf16.msra.mxu0 %v9249_v33 }
 0xa76   :  { %v12229_v30 = vadd.f32 %v3201_v48, %v14945_v49  ;;  %v3270_v55 = vsel %vm373_vm1, %v12221_v5, 0.0  ;;  %8451 = vmatprep.subr.bf16.mxu0 %v9250_v21 }
 0xa77   :  { %3271 = vadd.xlane.f32.xlu0 %v3270_v55  ;;  %v3279_v23 = vsel %vm373_vm1, %v12234_v7, 0.0 }
 0xa78   :  { %v3273_v15 = vsel %vm373_vm1, %v12229_v30, 0.0 }
 0xa79   :  { %3274 = vadd.xlane.f32.xlu1 %v3273_v15  ;;  %8452 = vmatpush3.bf16.msra.mxu0 %v9250_v21 }
 0xa7b   :  { %3277 = vadd.xlane.f32.xlu0 %v3276_v2 }
 0xa7d   :  { %3280 = vadd.xlane.f32.xlu1 %v3279_v23 }
 0xa80   :  { %v8447_v60 = vpop.f32.mrb[92].mxu1 }
 0xa81   :  { %v3213_v54 = vpop.f32.mrb[93].mxu1  ;;  %v3222_v57 = vadd.f32 %v8447_v60, %v12168_v19 }
 0xa82   :  { %v3214_v46 = vadd.f32 %v12168_v19, %v3213_v54  ;;  %v8448_v17 = vpop.f32.mrb[94].mxu1 }
 0xa83   :  { %v3216_v28 = vpop.f32.mrb[95].mxu1  ;;  %v3225_v12 = vadd.f32 %v8448_v17, %v12168_v19  ;;  %v12250_v10 = vadd.f32 %v3222_v57, %v14948_v31 }
 0xa84   :  { %v12245_v36 = vadd.f32 %v3214_v46, %v14947_v58  ;;  %v3217_v37 = vadd.f32 %v12168_v19, %v3216_v28 }
 0xa85   :  { %v12258_v32 = vadd.f32 %v3225_v12, %v14950_v35  ;;  %v3288_v19 = vsel %vm373_vm1, %v12250_v10, 0.0 }
 0xa86   :  { %v12253_v44 = vadd.f32 %v3217_v37, %v14949_v22  ;;  %v3282_v38 = vsel %vm373_vm1, %v12245_v36, 0.0 }
 0xa87   :  { %3283 = vadd.xlane.f32.xlu0 %v3282_v38  ;;  %v3291_v14 = vsel %vm373_vm1, %v12258_v32, 0.0 }
 0xa88   :  { %v3285_v8 = vsel %vm373_vm1, %v12253_v44, 0.0 }
 0xa89   :  { %3286 = vadd.xlane.f32.xlu1 %v3285_v8 }
 0xa8b   :  { %3289 = vadd.xlane.f32.xlu0 %v3288_v19 }
 0xa8d   :  { %3292 = vadd.xlane.f32.xlu1 %v3291_v14 }
 0xab8   :  { %v3248_v29 = vpop.xlane.xlu0 %3247 }
 0xab9   :  { %v3294_v59 = vmul.f32 0.03125, %v3248_v29 }
 0xaba   :  { %v3251_v4 = vpop.xlane.xlu1 %3250 }
 0xabb   :  { %v12267_v18 = vsub.f32 %v12173_v42, %v3294_v59  ;;  %v3295_v16 = vmul.f32 0.03125, %v3251_v4 }
 0xabc   :  { %v3254_v56 = vpop.xlane.xlu0 %3253 }
 0xabd   :  { %v12270_v41 = vsub.f32 %v12181_v62, %v3295_v16  ;;  %v3296_v1 = vmul.f32 0.03125, %v3254_v56  ;;  %v3326_v9 = vmul.f32 %v12267_v18, %v12267_v18 }
 0xabf   :  { %v12275_v39 = vsub.f32 %v12177_v3, %v3296_v1  ;;  %v3342_v26 = vsel %vm373_vm1, %v3326_v9, 0.0  ;;  %v3327_v6 = vmul.f32 %v12270_v41, %v12270_v41 }
 0xac0   :  { %3343 = vadd.xlane.f32.xlu0 %v3342_v26  ;;  %v3257_v51 = vpop.xlane.xlu0 %3256 }
 0xac1   :  { %v3297_v11 = vmul.f32 0.03125, %v3257_v51  ;;  %v3345_v40 = vsel %vm373_vm1, %v3327_v6, 0.0  ;;  %v3328_v34 = vmul.f32 %v12275_v39, %v12275_v39 }
 0xac2   :  { %3346 = vadd.xlane.f32.xlu1 %v3345_v40 }
 0xac3   :  { %v12284_v53 = vsub.f32 %v12188_v24, %v3297_v11  ;;  %v3348_v27 = vsel %vm373_vm1, %v3328_v34, 0.0 }
 0xac4   :  { %3349 = vadd.xlane.f32.xlu0 %v3348_v27 }
 0xac5   :  { %v3329_v52 = vmul.f32 %v12284_v53, %v12284_v53 }
 0xac7   :  { %v3351_v43 = vsel %vm373_vm1, %v3329_v52, 0.0 }
 0xac8   :  { %3352 = vadd.xlane.f32.xlu1 %v3351_v43 }
 0xaf1   :  { %v3260_v20 = vpop.xlane.xlu0 %3259 }
 0xaf2   :  { %v3298_v0 = vmul.f32 0.03125, %v3260_v20 }
 0xaf3   :  { %v3263_v48 = vpop.xlane.xlu1 %3262 }
 0xaf4   :  { %v12297_v13 = vsub.f32 %v12197_v50, %v3298_v0  ;;  %v3299_v49 = vmul.f32 0.03125, %v3263_v48 }
 0xaf5   :  { %v3266_v55 = vpop.xlane.xlu0 %3265 }
 0xaf6   :  { %v12300_v45 = vsub.f32 %v12205_v25, %v3299_v49  ;;  %v3300_v15 = vmul.f32 0.03125, %v3266_v55  ;;  %v3330_v2 = vmul.f32 %v12297_v13, %v12297_v13 }
 0xaf7   :  { %v3269_v23 = vpop.xlane.xlu1 %3268 }
 0xaf8   :  { %v12305_v60 = vsub.f32 %v12202_v47, %v3300_v15  ;;  %v3301_v54 = vmul.f32 0.03125, %v3269_v23  ;;  %v3354_v57 = vsel %vm373_vm1, %v3330_v2, 0.0  ;;  %v3331_v46 = vmul.f32 %v12300_v45, %v12300_v45 }
 0xaf9   :  { %3355 = vadd.xlane.f32.xlu0 %v3354_v57 }
 0xafa   :  { %v12311_v17 = vsub.f32 %v12210_v63, %v3301_v54  ;;  %v3357_v28 = vsel %vm373_vm1, %v3331_v46, 0.0  ;;  %v3332_v58 = vmul.f32 %v12305_v60, %v12305_v60 }
 0xafb   :  { %3358 = vadd.xlane.f32.xlu1 %v3357_v28 }
 0xafc   :  { %v3360_v12 = vsel %vm373_vm1, %v3332_v58, 0.0  ;;  %v3333_v37 = vmul.f32 %v12311_v17, %v12311_v17 }
 0xafd   :  { %3361 = vadd.xlane.f32.xlu0 %v3360_v12 }
 0xafe   :  { %v3363_v31 = vsel %vm373_vm1, %v3333_v37, 0.0 }
 0xaff   :  { %3364 = vadd.xlane.f32.xlu1 %v3363_v31 }
 0xb04   :  { %v3272_v22 = vpop.xlane.xlu0 %3271 }
 0xb05   :  { %v3302_v38 = vmul.f32 0.03125, %v3272_v22 }
 0xb06   :  { %v3275_v35 = vpop.xlane.xlu1 %3274 }
 0xb07   :  { %v12321_v8 = vsub.f32 %v12221_v5, %v3302_v38  ;;  %v3303_v19 = vmul.f32 0.03125, %v3275_v35 }
 0xb08   :  { %v3278_v14 = vpop.xlane.xlu0 %3277 }
 0xb09   :  { %v12324_v29 = vsub.f32 %v12229_v30, %v3303_v19  ;;  %v3304_v59 = vmul.f32 0.03125, %v3278_v14  ;;  %v3334_v4 = vmul.f32 %v12321_v8, %v12321_v8 }
 0xb0a   :  { %v3281_v16 = vpop.xlane.xlu1 %3280 }
 0xb0b   :  { %v12329_v56 = vsub.f32 %v12226_v61, %v3304_v59  ;;  %v3305_v1 = vmul.f32 0.03125, %v3281_v16  ;;  %v3366_v9 = vsel %vm373_vm1, %v3334_v4, 0.0  ;;  %v3335_v26 = vmul.f32 %v12324_v29, %v12324_v29 }
 0xb0c   :  { %3367 = vadd.xlane.f32.xlu0 %v3366_v9 }
 0xb0d   :  { %v12335_v6 = vsub.f32 %v12234_v7, %v3305_v1  ;;  %v3369_v51 = vsel %vm373_vm1, %v3335_v26, 0.0  ;;  %v3336_v11 = vmul.f32 %v12329_v56, %v12329_v56 }
 0xb0e   :  { %3370 = vadd.xlane.f32.xlu1 %v3369_v51 }
 0xb0f   :  { %v3372_v40 = vsel %vm373_vm1, %v3336_v11, 0.0  ;;  %v3337_v34 = vmul.f32 %v12335_v6, %v12335_v6 }
 0xb10   :  { %3373 = vadd.xlane.f32.xlu0 %v3372_v40  ;;  %v12371_v40 = vld [vmem:[%s14583_s11] ss:$0 sm:$0xff] }
 0xb11   :  { %v3375_v27 = vsel %vm373_vm1, %v3337_v34, 0.0 }
 0xb12   :  { %3376 = vadd.xlane.f32.xlu1 %v3375_v27 }
 0xb14   :  { %v3284_v52 = vpop.xlane.xlu0 %3283 }
 0xb15   :  { %v3306_v43 = vmul.f32 0.03125, %v3284_v52 }
 0xb16   :  { %v3287_v33 = vpop.xlane.xlu1 %3286 }
 0xb17   :  { %v12345_v21 = vsub.f32 %v12245_v36, %v3306_v43  ;;  %v3307_v20 = vmul.f32 0.03125, %v3287_v33 }
 0xb18   :  { %v3290_v0 = vpop.xlane.xlu0 %3289 }
 0xb19   :  { %v12348_v48 = vsub.f32 %v12253_v44, %v3307_v20  ;;  %v3308_v49 = vmul.f32 0.03125, %v3290_v0  ;;  %v3338_v55 = vmul.f32 %v12345_v21, %v12345_v21  ;;  %v12379_v20 = vld [vmem:[%s14584_s12] ss:$0 sm:$0xff] }
 0xb1a   :  { %v3293_v15 = vpop.xlane.xlu1 %3292 }
 0xb1b   :  { %v12353_v2 = vsub.f32 %v12250_v10, %v3308_v49  ;;  %v3309_v23 = vmul.f32 0.03125, %v3293_v15  ;;  %v3378_v54 = vsel %vm373_vm1, %v3338_v55, 0.0  ;;  %v3339_v57 = vmul.f32 %v12348_v48, %v12348_v48 }
 0xb1c   :  { %3379 = vadd.xlane.f32.xlu0 %v3378_v54 }
 0xb1d   :  { %v12359_v46 = vsub.f32 %v12258_v32, %v3309_v23  ;;  %v3381_v28 = vsel %vm373_vm1, %v3339_v57, 0.0  ;;  %v3340_v58 = vmul.f32 %v12353_v2, %v12353_v2 }
 0xb1e   :  { %3382 = vadd.xlane.f32.xlu1 %v3381_v28 }
 0xb1f   :  { %v3384_v12 = vsel %vm373_vm1, %v3340_v58, 0.0  ;;  %v3341_v37 = vmul.f32 %v12359_v46, %v12359_v46 }
 0xb20   :  { %3385 = vadd.xlane.f32.xlu0 %v3384_v12 }
 0xb21   :  { %v3387_v31 = vsel %vm373_vm1, %v3341_v37, 0.0 }
 0xb22   :  { %3388 = vadd.xlane.f32.xlu1 %v3387_v31 }
 0xb4d   :  { %v3344_v22 = vpop.xlane.xlu0 %3343 }
 0xb4e   :  { %v3390_v38 = vmul.f32 0.03125, %v3344_v22 }
 0xb4f   :  { %v3347_v35 = vpop.xlane.xlu1 %3346 }
 0xb50   :  { %v3406_v19 = vadd.f32 1e-05, %v3390_v38  ;;  %v3391_v14 = vmul.f32 0.03125, %v3347_v35 }
 0xb51   :  { %v3350_v59 = vpop.xlane.xlu0 %3349 }
 0xb52   :  { %9595 = vrsqrt.f32 %v3406_v19  ;;  %v3407_v4 = vadd.f32 1e-05, %v3391_v14  ;;  %v3392_v16 = vmul.f32 0.03125, %v3350_v59 }
 0xb54   :  { %9597 = vrsqrt.f32 %v3407_v4  ;;  %v3408_v1 = vadd.f32 1e-05, %v3392_v16 }
 0xb55   :  { %v3353_v9 = vpop.xlane.xlu1 %3352 }
 0xb56   :  { %9599 = vrsqrt.f32 %v3408_v1  ;;  %v3393_v26 = vmul.f32 0.03125, %v3353_v9 }
 0xb58   :  { %v3409_v51 = vadd.f32 1e-05, %v3393_v26 }
 0xb5a   :  { %9601 = vrsqrt.f32 %v3409_v51 }
 0xb5c   :  { %v9596_v11 = vpop.eup %9595 }
 0xb5d   :  { %v3438_v34 = vmul.f32 %v9596_v11, %v12267_v18 }
 0xb5e   :  { %v9598_v27 = vpop.eup %9597 }
 0xb5f   :  { %v3439_v52 = vmul.f32 %v9598_v27, %v12270_v41  ;;  %v3460_v43 = vmul.f32 %v12371_v40, %v3438_v34 }
 0xb60   :  { %v9600_v33 = vpop.eup %9599 }
 0xb61   :  { %v3440_v0 = vmul.f32 %v9600_v33, %v12275_v39  ;;  %v3461_v49 = vmul.f32 %v12371_v40, %v3439_v52  ;;  %v3482_v55 = vadd.f32 %v12379_v20, %v3460_v43 }
 0xb63   :  { %v3483_v15 = vadd.f32 %v12379_v20, %v3461_v49  ;;  %v3462_v23 = vmul.f32 %v12371_v40, %v3440_v0 }
 0xb64   :  { %v9602_v18 = vpop.eup %9601 }
 0xb65   :  { %v3441_v41 = vmul.f32 %v9602_v18, %v12284_v53  ;;  %v3498_v54 = vpack.c.bf16 %v3483_v15, %v3482_v55  ;;  %v3484_v28 = vadd.f32 %v12379_v20, %v3462_v23 }
 0xb67   :  { %v3463_v57 = vmul.f32 %v12371_v40, %v3441_v41  ;;  %8453 = vmatprep.mubr.msk.bf16.mxu0 %vm373_vm1, %v3498_v54 }
 0xb69   :  { %v3485_v39 = vadd.f32 %v12379_v20, %v3463_v57 }
 0xb6b   :  { %v3499_v58 = vpack.c.bf16 %v3485_v39, %v3484_v28 }
 0xb6d   :  { %8454 = vmatmul.mubr.msk.bf16.vlgmr.msra.gmra.mrb[80].mxu0 %vm373_vm1, %v3499_v58 }
 0xb86   :  { %v3356_v12 = vpop.xlane.xlu0 %3355 }
 0xb87   :  { %v3394_v37 = vmul.f32 0.03125, %v3356_v12 }
 0xb88   :  { %v3359_v31 = vpop.xlane.xlu1 %3358 }
 0xb89   :  { %v3410_v22 = vadd.f32 1e-05, %v3394_v37  ;;  %v3395_v38 = vmul.f32 0.03125, %v3359_v31 }
 0xb8a   :  { %v3362_v35 = vpop.xlane.xlu0 %3361 }
 0xb8b   :  { %9603 = vrsqrt.f32 %v3410_v22  ;;  %v3411_v53 = vadd.f32 1e-05, %v3395_v38  ;;  %v3396_v19 = vmul.f32 0.03125, %v3362_v35 }
 0xb8c   :  { %v3365_v14 = vpop.xlane.xlu1 %3364 }
 0xb8d   :  { %9605 = vrsqrt.f32 %v3411_v53  ;;  %v3412_v59 = vadd.f32 1e-05, %v3396_v19  ;;  %v3397_v4 = vmul.f32 0.03125, %v3365_v14 }
 0xb8f   :  { %9607 = vrsqrt.f32 %v3412_v59  ;;  %v3413_v16 = vadd.f32 1e-05, %v3397_v4 }
 0xb91   :  { %9609 = vrsqrt.f32 %v3413_v16 }
 0xb95   :  { %v9604_v1 = vpop.eup %9603 }
 0xb96   :  { %v3442_v9 = vmul.f32 %v9604_v1, %v12297_v13 }
 0xb97   :  { %v9606_v26 = vpop.eup %9605 }
 0xb98   :  { %v3443_v51 = vmul.f32 %v9606_v26, %v12300_v45  ;;  %v3464_v11 = vmul.f32 %v12371_v40, %v3442_v9 }
 0xb99   :  { %v9608_v34 = vpop.eup %9607  ;;  %v3368_v27 = vpop.xlane.xlu0 %3367 }
 0xb9a   :  { %v3398_v52 = vmul.f32 0.03125, %v3368_v27  ;;  %v3465_v43 = vmul.f32 %v12371_v40, %v3443_v51  ;;  %v3444_v33 = vmul.f32 %v9608_v34, %v12305_v60  ;;  %v3486_v55 = vadd.f32 %v12379_v20, %v3464_v11 }
 0xb9b   :  { %v9610_v0 = vpop.eup %9609  ;;  %v3371_v49 = vpop.xlane.xlu1 %3370 }
 0xb9c   :  { %v3414_v15 = vadd.f32 1e-05, %v3398_v52  ;;  %v3399_v18 = vmul.f32 0.03125, %v3371_v49  ;;  %v3487_v13 = vadd.f32 %v12379_v20, %v3465_v43  ;;  %v3445_v23 = vmul.f32 %v9610_v0, %v12311_v17 }
 0xb9d   :  { %v3374_v45 = vpop.xlane.xlu0 %3373  ;;  %v3466_v41 = vmul.f32 %v12371_v40, %v3444_v33 }
 0xb9e   :  { %9611 = vrsqrt.f32 %v3414_v15  ;;  %v3415_v54 = vadd.f32 1e-05, %v3399_v18  ;;  %v3400_v57 = vmul.f32 0.03125, %v3374_v45  ;;  %v3500_v28 = vpack.c.bf16 %v3487_v13, %v3486_v55 }
 0xb9f   :  { %v3377_v39 = vpop.xlane.xlu1 %3376  ;;  %v3467_v60 = vmul.f32 %v12371_v40, %v3445_v23  ;;  %v3488_v37 = vadd.f32 %v12379_v20, %v3466_v41 }
 0xba0   :  { %9613 = vrsqrt.f32 %v3415_v54  ;;  %v3416_v58 = vadd.f32 1e-05, %v3400_v57  ;;  %v3401_v12 = vmul.f32 0.03125, %v3377_v39  ;;  %8457 = vmatprep.mubr.msk.bf16.mxu0 %vm373_vm1, %v3500_v28 }
 0xba1   :  { %v3489_v31 = vadd.f32 %v12379_v20, %v3467_v60 }
 0xba2   :  { %9615 = vrsqrt.f32 %v3416_v58  ;;  %v3417_v17 = vadd.f32 1e-05, %v3401_v12 }
 0xba3   :  { %v3501_v22 = vpack.c.bf16 %v3489_v31, %v3488_v37 }
 0xba4   :  { %9617 = vrsqrt.f32 %v3417_v17 }
 0xba5   :  { %8458 = vmatmul.mubr.msk.bf16.gmra.mrb[84].mxu0 %vm373_vm1, %v3501_v22 }
 0xba8   :  { %v9612_v38 = vpop.eup %9611 }
 0xba9   :  { %v3380_v35 = vpop.xlane.xlu0 %3379  ;;  %v3446_v53 = vmul.f32 %v9612_v38, %v12321_v8 }
 0xbaa   :  { %v9614_v19 = vpop.eup %9613  ;;  %v3402_v14 = vmul.f32 0.03125, %v3380_v35 }
 0xbab   :  { %v3383_v59 = vpop.xlane.xlu1 %3382  ;;  %v3447_v4 = vmul.f32 %v9614_v19, %v12324_v29  ;;  %v3468_v16 = vmul.f32 %v12371_v40, %v3446_v53 }
 0xbac   :  { %v9616_v1 = vpop.eup %9615  ;;  %v3418_v9 = vadd.f32 1e-05, %v3402_v14  ;;  %v3403_v26 = vmul.f32 0.03125, %v3383_v59  ;;  %v9255_v14 = vld [vmem:[%s14587_s15 + $0x20] sm:$0xff]   ;;  %v9256_v59 = vld [vmem:[%s14587_s15 + $0x28] sm:$0xff]  }
 0xbad   :  { %v3386_v51 = vpop.xlane.xlu0 %3385  ;;  %v3469_v11 = vmul.f32 %v12371_v40, %v3447_v4  ;;  %v3448_v34 = vmul.f32 %v9616_v1, %v12329_v56  ;;  %v3490_v33 = vadd.f32 %v12379_v20, %v3468_v16  ;;  %v9257_v4 = vld [vmem:[%s14587_s15 + $0x30] sm:$0xff]   ;;  %v9258_v16 = vld [vmem:[%s14587_s15 + $0x38] sm:$0xff]   ;;  %v12461_v1 = vld [vmem:[%s14586_s14] ss:$0 sm:$0xff] }
 0xbae   :  { %v9618_v27 = vpop.eup %9617  ;;  %9619 = vrsqrt.f32 %v3418_v9  ;;  %v3419_v52 = vadd.f32 1e-05, %v3403_v26  ;;  %v3404_v43 = vmul.f32 0.03125, %v3386_v51 }
 0xbaf   :  { %v3389_v8 = vpop.xlane.xlu1 %3388  ;;  %v3491_v0 = vadd.f32 %v12379_v20, %v3469_v11  ;;  %v3449_v29 = vmul.f32 %v9618_v27, %v12335_v6  ;;  %v3470_v49 = vmul.f32 %v12371_v40, %v3448_v34 }
 0xbb0   :  { %9621 = vrsqrt.f32 %v3419_v52  ;;  %v3420_v55 = vadd.f32 1e-05, %v3404_v43  ;;  %v3405_v15 = vmul.f32 0.03125, %v3389_v8 }
 0xbb1   :  { %v3502_v18 = vpack.c.bf16 %v3491_v0, %v3490_v33  ;;  %v3471_v13 = vmul.f32 %v12371_v40, %v3449_v29  ;;  %v3492_v23 = vadd.f32 %v12379_v20, %v3470_v49 }
 0xbb2   :  { %9623 = vrsqrt.f32 %v3420_v55  ;;  %v3421_v56 = vadd.f32 1e-05, %v3405_v15 }
 0xbb3   :  { %8461 = vmatprep.mubr.msk.bf16.mxu0 %vm373_vm1, %v3502_v18  ;;  %v3493_v45 = vadd.f32 %v12379_v20, %v3471_v13 }
 0xbb4   :  { %9625 = vrsqrt.f32 %v3421_v56 }
 0xbb5   :  { %v3503_v41 = vpack.c.bf16 %v3493_v45, %v3492_v23 }
 0xbb7   :  { %8462 = vmatmul.mubr.msk.bf16.gmra.mrb[88].mxu0 %vm373_vm1, %v3503_v41 }
 0xbb8   :  { %v9620_v6 = vpop.eup %9619 }
 0xbb9   :  { %v3450_v54 = vmul.f32 %v9620_v6, %v12345_v21 }
 0xbba   :  { %v9622_v57 = vpop.eup %9621 }
 0xbbb   :  { %v3451_v28 = vmul.f32 %v9622_v57, %v12348_v48  ;;  %v3472_v39 = vmul.f32 %v12371_v40, %v3450_v54 }
 0xbbc   :  { %v9624_v60 = vpop.eup %9623 }
 0xbbd   :  { %v3473_v58 = vmul.f32 %v12371_v40, %v3451_v28  ;;  %v3452_v12 = vmul.f32 %v9624_v60, %v12353_v2  ;;  %v3494_v31 = vadd.f32 %v12379_v20, %v3472_v39  ;;  %v9251_v2 = vld [vmem:[%s14587_s15] sm:$0xff]  }
 0xbbe   :  { %v9626_v37 = vpop.eup %9625  ;;  %8469 = vmatprep.subr.bf16.mxu1 %v9251_v2 }
 0xbbf   :  { %v3495_v17 = vadd.f32 %v12379_v20, %v3473_v58  ;;  %v3453_v22 = vmul.f32 %v9626_v37, %v12359_v46  ;;  %v3474_v38 = vmul.f32 %v12371_v40, %v3452_v12  ;;  %8470 = vmatpush3.bf16.msra.mxu1 %v9251_v2  ;;  %v9252_v46 = vld [vmem:[%s14587_s15 + $0x8] sm:$0xff]  }
 0xbc0   :  { %8471 = vmatprep.subr.bf16.mxu1 %v9252_v46 }
 0xbc1   :  { %v3504_v21 = vpack.c.bf16 %v3495_v17, %v3494_v31  ;;  %v3475_v35 = vmul.f32 %v12371_v40, %v3453_v22  ;;  %v3496_v48 = vadd.f32 %v12379_v20, %v3474_v38  ;;  %v9253_v40 = vld [vmem:[%s14587_s15 + $0x10] sm:$0xff]  }
 0xbc3   :  { %8465 = vmatprep.mubr.msk.bf16.mxu0 %vm373_vm1, %v3504_v21  ;;  %v3497_v53 = vadd.f32 %v12379_v20, %v3475_v35  ;;  %8472 = vmatpush3.bf16.msra.mxu1 %v9252_v46  ;;  %v9254_v20 = vld [vmem:[%s14587_s15 + $0x18] sm:$0xff]  }
 0xbc4   :  { %8473 = vmatprep.subr.bf16.mxu1 %v9253_v40 }
 0xbc5   :  { %v3505_v19 = vpack.c.bf16 %v3497_v53, %v3496_v48 }
 0xbc7   :  { %8466 = vmatmul.mubr.msk.bf16.gmra.mrb[92].mxu0 %vm373_vm1, %v3505_v19  ;;  %8474 = vmatpush3.bf16.msra.mxu1 %v9253_v40 }
 0xbc8   :  { %8475 = vmatprep.subr.bf16.mxu1 %v9254_v20 }
 0xbcb   :  { %8476 = vmatpush3.bf16.msra.mxu1 %v9254_v20 }
 0xbcc   :  { %8477 = vmatprep.subr.bf16.mxu1 %v9255_v14 }
 0xbcf   :  { %8478 = vmatpush3.bf16.msra.mxu1 %v9255_v14 }
 0xbd0   :  { %8479 = vmatprep.subr.bf16.mxu1 %v9256_v59 }
 0xbd3   :  { %8480 = vmatpush3.bf16.msra.mxu1 %v9256_v59 }
 0xbd4   :  { %8481 = vmatprep.subr.bf16.mxu1 %v9257_v4 }
 0xbd7   :  { %8482 = vmatpush3.bf16.msra.mxu1 %v9257_v4 }
 0xbd8   :  { %8483 = vmatprep.subr.bf16.mxu1 %v9258_v16 }
 0xbdb   :  { %8484 = vmatpush3.bf16.msra.mxu1 %v9258_v16 }
 0xc40   :  { %v8455_v9 = vpop.f32.mrb[80].mxu0 }
 0xc41   :  { %v3596_v26 = vadd.f32 %v8455_v9, %v12461_v1  ;;  %v3587_v51 = vpop.f32.mrb[81].mxu0 }
 0xc42   :  { %v3588_v11 = vadd.f32 %v12461_v1, %v3587_v51  ;;  %v8456_v34 = vpop.f32.mrb[82].mxu0 }
 0xc43   :  { %v3652_v27 = vmul.f32 %v3596_v26, %v3596_v26  ;;  %v3599_v52 = vadd.f32 %v8456_v34, %v12461_v1  ;;  %v3590_v43 = vpop.f32.mrb[83].mxu0 }
 0xc44   :  { %v3650_v8 = vmul.f32 %v3588_v11, %v3588_v11  ;;  %v3591_v33 = vadd.f32 %v12461_v1, %v3590_v43 }
 0xc45   :  { %v3668_v0 = vmul.f32 %v3652_v27, %v3596_v26  ;;  %v3653_v29 = vmul.f32 %v3599_v52, %v3599_v52 }
 0xc46   :  { %v3666_v49 = vmul.f32 %v3650_v8, %v3588_v11  ;;  %v3651_v55 = vmul.f32 %v3591_v33, %v3591_v33 }
 0xc47   :  { %v3684_v15 = vmul.f32 0.044715, %v3668_v0  ;;  %v3669_v18 = vmul.f32 %v3653_v29, %v3599_v52 }
 0xc48   :  { %v3682_v13 = vmul.f32 0.044715, %v3666_v49  ;;  %v3667_v56 = vmul.f32 %v3651_v55, %v3591_v33 }
 0xc49   :  { %v3700_v23 = vadd.f32 %v3684_v15, %v3596_v26  ;;  %v3685_v45 = vmul.f32 0.044715, %v3669_v18 }
 0xc4a   :  { %v3698_v41 = vadd.f32 %v3682_v13, %v3588_v11  ;;  %v3683_v6 = vmul.f32 0.044715, %v3667_v56 }
 0xc4b   :  { %v3716_v54 = vmul.f32 0.7978846, %v3700_v23  ;;  %v3701_v57 = vadd.f32 %v3685_v45, %v3599_v52 }
 0xc4c   :  { %v3714_v28 = vmul.f32 0.7978846, %v3698_v41  ;;  %v3699_v39 = vadd.f32 %v3683_v6, %v3591_v33 }
 0xc4d   :  { %9627 = vtanh.f32 %v3716_v54  ;;  %v3717_v60 = vmul.f32 0.7978846, %v3701_v57 }
 0xc4e   :  { %9629 = vtanh.f32 %v3714_v28  ;;  %v3715_v58 = vmul.f32 0.7978846, %v3699_v39 }
 0xc4f   :  { %9631 = vtanh.f32 %v3717_v60 }
 0xc50   :  { %9633 = vtanh.f32 %v3715_v58 }
 0xc57   :  { %v9628_v12 = vpop.eup %9627 }
 0xc58   :  { %v9630_v37 = vpop.eup %9629  ;;  %v3748_v31 = vadd.f32 1.0, %v9628_v12 }
 0xc59   :  { %v9632_v17 = vpop.eup %9631  ;;  %v3746_v22 = vadd.f32 1.0, %v9630_v37 }
 0xc5a   :  { %v9634_v38 = vpop.eup %9633  ;;  %v3764_v21 = vmul.f32 0.5, %v3748_v31  ;;  %v3749_v35 = vadd.f32 1.0, %v9632_v17 }
 0xc5b   :  { %v3747_v48 = vadd.f32 1.0, %v9634_v38  ;;  %v3762_v53 = vmul.f32 0.5, %v3746_v22 }
 0xc5c   :  { %v3765_v2 = vmul.f32 0.5, %v3749_v35  ;;  %v3780_v46 = vmul.f32 %v3764_v21, %v3596_v26 }
 0xc5d   :  { %v3763_v19 = vmul.f32 0.5, %v3747_v48  ;;  %v3778_v20 = vmul.f32 %v3762_v53, %v3588_v11 }
 0xc5e   :  { %v3781_v40 = vmul.f32 %v3765_v2, %v3599_v52 }
 0xc5f   :  { %v3779_v14 = vmul.f32 %v3763_v19, %v3591_v33 }
 0xc60   :  { %v3795_v59 = vpack.c.bf16 %v3781_v40, %v3780_v46 }
 0xc61   :  { %v3794_v4 = vpack.c.bf16 %v3779_v14, %v3778_v20 }
 0xc63   :  { %8485 = vmatprep.mubr.bf16.mxu1 %v3794_v4 }
 0xc64   :  { %8486 = vmatmul.mubr.bf16.vlgmr.msra.gmra.mrb[96].mxu1 %v3795_v59 }
 0xc78   :  { %v8459_v16 = vpop.f32.mrb[84].mxu0 }
 0xc79   :  { %v12468_v9 = vadd.f32 %v8459_v16, %v12461_v1  ;;  %v3603_v51 = vpop.f32.mrb[85].mxu0 }
 0xc7a   :  { %v12471_v34 = vadd.f32 %v12461_v1, %v3603_v51  ;;  %v8460_v27 = vpop.f32.mrb[86].mxu0 }
 0xc7b   :  { %v3656_v43 = vmul.f32 %v12468_v9, %v12468_v9  ;;  %v12476_v26 = vadd.f32 %v8460_v27, %v12461_v1  ;;  %v3606_v11 = vpop.f32.mrb[87].mxu0 }
 0xc7c   :  { %v3654_v52 = vmul.f32 %v12471_v34, %v12471_v34  ;;  %v12481_v8 = vadd.f32 %v12461_v1, %v3606_v11 }
 0xc7d   :  { %v3672_v33 = vmul.f32 %v3656_v43, %v12468_v9  ;;  %v3657_v0 = vmul.f32 %v12476_v26, %v12476_v26 }
 0xc7e   :  { %v3670_v29 = vmul.f32 %v3654_v52, %v12471_v34  ;;  %v3655_v49 = vmul.f32 %v12481_v8, %v12481_v8 }
 0xc7f   :  { %v3688_v55 = vmul.f32 0.044715, %v3672_v33  ;;  %v3673_v15 = vmul.f32 %v3657_v0, %v12476_v26 }
 0xc80   :  { %v3686_v18 = vmul.f32 0.044715, %v3670_v29  ;;  %v3671_v13 = vmul.f32 %v3655_v49, %v12481_v8 }
 0xc81   :  { %v3704_v56 = vadd.f32 %v3688_v55, %v12468_v9  ;;  %v3689_v23 = vmul.f32 0.044715, %v3673_v15 }
 0xc82   :  { %v3702_v45 = vadd.f32 %v3686_v18, %v12471_v34  ;;  %v3687_v41 = vmul.f32 0.044715, %v3671_v13 }
 0xc83   :  { %v3720_v6 = vmul.f32 0.7978846, %v3704_v56  ;;  %v3705_v54 = vadd.f32 %v3689_v23, %v12476_v26 }
 0xc84   :  { %v3718_v57 = vmul.f32 0.7978846, %v3702_v45  ;;  %v3703_v28 = vadd.f32 %v3687_v41, %v12481_v8 }
 0xc85   :  { %9635 = vtanh.f32 %v3720_v6  ;;  %v3721_v39 = vmul.f32 0.7978846, %v3705_v54 }
 0xc86   :  { %9637 = vtanh.f32 %v3718_v57  ;;  %v3719_v60 = vmul.f32 0.7978846, %v3703_v28 }
 0xc87   :  { %9639 = vtanh.f32 %v3721_v39 }
 0xc88   :  { %9641 = vtanh.f32 %v3719_v60 }
 0xc8a   :  { %v8463_v58 = vpop.f32.mrb[88].mxu0 }
 0xc8b   :  { %v12496_v12 = vadd.f32 %v8463_v58, %v12461_v1  ;;  %v3619_v37 = vpop.f32.mrb[89].mxu0 }
 0xc8c   :  { %v12499_v31 = vadd.f32 %v12461_v1, %v3619_v37  ;;  %v8464_v17 = vpop.f32.mrb[90].mxu0 }
 0xc8d   :  { %v3660_v22 = vmul.f32 %v12496_v12, %v12496_v12  ;;  %v12504_v38 = vadd.f32 %v8464_v17, %v12461_v1  ;;  %v3622_v21 = vpop.f32.mrb[91].mxu0 }
 0xc8e   :  { %v3658_v35 = vmul.f32 %v12499_v31, %v12499_v31  ;;  %v12509_v48 = vadd.f32 %v12461_v1, %v3622_v21 }
 0xc8f   :  { %v9636_v53 = vpop.eup %9635  ;;  %v3676_v2 = vmul.f32 %v3660_v22, %v12496_v12  ;;  %v3661_v19 = vmul.f32 %v12504_v38, %v12504_v38 }
 0xc90   :  { %v9638_v46 = vpop.eup %9637  ;;  %v3674_v40 = vmul.f32 %v3658_v35, %v12499_v31  ;;  %v3659_v20 = vmul.f32 %v12509_v48, %v12509_v48  ;;  %v3752_v14 = vadd.f32 1.0, %v9636_v53 }
 0xc91   :  { %v9640_v59 = vpop.eup %9639  ;;  %v3692_v4 = vmul.f32 0.044715, %v3676_v2  ;;  %v3677_v16 = vmul.f32 %v3661_v19, %v12504_v38  ;;  %v3750_v51 = vadd.f32 1.0, %v9638_v46 }
 0xc92   :  { %v9642_v27 = vpop.eup %9641  ;;  %v3690_v43 = vmul.f32 0.044715, %v3674_v40  ;;  %v3675_v11 = vmul.f32 %v3659_v20, %v12509_v48  ;;  %v3753_v52 = vadd.f32 1.0, %v9640_v59  ;;  %v3768_v33 = vmul.f32 0.5, %v3752_v14 }
 0xc93   :  { %v3708_v0 = vadd.f32 %v3692_v4, %v12496_v12  ;;  %v3693_v29 = vmul.f32 0.044715, %v3677_v16  ;;  %v3751_v49 = vadd.f32 1.0, %v9642_v27  ;;  %v3766_v55 = vmul.f32 0.5, %v3750_v51 }
 0xc94   :  { %v3706_v15 = vadd.f32 %v3690_v43, %v12499_v31  ;;  %v3691_v18 = vmul.f32 0.044715, %v3675_v11  ;;  %v3769_v13 = vmul.f32 0.5, %v3753_v52  ;;  %v3784_v54 = vmul.f32 %v3768_v33, %v12468_v9 }
 0xc95   :  { %v3724_v56 = vmul.f32 0.7978846, %v3708_v0  ;;  %v3709_v23 = vadd.f32 %v3693_v29, %v12504_v38  ;;  %v3767_v45 = vmul.f32 0.5, %v3751_v49  ;;  %v3782_v39 = vmul.f32 %v3766_v55, %v12471_v34 }
 0xc96   :  { %v3722_v41 = vmul.f32 0.7978846, %v3706_v15  ;;  %v3707_v6 = vadd.f32 %v3691_v18, %v12509_v48  ;;  %v3785_v57 = vmul.f32 %v3769_v13, %v12476_v26 }
 0xc97   :  { %9643 = vtanh.f32 %v3724_v56  ;;  %v3725_v28 = vmul.f32 0.7978846, %v3709_v23  ;;  %v3783_v60 = vmul.f32 %v3767_v45, %v12481_v8 }
 0xc98   :  { %9645 = vtanh.f32 %v3722_v41  ;;  %v3723_v58 = vmul.f32 0.7978846, %v3707_v6  ;;  %v3797_v37 = vpack.c.bf16 %v3785_v57, %v3784_v54 }
 0xc99   :  { %9647 = vtanh.f32 %v3725_v28  ;;  %v3796_v17 = vpack.c.bf16 %v3783_v60, %v3782_v39 }
 0xc9a   :  { %9649 = vtanh.f32 %v3723_v58  ;;  %v8467_v22 = vpop.f32.mrb[92].mxu0 }
 0xc9b   :  { %v12528_v21 = vadd.f32 %v8467_v22, %v12461_v1  ;;  %8489 = vmatprep.mubr.bf16.mxu1 %v3796_v17  ;;  %v3635_v9 = vpop.f32.mrb[93].mxu0 }
 0xc9c   :  { %v12531_v26 = vadd.f32 %v12461_v1, %v3635_v9  ;;  %8490 = vmatmul.mubr.bf16.gmra.mrb[100].mxu1 %v3797_v37  ;;  %v8468_v35 = vpop.f32.mrb[94].mxu0 }
 0xc9d   :  { %v3664_v34 = vmul.f32 %v12528_v21, %v12528_v21  ;;  %v3647_v8 = vadd.f32 %v8468_v35, %v12461_v1  ;;  %v3638_v53 = vpop.f32.mrb[95].mxu0 }
 0xc9e   :  { %v3662_v2 = vmul.f32 %v12531_v26, %v12531_v26  ;;  %v3639_v19 = vadd.f32 %v12461_v1, %v3638_v53 }
 0xc9f   :  { %v3680_v46 = vmul.f32 %v3664_v34, %v12528_v21  ;;  %v3665_v40 = vmul.f32 %v3647_v8, %v3647_v8 }
 0xca0   :  { %v3678_v20 = vmul.f32 %v3662_v2, %v12531_v26  ;;  %v3663_v14 = vmul.f32 %v3639_v19, %v3639_v19 }
 0xca1   :  { %v9644_v59 = vpop.eup %9643  ;;  %v3696_v4 = vmul.f32 0.044715, %v3680_v46  ;;  %v3681_v16 = vmul.f32 %v3665_v40, %v3647_v8 }
 0xca2   :  { %v9646_v51 = vpop.eup %9645  ;;  %v3694_v27 = vmul.f32 0.044715, %v3678_v20  ;;  %v3679_v43 = vmul.f32 %v3663_v14, %v3639_v19  ;;  %v3756_v11 = vadd.f32 1.0, %v9644_v59 }
 0xca3   :  { %v9648_v52 = vpop.eup %9647  ;;  %v3712_v33 = vadd.f32 %v3696_v4, %v12528_v21  ;;  %v3697_v0 = vmul.f32 0.044715, %v3681_v16  ;;  %v3754_v29 = vadd.f32 1.0, %v9646_v51 }
 0xca4   :  { %v9650_v49 = vpop.eup %9649  ;;  %v3710_v1 = vadd.f32 %v3694_v27, %v12531_v26  ;;  %v3695_v55 = vmul.f32 0.044715, %v3679_v43  ;;  %v3757_v15 = vadd.f32 1.0, %v9648_v52  ;;  %v3772_v18 = vmul.f32 0.5, %v3756_v11  ;;  %v12552_v11 = vld [vmem:[%s14588_s16] ss:$0 sm:$0xff] }
 0xca5   :  { %v3728_v13 = vmul.f32 0.7978846, %v3712_v33  ;;  %v3713_v56 = vadd.f32 %v3697_v0, %v3647_v8  ;;  %v3755_v23 = vadd.f32 1.0, %v9650_v49  ;;  %v3770_v45 = vmul.f32 0.5, %v3754_v29 }
 0xca6   :  { %v3726_v41 = vmul.f32 0.7978846, %v3710_v1  ;;  %v3711_v6 = vadd.f32 %v3695_v55, %v3639_v19  ;;  %v3773_v54 = vmul.f32 0.5, %v3757_v15  ;;  %v3788_v60 = vmul.f32 %v3772_v18, %v12496_v12 }
 0xca7   :  { %9651 = vtanh.f32 %v3728_v13  ;;  %v3729_v57 = vmul.f32 0.7978846, %v3713_v56  ;;  %v3771_v28 = vmul.f32 0.5, %v3755_v23  ;;  %v3786_v37 = vmul.f32 %v3770_v45, %v12499_v31 }
 0xca8   :  { %9653 = vtanh.f32 %v3726_v41  ;;  %v3727_v39 = vmul.f32 0.7978846, %v3711_v6  ;;  %v3789_v58 = vmul.f32 %v3773_v54, %v12504_v38 }
 0xca9   :  { %9655 = vtanh.f32 %v3729_v57  ;;  %v3787_v17 = vmul.f32 %v3771_v28, %v12509_v48 }
 0xcaa   :  { %9657 = vtanh.f32 %v3727_v39  ;;  %v3799_v22 = vpack.c.bf16 %v3789_v58, %v3788_v60 }
 0xcab   :  { %v3798_v9 = vpack.c.bf16 %v3787_v17, %v3786_v37 }
 0xcad   :  { %8493 = vmatprep.mubr.bf16.mxu1 %v3798_v9 }
 0xcae   :  { %8494 = vmatmul.mubr.bf16.gmra.mrb[104].mxu1 %v3799_v22 }
 0xcb1   :  { %v9652_v35 = vpop.eup %9651 }
 0xcb2   :  { %v9654_v34 = vpop.eup %9653  ;;  %v3760_v53 = vadd.f32 1.0, %v9652_v35 }
 0xcb3   :  { %v9656_v2 = vpop.eup %9655  ;;  %v3758_v46 = vadd.f32 1.0, %v9654_v34 }
 0xcb4   :  { %v9658_v40 = vpop.eup %9657  ;;  %v3761_v20 = vadd.f32 1.0, %v9656_v2  ;;  %v3776_v12 = vmul.f32 0.5, %v3760_v53 }
 0xcb5   :  { %v3759_v14 = vadd.f32 1.0, %v9658_v40  ;;  %v3774_v38 = vmul.f32 0.5, %v3758_v46 }
 0xcb6   :  { %v3777_v59 = vmul.f32 0.5, %v3761_v20  ;;  %v3792_v31 = vmul.f32 %v3776_v12, %v12528_v21 }
 0xcb7   :  { %v3775_v4 = vmul.f32 0.5, %v3759_v14  ;;  %v3790_v16 = vmul.f32 %v3774_v38, %v12531_v26 }
 0xcb8   :  { %v3793_v48 = vmul.f32 %v3777_v59, %v3647_v8 }
 0xcb9   :  { %v3791_v51 = vmul.f32 %v3775_v4, %v3639_v19 }
 0xcba   :  { %v3801_v27 = vpack.c.bf16 %v3793_v48, %v3792_v31 }
 0xcbb   :  { %v3800_v43 = vpack.c.bf16 %v3791_v51, %v3790_v16 }
 0xcbd   :  { %8497 = vmatprep.mubr.bf16.mxu1 %v3800_v43 }
 0xcbe   :  { %8498 = vmatmul.mubr.bf16.gmra.mrb[108].mxu1 %v3801_v27 }
 0xd37   :  { %v8487_v52 = vpop.f32.mrb[96].mxu1 }
 0xd38   :  { %v3907_v33 = vpop.f32.mrb[97].mxu1  ;;  %v3916_v0 = vadd.f32 %v8487_v52, %v12552_v11 }
 0xd39   :  { %v3908_v29 = vadd.f32 %v12552_v11, %v3907_v33  ;;  %v8488_v21 = vpop.f32.mrb[98].mxu1 }
 0xd3a   :  { %v3910_v8 = vpop.f32.mrb[99].mxu1  ;;  %v3919_v19 = vadd.f32 %v8488_v21, %v12552_v11  ;;  %v12562_v1 = vadd.f32 %v3916_v0, %v12177_v3 }
 0xd3b   :  { %v12557_v26 = vadd.f32 %v3908_v29, %v12173_v42  ;;  %v3911_v49 = vadd.f32 %v12552_v11, %v3910_v8 }
 0xd3c   :  { %14952 = vst [vmem:[#allocation49_spill] sm:$0xff] %v12562_v1  ;;  %v12570_v18 = vadd.f32 %v3919_v19, %v12188_v24  ;;  %v3996_v13 = vsel %vm373_vm1, %v12562_v1, 0.0 }
 0xd3d   :  { %14951 = vst [vmem:[#allocation40_spill] sm:$0xff] %v12557_v26  ;;  %v12565_v55 = vadd.f32 %v3911_v49, %v12181_v62  ;;  %v3990_v15 = vsel %vm373_vm1, %v12557_v26, 0.0 }
 0xd3e   :  { %3991 = vadd.xlane.f32.xlu0 %v3990_v15  ;;  %14954 = vst [vmem:[#allocation51_spill] sm:$0xff] %v12570_v18  ;;  %v3999_v3 = vsel %vm373_vm1, %v12570_v18, 0.0 }
 0xd3f   :  { %14953 = vst [vmem:[#allocation44_spill] sm:$0xff] %v12565_v55  ;;  %v3993_v42 = vsel %vm373_vm1, %v12565_v55, 0.0 }
 0xd40   :  { %3994 = vadd.xlane.f32.xlu1 %v3993_v42 }
 0xd42   :  { %3997 = vadd.xlane.f32.xlu0 %v3996_v13 }
 0xd44   :  { %4000 = vadd.xlane.f32.xlu1 %v3999_v3 }
 0xd6f   :  { %v8491_v62 = vpop.f32.mrb[100].mxu1 }
 0xd70   :  { %v3923_v56 = vpop.f32.mrb[101].mxu1  ;;  %v3932_v23 = vadd.f32 %v8491_v62, %v12552_v11 }
 0xd71   :  { %v3924_v45 = vadd.f32 %v12552_v11, %v3923_v56  ;;  %v8492_v24 = vpop.f32.mrb[102].mxu1 }
 0xd72   :  { %v3926_v41 = vpop.f32.mrb[103].mxu1  ;;  %v3935_v54 = vadd.f32 %v8492_v24, %v12552_v11  ;;  %v12586_v28 = vadd.f32 %v3932_v23, %v12202_v47 }
 0xd73   :  { %v12581_v6 = vadd.f32 %v3924_v45, %v12197_v50  ;;  %v3927_v57 = vadd.f32 %v12552_v11, %v3926_v41 }
 0xd74   :  { %14956 = vst [vmem:[#allocation59_spill] sm:$0xff] %v12586_v28  ;;  %v12594_v58 = vadd.f32 %v3935_v54, %v12210_v63  ;;  %v4008_v37 = vsel %vm373_vm1, %v12586_v28, 0.0 }
 0xd75   :  { %14955 = vst [vmem:[#allocation55_spill] sm:$0xff] %v12581_v6  ;;  %v12589_v39 = vadd.f32 %v3927_v57, %v12205_v25  ;;  %v4002_v60 = vsel %vm373_vm1, %v12581_v6, 0.0 }
 0xd76   :  { %4003 = vadd.xlane.f32.xlu0 %v4002_v60  ;;  %14958 = vst [vmem:[#allocation21_spill] sm:$0xff] %v12594_v58  ;;  %v4011_v47 = vsel %vm373_vm1, %v12594_v58, 0.0  ;;  %v9259_v60 = vld [vmem:[%s14577_s5 + $0x10] sm:$0xff]  }
 0xd77   :  { %14957 = vst [vmem:[#allocation58_spill] sm:$0xff] %v12589_v39  ;;  %v4005_v50 = vsel %vm373_vm1, %v12589_v39, 0.0  ;;  %8501 = vmatprep.subr.bf16.mxu0 %v9259_v60 }
 0xd78   :  { %4006 = vadd.xlane.f32.xlu1 %v4005_v50  ;;  %8502 = vmatpush3.bf16.msra.mxu0 %v9259_v60  ;;  %v9260_v50 = vld [vmem:[%s14577_s5 + $0x18] sm:$0xff]  }
 0xd79   :  { %8503 = vmatprep.subr.bf16.mxu0 %v9260_v50 }
 0xd7a   :  { %4009 = vadd.xlane.f32.xlu0 %v4008_v37 }
 0xd7c   :  { %4012 = vadd.xlane.f32.xlu1 %v4011_v47  ;;  %8504 = vmatpush3.bf16.msra.mxu0 %v9260_v50 }
 0xd81   :  { %v8495_v25 = vpop.f32.mrb[104].mxu1 }
 0xd82   :  { %v3939_v17 = vpop.f32.mrb[105].mxu1  ;;  %v3948_v22 = vadd.f32 %v8495_v25, %v12552_v11 }
 0xd83   :  { %v3940_v9 = vadd.f32 %v12552_v11, %v3939_v17  ;;  %v8496_v63 = vpop.f32.mrb[106].mxu1 }
 0xd84   :  { %v3942_v35 = vpop.f32.mrb[107].mxu1  ;;  %v3951_v53 = vadd.f32 %v8496_v63, %v12552_v11  ;;  %v12610_v46 = vadd.f32 %v3948_v22, %v12226_v61 }
 0xd85   :  { %v12605_v34 = vadd.f32 %v3940_v9, %v12221_v5  ;;  %v3943_v2 = vadd.f32 %v12552_v11, %v3942_v35 }
 0xd86   :  { %14960 = vst [vmem:[#allocation63_spill] sm:$0xff] %v12610_v46  ;;  %v12618_v12 = vadd.f32 %v3951_v53, %v12234_v7  ;;  %v4020_v14 = vsel %vm373_vm1, %v12610_v46, 0.0 }
 0xd87   :  { %14959 = vst [vmem:[#allocation22_spill] sm:$0xff] %v12605_v34  ;;  %v12613_v40 = vadd.f32 %v3943_v2, %v12229_v30  ;;  %v4014_v20 = vsel %vm373_vm1, %v12605_v34, 0.0 }
 0xd88   :  { %4015 = vadd.xlane.f32.xlu0 %v4014_v20  ;;  %14962 = vst [vmem:[#allocation68_spill] sm:$0xff] %v12618_v12  ;;  %v4023_v61 = vsel %vm373_vm1, %v12618_v12, 0.0 }
 0xd89   :  { %14961 = vst [vmem:[#allocation67_spill] sm:$0xff] %v12613_v40  ;;  %v4017_v5 = vsel %vm373_vm1, %v12613_v40, 0.0 }
 0xd8a   :  { %4018 = vadd.xlane.f32.xlu1 %v4017_v5 }
 0xd8c   :  { %4021 = vadd.xlane.f32.xlu0 %v4020_v14 }
 0xd8e   :  { %4024 = vadd.xlane.f32.xlu1 %v4023_v61 }
 0xd91   :  { %v8499_v30 = vpop.f32.mrb[108].mxu1 }
 0xd92   :  { %v3955_v38 = vpop.f32.mrb[109].mxu1  ;;  %v3964_v59 = vadd.f32 %v8499_v30, %v12552_v11 }
 0xd93   :  { %v3956_v4 = vadd.f32 %v12552_v11, %v3955_v38  ;;  %v8500_v7 = vpop.f32.mrb[110].mxu1 }
 0xd94   :  { %v3958_v31 = vpop.f32.mrb[111].mxu1  ;;  %v3967_v16 = vadd.f32 %v8500_v7, %v12552_v11  ;;  %v12634_v27 = vadd.f32 %v3964_v59, %v12250_v10 }
 0xd95   :  { %v12629_v48 = vadd.f32 %v3956_v4, %v12245_v36  ;;  %v3959_v51 = vadd.f32 %v12552_v11, %v3958_v31 }
 0xd96   :  { %14964 = vst [vmem:[#allocation70_spill] sm:$0xff] %v12634_v27  ;;  %v12642_v33 = vadd.f32 %v3967_v16, %v12258_v32  ;;  %v4032_v11 = vsel %vm373_vm1, %v12634_v27, 0.0 }
 0xd97   :  { %14963 = vst [vmem:[#allocation64_spill] sm:$0xff] %v12629_v48  ;;  %v12637_v43 = vadd.f32 %v3959_v51, %v12253_v44  ;;  %v4026_v52 = vsel %vm373_vm1, %v12629_v48, 0.0 }
 0xd98   :  { %4027 = vadd.xlane.f32.xlu0 %v4026_v52  ;;  %14966 = vst [vmem:[#allocation69_spill] sm:$0xff] %v12642_v33  ;;  %v4035_v10 = vsel %vm373_vm1, %v12642_v33, 0.0 }
 0xd99   :  { %14965 = vst [vmem:[#allocation71_spill] sm:$0xff] %v12637_v43  ;;  %v4029_v36 = vsel %vm373_vm1, %v12637_v43, 0.0 }
 0xd9a   :  { %4030 = vadd.xlane.f32.xlu1 %v4029_v36 }
 0xd9c   :  { %4033 = vadd.xlane.f32.xlu0 %v4032_v11 }
 0xd9e   :  { %4036 = vadd.xlane.f32.xlu1 %v4035_v10 }
 0xdcb   :  { %v3992_v44 = vpop.xlane.xlu0 %3991 }
 0xdcc   :  { %v4038_v0 = vmul.f32 0.03125, %v3992_v44 }
 0xdcd   :  { %v3995_v29 = vpop.xlane.xlu1 %3994 }
 0xdce   :  { %v12651_v21 = vsub.f32 %v12557_v26, %v4038_v0  ;;  %v4039_v32 = vmul.f32 0.03125, %v3995_v29 }
 0xdcf   :  { %v3998_v8 = vpop.xlane.xlu0 %3997 }
 0xdd0   :  { %v12654_v19 = vsub.f32 %v12565_v55, %v4039_v32  ;;  %v4040_v49 = vmul.f32 0.03125, %v3998_v8  ;;  %v4070_v15 = vmul.f32 %v12651_v21, %v12651_v21 }
 0xdd1   :  { %v4001_v42 = vpop.xlane.xlu1 %4000 }
 0xdd2   :  { %v12659_v13 = vsub.f32 %v12562_v1, %v4040_v49  ;;  %v4041_v3 = vmul.f32 0.03125, %v4001_v42  ;;  %v4086_v62 = vsel %vm373_vm1, %v4070_v15, 0.0  ;;  %v4071_v56 = vmul.f32 %v12654_v19, %v12654_v19 }
 0xdd3   :  { %4087 = vadd.xlane.f32.xlu0 %v4086_v62 }
 0xdd4   :  { %v12665_v23 = vsub.f32 %v12570_v18, %v4041_v3  ;;  %v4089_v45 = vsel %vm373_vm1, %v4071_v56, 0.0  ;;  %v4072_v24 = vmul.f32 %v12659_v13, %v12659_v13 }
 0xdd5   :  { %4090 = vadd.xlane.f32.xlu1 %v4089_v45 }
 0xdd6   :  { %v4092_v41 = vsel %vm373_vm1, %v4072_v24, 0.0  ;;  %v4073_v54 = vmul.f32 %v12665_v23, %v12665_v23 }
 0xdd7   :  { %4093 = vadd.xlane.f32.xlu0 %v4092_v41 }
 0xdd8   :  { %v4095_v57 = vsel %vm373_vm1, %v4073_v54, 0.0 }
 0xdd9   :  { %4096 = vadd.xlane.f32.xlu1 %v4095_v57 }
 0xe03   :  { %v4004_v37 = vpop.xlane.xlu0 %4003 }
 0xe04   :  { %v4042_v47 = vmul.f32 0.03125, %v4004_v37 }
 0xe05   :  { %v4007_v25 = vpop.xlane.xlu1 %4006 }
 0xe06   :  { %v12681_v17 = vsub.f32 %v12581_v6, %v4042_v47  ;;  %v4043_v22 = vmul.f32 0.03125, %v4007_v25 }
 0xe07   :  { %v4010_v9 = vpop.xlane.xlu0 %4009 }
 0xe08   :  { %v12684_v63 = vsub.f32 %v12589_v39, %v4043_v22  ;;  %v4044_v35 = vmul.f32 0.03125, %v4010_v9  ;;  %v4074_v53 = vmul.f32 %v12681_v17, %v12681_v17 }
 0xe09   :  { %v4013_v2 = vpop.xlane.xlu1 %4012 }
 0xe0a   :  { %v12689_v20 = vsub.f32 %v12586_v28, %v4044_v35  ;;  %v4045_v5 = vmul.f32 0.03125, %v4013_v2  ;;  %v4098_v14 = vsel %vm373_vm1, %v4074_v53, 0.0  ;;  %v4075_v61 = vmul.f32 %v12684_v63, %v12684_v63 }
 0xe0b   :  { %4099 = vadd.xlane.f32.xlu0 %v4098_v14 }
 0xe0c   :  { %v12695_v30 = vsub.f32 %v12594_v58, %v4045_v5  ;;  %v4101_v38 = vsel %vm373_vm1, %v4075_v61, 0.0  ;;  %v4076_v59 = vmul.f32 %v12689_v20, %v12689_v20 }
 0xe0d   :  { %4102 = vadd.xlane.f32.xlu1 %v4101_v38 }
 0xe0e   :  { %v4104_v4 = vsel %vm373_vm1, %v4076_v59, 0.0  ;;  %v4077_v7 = vmul.f32 %v12695_v30, %v12695_v30 }
 0xe0f   :  { %4105 = vadd.xlane.f32.xlu0 %v4104_v4 }
 0xe10   :  { %v4107_v31 = vsel %vm373_vm1, %v4077_v7, 0.0 }
 0xe11   :  { %4108 = vadd.xlane.f32.xlu1 %v4107_v31 }
 0xe15   :  { %v4016_v16 = vpop.xlane.xlu0 %4015 }
 0xe16   :  { %v4046_v51 = vmul.f32 0.03125, %v4016_v16 }
 0xe17   :  { %v4019_v52 = vpop.xlane.xlu1 %4018 }
 0xe18   :  { %v12705_v36 = vsub.f32 %v12605_v34, %v4046_v51  ;;  %v4047_v11 = vmul.f32 0.03125, %v4019_v52 }
 0xe19   :  { %v4022_v10 = vpop.xlane.xlu0 %4021 }
 0xe1a   :  { %v12708_v44 = vsub.f32 %v12613_v40, %v4047_v11  ;;  %v4048_v0 = vmul.f32 0.03125, %v4022_v10  ;;  %v4078_v29 = vmul.f32 %v12705_v36, %v12705_v36 }
 0xe1b   :  { %v4025_v32 = vpop.xlane.xlu1 %4024 }
 0xe1c   :  { %v12713_v8 = vsub.f32 %v12610_v46, %v4048_v0  ;;  %v4049_v49 = vmul.f32 0.03125, %v4025_v32  ;;  %v4110_v15 = vsel %vm373_vm1, %v4078_v29, 0.0  ;;  %v4079_v42 = vmul.f32 %v12708_v44, %v12708_v44 }
 0xe1d   :  { %4111 = vadd.xlane.f32.xlu0 %v4110_v15 }
 0xe1e   :  { %v12719_v3 = vsub.f32 %v12618_v12, %v4049_v49  ;;  %v4113_v62 = vsel %vm373_vm1, %v4079_v42, 0.0  ;;  %v4080_v56 = vmul.f32 %v12713_v8, %v12713_v8 }
 0xe1f   :  { %4114 = vadd.xlane.f32.xlu1 %v4113_v62 }
 0xe20   :  { %v4116_v45 = vsel %vm373_vm1, %v4080_v56, 0.0  ;;  %v4081_v24 = vmul.f32 %v12719_v3, %v12719_v3 }
 0xe21   :  { %4117 = vadd.xlane.f32.xlu0 %v4116_v45  ;;  %v12755_v45 = vld [vmem:[%s14581_s9 + $0x1] ss:$0 sm:$0xff] }
 0xe22   :  { %v4119_v41 = vsel %vm373_vm1, %v4081_v24, 0.0 }
 0xe23   :  { %4120 = vadd.xlane.f32.xlu1 %v4119_v41 }
 0xe25   :  { %v4028_v54 = vpop.xlane.xlu0 %4027 }
 0xe26   :  { %v4050_v57 = vmul.f32 0.03125, %v4028_v54 }
 0xe27   :  { %v4031_v60 = vpop.xlane.xlu1 %4030 }
 0xe28   :  { %v12729_v50 = vsub.f32 %v12629_v48, %v4050_v57  ;;  %v4051_v37 = vmul.f32 0.03125, %v4031_v60 }
 0xe29   :  { %v4034_v47 = vpop.xlane.xlu0 %4033 }
 0xe2a   :  { %v12732_v25 = vsub.f32 %v12637_v43, %v4051_v37  ;;  %v4052_v22 = vmul.f32 0.03125, %v4034_v47  ;;  %v4082_v9 = vmul.f32 %v12729_v50, %v12729_v50  ;;  %v12763_v37 = vld [vmem:[%s14582_s10 + $0x1] ss:$0 sm:$0xff] }
 0xe2b   :  { %v4037_v35 = vpop.xlane.xlu1 %4036 }
 0xe2c   :  { %v12737_v53 = vsub.f32 %v12634_v27, %v4052_v22  ;;  %v4053_v2 = vmul.f32 0.03125, %v4037_v35  ;;  %v4122_v5 = vsel %vm373_vm1, %v4082_v9, 0.0  ;;  %v4083_v14 = vmul.f32 %v12732_v25, %v12732_v25 }
 0xe2d   :  { %4123 = vadd.xlane.f32.xlu0 %v4122_v5 }
 0xe2e   :  { %v12743_v61 = vsub.f32 %v12642_v33, %v4053_v2  ;;  %v4125_v38 = vsel %vm373_vm1, %v4083_v14, 0.0  ;;  %v4084_v59 = vmul.f32 %v12737_v53, %v12737_v53 }
 0xe2f   :  { %4126 = vadd.xlane.f32.xlu1 %v4125_v38 }
 0xe30   :  { %v4128_v4 = vsel %vm373_vm1, %v4084_v59, 0.0  ;;  %v4085_v7 = vmul.f32 %v12743_v61, %v12743_v61 }
 0xe31   :  { %4129 = vadd.xlane.f32.xlu0 %v4128_v4 }
 0xe32   :  { %v4131_v31 = vsel %vm373_vm1, %v4085_v7, 0.0 }
 0xe33   :  { %4132 = vadd.xlane.f32.xlu1 %v4131_v31 }
 0xe60   :  { %v4088_v16 = vpop.xlane.xlu0 %4087 }
 0xe61   :  { %v4134_v51 = vmul.f32 0.03125, %v4088_v16 }
 0xe62   :  { %v4091_v52 = vpop.xlane.xlu1 %4090 }
 0xe63   :  { %v4150_v11 = vadd.f32 1e-05, %v4134_v51  ;;  %v4135_v10 = vmul.f32 0.03125, %v4091_v52 }
 0xe64   :  { %v4094_v0 = vpop.xlane.xlu0 %4093 }
 0xe65   :  { %9659 = vrsqrt.f32 %v4150_v11  ;;  %v4151_v29 = vadd.f32 1e-05, %v4135_v10  ;;  %v4136_v32 = vmul.f32 0.03125, %v4094_v0 }
 0xe66   :  { %v4097_v49 = vpop.xlane.xlu1 %4096 }
 0xe67   :  { %9661 = vrsqrt.f32 %v4151_v29  ;;  %v4152_v15 = vadd.f32 1e-05, %v4136_v32  ;;  %v4137_v42 = vmul.f32 0.03125, %v4097_v49 }
 0xe69   :  { %9663 = vrsqrt.f32 %v4152_v15  ;;  %v4153_v62 = vadd.f32 1e-05, %v4137_v42 }
 0xe6b   :  { %9665 = vrsqrt.f32 %v4153_v62 }
 0xe6f   :  { %v9660_v56 = vpop.eup %9659 }
 0xe70   :  { %v4182_v24 = vmul.f32 %v9660_v56, %v12651_v21 }
 0xe71   :  { %v9662_v41 = vpop.eup %9661 }
 0xe72   :  { %v4183_v54 = vmul.f32 %v9662_v41, %v12654_v19  ;;  %v4204_v57 = vmul.f32 %v12755_v45, %v4182_v24 }
 0xe73   :  { %v9664_v60 = vpop.eup %9663 }
 0xe74   :  { %v4184_v47 = vmul.f32 %v9664_v60, %v12659_v13  ;;  %v4205_v22 = vmul.f32 %v12755_v45, %v4183_v54  ;;  %v4226_v2 = vadd.f32 %v12763_v37, %v4204_v57 }
 0xe75   :  { %v9666_v9 = vpop.eup %9665 }
 0xe76   :  { %v4206_v35 = vmul.f32 %v12755_v45, %v4184_v47  ;;  %v4185_v21 = vmul.f32 %v9666_v9, %v12665_v23  ;;  %v4227_v19 = vadd.f32 %v12763_v37, %v4205_v22 }
 0xe78   :  { %v4207_v5 = vmul.f32 %v12755_v45, %v4185_v21  ;;  %v4242_v14 = vpack.c.bf16 %v4227_v19, %v4226_v2  ;;  %v4228_v38 = vadd.f32 %v12763_v37, %v4206_v35 }
 0xe7a   :  { %v4229_v59 = vadd.f32 %v12763_v37, %v4207_v5  ;;  %8505 = vmatprep.mubr.msk.bf16.mxu0 %vm373_vm1, %v4242_v14 }
 0xe7c   :  { %v4243_v13 = vpack.c.bf16 %v4229_v59, %v4228_v38 }
 0xe7e   :  { %8506 = vmatmul.mubr.msk.bf16.vlgmr.msra.gmra.mrb[96].mxu0 %vm373_vm1, %v4243_v13 }
 0xe98   :  { %v4100_v4 = vpop.xlane.xlu0 %4099 }
 0xe99   :  { %v4138_v7 = vmul.f32 0.03125, %v4100_v4 }
 0xe9a   :  { %v4103_v31 = vpop.xlane.xlu1 %4102 }
 0xe9b   :  { %v4154_v23 = vadd.f32 1e-05, %v4138_v7  ;;  %v4139_v16 = vmul.f32 0.03125, %v4103_v31 }
 0xe9c   :  { %v4106_v51 = vpop.xlane.xlu0 %4105 }
 0xe9d   :  { %9667 = vrsqrt.f32 %v4154_v23  ;;  %v4155_v52 = vadd.f32 1e-05, %v4139_v16  ;;  %v4140_v11 = vmul.f32 0.03125, %v4106_v51 }
 0xe9e   :  { %v4109_v10 = vpop.xlane.xlu1 %4108 }
 0xe9f   :  { %9669 = vrsqrt.f32 %v4155_v52  ;;  %v4156_v0 = vadd.f32 1e-05, %v4140_v11  ;;  %v4141_v29 = vmul.f32 0.03125, %v4109_v10 }
 0xea1   :  { %9671 = vrsqrt.f32 %v4156_v0  ;;  %v4157_v32 = vadd.f32 1e-05, %v4141_v29 }
 0xea3   :  { %9673 = vrsqrt.f32 %v4157_v32 }
 0xea7   :  { %v9668_v49 = vpop.eup %9667 }
 0xea8   :  { %v4186_v15 = vmul.f32 %v9668_v49, %v12681_v17 }
 0xea9   :  { %v9670_v42 = vpop.eup %9669 }
 0xeaa   :  { %v4112_v62 = vpop.xlane.xlu0 %4111  ;;  %v4187_v56 = vmul.f32 %v9670_v42, %v12684_v63  ;;  %v4208_v24 = vmul.f32 %v12755_v45, %v4186_v15 }
 0xeab   :  { %v9672_v41 = vpop.eup %9671  ;;  %v4142_v54 = vmul.f32 0.03125, %v4112_v62 }
 0xeac   :  { %v4115_v57 = vpop.xlane.xlu1 %4114  ;;  %v4209_v60 = vmul.f32 %v12755_v45, %v4187_v56  ;;  %v4188_v47 = vmul.f32 %v9672_v41, %v12689_v20  ;;  %v4230_v2 = vadd.f32 %v12763_v37, %v4208_v24 }
 0xead   :  { %v9674_v22 = vpop.eup %9673  ;;  %v4158_v9 = vadd.f32 1e-05, %v4142_v54  ;;  %v4143_v35 = vmul.f32 0.03125, %v4115_v57 }
 0xeae   :  { %v4118_v21 = vpop.xlane.xlu0 %4117  ;;  %v4231_v17 = vadd.f32 %v12763_v37, %v4209_v60  ;;  %v4189_v19 = vmul.f32 %v9674_v22, %v12695_v30  ;;  %v4210_v63 = vmul.f32 %v12755_v45, %v4188_v47 }
 0xeaf   :  { %9675 = vrsqrt.f32 %v4158_v9  ;;  %v4159_v5 = vadd.f32 1e-05, %v4143_v35  ;;  %v4144_v14 = vmul.f32 0.03125, %v4118_v21 }
 0xeb0   :  { %v4121_v38 = vpop.xlane.xlu1 %4120  ;;  %v4244_v59 = vpack.c.bf16 %v4231_v17, %v4230_v2  ;;  %v4211_v13 = vmul.f32 %v12755_v45, %v4189_v19  ;;  %v4232_v7 = vadd.f32 %v12763_v37, %v4210_v63 }
 0xeb1   :  { %9677 = vrsqrt.f32 %v4159_v5  ;;  %v4160_v20 = vadd.f32 1e-05, %v4144_v14  ;;  %v4145_v4 = vmul.f32 0.03125, %v4121_v38 }
 0xeb2   :  { %8509 = vmatprep.mubr.msk.bf16.mxu0 %vm373_vm1, %v4244_v59  ;;  %v4233_v31 = vadd.f32 %v12763_v37, %v4211_v13 }
 0xeb3   :  { %9679 = vrsqrt.f32 %v4160_v20  ;;  %v4161_v30 = vadd.f32 1e-05, %v4145_v4 }
 0xeb4   :  { %v4245_v23 = vpack.c.bf16 %v4233_v31, %v4232_v7 }
 0xeb5   :  { %9681 = vrsqrt.f32 %v4161_v30 }
 0xeb6   :  { %8510 = vmatmul.mubr.msk.bf16.gmra.mrb[100].mxu0 %vm373_vm1, %v4245_v23 }
 0xeb9   :  { %v9676_v16 = vpop.eup %9675 }
 0xeba   :  { %v4124_v51 = vpop.xlane.xlu0 %4123  ;;  %v4190_v52 = vmul.f32 %v9676_v16, %v12705_v36 }
 0xebb   :  { %v9678_v11 = vpop.eup %9677  ;;  %v4146_v10 = vmul.f32 0.03125, %v4124_v51 }
 0xebc   :  { %v4127_v0 = vpop.xlane.xlu1 %4126  ;;  %v4191_v29 = vmul.f32 %v9678_v11, %v12708_v44  ;;  %v4212_v32 = vmul.f32 %v12755_v45, %v4190_v52 }
 0xebd   :  { %v9680_v49 = vpop.eup %9679  ;;  %v4162_v15 = vadd.f32 1e-05, %v4146_v10  ;;  %v4147_v42 = vmul.f32 0.03125, %v4127_v0  ;;  %v7641_v10 = vld [vmem:[%s14578_s6 + $0x1] ss:$0 sm:$0xff] }
 0xebe   :  { %v4130_v62 = vpop.xlane.xlu0 %4129  ;;  %v4213_v56 = vmul.f32 %v12755_v45, %v4191_v29  ;;  %v4192_v24 = vmul.f32 %v9680_v49, %v12713_v8  ;;  %v4234_v60 = vadd.f32 %v12763_v37, %v4212_v32 }
 0xebf   :  { %v9682_v41 = vpop.eup %9681  ;;  %9683 = vrsqrt.f32 %v4162_v15  ;;  %v4163_v54 = vadd.f32 1e-05, %v4147_v42  ;;  %v4148_v57 = vmul.f32 0.03125, %v4130_v62 }
 0xec0   :  { %v4133_v36 = vpop.xlane.xlu1 %4132  ;;  %v4235_v47 = vadd.f32 %v12763_v37, %v4213_v56  ;;  %v4193_v44 = vmul.f32 %v9682_v41, %v12719_v3  ;;  %v4214_v22 = vmul.f32 %v12755_v45, %v4192_v24 }
 0xec1   :  { %9685 = vrsqrt.f32 %v4163_v54  ;;  %v4164_v9 = vadd.f32 1e-05, %v4148_v57  ;;  %v4149_v35 = vmul.f32 0.03125, %v4133_v36 }
 0xec2   :  { %v4246_v21 = vpack.c.bf16 %v4235_v47, %v4234_v60  ;;  %v4215_v2 = vmul.f32 %v12755_v45, %v4193_v44  ;;  %v4236_v17 = vadd.f32 %v12763_v37, %v4214_v22 }
 0xec3   :  { %9687 = vrsqrt.f32 %v4164_v9  ;;  %v4165_v8 = vadd.f32 1e-05, %v4149_v35 }
 0xec4   :  { %8513 = vmatprep.mubr.msk.bf16.mxu0 %vm373_vm1, %v4246_v21  ;;  %v4237_v19 = vadd.f32 %v12763_v37, %v4215_v2 }
 0xec5   :  { %9689 = vrsqrt.f32 %v4165_v8 }
 0xec6   :  { %v4247_v63 = vpack.c.bf16 %v4237_v19, %v4236_v17 }
 0xec8   :  { %8514 = vmatmul.mubr.msk.bf16.gmra.mrb[104].mxu0 %vm373_vm1, %v4247_v63 }
 0xec9   :  { %v9684_v3 = vpop.eup %9683 }
 0xeca   :  { %v4194_v5 = vmul.f32 %v9684_v3, %v12729_v50 }
 0xecb   :  { %v9686_v14 = vpop.eup %9685 }
 0xecc   :  { %v4195_v38 = vmul.f32 %v9686_v14, %v12732_v25  ;;  %v4216_v59 = vmul.f32 %v12755_v45, %v4194_v5 }
 0xecd   :  { %v9688_v13 = vpop.eup %9687 }
 0xece   :  { %v4217_v20 = vmul.f32 %v12755_v45, %v4195_v38  ;;  %v4196_v4 = vmul.f32 %v9688_v13, %v12737_v53  ;;  %v4238_v31 = vadd.f32 %v12763_v37, %v4216_v59 }
 0xecf   :  { %v9690_v7 = vpop.eup %9689 }
 0xed0   :  { %v4239_v30 = vadd.f32 %v12763_v37, %v4217_v20  ;;  %v4197_v23 = vmul.f32 %v9690_v7, %v12743_v61  ;;  %v4218_v16 = vmul.f32 %v12755_v45, %v4196_v4 }
 0xed2   :  { %v4248_v50 = vpack.c.bf16 %v4239_v30, %v4238_v31  ;;  %v4219_v51 = vmul.f32 %v12755_v45, %v4197_v23  ;;  %v4240_v25 = vadd.f32 %v12763_v37, %v4218_v16 }
 0xed4   :  { %8517 = vmatprep.mubr.msk.bf16.mxu0 %vm373_vm1, %v4248_v50  ;;  %v4241_v52 = vadd.f32 %v12763_v37, %v4219_v51 }
 0xed6   :  { %v4249_v11 = vpack.c.bf16 %v4241_v52, %v4240_v25 }
 0xed8   :  { %8518 = vmatmul.mubr.msk.bf16.gmra.mrb[108].mxu0 %vm373_vm1, %v4249_v11 }
 0xf51   :  { %v8507_v53 = vpop.f32.mrb[96].mxu0 }
 0xf52   :  { %v4333_v61 = vpop.f32.mrb[97].mxu0  ;;  %v4342_v29 = vadd.f32 %v8507_v53, %v7641_v10 }
 0xf53   :  { %v8508_v0 = vpop.f32.mrb[98].mxu0  ;;  %v4334_v45 = vadd.f32 %v7641_v10, %v4333_v61 }
 0xf54   :  { %v4345_v32 = vadd.f32 %v8508_v0, %v7641_v10  ;;  %v4336_v49 = vpop.f32.mrb[99].mxu0 }
 0xf55   :  { %v4337_v15 = vadd.f32 %v7641_v10, %v4336_v49 }
 0xf56   :  { %v12821_v42 = vpack.c.bf16 %v4345_v32, %v4342_v29 }
 0xf57   :  { %v12823_v62 = vpack.c.bf16 %v4337_v15, %v4334_v45 }
 0xf58   :  { %4414 = vrot.lane.b32.xlu1 %v12821_v42, %s10037_s1 }
 0xf59   :  { %4412 = vrot.lane.b32.xlu0 %v12823_v62, %s10037_s1  ;;  %8537 = vmatprep.mubr.msk.bf16.mxu1 %vm1113_vm2, %v12823_v62 }
 0xf89   :  { %v8511_v37 = vpop.f32.mrb[100].mxu0 }
 0xf8a   :  { %v4349_v56 = vpop.f32.mrb[101].mxu0  ;;  %v4358_v41 = vadd.f32 %v8511_v37, %v7641_v10 }
 0xf8b   :  { %v8512_v24 = vpop.f32.mrb[102].mxu0  ;;  %v4350_v36 = vadd.f32 %v7641_v10, %v4349_v56 }
 0xf8c   :  { %v4361_v54 = vadd.f32 %v8512_v24, %v7641_v10  ;;  %v4352_v57 = vpop.f32.mrb[103].mxu0 }
 0xf8d   :  { %v4353_v60 = vadd.f32 %v7641_v10, %v4352_v57 }
 0xf8e   :  { %v12831_v47 = vpack.c.bf16 %v4361_v54, %v4358_v41 }
 0xf8f   :  { %v12833_v44 = vpack.c.bf16 %v4353_v60, %v4350_v36 }
 0xf91   :  { %4416 = vrot.lane.b32.xlu1 %v12833_v44, %s10037_s1 }
 0xf95   :  { %4418 = vrot.lane.b32.xlu1 %v12831_v47, %s10037_s1 }
 0xf9b   :  { %v8515_v22 = vpop.f32.mrb[104].mxu0 }
 0xf9c   :  { %v4365_v9 = vpop.f32.mrb[105].mxu0  ;;  %v4374_v21 = vadd.f32 %v8515_v22, %v7641_v10 }
 0xf9d   :  { %v8516_v35 = vpop.f32.mrb[106].mxu0  ;;  %v4366_v17 = vadd.f32 %v7641_v10, %v4365_v9 }
 0xf9e   :  { %v4377_v2 = vadd.f32 %v8516_v35, %v7641_v10  ;;  %v4368_v8 = vpop.f32.mrb[107].mxu0 }
 0xf9f   :  { %v4369_v19 = vadd.f32 %v7641_v10, %v4368_v8 }
 0xfa0   :  { %v12839_v63 = vpack.c.bf16 %v4377_v2, %v4374_v21 }
 0xfa1   :  { %v12841_v3 = vpack.c.bf16 %v4369_v19, %v4366_v17 }
 0xfa2   :  { %4422 = vrot.lane.b32.xlu1 %v12839_v63, %s10037_s1 }
 0xfa3   :  { %4420 = vrot.lane.b32.xlu0 %v12841_v3, %s10037_s1 }
 0xfab   :  { %v8519_v5 = vpop.f32.mrb[108].mxu0 }
 0xfac   :  { %v4381_v14 = vpop.f32.mrb[109].mxu0  ;;  %v4390_v59 = vadd.f32 %v8519_v5, %v7641_v10 }
 0xfad   :  { %v8520_v38 = vpop.f32.mrb[110].mxu0  ;;  %v4382_v4 = vadd.f32 %v7641_v10, %v4381_v14 }
 0xfae   :  { %v4393_v13 = vadd.f32 %v8520_v38, %v7641_v10  ;;  %v4384_v20 = vpop.f32.mrb[111].mxu0 }
 0xfaf   :  { %v4385_v7 = vadd.f32 %v7641_v10, %v4384_v20 }
 0xfb0   :  { %v12847_v31 = vpack.c.bf16 %v4393_v13, %v4390_v59 }
 0xfb1   :  { %v12849_v30 = vpack.c.bf16 %v4385_v7, %v4382_v4 }
 0xfb2   :  { %4426 = vrot.lane.b32.xlu1 %v12847_v31, %s10037_s1 }
 0xfb3   :  { %4424 = vrot.lane.b32.xlu0 %v12849_v30, %s10037_s1 }
 0xfb7   :  { %4460 = vrot.lane.b32.xlu0 %v12823_v62, %s10038_s22 }
 0xfbb   :  { %4428 = vrot.lane.b32.xlu0 %v12823_v62, %s10039_s26 }
 0xfbf   :  { %4462 = vrot.lane.b32.xlu0 %v12821_v42, %s10038_s22 }
 0xfc3   :  { %4430 = vrot.lane.b32.xlu0 %v12821_v42, %s10039_s26 }
 0xfc7   :  { %4464 = vrot.lane.b32.xlu0 %v12833_v44, %s10038_s22 }
 0xfca   :  { %v12877_v16 = vpop.permute.xlu1 %4414 }
 0xfcb   :  { %4432 = vrot.lane.b32.xlu0 %v12833_v44, %s10039_s26  ;;  %v12867_v23 = vpop.permute.xlu0 %4412 }
 0xfcc   :  { %8569 = vmatprep.mubr.msk.bf16.mxu0 %vm1113_vm2, %v12867_v23  ;;  %4621 = vrot.lane.b32.xlu1 %v12867_v23, %s10038_s22 }
 0xfcf   :  { %4466 = vrot.lane.b32.xlu0 %v12831_v47, %s10038_s22 }
 0xfd0   :  { %4444 = vrot.lane.b32.xlu1 %v12823_v62, %s10040_s23 }
 0xfd3   :  { %4434 = vrot.lane.b32.xlu0 %v12831_v47, %s10039_s26 }
 0xfd4   :  { %4623 = vrot.lane.b32.xlu1 %v12877_v16, %s10038_s22 }
 0xfd7   :  { %4468 = vrot.lane.b32.xlu0 %v12841_v3, %s10038_s22 }
 0xfd8   :  { %4446 = vrot.lane.b32.xlu1 %v12821_v42, %s10040_s23 }
 0xfdb   :  { %4436 = vrot.lane.b32.xlu0 %v12841_v3, %s10039_s26 }
 0xfdf   :  { %4470 = vrot.lane.b32.xlu0 %v12839_v63, %s10038_s22 }
 0xfe3   :  { %4438 = vrot.lane.b32.xlu0 %v12839_v63, %s10039_s26 }
 0xfe7   :  { %4472 = vrot.lane.b32.xlu0 %v12849_v30, %s10038_s22 }
 0xfeb   :  { %4440 = vrot.lane.b32.xlu0 %v12849_v30, %s10039_s26 }
 0xfef   :  { %4474 = vrot.lane.b32.xlu0 %v12847_v31, %s10038_s22 }
 0xff3   :  { %4442 = vrot.lane.b32.xlu0 %v12847_v31, %s10039_s26 }
0x1003   :  { %v12901_v50 = vpop.permute.xlu1 %4416 }
0x1004   :  { %4625 = vrot.lane.b32.xlu1 %v12901_v50, %s10038_s22 }
0x1007   :  { %v12907_v51 = vpop.permute.xlu1 %4418 }
0x1008   :  { %4448 = vrot.lane.b32.xlu1 %v12833_v44, %s10040_s23 }
0x100c   :  { %4627 = vrot.lane.b32.xlu1 %v12907_v51, %s10038_s22 }
0x1010   :  { %4450 = vrot.lane.b32.xlu1 %v12831_v47, %s10040_s23 }
0x1014   :  { %v12919_v52 = vpop.permute.xlu1 %4422 }
0x1015   :  { %v12913_v25 = vpop.permute.xlu0 %4420 }
0x1016   :  { %4629 = vrot.lane.b32.xlu1 %v12913_v25, %s10038_s22 }
0x101a   :  { %4452 = vrot.lane.b32.xlu1 %v12841_v3, %s10040_s23 }
0x101e   :  { %4631 = vrot.lane.b32.xlu1 %v12919_v52, %s10038_s22 }
0x1022   :  { %4454 = vrot.lane.b32.xlu1 %v12839_v63, %s10040_s23 }
0x1024   :  { %v12933_v61 = vpop.permute.xlu1 %4426 }
0x1025   :  { %v12925_v11 = vpop.permute.xlu0 %4424 }
0x1026   :  { %4633 = vrot.lane.b32.xlu1 %v12925_v11, %s10038_s22 }
0x1029   :  { %v4461_v53 = vpop.permute.xlu0 %4460 }
0x102a   :  { %4456 = vrot.lane.b32.xlu1 %v12849_v30, %s10040_s23  ;;  %8948 = vmatprep.subr.msk.bf16.mxu1 %vm1113_vm2, %v4461_v53  ;;  %v4501_v10 = vsel %vm1113_vm2, %v4461_v53, 0 }
0x102b   :  { %8522 = vmatpush3.bf16.xpose.msra.mxu1 %v4501_v10 }
0x102d   :  { %v12935_v0 = vpop.permute.xlu0 %4428 }
0x102e   :  { %4635 = vrot.lane.b32.xlu1 %v12933_v61, %s10038_s22  ;;  %4782 = vrot.lane.b32.xlu0 %v12935_v0, %s10038_s22 }
0x1031   :  { %v4463_v29 = vpop.permute.xlu0 %4462 }
0x1032   :  { %4458 = vrot.lane.b32.xlu1 %v12847_v31, %s10040_s23  ;;  %8949 = vmatprep.subr.msk.bf16.mxu1 %vm1113_vm2, %v4463_v29  ;;  %v4504_v32 = vsel %vm1113_vm2, %v4463_v29, 0 }
0x1033   :  { %8524 = vmatpush3.bf16.xpose.msra.mxu1 %v4504_v32 }
0x1035   :  { %v12945_v49 = vpop.permute.xlu0 %4430 }
0x1036   :  { %4784 = vrot.lane.b32.xlu0 %v12945_v49, %s10038_s22 }
0x1039   :  { %v4465_v45 = vpop.permute.xlu0 %4464 }
0x103a   :  { %8950 = vmatprep.subr.msk.bf16.mxu1 %vm1113_vm2, %v4465_v45  ;;  %v4507_v15 = vsel %vm1113_vm2, %v4465_v45, 0 }
0x103b   :  { %8526 = vmatpush3.bf16.xpose.msra.mxu1 %v4507_v15 }
0x103d   :  { %v12951_v37 = vpop.permute.xlu0 %4432 }
0x103e   :  { %4786 = vrot.lane.b32.xlu0 %v12951_v37, %s10038_s22  ;;  %v4622_v56 = vpop.permute.xlu1 %4621 }
0x103f   :  { %8956 = vmatprep.subr.msk.bf16.mxu0 %vm1113_vm2, %v4622_v56  ;;  %v4662_v24 = vsel %vm1113_vm2, %v4622_v56, 0 }
0x1040   :  { %8554 = vmatpush3.bf16.xpose.msra.mxu0 %v4662_v24 }
0x1041   :  { %v4467_v41 = vpop.permute.xlu0 %4466 }
0x1042   :  { %8951 = vmatprep.subr.msk.bf16.mxu1 %vm1113_vm2, %v4467_v41  ;;  %v12958_v54 = vpop.permute.xlu1 %4444  ;;  %v4510_v57 = vsel %vm1113_vm2, %v4467_v41, 0 }
0x1043   :  { %8528 = vmatpush3.bf16.xpose.msra.mxu1 %v4510_v57  ;;  %4943 = vrot.lane.b32.xlu1 %v12958_v54, %s10038_s22 }
0x1045   :  { %v12963_v36 = vpop.permute.xlu0 %4434 }
0x1046   :  { %4788 = vrot.lane.b32.xlu0 %v12963_v36, %s10038_s22  ;;  %v4624_v60 = vpop.permute.xlu1 %4623 }
0x1047   :  { %8957 = vmatprep.subr.msk.bf16.mxu0 %vm1113_vm2, %v4624_v60  ;;  %v4665_v22 = vsel %vm1113_vm2, %v4624_v60, 0 }
0x1048   :  { %8556 = vmatpush3.bf16.xpose.msra.mxu0 %v4665_v22 }
0x1049   :  { %v4469_v9 = vpop.permute.xlu0 %4468 }
0x104a   :  { %8952 = vmatprep.subr.msk.bf16.mxu1 %vm1113_vm2, %v4469_v9  ;;  %v12970_v35 = vpop.permute.xlu1 %4446  ;;  %v4513_v21 = vsel %vm1113_vm2, %v4469_v9, 0 }
0x104b   :  { %8530 = vmatpush3.bf16.xpose.msra.mxu1 %v4513_v21  ;;  %4945 = vrot.lane.b32.xlu1 %v12970_v35, %s10038_s22 }
0x104d   :  { %v12975_v2 = vpop.permute.xlu0 %4436 }
0x104e   :  { %4790 = vrot.lane.b32.xlu0 %v12975_v2, %s10038_s22 }
0x1051   :  { %v4471_v8 = vpop.permute.xlu0 %4470 }
0x1052   :  { %8953 = vmatprep.subr.msk.bf16.mxu1 %vm1113_vm2, %v4471_v8  ;;  %v4516_v17 = vsel %vm1113_vm2, %v4471_v8, 0 }
0x1053   :  { %8532 = vmatpush3.bf16.xpose.msra.mxu1 %v4516_v17 }
0x1055   :  { %v12981_v19 = vpop.permute.xlu0 %4438 }
0x1056   :  { %4792 = vrot.lane.b32.xlu0 %v12981_v19, %s10038_s22 }
0x1059   :  { %v4473_v5 = vpop.permute.xlu0 %4472 }
0x105a   :  { %8954 = vmatprep.subr.msk.bf16.mxu1 %vm1113_vm2, %v4473_v5  ;;  %v4519_v14 = vsel %vm1113_vm2, %v4473_v5, 0 }
0x105b   :  { %8534 = vmatpush3.bf16.xpose.msra.mxu1 %v4519_v14 }
0x105d   :  { %v12987_v38 = vpop.permute.xlu0 %4440 }
0x105e   :  { %4794 = vrot.lane.b32.xlu0 %v12987_v38, %s10038_s22 }
0x1061   :  { %v4475_v59 = vpop.permute.xlu0 %4474 }
0x1062   :  { %8955 = vmatprep.subr.msk.bf16.mxu1 %vm1113_vm2, %v4475_v59  ;;  %v4522_v13 = vsel %vm1113_vm2, %v4475_v59, 0 }
0x1063   :  { %8536 = vmatpush3.bf16.xpose.msra.mxu1 %v4522_v13 }
0x1065   :  { %v12993_v20 = vpop.permute.xlu0 %4442 }
0x1066   :  { %14967 = vst [vmem:[#allocation42_spill] sm:$0xff] %v12993_v20  ;;  %4796 = vrot.lane.b32.xlu0 %v12993_v20, %s10038_s22 }
0x106a   :  { %8538 = vmatmul.mubr.msk.bf16.vlgmr.msra.gmra.mrb[112].mxu1 %vm1113_vm2, %v12821_v42  ;;  %5712 = vrot.lane.b32.xlu0 %v12823_v62, %s10041_s24 }
0x106b   :  { %8541 = vmatprep.mubr.msk.bf16.mxu1 %vm1113_vm2, %v12833_v44 }
0x106e   :  { %5714 = vrot.lane.b32.xlu0 %v12821_v42, %s10041_s24 }
0x1072   :  { %8542 = vmatmul.mubr.msk.bf16.gmra.mrb[116].mxu1 %vm1113_vm2, %v12831_v47  ;;  %5718 = vrot.lane.b32.xlu0 %v12831_v47, %s10041_s24 }
0x1073   :  { %8545 = vmatprep.mubr.msk.bf16.mxu1 %vm1113_vm2, %v12841_v3 }
0x1076   :  { %v4626_v4 = vpop.permute.xlu1 %4625  ;;  %5722 = vrot.lane.b32.xlu0 %v12839_v63, %s10041_s24 }
0x1077   :  { %8958 = vmatprep.subr.msk.bf16.mxu0 %vm1113_vm2, %v4626_v4  ;;  %v4668_v62 = vsel %vm1113_vm2, %v4626_v4, 0 }
0x1078   :  { %8558 = vmatpush3.bf16.xpose.msra.mxu0 %v4668_v62 }
0x107a   :  { %v13015_v7 = vpop.permute.xlu1 %4448  ;;  %8546 = vmatmul.mubr.msk.bf16.gmra.mrb[120].mxu1 %vm1113_vm2, %v12839_v63  ;;  %5726 = vrot.lane.b32.xlu0 %v12847_v31, %s10041_s24 }
0x107b   :  { %4947 = vrot.lane.b32.xlu1 %v13015_v7, %s10038_s22  ;;  %8549 = vmatprep.mubr.msk.bf16.mxu1 %vm1113_vm2, %v12849_v30 }
0x107e   :  { %v4628_v42 = vpop.permute.xlu1 %4627  ;;  %5956 = vrot.lane.b32.xlu0 %v12945_v49, %s10041_s24 }
0x107f   :  { %8959 = vmatprep.subr.msk.bf16.mxu0 %vm1113_vm2, %v4628_v42  ;;  %v4671_v47 = vsel %vm1113_vm2, %v4628_v42, 0 }
0x1080   :  { %8560 = vmatpush3.bf16.xpose.msra.mxu0 %v4671_v47 }
0x1082   :  { %v13029_v53 = vpop.permute.xlu1 %4450  ;;  %8550 = vmatmul.mubr.msk.bf16.gmra.mrb[124].mxu1 %vm1113_vm2, %v12847_v31  ;;  %5960 = vrot.lane.b32.xlu0 %v12963_v36, %s10041_s24 }
0x1083   :  { %4949 = vrot.lane.b32.xlu1 %v13029_v53, %s10038_s22  ;;  %8601 = vmatprep.mubr.msk.bf16.mxu1 %vm1113_vm2, %v12935_v0 }
0x1086   :  { %5964 = vrot.lane.b32.xlu0 %v12981_v19, %s10041_s24 }
0x1088   :  { %v4630_v63 = vpop.permute.xlu1 %4629 }
0x1089   :  { %8960 = vmatprep.subr.msk.bf16.mxu0 %vm1113_vm2, %v4630_v63  ;;  %v4674_v10 = vsel %vm1113_vm2, %v4630_v63, 0 }
0x108a   :  { %8562 = vmatpush3.bf16.xpose.msra.mxu0 %v4674_v10 }
0x108c   :  { %v13043_v29 = vpop.permute.xlu1 %4452 }
0x108d   :  { %4951 = vrot.lane.b32.xlu1 %v13043_v29, %s10038_s22 }
0x1090   :  { %v4632_v31 = vpop.permute.xlu1 %4631 }
0x1091   :  { %8961 = vmatprep.subr.msk.bf16.mxu0 %vm1113_vm2, %v4632_v31  ;;  %v4677_v32 = vsel %vm1113_vm2, %v4632_v31, 0 }
0x1092   :  { %8564 = vmatpush3.bf16.xpose.msra.mxu0 %v4677_v32 }
0x1094   :  { %v13049_v45 = vpop.permute.xlu1 %4454 }
0x1095   :  { %4953 = vrot.lane.b32.xlu1 %v13049_v45, %s10038_s22 }
0x1098   :  { %v4634_v15 = vpop.permute.xlu1 %4633 }
0x1099   :  { %8962 = vmatprep.subr.msk.bf16.mxu0 %vm1113_vm2, %v4634_v15  ;;  %v4680_v56 = vsel %vm1113_vm2, %v4634_v15, 0 }
0x109a   :  { %8566 = vmatpush3.bf16.xpose.msra.mxu0 %v4680_v56 }
0x109c   :  { %v13055_v24 = vpop.permute.xlu1 %4456 }
0x109d   :  { %4955 = vrot.lane.b32.xlu1 %v13055_v24, %s10038_s22 }
0x10a0   :  { %v4636_v41 = vpop.permute.xlu1 %4635  ;;  %v4783_v57 = vpop.permute.xlu0 %4782 }
0x10a1   :  { %8963 = vmatprep.subr.msk.bf16.mxu0 %vm1113_vm2, %v4636_v41  ;;  %8964 = vmatprep.subr.msk.bf16.mxu1 %vm1113_vm2, %v4783_v57  ;;  %v4683_v60 = vsel %vm1113_vm2, %v4636_v41, 0  ;;  %v4823_v22 = vsel %vm1113_vm2, %v4783_v57, 0 }
0x10a2   :  { %8568 = vmatpush3.bf16.xpose.msra.mxu0 %v4683_v60  ;;  %8586 = vmatpush3.bf16.xpose.msra.mxu1 %v4823_v22 }
0x10a4   :  { %v13063_v9 = vpop.permute.xlu1 %4458 }
0x10a5   :  { %14968 = vst [vmem:[#allocation43_spill] sm:$0xff] %v13063_v9  ;;  %4957 = vrot.lane.b32.xlu1 %v13063_v9, %s10038_s22 }
0x10a8   :  { %v4785_v21 = vpop.permute.xlu0 %4784 }
0x10a9   :  { %8570 = vmatmul.mubr.msk.bf16.vlgmr.msra.gmra.mrb[112].mxu0 %vm1113_vm2, %v12877_v16  ;;  %5833 = vrot.lane.b32.xlu1 %v12867_v23, %s10041_s24  ;;  %v4826_v8 = vsel %vm1113_vm2, %v4785_v21, 0 }
0x10aa   :  { %8965 = vmatprep.subr.msk.bf16.mxu1 %vm1113_vm2, %v4785_v21  ;;  %8573 = vmatprep.mubr.msk.bf16.mxu0 %vm1113_vm2, %v12901_v50  ;;  %v14969_v21 = vld [vmem:[#allocation25_spill] sm:$0xff] }
0x10ab   :  { %8588 = vmatpush3.bf16.xpose.msra.mxu1 %v4826_v8 }
0x10ad   :  { %5835 = vrot.lane.b32.xlu1 %v12877_v16, %s10041_s24 }
0x10b0   :  { %v4787_v17 = vpop.permute.xlu0 %4786 }
0x10b1   :  { %8574 = vmatmul.mubr.msk.bf16.gmra.mrb[116].mxu0 %vm1113_vm2, %v12907_v51  ;;  %5716 = vrot.lane.b32.xlu1 %v12833_v44, %s10041_s24  ;;  %v4829_v23 = vsel %vm1113_vm2, %v4787_v17, 0 }
0x10b2   :  { %8966 = vmatprep.subr.msk.bf16.mxu1 %vm1113_vm2, %v4787_v17  ;;  %8577 = vmatprep.mubr.msk.bf16.mxu0 %vm1113_vm2, %v12913_v25 }
0x10b3   :  { %8590 = vmatpush3.bf16.xpose.msra.mxu1 %v4829_v23 }
0x10b5   :  { %5837 = vrot.lane.b32.xlu1 %v12901_v50, %s10041_s24  ;;  %v4944_v5 = vpop.permute.xlu1 %4943 }
0x10b6   :  { %8972 = vmatprep.subr.msk.bf16.mxu0 %vm1113_vm2, %v4944_v5  ;;  %v4984_v16 = vsel %vm1113_vm2, %v4944_v5, 0 }
0x10b7   :  { %8618 = vmatpush3.bf16.xpose.msra.mxu0 %v4984_v16  ;;  %v14970_v16 = vld [vmem:[#allocation26_spill] sm:$0xff] }
0x10b8   :  { %v4789_v14 = vpop.permute.xlu0 %4788 }
0x10b9   :  { %8578 = vmatmul.mubr.msk.bf16.gmra.mrb[120].mxu0 %vm1113_vm2, %v12919_v52  ;;  %5839 = vrot.lane.b32.xlu1 %v12907_v51, %s10041_s24  ;;  %v4832_v44 = vsel %vm1113_vm2, %v4789_v14, 0 }
0x10ba   :  { %8967 = vmatprep.subr.msk.bf16.mxu1 %vm1113_vm2, %v4789_v14  ;;  %8581 = vmatprep.mubr.msk.bf16.mxu0 %vm1113_vm2, %v12925_v11 }
0x10bb   :  { %8592 = vmatpush3.bf16.xpose.msra.mxu1 %v4832_v44  ;;  %v14971_v44 = vld [vmem:[#allocation27_spill] sm:$0xff] }
0x10bd   :  { %5720 = vrot.lane.b32.xlu1 %v12841_v3, %s10041_s24  ;;  %v4946_v50 = vpop.permute.xlu1 %4945 }
0x10be   :  { %8973 = vmatprep.subr.msk.bf16.mxu0 %vm1113_vm2, %v4946_v50  ;;  %v4987_v59 = vsel %vm1113_vm2, %v4946_v50, 0 }
0x10bf   :  { %8620 = vmatpush3.bf16.xpose.msra.mxu0 %v4987_v59 }
0x10c0   :  { %v4791_v13 = vpop.permute.xlu0 %4790 }
0x10c1   :  { %8582 = vmatmul.mubr.msk.bf16.gmra.mrb[124].mxu0 %vm1113_vm2, %v12933_v61  ;;  %5841 = vrot.lane.b32.xlu1 %v12913_v25, %s10041_s24  ;;  %v4835_v51 = vsel %vm1113_vm2, %v4791_v13, 0 }
0x10c2   :  { %8968 = vmatprep.subr.msk.bf16.mxu1 %vm1113_vm2, %v4791_v13  ;;  %8633 = vmatprep.mubr.msk.bf16.mxu0 %vm1113_vm2, %v12958_v54 }
0x10c3   :  { %8594 = vmatpush3.bf16.xpose.msra.mxu1 %v4835_v51  ;;  %v14973_v51 = vld [vmem:[#allocation28_spill] sm:$0xff] }
0x10c5   :  { %5843 = vrot.lane.b32.xlu1 %v12919_v52, %s10041_s24 }
0x10c8   :  { %v4793_v3 = vpop.permute.xlu0 %4792 }
0x10c9   :  { %5724 = vrot.lane.b32.xlu1 %v12849_v30, %s10041_s24  ;;  %8969 = vmatprep.subr.msk.bf16.mxu1 %vm1113_vm2, %v4793_v3  ;;  %v4838_v4 = vsel %vm1113_vm2, %v4793_v3, 0 }
0x10cb   :  { %8596 = vmatpush3.bf16.xpose.msra.mxu1 %v4838_v4 }
0x10cd   :  { %5847 = vrot.lane.b32.xlu1 %v12933_v61, %s10041_s24 }
0x10d0   :  { %v4795_v25 = vpop.permute.xlu0 %4794 }
0x10d1   :  { %5954 = vrot.lane.b32.xlu1 %v12935_v0, %s10041_s24  ;;  %8970 = vmatprep.subr.msk.bf16.mxu1 %vm1113_vm2, %v4795_v25  ;;  %v4841_v52 = vsel %vm1113_vm2, %v4795_v25, 0 }
0x10d3   :  { %8598 = vmatpush3.bf16.xpose.msra.mxu1 %v4841_v52 }
0x10d5   :  { %6075 = vrot.lane.b32.xlu1 %v12958_v54, %s10041_s24 }
0x10d8   :  { %v4797_v30 = vpop.permute.xlu0 %4796 }
0x10d9   :  { %6077 = vrot.lane.b32.xlu1 %v12970_v35, %s10041_s24  ;;  %8971 = vmatprep.subr.msk.bf16.mxu1 %vm1113_vm2, %v4797_v30  ;;  %v4844_v61 = vsel %vm1113_vm2, %v4797_v30, 0  ;;  %v14975_v30 = vld [vmem:[#allocation29_spill] sm:$0xff] }
0x10db   :  { %8600 = vmatpush3.bf16.xpose.msra.mxu1 %v4844_v61 }
0x10dc   :  { %v5713_v62 = vpop.permute.xlu0 %5712 }
0x10dd   :  { %5958 = vrot.lane.b32.xlu1 %v12951_v37, %s10041_s24  ;;  %8649 = vmatprep.subr.bf16.mxu1 %v5713_v62 }
0x10e0   :  { %v5715_v0 = vpop.permute.xlu0 %5714 }
0x10e1   :  { %6079 = vrot.lane.b32.xlu1 %v13015_v7, %s10041_s24 }
0x10e2   :  { %8602 = vmatmul.mubr.msk.bf16.vlgmr.msra.gmra.mrb[128].mxu1 %vm1113_vm2, %v12945_v49 }
0x10e3   :  { %8605 = vmatprep.mubr.msk.bf16.mxu1 %vm1113_vm2, %v12951_v37  ;;  %8650 = vmatpush3.bf16.msra.mxu1 %v5713_v62 }
0x10e4   :  { %8651 = vmatprep.subr.bf16.mxu1 %v5715_v0  ;;  %v5719_v56 = vpop.permute.xlu0 %5718 }
0x10e5   :  { %6081 = vrot.lane.b32.xlu1 %v13029_v53, %s10041_s24 }
0x10e7   :  { %8652 = vmatpush3.bf16.msra.mxu1 %v5715_v0  ;;  %v14976_v0 = vld [vmem:[#allocation30_spill] sm:$0xff] }
0x10e8   :  { %v5723_v57 = vpop.permute.xlu0 %5722 }
0x10e9   :  { %5962 = vrot.lane.b32.xlu1 %v12975_v2, %s10041_s24 }
0x10ea   :  { %8606 = vmatmul.mubr.msk.bf16.gmra.mrb[132].mxu1 %vm1113_vm2, %v12963_v36 }
0x10eb   :  { %8609 = vmatprep.mubr.msk.bf16.mxu1 %vm1113_vm2, %v12975_v2 }
0x10ed   :  { %v4948_v49 = vpop.permute.xlu1 %4947  ;;  %6083 = vrot.lane.b32.xlu1 %v13043_v29, %s10041_s24 }
0x10ee   :  { %8974 = vmatprep.subr.msk.bf16.mxu0 %vm1113_vm2, %v4948_v49  ;;  %v4990_v37 = vsel %vm1113_vm2, %v4948_v49, 0 }
0x10ef   :  { %8622 = vmatpush3.bf16.xpose.msra.mxu0 %v4990_v37 }
0x10f1   :  { %6085 = vrot.lane.b32.xlu1 %v13049_v45, %s10041_s24 }
0x10f2   :  { %8610 = vmatmul.mubr.msk.bf16.gmra.mrb[136].mxu1 %vm1113_vm2, %v12981_v19 }
0x10f3   :  { %8613 = vmatprep.mubr.msk.bf16.mxu1 %vm1113_vm2, %v12987_v38 }
0x10f5   :  { %v4950_v54 = vpop.permute.xlu1 %4949  ;;  %5845 = vrot.lane.b32.xlu1 %v12925_v11, %s10041_s24 }
0x10f6   :  { %8975 = vmatprep.subr.msk.bf16.mxu0 %vm1113_vm2, %v4950_v54  ;;  %v4993_v36 = vsel %vm1113_vm2, %v4950_v54, 0  ;;  %v14978_v54 = vld [vmem:[#allocation31_spill] sm:$0xff] }
0x10f7   :  { %8624 = vmatpush3.bf16.xpose.msra.mxu0 %v4993_v36 }
0x10f9   :  { %5966 = vrot.lane.b32.xlu1 %v12987_v38, %s10041_s24 }
0x10fa   :  { %8614 = vmatmul.mubr.msk.bf16.gmra.mrb[140].mxu1 %vm1113_vm2, %v12993_v20 }
0x10fd   :  { %6087 = vrot.lane.b32.xlu1 %v13055_v24, %s10041_s24 }
0x10ff   :  { %v4952_v2 = vpop.permute.xlu1 %4951 }
0x1100   :  { %8976 = vmatprep.subr.msk.bf16.mxu0 %vm1113_vm2, %v4952_v2  ;;  %v4996_v19 = vsel %vm1113_vm2, %v4952_v2, 0 }
0x1101   :  { %8626 = vmatpush3.bf16.xpose.msra.mxu0 %v4996_v19  ;;  %v14979_v19 = vld [vmem:[#allocation32_spill] sm:$0xff] }
0x1107   :  { %v4954_v11 = vpop.permute.xlu1 %4953 }
0x1108   :  { %8977 = vmatprep.subr.msk.bf16.mxu0 %vm1113_vm2, %v4954_v11  ;;  %v4999_v42 = vsel %vm1113_vm2, %v4954_v11, 0 }
0x1109   :  { %8628 = vmatpush3.bf16.xpose.msra.mxu0 %v4999_v42 }
0x110f   :  { %v4956_v47 = vpop.permute.xlu1 %4955 }
0x1110   :  { %8978 = vmatprep.subr.msk.bf16.mxu0 %vm1113_vm2, %v4956_v47  ;;  %v5002_v38 = vsel %vm1113_vm2, %v4956_v47, 0 }
0x1111   :  { %8630 = vmatpush3.bf16.xpose.msra.mxu0 %v5002_v38 }
0x1117   :  { %v4958_v63 = vpop.permute.xlu1 %4957 }
0x1118   :  { %8979 = vmatprep.subr.msk.bf16.mxu0 %vm1113_vm2, %v4958_v63  ;;  %v5005_v10 = vsel %vm1113_vm2, %v4958_v63, 0  ;;  %v14981_v63 = vld [vmem:[#allocation33_spill] sm:$0xff] }
0x1119   :  { %8632 = vmatpush3.bf16.xpose.msra.mxu0 %v5005_v10 }
0x111b   :  { %v5834_v31 = vpop.permute.xlu1 %5833 }
0x111c   :  { %8681 = vmatprep.subr.bf16.mxu0 %v5834_v31 }
0x111f   :  { %v5836_v32 = vpop.permute.xlu1 %5835 }
0x1120   :  { %8634 = vmatmul.mubr.msk.bf16.vlgmr.msra.gmra.mrb[128].mxu0 %vm1113_vm2, %v12970_v35 }
0x1121   :  { %8637 = vmatprep.mubr.msk.bf16.mxu0 %vm1113_vm2, %v13015_v7  ;;  %8682 = vmatpush3.bf16.msra.mxu0 %v5834_v31 }
0x1122   :  { %8683 = vmatprep.subr.bf16.mxu0 %v5836_v32 }
0x1123   :  { %v5717_v15 = vpop.permute.xlu1 %5716 }
0x1124   :  { %8653 = vmatprep.subr.bf16.mxu1 %v5717_v15 }
0x1125   :  { %8654 = vmatpush3.bf16.msra.mxu1 %v5717_v15  ;;  %8684 = vmatpush3.bf16.msra.mxu0 %v5836_v32  ;;  %v14982_v32 = vld [vmem:[#allocation34_spill] sm:$0xff] }
0x1126   :  { %8655 = vmatprep.subr.bf16.mxu1 %v5719_v56 }
0x1127   :  { %v5838_v41 = vpop.permute.xlu1 %5837 }
0x1128   :  { %8638 = vmatmul.mubr.msk.bf16.gmra.mrb[132].mxu0 %vm1113_vm2, %v13029_v53  ;;  %8685 = vmatprep.subr.bf16.mxu0 %v5838_v41 }
0x1129   :  { %8641 = vmatprep.mubr.msk.bf16.mxu0 %vm1113_vm2, %v13043_v29  ;;  %8656 = vmatpush3.bf16.msra.mxu1 %v5719_v56 }
0x112a   :  { %8686 = vmatpush3.bf16.msra.mxu0 %v5838_v41  ;;  %v14984_v41 = vld [vmem:[#allocation35_spill] sm:$0xff] }
0x112b   :  { %v5840_v35 = vpop.permute.xlu1 %5839 }
0x112c   :  { %8687 = vmatprep.subr.bf16.mxu0 %v5840_v35 }
0x112e   :  { %8688 = vmatpush3.bf16.msra.mxu0 %v5840_v35 }
0x112f   :  { %v5721_v7 = vpop.permute.xlu1 %5720 }
0x1130   :  { %8642 = vmatmul.mubr.msk.bf16.gmra.mrb[136].mxu0 %vm1113_vm2, %v13049_v45  ;;  %8657 = vmatprep.subr.bf16.mxu1 %v5721_v7  ;;  %v5727_v45 = vpop.permute.xlu0 %5726 }
0x1131   :  { %8645 = vmatprep.mubr.msk.bf16.mxu0 %vm1113_vm2, %v13055_v24  ;;  %8658 = vmatpush3.bf16.msra.mxu1 %v5721_v7 }
0x1132   :  { %8659 = vmatprep.subr.bf16.mxu1 %v5723_v57 }
0x1133   :  { %v5842_v53 = vpop.permute.xlu1 %5841 }
0x1134   :  { %8689 = vmatprep.subr.bf16.mxu0 %v5842_v53  ;;  %v13312_v20 = vpop.permute.xlu0 %5956 }
0x1135   :  { %8660 = vmatpush3.bf16.msra.mxu1 %v5723_v57  ;;  %8690 = vmatpush3.bf16.msra.mxu0 %v5842_v53  ;;  %v14985_v57 = vld [vmem:[#allocation36_spill] sm:$0xff]  ;;  %14995 = vst [vmem:[#allocation73_spill] sm:$0xff] %v13312_v20 }
0x1137   :  { %v5844_v29 = vpop.permute.xlu1 %5843 }
0x1138   :  { %8646 = vmatmul.mubr.msk.bf16.gmra.mrb[140].mxu0 %vm1113_vm2, %v13063_v9  ;;  %8691 = vmatprep.subr.bf16.mxu0 %v5844_v29 }
0x1139   :  { %8692 = vmatpush3.bf16.msra.mxu0 %v5844_v29 }
0x113b   :  { %v5725_v60 = vpop.permute.xlu1 %5724 }
0x113c   :  { %8661 = vmatprep.subr.bf16.mxu1 %v5725_v60 }
0x113d   :  { %v8539_v22 = vpop.f32.mrb[112].mxu1  ;;  %8662 = vmatpush3.bf16.msra.mxu1 %v5725_v60 }
0x113e   :  { %v13186_v8 = vadd.f32 %v8539_v22, %v14969_v21  ;;  %v4558_v24 = vpop.f32.mrb[113].mxu1  ;;  %8663 = vmatprep.subr.bf16.mxu1 %v5727_v45  ;;  %v14987_v22 = vld [vmem:[#allocation37_spill] sm:$0xff] }
0x113f   :  { %v5848_v17 = vpop.permute.xlu1 %5847  ;;  %v8540_v23 = vpop.f32.mrb[114].mxu1  ;;  %v13193_v50 = vadd.f32 %v4558_v24, %v14971_v44 }
0x1140   :  { %v4561_v5 = vpop.f32.mrb[115].mxu1  ;;  %5108 = vmax.xlane.f32.xlu0 %v13186_v8  ;;  %v13201_v3 = vadd.f32 %v8540_v23, %v14973_v51 }
0x1141   :  { %v13190_v14 = vadd.f32 %v4561_v5, %v14970_v16  ;;  %8664 = vmatpush3.bf16.msra.mxu1 %v5727_v45  ;;  %v14988_v5 = vld [vmem:[#allocation38_spill] sm:$0xff] }
0x1143   :  { %v13195_v59 = vpop.permute.xlu1 %5954  ;;  %5106 = vmax.xlane.f32.xlu1 %v13190_v14 }
0x1144   :  { %14972 = vst [vmem:[#allocation45_spill] sm:$0xff] %v13195_v59  ;;  %5104 = vmax.xlane.f32.xlu0 %v13193_v50  ;;  %8713 = vmatprep.subr.bf16.mxu1 %v13195_v59  ;;  %v13326_v59 = vpop.permute.xlu0 %5960 }
0x1145   :  { %v8543_v13 = vpop.f32.mrb[116].mxu1  ;;  %14999 = vst [vmem:[#allocation78_spill] sm:$0xff] %v13326_v59 }
0x1146   :  { %v4574_v4 = vpop.f32.mrb[117].mxu1  ;;  %v13210_v49 = vadd.f32 %v8543_v13, %v14976_v0 }
0x1147   :  { %v13203_v25 = vpop.permute.xlu1 %6075  ;;  %v8544_v52 = vpop.f32.mrb[118].mxu1  ;;  %v13220_v11 = vadd.f32 %v4574_v4, %v14979_v19 }
0x1148   :  { %14974 = vst [vmem:[#allocation46_spill] sm:$0xff] %v13203_v25  ;;  %v13206_v61 = vadd.f32 %v8544_v52, %v14975_v30  ;;  %v4577_v62 = vpop.f32.mrb[119].mxu1  ;;  %5110 = vmax.xlane.f32.xlu0 %v13201_v3  ;;  %v14990_v52 = vld [vmem:[#allocation39_spill] sm:$0xff]  ;;  %v13342_v59 = vpop.permute.xlu0 %5964 }
0x1149   :  { %v13216_v36 = vadd.f32 %v4577_v62, %v14978_v54  ;;  %15003 = vst [vmem:[#allocation50_spill] sm:$0xff] %v13342_v59 }
0x114a   :  { %5118 = vmax.xlane.f32.xlu1 %v13206_v61 }
0x114b   :  { %v13213_v37 = vpop.permute.xlu1 %6077 }
0x114c   :  { %14977 = vst [vmem:[#allocation60_spill] sm:$0xff] %v13213_v37  ;;  %5116 = vmax.xlane.f32.xlu0 %v13210_v49 }
0x114d   :  { %v8547_v2 = vpop.f32.mrb[120].mxu1 }
0x114e   :  { %v4590_v42 = vpop.f32.mrb[121].mxu1  ;;  %5114 = vmax.xlane.f32.xlu1 %v13216_v36  ;;  %v13230_v15 = vadd.f32 %v8547_v2, %v14982_v32  ;;  %v14991_v2 = vld [vmem:[#allocation41_spill] sm:$0xff] }
0x114f   :  { %v13223_v47 = vpop.permute.xlu1 %5958  ;;  %v8548_v38 = vpop.f32.mrb[122].mxu1  ;;  %v13240_v53 = vadd.f32 %v4590_v42, %v14985_v57 }
0x1150   :  { %14980 = vst [vmem:[#allocation54_spill] sm:$0xff] %v13223_v47  ;;  %v13226_v10 = vadd.f32 %v8548_v38, %v14981_v63  ;;  %v4593_v31 = vpop.f32.mrb[123].mxu1  ;;  %5112 = vmax.xlane.f32.xlu0 %v13220_v11 }
0x1151   :  { %v13236_v35 = vadd.f32 %v4593_v31, %v14984_v41 }
0x1152   :  { %5126 = vmax.xlane.f32.xlu1 %v13226_v10 }
0x1153   :  { %v13233_v56 = vpop.permute.xlu1 %6079 }
0x1154   :  { %14983 = vst [vmem:[#allocation47_spill] sm:$0xff] %v13233_v56  ;;  %5124 = vmax.xlane.f32.xlu0 %v13230_v15 }
0x1155   :  { %v8551_v7 = vpop.f32.mrb[124].mxu1 }
0x1156   :  { %v4606_v29 = vpop.f32.mrb[125].mxu1  ;;  %5122 = vmax.xlane.f32.xlu1 %v13236_v35  ;;  %v13250_v13 = vadd.f32 %v8551_v7, %v14988_v5 }
0x1157   :  { %v13243_v60 = vpop.permute.xlu1 %6081  ;;  %v8552_v45 = vpop.f32.mrb[126].mxu1  ;;  %v13260_v42 = vadd.f32 %v4606_v29, %v14991_v2 }
0x1158   :  { %14986 = vst [vmem:[#allocation53_spill] sm:$0xff] %v13243_v60  ;;  %v13246_v24 = vadd.f32 %v8552_v45, %v14987_v22  ;;  %v4609_v23 = vpop.f32.mrb[127].mxu1  ;;  %5120 = vmax.xlane.f32.xlu0 %v13240_v53 }
0x1159   :  { %v13256_v62 = vadd.f32 %v4609_v23, %v14990_v52 }
0x115a   :  { %5134 = vmax.xlane.f32.xlu1 %v13246_v24 }
0x115b   :  { %v13253_v4 = vpop.permute.xlu1 %5962 }
0x115c   :  { %14989 = vst [vmem:[#allocation48_spill] sm:$0xff] %v13253_v4  ;;  %5132 = vmax.xlane.f32.xlu0 %v13250_v13 }
0x115e   :  { %5130 = vmax.xlane.f32.xlu1 %v13256_v62 }
0x115f   :  { %v13263_v38 = vpop.permute.xlu1 %6083 }
0x1160   :  { %14992 = vst [vmem:[#allocation61_spill] sm:$0xff] %v13263_v38  ;;  %5128 = vmax.xlane.f32.xlu0 %v13260_v42 }
0x1163   :  { %v13266_v31 = vpop.permute.xlu1 %6085 }
0x1164   :  { %14993 = vst [vmem:[#allocation72_spill] sm:$0xff] %v13266_v31 }
0x1167   :  { %v5846_v7 = vpop.permute.xlu1 %5845 }
0x1168   :  { %8693 = vmatprep.subr.bf16.mxu0 %v5846_v7 }
0x1169   :  { %8694 = vmatpush3.bf16.msra.mxu0 %v5846_v7 }
0x116a   :  { %8695 = vmatprep.subr.bf16.mxu0 %v5848_v17 }
0x116d   :  { %8696 = vmatpush3.bf16.msra.mxu0 %v5848_v17 }
0x116e   :  { %8745 = vmatprep.subr.bf16.mxu0 %v13203_v25 }
0x117c   :  { %v8571_v45 = vpop.f32.mrb[112].mxu0 }
0x117d   :  { %v13270_v23 = vadd.f32 %v8571_v45, %v14969_v21  ;;  %v4719_v29 = vpop.f32.mrb[113].mxu0 }
0x117e   :  { %v8572_v27 = vpop.f32.mrb[114].mxu0  ;;  %v13297_v38 = vadd.f32 %v4719_v29, %v14971_v44 }
0x117f   :  { %v13273_v33 = vadd.f32 %v8572_v27, %v14973_v51  ;;  %v4722_v43 = vpop.f32.mrb[115].mxu0  ;;  %5140 = vmax.xlane.f32.xlu0 %v13270_v23 }
0x1180   :  { %v13301_v60 = vadd.f32 %v4722_v43, %v14970_v16 }
0x1181   :  { %5142 = vmax.xlane.f32.xlu1 %v13273_v33 }
0x1184   :  { %v8575_v48 = vpop.f32.mrb[116].mxu0 }
0x1185   :  { %v4735_v7 = vpop.f32.mrb[117].mxu0  ;;  %v13315_v43 = vadd.f32 %v8575_v48, %v14976_v0 }
0x1186   :  { %v8576_v46 = vpop.f32.mrb[118].mxu0 }
0x1187   :  { %v4738_v17 = vpop.f32.mrb[119].mxu0  ;;  %14996 = vst [vmem:[#allocation65_spill] sm:$0xff] %v13315_v43 }
0x118c   :  { %v8579_v12 = vpop.f32.mrb[120].mxu0 }
0x118d   :  { %v13277_v40 = vpop.f32.mrb[121].mxu0 }
0x118e   :  { %v8580_v34 = vpop.f32.mrb[122].mxu0 }
0x118f   :  { %v13279_v45 = vpop.f32.mrb[123].mxu0 }
0x1194   :  { %v13281_v28 = vpop.f32.mrb[124].mxu0 }
0x1195   :  { %v13283_v58 = vpop.f32.mrb[125].mxu0 }
0x1196   :  { %v13285_v27 = vpop.f32.mrb[126].mxu0 }
0x1197   :  { %v13287_v39 = vpop.f32.mrb[127].mxu0 }
0x11b5   :  { %v8603_v6 = vpop.f32.mrb[128].mxu1 }
0x11b6   :  { %v13290_v18 = vadd.f32 %v8603_v6, %v14969_v21  ;;  %v4880_v55 = vpop.f32.mrb[129].mxu1 }
0x11b7   :  { %v8604_v1 = vpop.f32.mrb[130].mxu1  ;;  %v13305_v56 = vadd.f32 %v4880_v55, %v14971_v44  ;;  %v13319_v55 = vadd.f32 %v8576_v46, %v14975_v30  ;;  %v13333_v46 = vadd.f32 %v4735_v7, %v14979_v19 }
0x11b8   :  { %v13293_v26 = vadd.f32 %v8604_v1, %v14973_v51  ;;  %5172 = vmax.xlane.f32.xlu0 %v13290_v18  ;;  %v4883_v31 = vpop.f32.mrb[131].mxu1 }
0x11b9   :  { %v13309_v25 = vadd.f32 %v4883_v31, %v14970_v16  ;;  %14997 = vst [vmem:[#allocation76_spill] sm:$0xff] %v13319_v55  ;;  %15001 = vst [vmem:[#allocation52_spill] sm:$0xff] %v13333_v46 }
0x11ba   :  { %5174 = vmax.xlane.f32.xlu1 %v13293_v26 }
0x11bb   :  { %14994 = vst [vmem:[#allocation74_spill] sm:$0xff] %v13309_v25 }
0x11bc   :  { %5136 = vmax.xlane.f32.xlu0 %v13297_v38 }
0x11bd   :  { %v8607_v6 = vpop.f32.mrb[132].mxu1 }
0x11be   :  { %5138 = vmax.xlane.f32.xlu1 %v13301_v60  ;;  %v4896_v1 = vpop.f32.mrb[133].mxu1  ;;  %v13323_v4 = vadd.f32 %v8607_v6, %v14976_v0  ;;  %v13339_v6 = vadd.f32 %v4738_v17, %v14978_v54 }
0x11bf   :  { %v8608_v37 = vpop.f32.mrb[134].mxu1 }
0x11c0   :  { %v4899_v29 = vpop.f32.mrb[135].mxu1  ;;  %5168 = vmax.xlane.f32.xlu0 %v13305_v56  ;;  %14998 = vst [vmem:[#allocation77_spill] sm:$0xff] %v13323_v4  ;;  %v13329_v48 = vadd.f32 %v8608_v37, %v14975_v30  ;;  %v13345_v37 = vadd.f32 %v4896_v1, %v14979_v19  ;;  %v13359_v1 = vadd.f32 %v8580_v34, %v14981_v63 }
0x11c2   :  { %5170 = vmax.xlane.f32.xlu1 %v13309_v25  ;;  %15000 = vst [vmem:[#allocation75_spill] sm:$0xff] %v13329_v48  ;;  %15004 = vst [vmem:[#allocation56_spill] sm:$0xff] %v13345_v37 }
0x11c4   :  { %5148 = vmax.xlane.f32.xlu0 %v13315_v43  ;;  %v13336_v43 = vpop.permute.xlu1 %5966 }
0x11c5   :  { %v8611_v9 = vpop.f32.mrb[136].mxu1  ;;  %15002 = vst [vmem:[#allocation62_spill] sm:$0xff] %v13336_v43  ;;  %v13355_v43 = vadd.f32 %v8579_v12, %v14982_v32  ;;  %v13372_v12 = vadd.f32 %v13277_v40, %v14985_v57 }
0x11c6   :  { %v4912_v31 = vpop.f32.mrb[137].mxu1  ;;  %5150 = vmax.xlane.f32.xlu1 %v13319_v55  ;;  %v13363_v59 = vadd.f32 %v8611_v9, %v14982_v32  ;;  %v13377_v9 = vadd.f32 %v13279_v45, %v14984_v41  ;;  %v13391_v45 = vadd.f32 %v13281_v28, %v14988_v5 }
0x11c7   :  { %v8612_v47 = vpop.f32.mrb[138].mxu1  ;;  %15006 = vst [vmem:[#allocation57_spill] sm:$0xff] %v13355_v43  ;;  %15009 = vst [vmem:[#allocation6_spill] sm:$0xff] %v13372_v12 }
0x11c8   :  { %v4915_v20 = vpop.f32.mrb[139].mxu1  ;;  %5180 = vmax.xlane.f32.xlu0 %v13323_v4  ;;  %v13349_v4 = vadd.f32 %v4899_v29, %v14978_v54  ;;  %v13352_v17 = vpop.permute.xlu1 %6087  ;;  %15007 = vst [vmem:[#allocation5_spill] sm:$0xff] %v13363_v59  ;;  %15010 = vst [vmem:[#allocation8_spill] sm:$0xff] %v13377_v9 }
0x11c9   :  { %15005 = vst [vmem:[#allocation66_spill] sm:$0xff] %v13352_v17 }
0x11ca   :  { %5182 = vmax.xlane.f32.xlu1 %v13329_v48 }
0x11cc   :  { %5144 = vmax.xlane.f32.xlu0 %v13333_v46 }
0x11cd   :  { %v8615_v55 = vpop.f32.mrb[140].mxu1  ;;  %v5109_v46 = vpop.xlane.xlu0 %5108 }
0x11ce   :  { %v4928_v25 = vpop.f32.mrb[141].mxu1  ;;  %5146 = vmax.xlane.f32.xlu1 %v13339_v6 }
0x11cf   :  { %v8616_v7 = vpop.f32.mrb[142].mxu1 }
0x11d0   :  { %v4931_v48 = vpop.f32.mrb[143].mxu1  ;;  %5176 = vmax.xlane.f32.xlu0 %v13345_v37  ;;  %v5107_v29 = vpop.xlane.xlu1 %5106  ;;  %v13367_v37 = vadd.f32 %v8612_v47, %v14981_v63 }
0x11d1   :  { %v5105_v17 = vpop.xlane.xlu0 %5104 }
0x11d2   :  { %5178 = vmax.xlane.f32.xlu1 %v13349_v4  ;;  %15008 = vst [vmem:[#allocation7_spill] sm:$0xff] %v13367_v37 }
0x11d4   :  { %5156 = vmax.xlane.f32.xlu0 %v13355_v43  ;;  %v13381_v43 = vadd.f32 %v4912_v31, %v14985_v57  ;;  %v5232_v31 = vsub.f32 %v13193_v50, %v5105_v17  ;;  %v13409_v17 = vadd.f32 %v8616_v7, %v14987_v22  ;;  %v13421_v7 = vadd.f32 %v13287_v39, %v14990_v52 }
0x11d5   :  { %v5111_v47 = vpop.xlane.xlu0 %5110 }
0x11d6   :  { %5158 = vmax.xlane.f32.xlu1 %v13359_v1  ;;  %15011 = vst [vmem:[#allocation9_spill] sm:$0xff] %v13381_v43  ;;  %v5296_v28 = vmul.f32 1.442695, %v5232_v31  ;;  %v5235_v50 = vsub.f32 %v13201_v3, %v5111_v47 }
0x11d7   :  { %v5119_v34 = vpop.xlane.xlu1 %5118 }
0x11d8   :  { %5188 = vmax.xlane.f32.xlu0 %v13363_v59  ;;  %v13385_v59 = vadd.f32 %v4915_v20, %v14984_v41  ;;  %v5239_v31 = vsub.f32 %v13206_v61, %v5119_v34 }
0x11da   :  { %5190 = vmax.xlane.f32.xlu1 %v13367_v37  ;;  %v5234_v37 = vsub.f32 %v13186_v8, %v5109_v46  ;;  %v13402_v8 = vadd.f32 %v8615_v55, %v14988_v5 }
0x11db   :  { %v5115_v40 = vpop.xlane.xlu1 %5114 }
0x11dc   :  { %5152 = vmax.xlane.f32.xlu0 %v13372_v12  ;;  %v13397_v12 = vadd.f32 %v13285_v27, %v14987_v22  ;;  %v5300_v20 = vmul.f32 1.442695, %v5234_v37  ;;  %v5237_v3 = vsub.f32 %v13216_v36, %v5115_v40  ;;  %v13431_v40 = vadd.f32 %v4931_v48, %v14990_v52 }
0x11de   :  { %5154 = vmax.xlane.f32.xlu1 %v13377_v9  ;;  %v5117_v9 = vpop.xlane.xlu0 %5116  ;;  %9691 = vpow2.f32 %v5300_v20 }
0x11df   :  { %v13404_v46 = vpop.xlane.xlu1 %5126  ;;  %v5238_v37 = vsub.f32 %v13210_v49, %v5117_v9  ;;  %9693 = vpow2.f32 %v5296_v28  ;;  %v5306_v9 = vmul.f32 1.442695, %v5237_v3 }
0x11e0   :  { %5184 = vmax.xlane.f32.xlu0 %v13381_v43  ;;  %v5233_v43 = vsub.f32 %v13190_v14, %v5107_v29  ;;  %v13415_v14 = vadd.f32 %v13283_v58, %v14991_v2  ;;  %v5302_v29 = vmul.f32 1.442695, %v5235_v50  ;;  %v13426_v58 = vadd.f32 %v4928_v25, %v14991_v2 }
0x11e1   :  { %v5308_v49 = vmul.f32 1.442695, %v5238_v37 }
0x11e2   :  { %5186 = vmax.xlane.f32.xlu1 %v13385_v59  ;;  %v5298_v27 = vmul.f32 1.442695, %v5233_v43  ;;  %v5113_v55 = vpop.xlane.xlu0 %5112 }
0x11e3   :  { %v5123_v47 = vpop.xlane.xlu1 %5122  ;;  %v5236_v43 = vsub.f32 %v13220_v11, %v5113_v55 }
0x11e4   :  { %5164 = vmax.xlane.f32.xlu0 %v13391_v45  ;;  %9695 = vpow2.f32 %v5298_v27  ;;  %v5241_v36 = vsub.f32 %v13236_v35, %v5123_v47  ;;  %v5310_v27 = vmul.f32 1.442695, %v5239_v31 }
0x11e5   :  { %9697 = vpow2.f32 %v5302_v29  ;;  %v5304_v20 = vmul.f32 1.442695, %v5236_v43 }
0x11e6   :  { %5166 = vmax.xlane.f32.xlu1 %v13397_v12  ;;  %v5125_v39 = vpop.xlane.xlu0 %5124  ;;  %9699 = vpow2.f32 %v5308_v49  ;;  %v5314_v28 = vmul.f32 1.442695, %v5241_v36 }
0x11e7   :  { %v13435_v11 = vpop.xlane.xlu1 %5134  ;;  %9701 = vpow2.f32 %v5306_v9  ;;  %v5242_v61 = vsub.f32 %v13230_v15, %v5125_v39 }
0x11e8   :  { %5196 = vmax.xlane.f32.xlu0 %v13402_v8  ;;  %v13438_v25 = vpop.eup %9691  ;;  %9703 = vpow2.f32 %v5304_v20  ;;  %v5243_v20 = vsub.f32 %v13226_v10, %v13404_v46 }
0x11e9   :  { %v13445_v48 = vpop.eup %9693  ;;  %9705 = vpow2.f32 %v5314_v28  ;;  %v5316_v49 = vmul.f32 1.442695, %v5242_v61 }
0x11ea   :  { %5198 = vmax.xlane.f32.xlu1 %v13409_v17  ;;  %v5121_v37 = vpop.xlane.xlu0 %5120  ;;  %9707 = vpow2.f32 %v5310_v27 }
0x11eb   :  { %v5131_v3 = vpop.xlane.xlu1 %5130  ;;  %v5240_v43 = vsub.f32 %v13240_v53, %v5121_v37  ;;  %9709 = vpow2.f32 %v5316_v49 }
0x11ec   :  { %5160 = vmax.xlane.f32.xlu0 %v13415_v14  ;;  %v5245_v9 = vsub.f32 %v13256_v62, %v5131_v3  ;;  %v5318_v3 = vmul.f32 1.442695, %v5243_v20 }
0x11ed   :  { %v5312_v28 = vmul.f32 1.442695, %v5240_v43 }
0x11ee   :  { %5162 = vmax.xlane.f32.xlu1 %v13421_v7  ;;  %v13449_v29 = vpop.eup %9695  ;;  %v5322_v62 = vmul.f32 1.442695, %v5245_v9  ;;  %v5133_v46 = vpop.xlane.xlu0 %5132 }
0x11ef   :  { %v13452_v47 = vpop.eup %9697  ;;  %9711 = vpow2.f32 %v5312_v28 }
0x11f0   :  { %5192 = vmax.xlane.f32.xlu0 %v13426_v58  ;;  %v13456_v15 = vpop.eup %9699  ;;  %9713 = vpow2.f32 %v5322_v62  ;;  %v5246_v62 = vsub.f32 %v13250_v13, %v5133_v46  ;;  %v5247_v46 = vsub.f32 %v13246_v24, %v13435_v11 }
0x11f1   :  { %15012 = vst [vmem:[#allocation11_spill] sm:$0xff] %v13456_v15  ;;  %v13464_v31 = vpop.eup %9701  ;;  %9715 = vpow2.f32 %v5318_v3 }
0x11f2   :  { %5194 = vmax.xlane.f32.xlu1 %v13431_v40  ;;  %15013 = vst [vmem:[#allocation10_spill] sm:$0xff] %v13464_v31  ;;  %v13469_v61 = vpop.eup %9703 }
0x11f3   :  { %v13440_v50 = vpop.f32.mrb[128].mxu0  ;;  %15014 = vst [vmem:[#allocation12_spill] sm:$0xff] %v13469_v61  ;;  %v13472_v37 = vpop.eup %9705 }
0x11f4   :  { %5428 = vadd.xlane.f32.xlu0 %v13438_v25  ;;  %v13443_v35 = vpop.f32.mrb[129].mxu0  ;;  %15015 = vst [vmem:[#allocation13_spill] sm:$0xff] %v13472_v37 }
0x11f5   :  { %v8636_v34 = vpop.f32.mrb[130].mxu0 }
0x11f6   :  { %5424 = vadd.xlane.f32.xlu1 %v13445_v48  ;;  %v5044_v55 = vpop.f32.mrb[131].mxu0  ;;  %v13480_v49 = vadd.f32 %v8636_v34, %v14973_v51  ;;  %v5129_v51 = vpop.xlane.xlu0 %5128 }
0x11f8   :  { %5426 = vadd.xlane.f32.xlu0 %v13449_v29  ;;  %15017 = vst [vmem:[#allocation14_spill] sm:$0xff] %v13480_v49 }
0x11fa   :  { %5430 = vadd.xlane.f32.xlu1 %v13452_v47 }
0x11fb   :  { %v13459_v36 = vpop.f32.mrb[132].mxu0 }
0x11fc   :  { %5436 = vadd.xlane.f32.xlu0 %v13456_v15  ;;  %v13462_v39 = vpop.f32.mrb[133].mxu0  ;;  %v13475_v15 = vpop.eup %9707 }
0x11fd   :  { %v8640_v53 = vpop.f32.mrb[134].mxu0  ;;  %15016 = vst [vmem:[#allocation15_spill] sm:$0xff] %v13475_v15  ;;  %v13486_v28 = vpop.eup %9709 }
0x11fe   :  { %5434 = vadd.xlane.f32.xlu1 %v13464_v31  ;;  %v5060_v27 = vpop.f32.mrb[135].mxu0  ;;  %15018 = vst [vmem:[#allocation16_spill] sm:$0xff] %v13486_v28  ;;  %v13494_v34 = vpop.eup %9711  ;;  %v13504_v13 = vadd.f32 %v8640_v53, %v14975_v30  ;;  %v5326_v30 = vmul.f32 1.442695, %v5247_v46  ;;  %v13520_v53 = vadd.f32 %v13443_v35, %v14971_v44 }
0x11ff   :  { %15019 = vst [vmem:[#allocation17_spill] sm:$0xff] %v13494_v34  ;;  %v13497_v31 = vpop.eup %9713 }
0x1200   :  { %5432 = vadd.xlane.f32.xlu0 %v13469_v61  ;;  %v5324_v61 = vmul.f32 1.442695, %v5246_v62  ;;  %v13511_v62 = vadd.f32 %v13440_v50, %v14969_v21 }
0x1202   :  { %5442 = vadd.xlane.f32.xlu1 %v13472_v37  ;;  %v13489_v37 = vadd.f32 %v5044_v55, %v14970_v16  ;;  %9717 = vpow2.f32 %v5324_v61 }
0x1203   :  { %v13477_v10 = vpop.f32.mrb[136].mxu0 }
0x1204   :  { %5438 = vadd.xlane.f32.xlu0 %v13475_v15  ;;  %v13483_v43 = vpop.f32.mrb[137].mxu0 }
0x1205   :  { %v8644_v9 = vpop.f32.mrb[138].mxu0 }
0x1206   :  { %5206 = vmax.xlane.f32.xlu1 %v13480_v49  ;;  %v5076_v20 = vpop.f32.mrb[139].mxu0  ;;  %v5244_v49 = vsub.f32 %v13260_v42, %v5129_v51  ;;  %v13515_v42 = vadd.f32 %v5060_v27, %v14978_v54  ;;  %v13525_v21 = vadd.f32 %v8644_v9, %v14981_v63  ;;  %v13559_v27 = vadd.f32 %v13462_v39, %v14979_v19 }
0x1207   :  { %v13532_v50 = vadd.f32 %v5076_v20, %v14984_v41  ;;  %v13551_v41 = vadd.f32 %v13459_v36, %v14976_v0  ;;  %v13566_v0 = vadd.f32 %v13477_v10, %v14982_v32 }
0x1208   :  { %5444 = vadd.xlane.f32.xlu0 %v13486_v28  ;;  %v13501_v28 = vpop.eup %9715 }
0x120a   :  { %5202 = vmax.xlane.f32.xlu1 %v13489_v37 }
0x120b   :  { %v8647_v15 = vpop.f32.mrb[140].mxu0 }
0x120c   :  { %5440 = vadd.xlane.f32.xlu0 %v13494_v34  ;;  %v5089_v3 = vpop.f32.mrb[141].mxu0  ;;  %v5320_v34 = vmul.f32 1.442695, %v5244_v49  ;;  %v13529_v54 = vpop.eup %9717  ;;  %v13571_v49 = vadd.f32 %v13483_v43, %v14985_v57  ;;  %v13575_v19 = vadd.f32 %v8647_v15, %v14988_v5 }
0x120d   :  { %v8648_v16 = vpop.f32.mrb[142].mxu0  ;;  %v5141_v61 = vpop.xlane.xlu0 %5140 }
0x120e   :  { %5450 = vadd.xlane.f32.xlu1 %v13497_v31  ;;  %v5092_v55 = vpop.f32.mrb[143].mxu0  ;;  %v5143_v51 = vpop.xlane.xlu1 %5142  ;;  %9719 = vpow2.f32 %v5320_v34 }
0x120f   :  { %v5251_v24 = vsub.f32 %v13273_v33, %v5143_v51  ;;  %9721 = vpow2.f32 %v5326_v30  ;;  %v13539_v33 = vadd.f32 %v8648_v16, %v14987_v22  ;;  %v13546_v35 = vadd.f32 %v5092_v55, %v14990_v52  ;;  %v15020_v51 = vld [vmem:[#allocation74_spill] sm:$0xff] }
0x1210   :  { %5446 = vadd.xlane.f32.xlu0 %v13501_v28  ;;  %v5250_v52 = vsub.f32 %v13270_v23, %v5141_v61  ;;  %v13579_v23 = vadd.f32 %v5089_v3, %v14991_v2  ;;  %v15021_v61 = vld [vmem:[#allocation65_spill] sm:$0xff] }
0x1211   :  { %v5334_v11 = vmul.f32 1.442695, %v5251_v24 }
0x1212   :  { %5214 = vmax.xlane.f32.xlu1 %v13504_v13  ;;  %v5332_v36 = vmul.f32 1.442695, %v5250_v52 }
0x1213   :  { %9723 = vpow2.f32 %v5334_v11 }
0x1214   :  { %5204 = vmax.xlane.f32.xlu0 %v13511_v62  ;;  %9725 = vpow2.f32 %v5332_v36 }
0x1216   :  { %5210 = vmax.xlane.f32.xlu1 %v13515_v42 }
0x1218   :  { %5200 = vmax.xlane.f32.xlu0 %v13520_v53  ;;  %v13536_v44 = vpop.eup %9719 }
0x1219   :  { %v13543_v63 = vpop.eup %9721 }
0x121a   :  { %5222 = vmax.xlane.f32.xlu1 %v13525_v21 }
0x121c   :  { %5452 = vadd.xlane.f32.xlu0 %v13529_v54 }
0x121d   :  { %v13555_v22 = vpop.eup %9723 }
0x121e   :  { %5218 = vmax.xlane.f32.xlu1 %v13532_v50  ;;  %v13582_v32 = vpop.eup %9725 }
0x1220   :  { %5448 = vadd.xlane.f32.xlu0 %v13536_v44 }
0x1222   :  { %5230 = vmax.xlane.f32.xlu1 %v13539_v33 }
0x1224   :  { %5454 = vadd.xlane.f32.xlu0 %v13543_v63 }
0x1226   :  { %5226 = vmax.xlane.f32.xlu1 %v13546_v35 }
0x1228   :  { %5212 = vmax.xlane.f32.xlu0 %v13551_v41 }
0x122a   :  { %5462 = vadd.xlane.f32.xlu1 %v13555_v22 }
0x122c   :  { %5208 = vmax.xlane.f32.xlu0 %v13559_v27 }
0x1230   :  { %5220 = vmax.xlane.f32.xlu0 %v13566_v0 }
0x1234   :  { %5216 = vmax.xlane.f32.xlu0 %v13571_v49 }
0x1238   :  { %5228 = vmax.xlane.f32.xlu0 %v13575_v19 }
0x123c   :  { %5224 = vmax.xlane.f32.xlu0 %v13579_v23 }
0x1240   :  { %5460 = vadd.xlane.f32.xlu0 %v13582_v32 }
0x1245   :  { %v5173_v39 = vpop.xlane.xlu0 %5172 }
0x1246   :  { %v5266_v57 = vsub.f32 %v13290_v18, %v5173_v39 }
0x1247   :  { %v5175_v10 = vpop.xlane.xlu1 %5174 }
0x1248   :  { %v5364_v43 = vmul.f32 1.442695, %v5266_v57  ;;  %v5267_v3 = vsub.f32 %v13293_v26, %v5175_v10  ;;  %v15023_v26 = vld [vmem:[#allocation76_spill] sm:$0xff] }
0x1249   :  { %v5137_v9 = vpop.xlane.xlu0 %5136 }
0x124a   :  { %9727 = vpow2.f32 %v5364_v43  ;;  %v5248_v5 = vsub.f32 %v13297_v38, %v5137_v9  ;;  %v5366_v11 = vmul.f32 1.442695, %v5267_v3  ;;  %v15024_v43 = vld [vmem:[#allocation77_spill] sm:$0xff]  ;;  %v15025_v3 = vld [vmem:[#allocation52_spill] sm:$0xff] }
0x124b   :  { %v5139_v15 = vpop.xlane.xlu1 %5138 }
0x124c   :  { %v5328_v20 = vmul.f32 1.442695, %v5248_v5  ;;  %v5249_v2 = vsub.f32 %v13301_v60, %v5139_v15 }
0x124d   :  { %v5169_v34 = vpop.xlane.xlu0 %5168 }
0x124e   :  { %9729 = vpow2.f32 %v5328_v20  ;;  %v5330_v16 = vmul.f32 1.442695, %v5249_v2  ;;  %v5264_v55 = vsub.f32 %v13305_v56, %v5169_v34 }
0x124f   :  { %v5171_v46 = vpop.xlane.xlu1 %5170 }
0x1250   :  { %9731 = vpow2.f32 %v5330_v16  ;;  %v5360_v18 = vmul.f32 1.442695, %v5264_v55  ;;  %v5265_v30 = vsub.f32 %v15020_v51, %v5171_v46 }
0x1251   :  { %v5149_v24 = vpop.xlane.xlu0 %5148 }
0x1252   :  { %9733 = vpow2.f32 %v5360_v18  ;;  %v5362_v38 = vmul.f32 1.442695, %v5265_v30  ;;  %v5254_v52 = vsub.f32 %v15021_v61, %v5149_v24 }
0x1253   :  { %v5151_v36 = vpop.xlane.xlu1 %5150 }
0x1254   :  { %v13592_v60 = vpop.eup %9727  ;;  %9735 = vpow2.f32 %v5362_v38  ;;  %v5255_v39 = vsub.f32 %v15023_v26, %v5151_v36  ;;  %v5340_v57 = vmul.f32 1.442695, %v5254_v52  ;;  %v15026_v38 = vld [vmem:[#allocation56_spill] sm:$0xff] }
0x1255   :  { %15022 = vst [vmem:[#allocation19_spill] sm:$0xff] %v13592_v60  ;;  %5492 = vadd.xlane.f32.xlu0 %v13592_v60  ;;  %v5181_v56 = vpop.xlane.xlu0 %5180  ;;  %9737 = vpow2.f32 %v5366_v11  ;;  %v15039_v60 = vld [vmem:[#allocation14_spill] sm:$0xff] }
0x1256   :  { %v5342_v10 = vmul.f32 1.442695, %v5255_v39  ;;  %v5270_v9 = vsub.f32 %v15024_v43, %v5181_v56  ;;  %v15027_v56 = vld [vmem:[#allocation75_spill] sm:$0xff] }
0x1257   :  { %v5183_v5 = vpop.xlane.xlu1 %5182 }
0x1258   :  { %v13597_v15 = vpop.eup %9729  ;;  %9739 = vpow2.f32 %v5342_v10  ;;  %v5372_v34 = vmul.f32 1.442695, %v5270_v9 }
0x1259   :  { %5456 = vadd.xlane.f32.xlu0 %v13597_v15  ;;  %v5145_v20 = vpop.xlane.xlu0 %5144  ;;  %9741 = vpow2.f32 %v5340_v57  ;;  %v5271_v57 = vsub.f32 %v15027_v56, %v5183_v5 }
0x125a   :  { %v13600_v2 = vpop.eup %9731  ;;  %v5252_v16 = vsub.f32 %v15025_v3, %v5145_v20  ;;  %9743 = vpow2.f32 %v5372_v34 }
0x125b   :  { %v5147_v55 = vpop.xlane.xlu1 %5146  ;;  %5458 = vadd.xlane.f32.xlu1 %v13600_v2  ;;  %v5374_v3 = vmul.f32 1.442695, %v5271_v57 }
0x125c   :  { %v13604_v46 = vpop.eup %9733  ;;  %v5253_v18 = vsub.f32 %v13339_v6, %v5147_v55  ;;  %v5336_v24 = vmul.f32 1.442695, %v5252_v16  ;;  %v15028_v16 = vld [vmem:[#allocation57_spill] sm:$0xff] }
0x125d   :  { %5488 = vadd.xlane.f32.xlu0 %v13604_v46  ;;  %v5177_v51 = vpop.xlane.xlu0 %5176 }
0x125e   :  { %v13608_v30 = vpop.eup %9735  ;;  %v5338_v11 = vmul.f32 1.442695, %v5253_v18  ;;  %v5268_v61 = vsub.f32 %v15026_v38, %v5177_v51 }
0x125f   :  { %v5179_v52 = vpop.xlane.xlu1 %5178  ;;  %5490 = vadd.xlane.f32.xlu1 %v13608_v30  ;;  %v13612_v36 = vpop.eup %9737 }
0x1260   :  { %9745 = vpow2.f32 %v5338_v11  ;;  %v5269_v26 = vsub.f32 %v13349_v4, %v5179_v52  ;;  %v5368_v10 = vmul.f32 1.442695, %v5268_v61 }
0x1261   :  { %5494 = vadd.xlane.f32.xlu0 %v13612_v36  ;;  %v5157_v6 = vpop.xlane.xlu0 %5156  ;;  %9747 = vpow2.f32 %v5336_v24 }
0x1262   :  { %v13616_v39 = vpop.eup %9739  ;;  %v5370_v43 = vmul.f32 1.442695, %v5269_v26  ;;  %v5258_v55 = vsub.f32 %v15028_v16, %v5157_v6  ;;  %v15031_v6 = vld [vmem:[#allocation8_spill] sm:$0xff] }
0x1263   :  { %v5159_v9 = vpop.xlane.xlu1 %5158  ;;  %5470 = vadd.xlane.f32.xlu1 %v13616_v39  ;;  %v13620_v20 = vpop.eup %9741 }
0x1264   :  { %9749 = vpow2.f32 %v5370_v43  ;;  %v5259_v34 = vsub.f32 %v13359_v1, %v5159_v9  ;;  %v13625_v51 = vpop.eup %9743  ;;  %v5348_v38 = vmul.f32 1.442695, %v5258_v55  ;;  %v15030_v1 = vld [vmem:[#allocation5_spill] sm:$0xff]  ;;  %v15033_v9 = vld [vmem:[#allocation6_spill] sm:$0xff] }
0x1265   :  { %5468 = vadd.xlane.f32.xlu0 %v13620_v20  ;;  %v5189_v4 = vpop.xlane.xlu0 %5188  ;;  %9751 = vpow2.f32 %v5368_v10  ;;  %15029 = vst [vmem:[#allocation18_spill] sm:$0xff] %v13625_v51 }
0x1266   :  { %v5350_v18 = vmul.f32 1.442695, %v5259_v34  ;;  %v5274_v61 = vsub.f32 %v15030_v1, %v5189_v4 }
0x1267   :  { %v5191_v5 = vpop.xlane.xlu1 %5190 }
0x1268   :  { %9753 = vpow2.f32 %v5350_v18  ;;  %v5380_v43 = vmul.f32 1.442695, %v5274_v61 }
0x1269   :  { %5500 = vadd.xlane.f32.xlu0 %v13625_v51  ;;  %v5153_v24 = vpop.xlane.xlu0 %5152  ;;  %9755 = vpow2.f32 %v5374_v3 }
0x126a   :  { %v13628_v11 = vpop.eup %9745  ;;  %9757 = vpow2.f32 %v5348_v38  ;;  %v5256_v34 = vsub.f32 %v15033_v9, %v5153_v24  ;;  %v15034_v38 = vld [vmem:[#allocation9_spill] sm:$0xff] }
0x126b   :  { %v5155_v52 = vpop.xlane.xlu1 %5154  ;;  %5466 = vadd.xlane.f32.xlu1 %v13628_v11  ;;  %v13632_v26 = vpop.eup %9747 }
0x126c   :  { %v5257_v56 = vsub.f32 %v15031_v6, %v5155_v52  ;;  %v5344_v52 = vmul.f32 1.442695, %v5256_v34 }
0x126d   :  { %5464 = vadd.xlane.f32.xlu0 %v13632_v26  ;;  %v5185_v57 = vpop.xlane.xlu0 %5184 }
0x126e   :  { %v13636_v10 = vpop.eup %9749  ;;  %v5346_v3 = vmul.f32 1.442695, %v5257_v56  ;;  %v5272_v61 = vsub.f32 %v15034_v38, %v5185_v57 }
0x126f   :  { %15032 = vst [vmem:[#allocation20_spill] sm:$0xff] %v13636_v10  ;;  %v5187_v16 = vpop.xlane.xlu1 %5186  ;;  %5498 = vadd.xlane.f32.xlu1 %v13636_v10  ;;  %v13640_v4 = vpop.eup %9751 }
0x1270   :  { %9759 = vpow2.f32 %v5346_v3  ;;  %v5273_v55 = vsub.f32 %v13385_v59, %v5187_v16  ;;  %v15036_v3 = vld [vmem:[#allocation7_spill] sm:$0xff]  ;;  %v5376_v51 = vmul.f32 1.442695, %v5272_v61 }
0x1271   :  { %5496 = vadd.xlane.f32.xlu0 %v13640_v4  ;;  %v5165_v18 = vpop.xlane.xlu0 %5164  ;;  %9761 = vpow2.f32 %v5380_v43  ;;  %v5275_v16 = vsub.f32 %v15036_v3, %v5191_v5 }
0x1272   :  { %v13644_v1 = vpop.eup %9753  ;;  %v5378_v6 = vmul.f32 1.442695, %v5273_v55  ;;  %v5262_v57 = vsub.f32 %v13391_v45, %v5165_v18 }
0x1273   :  { %v5167_v24 = vpop.xlane.xlu1 %5166  ;;  %5478 = vadd.xlane.f32.xlu1 %v13644_v1  ;;  %v13648_v56 = vpop.eup %9755 }
0x1274   :  { %15035 = vst [vmem:[#allocation25_spill] sm:$0xff] %v13648_v56  ;;  %9763 = vpow2.f32 %v5378_v6  ;;  %v5263_v9 = vsub.f32 %v13397_v12, %v5167_v24  ;;  %v13653_v10 = vpop.eup %9757  ;;  %v5382_v12 = vmul.f32 1.442695, %v5275_v16  ;;  %v5356_v61 = vmul.f32 1.442695, %v5262_v57 }
0x1275   :  { %5502 = vadd.xlane.f32.xlu0 %v13648_v56  ;;  %v5197_v59 = vpop.xlane.xlu0 %5196  ;;  %9765 = vpow2.f32 %v5344_v52 }
0x1276   :  { %v5358_v43 = vmul.f32 1.442695, %v5263_v9  ;;  %v5278_v6 = vsub.f32 %v13402_v8, %v5197_v59 }
0x1277   :  { %v5199_v34 = vpop.xlane.xlu1 %5198 }
0x1278   :  { %9767 = vpow2.f32 %v5358_v43  ;;  %v5388_v9 = vmul.f32 1.442695, %v5278_v6 }
0x1279   :  { %5476 = vadd.xlane.f32.xlu0 %v13653_v10  ;;  %v5161_v55 = vpop.xlane.xlu0 %5160  ;;  %9769 = vpow2.f32 %v5376_v51 }
0x127a   :  { %v13657_v38 = vpop.eup %9759  ;;  %9771 = vpow2.f32 %v5382_v12  ;;  %v5260_v43 = vsub.f32 %v13415_v14, %v5161_v55  ;;  %v5279_v14 = vsub.f32 %v13409_v17, %v5199_v34 }
0x127b   :  { %v5163_v24 = vpop.xlane.xlu1 %5162  ;;  %5474 = vadd.xlane.f32.xlu1 %v13657_v38  ;;  %v13661_v5 = vpop.eup %9761 }
0x127c   :  { %v5261_v52 = vsub.f32 %v13421_v7, %v5163_v24 }
0x127d   :  { %5508 = vadd.xlane.f32.xlu0 %v13661_v5  ;;  %v5193_v45 = vpop.xlane.xlu0 %5192 }
0x127e   :  { %v13665_v18 = vpop.eup %9763  ;;  %v5354_v3 = vmul.f32 1.442695, %v5261_v52  ;;  %v5276_v24 = vsub.f32 %v13426_v58, %v5193_v45  ;;  %v5352_v52 = vmul.f32 1.442695, %v5260_v43  ;;  %v5390_v43 = vmul.f32 1.442695, %v5279_v14 }
0x127f   :  { %v5195_v16 = vpop.xlane.xlu1 %5194  ;;  %5506 = vadd.xlane.f32.xlu1 %v13665_v18  ;;  %v13668_v8 = vpop.eup %9765 }
0x1280   :  { %9773 = vpow2.f32 %v5354_v3  ;;  %v5277_v51 = vsub.f32 %v13431_v40, %v5195_v16  ;;  %v5384_v55 = vmul.f32 1.442695, %v5276_v24 }
0x1281   :  { %9775 = vpow2.f32 %v5356_v61  ;;  %5472 = vadd.xlane.f32.xlu0 %v13668_v8  ;;  %v5429_v7 = vpop.xlane.xlu0 %5428 }
0x1282   :  { %v13672_v59 = vpop.eup %9767  ;;  %9777 = vpow2.f32 %v5388_v9  ;;  %v5386_v57 = vmul.f32 1.442695, %v5277_v51 }
0x1283   :  { %9779 = vrcp.f32 %v5429_v7  ;;  %v5425_v12 = vpop.xlane.xlu1 %5424  ;;  %5486 = vadd.xlane.f32.xlu1 %v13672_v59  ;;  %v13676_v6 = vpop.eup %9769 }
0x1284   :  { %9781 = vpow2.f32 %v5386_v57  ;;  %v13680_v9 = vpop.eup %9771 }
0x1285   :  { %9783 = vrcp.f32 %v5425_v12  ;;  %5504 = vadd.xlane.f32.xlu0 %v13676_v6  ;;  %v5427_v40 = vpop.xlane.xlu0 %5426 }
0x1286   :  { %9785 = vrcp.f32 %v5427_v40 }
0x1287   :  { %v5431_v61 = vpop.xlane.xlu1 %5430 }
0x1288   :  { %9787 = vrcp.f32 %v5431_v61 }
0x1289   :  { %5510 = vadd.xlane.f32.xlu0 %v13680_v9  ;;  %v5437_v3 = vpop.xlane.xlu0 %5436  ;;  %9789 = vpow2.f32 %v5352_v52 }
0x128a   :  { %v13684_v16 = vpop.eup %9773 }
0x128b   :  { %v13686_v58 = vpop.eup %9775  ;;  %5482 = vadd.xlane.f32.xlu1 %v13684_v16  ;;  %v5435_v45 = vpop.xlane.xlu1 %5434 }
0x128c   :  { %v13689_v51 = vpop.eup %9777  ;;  %9791 = vrcp.f32 %v5435_v45 }
0x128d   :  { %15037 = vst [vmem:[#allocation26_spill] sm:$0xff] %v13689_v51  ;;  %v9780_v7 = vpop.eup %9779  ;;  %9793 = vpow2.f32 %v5384_v55  ;;  %5484 = vadd.xlane.f32.xlu0 %v13686_v58  ;;  %v5433_v17 = vpop.xlane.xlu0 %5432 }
0x128e   :  { %v13692_v34 = vpop.eup %9781  ;;  %9795 = vrcp.f32 %v5433_v17  ;;  %v5557_v55 = vmul.f32 %v9780_v7, %v13438_v25  ;;  %v15040_v7 = vld [vmem:[#allocation45_spill] sm:$0xff] }
0x128f   :  { %15038 = vst [vmem:[#allocation27_spill] sm:$0xff] %v13692_v34  ;;  %v9784_v57 = vpop.eup %9783  ;;  %5514 = vadd.xlane.f32.xlu1 %v13692_v34  ;;  %v5443_v12 = vpop.xlane.xlu1 %5442  ;;  %9797 = vrcp.f32 %v5437_v3 }
0x1290   :  { %v9786_v24 = vpop.eup %9785  ;;  %9799 = vpow2.f32 %v5390_v43  ;;  %v5553_v52 = vmul.f32 %v9784_v57, %v13445_v48 }
0x1291   :  { %5516 = vadd.xlane.f32.xlu0 %v13689_v51  ;;  %v5439_v40 = vpop.xlane.xlu0 %5438  ;;  %v5555_v61 = vmul.f32 %v9786_v24, %v13449_v29 }
0x1292   :  { %v9788_v14 = vpop.eup %9787  ;;  %9801 = vrcp.f32 %v5439_v40  ;;  %v15041_v40 = vld [vmem:[#allocation73_spill] sm:$0xff] }
0x1293   :  { %v5559_v45 = vmul.f32 %v9788_v14, %v13452_v47  ;;  %v5207_v17 = vpop.xlane.xlu1 %5206  ;;  %v5680_v56 = vpack.c.bf16 %v5555_v61, %v5553_v52  ;;  %v13700_v34 = vpop.eup %9789  ;;  %9803 = vrcp.f32 %v5443_v12  ;;  %v15043_v61 = vld [vmem:[#allocation10_spill] sm:$0xff] }
0x1294   :  { %v5283_v3 = vsub.f32 %v15039_v60, %v5207_v17 }
0x1295   :  { %5480 = vadd.xlane.f32.xlu0 %v13700_v34  ;;  %8665 = vmatprep.mubr.bf16.mxu1 %v5680_v56  ;;  %v5445_v43 = vpop.xlane.xlu0 %5444  ;;  %v5681_v51 = vpack.c.bf16 %v5559_v45, %v5557_v55  ;;  %v15042_v56 = vld [vmem:[#allocation12_spill] sm:$0xff] }
0x1296   :  { %v9792_v48 = vpop.eup %9791  ;;  %v5398_v57 = vmul.f32 1.442695, %v5283_v3  ;;  %v15044_v3 = vld [vmem:[#allocation54_spill] sm:$0xff] }
0x1297   :  { %v13704_v29 = vpop.eup %9793  ;;  %v5203_v24 = vpop.xlane.xlu1 %5202  ;;  %8666 = vmatmul.mubr.bf16.vlgmr.msra.gmra.mrb[144].mxu1 %v5681_v51  ;;  %v5563_v14 = vmul.f32 %v9792_v48, %v15043_v61  ;;  %v15046_v48 = vld [vmem:[#allocation15_spill] sm:$0xff] }
0x1298   :  { %v9796_v25 = vpop.eup %9795  ;;  %9805 = vpow2.f32 %v5398_v57  ;;  %v5281_v47 = vsub.f32 %v13489_v37, %v5203_v24  ;;  %8714 = vmatpush3.bf16.msra.mxu1 %v15040_v7  ;;  %v15045_v24 = vld [vmem:[#allocation11_spill] sm:$0xff] }
0x1299   :  { %8715 = vmatprep.subr.bf16.mxu1 %v15041_v40  ;;  %5512 = vadd.xlane.f32.xlu0 %v13704_v29  ;;  %v5441_v60 = vpop.xlane.xlu0 %5440  ;;  %v5561_v52 = vmul.f32 %v9796_v25, %v15042_v56  ;;  %v9798_v55 = vpop.eup %9797 }
0x129a   :  { %v5394_v45 = vmul.f32 1.442695, %v5281_v47  ;;  %9807 = vrcp.f32 %v5441_v60  ;;  %v13712_v12 = vpop.eup %9799  ;;  %v5565_v25 = vmul.f32 %v9798_v55, %v15045_v24 }
0x129b   :  { %9809 = vrcp.f32 %v5445_v43  ;;  %v5451_v51 = vpop.xlane.xlu1 %5450  ;;  %v5682_v17 = vpack.c.bf16 %v5563_v14, %v5561_v52  ;;  %v15047_v52 = vld [vmem:[#allocation78_spill] sm:$0xff] }
0x129c   :  { %v9802_v37 = vpop.eup %9801  ;;  %9811 = vpow2.f32 %v5394_v45  ;;  %8716 = vmatpush3.bf16.msra.mxu1 %v15041_v40 }
0x129d   :  { %8717 = vmatprep.subr.bf16.mxu1 %v15044_v3  ;;  %5518 = vadd.xlane.f32.xlu0 %v13712_v12  ;;  %v5447_v57 = vpop.xlane.xlu0 %5446  ;;  %v5567_v7 = vmul.f32 %v9802_v37, %v15046_v48  ;;  %v9804_v56 = vpop.eup %9803 }
0x129e   :  { %8669 = vmatprep.mubr.bf16.mxu1 %v5682_v17  ;;  %9813 = vrcp.f32 %v5447_v57  ;;  %v15048_v57 = vld [vmem:[#allocation48_spill] sm:$0xff] }
0x129f   :  { %v5215_v47 = vpop.xlane.xlu1 %5214  ;;  %v5683_v60 = vpack.c.bf16 %v5567_v7, %v5565_v25  ;;  %v15049_v25 = vld [vmem:[#allocation17_spill] sm:$0xff] }
0x12a0   :  { %v5287_v43 = vsub.f32 %v13504_v13, %v5215_v47  ;;  %8718 = vmatpush3.bf16.msra.mxu1 %v15044_v3  ;;  %v15050_v7 = vld [vmem:[#allocation13_spill] sm:$0xff] }
0x12a1   :  { %8719 = vmatprep.subr.bf16.mxu1 %v15047_v52  ;;  %8670 = vmatmul.mubr.bf16.gmra.mrb[148].mxu1 %v5683_v60  ;;  %v5205_v40 = vpop.xlane.xlu0 %5204  ;;  %v5571_v47 = vmul.f32 %v9804_v56, %v15050_v7 }
0x12a2   :  { %v13722_v61 = vpop.eup %9805  ;;  %v5406_v14 = vmul.f32 1.442695, %v5287_v43  ;;  %v5282_v55 = vsub.f32 %v13511_v62, %v5205_v40 }
0x12a3   :  { %5526 = vadd.xlane.f32.xlu1 %v13722_v61  ;;  %v5211_v45 = vpop.xlane.xlu1 %5210 }
0x12a4   :  { %v9808_v17 = vpop.eup %9807  ;;  %9815 = vpow2.f32 %v5406_v14  ;;  %v5396_v37 = vmul.f32 1.442695, %v5282_v55  ;;  %v5285_v13 = vsub.f32 %v13515_v42, %v5211_v45  ;;  %8720 = vmatpush3.bf16.msra.mxu1 %v15047_v52  ;;  %v15051_v45 = vld [vmem:[#allocation50_spill] sm:$0xff] }
0x12a5   :  { %v9810_v3 = vpop.eup %9809  ;;  %8721 = vmatprep.subr.bf16.mxu1 %v15048_v57  ;;  %v5201_v24 = vpop.xlane.xlu0 %5200  ;;  %v5569_v48 = vmul.f32 %v9808_v17, %v15049_v25  ;;  %v15052_v17 = vld [vmem:[#allocation16_spill] sm:$0xff] }
0x12a6   :  { %v13731_v60 = vpop.eup %9811  ;;  %9817 = vpow2.f32 %v5396_v37  ;;  %v5402_v62 = vmul.f32 1.442695, %v5285_v13  ;;  %v5280_v43 = vsub.f32 %v13520_v53, %v5201_v24  ;;  %v5573_v37 = vmul.f32 %v9810_v3, %v15052_v17 }
0x12a7   :  { %5522 = vadd.xlane.f32.xlu1 %v13731_v60  ;;  %v5223_v40 = vpop.xlane.xlu1 %5222  ;;  %v5684_v42 = vpack.c.bf16 %v5571_v47, %v5569_v48 }
0x12a8   :  { %v9814_v14 = vpop.eup %9813  ;;  %9819 = vpow2.f32 %v5402_v62  ;;  %v5392_v52 = vmul.f32 1.442695, %v5280_v43  ;;  %v5291_v55 = vsub.f32 %v13525_v21, %v5223_v40  ;;  %8722 = vmatpush3.bf16.msra.mxu1 %v15048_v57  ;;  %v15053_v21 = vld [vmem:[#allocation62_spill] sm:$0xff] }
0x12a9   :  { %8723 = vmatprep.subr.bf16.mxu1 %v15051_v45  ;;  %8673 = vmatprep.mubr.bf16.mxu1 %v5684_v42  ;;  %v5453_v56 = vpop.xlane.xlu0 %5452  ;;  %v5575_v13 = vmul.f32 %v9814_v14, %v13501_v28 }
0x12aa   :  { %9821 = vpow2.f32 %v5392_v52  ;;  %v5414_v53 = vmul.f32 1.442695, %v5291_v55 }
0x12ab   :  { %9823 = vrcp.f32 %v5451_v51  ;;  %v5219_v24 = vpop.xlane.xlu1 %5218  ;;  %v5685_v25 = vpack.c.bf16 %v5575_v13, %v5573_v37 }
0x12ac   :  { %9825 = vpow2.f32 %v5414_v53  ;;  %v5289_v48 = vsub.f32 %v13532_v50, %v5219_v24  ;;  %8724 = vmatpush3.bf16.msra.mxu1 %v15051_v45 }
0x12ad   :  { %8725 = vmatprep.subr.bf16.mxu1 %v15053_v21  ;;  %8674 = vmatmul.mubr.bf16.gmra.mrb[152].mxu1 %v5685_v25  ;;  %v5449_v57 = vpop.xlane.xlu0 %5448 }
0x12ae   :  { %v13743_v7 = vpop.eup %9815  ;;  %v5410_v47 = vmul.f32 1.442695, %v5289_v48  ;;  %9827 = vrcp.f32 %v5449_v57 }
0x12af   :  { %9829 = vrcp.f32 %v5453_v56  ;;  %5534 = vadd.xlane.f32.xlu1 %v13743_v7  ;;  %v5231_v28 = vpop.xlane.xlu1 %5230 }
0x12b0   :  { %v13746_v51 = vpop.eup %9817  ;;  %9831 = vpow2.f32 %v5410_v47  ;;  %v5295_v3 = vsub.f32 %v13539_v33, %v5231_v28  ;;  %8726 = vmatpush3.bf16.msra.mxu1 %v15053_v21 }
0x12b1   :  { %5524 = vadd.xlane.f32.xlu0 %v13746_v51  ;;  %v5455_v50 = vpop.xlane.xlu0 %5454 }
0x12b2   :  { %v13751_v62 = vpop.eup %9819  ;;  %v5422_v43 = vmul.f32 1.442695, %v5295_v3  ;;  %9833 = vrcp.f32 %v5455_v50 }
0x12b3   :  { %5530 = vadd.xlane.f32.xlu1 %v13751_v62  ;;  %v5227_v40 = vpop.xlane.xlu1 %5226 }
0x12b4   :  { %v13754_v42 = vpop.eup %9821  ;;  %9835 = vpow2.f32 %v5422_v43  ;;  %v5293_v14 = vsub.f32 %v13546_v35, %v5227_v40 }
0x12b5   :  { %v9824_v52 = vpop.eup %9823  ;;  %5520 = vadd.xlane.f32.xlu0 %v13754_v42  ;;  %v5213_v33 = vpop.xlane.xlu0 %5212 }
0x12b6   :  { %v13758_v55 = vpop.eup %9825  ;;  %v5418_v45 = vmul.f32 1.442695, %v5293_v14  ;;  %v5286_v56 = vsub.f32 %v13551_v41, %v5213_v33  ;;  %v5579_v35 = vmul.f32 %v9824_v52, %v13497_v31 }
0x12b7   :  { %5542 = vadd.xlane.f32.xlu1 %v13758_v55 }
0x12b8   :  { %v9828_v17 = vpop.eup %9827  ;;  %9837 = vpow2.f32 %v5418_v45  ;;  %v5404_v37 = vmul.f32 1.442695, %v5286_v56 }
0x12b9   :  { %v9830_v13 = vpop.eup %9829  ;;  %v5209_v53 = vpop.xlane.xlu0 %5208  ;;  %v5577_v24 = vmul.f32 %v9828_v17, %v13536_v44 }
0x12ba   :  { %v13764_v25 = vpop.eup %9831  ;;  %9839 = vpow2.f32 %v5404_v37  ;;  %v5284_v48 = vsub.f32 %v13559_v27, %v5209_v53  ;;  %v5581_v28 = vmul.f32 %v9830_v13, %v13529_v54  ;;  %v15054_v53 = vld [vmem:[#allocation43_spill] sm:$0xff] }
0x12bb   :  { %5538 = vadd.xlane.f32.xlu1 %v13764_v25  ;;  %v5686_v21 = vpack.c.bf16 %v5579_v35, %v5577_v24 }
0x12bc   :  { %v9834_v41 = vpop.eup %9833  ;;  %v5400_v57 = vmul.f32 1.442695, %v5284_v48  ;;  %v5463_v48 = vpop.xlane.xlu1 %5462 }
0x12bd   :  { %8677 = vmatprep.mubr.bf16.mxu1 %v5686_v21  ;;  %v5221_v47 = vpop.xlane.xlu0 %5220  ;;  %v5583_v3 = vmul.f32 %v9834_v41, %v13543_v63 }
0x12be   :  { %v13770_v50 = vpop.eup %9835  ;;  %9841 = vpow2.f32 %v5400_v57  ;;  %v5290_v31 = vsub.f32 %v13566_v0, %v5221_v47 }
0x12bf   :  { %5550 = vadd.xlane.f32.xlu1 %v13770_v50  ;;  %v5687_v44 = vpack.c.bf16 %v5583_v3, %v5581_v28  ;;  %v15055_v3 = vld [vmem:[#allocation42_spill] sm:$0xff] }
0x12c0   :  { %v5412_v27 = vmul.f32 1.442695, %v5290_v31 }
0x12c1   :  { %8678 = vmatmul.mubr.bf16.gmra.mrb[156].mxu1 %v5687_v44  ;;  %v5217_v43 = vpop.xlane.xlu0 %5216 }
0x12c2   :  { %v13774_v40 = vpop.eup %9837  ;;  %9843 = vpow2.f32 %v5412_v27  ;;  %v5288_v14 = vsub.f32 %v13571_v49, %v5217_v43 }
0x12c3   :  { %5546 = vadd.xlane.f32.xlu1 %v13774_v40 }
0x12c4   :  { %v13778_v54 = vpop.eup %9839  ;;  %v5408_v63 = vmul.f32 1.442695, %v5288_v14 }
0x12c5   :  { %5532 = vadd.xlane.f32.xlu0 %v13778_v54  ;;  %v5229_v52 = vpop.xlane.xlu0 %5228 }
0x12c6   :  { %9845 = vpow2.f32 %v5408_v63  ;;  %v5294_v0 = vsub.f32 %v13575_v19, %v5229_v52 }
0x12c8   :  { %v13782_v33 = vpop.eup %9841  ;;  %v5420_v45 = vmul.f32 1.442695, %v5294_v0 }
0x12c9   :  { %5528 = vadd.xlane.f32.xlu0 %v13782_v33  ;;  %v5225_v56 = vpop.xlane.xlu0 %5224 }
0x12ca   :  { %9847 = vpow2.f32 %v5420_v45  ;;  %v5292_v49 = vsub.f32 %v13579_v23, %v5225_v56 }
0x12cc   :  { %v13786_v17 = vpop.eup %9843  ;;  %v5416_v37 = vmul.f32 1.442695, %v5292_v49 }
0x12cd   :  { %5540 = vadd.xlane.f32.xlu0 %v13786_v17  ;;  %v5461_v23 = vpop.xlane.xlu0 %5460 }
0x12ce   :  { %9849 = vpow2.f32 %v5416_v37 }
0x12cf   :  { %9851 = vrcp.f32 %v5461_v23 }
0x12d0   :  { %v13789_v13 = vpop.eup %9845 }
0x12d1   :  { %5536 = vadd.xlane.f32.xlu0 %v13789_v13 }
0x12d4   :  { %v13792_v19 = vpop.eup %9847  ;;  %6089 = vrot.lane.b32.xlu1 %v15054_v53, %s10041_s24 }
0x12d5   :  { %5548 = vadd.xlane.f32.xlu0 %v13792_v19 }
0x12d8   :  { %v13797_v24 = vpop.eup %9849 }
0x12d9   :  { %5544 = vadd.xlane.f32.xlu0 %v13797_v24  ;;  %v9852_v31 = vpop.eup %9851 }
0x12da   :  { %v5589_v63 = vmul.f32 %v9852_v31, %v13582_v32 }
0x12e2   :  { %v13800_v35 = vpop.xlane.xlu0 %5492 }
0x12e6   :  { %v5457_v21 = vpop.xlane.xlu0 %5456 }
0x12e7   :  { %9853 = vrcp.f32 %v5457_v21 }
0x12e8   :  { %9855 = vrcp.f32 %v5463_v48  ;;  %v5459_v41 = vpop.xlane.xlu1 %5458 }
0x12e9   :  { %9857 = vrcp.f32 %v5459_v41 }
0x12ea   :  { %v5489_v57 = vpop.xlane.xlu0 %5488 }
0x12eb   :  { %9859 = vrcp.f32 %v5489_v57 }
0x12ec   :  { %v5491_v47 = vpop.xlane.xlu1 %5490 }
0x12ed   :  { %9861 = vrcp.f32 %v5491_v47 }
0x12ee   :  { %v13802_v28 = vpop.xlane.xlu0 %5494 }
0x12ef   :  { %5968 = vrot.lane.b32.xlu0 %v15055_v3, %s10041_s24 }
0x12f0   :  { %v5471_v52 = vpop.xlane.xlu1 %5470 }
0x12f1   :  { %v9854_v44 = vpop.eup %9853 }
0x12f2   :  { %v9856_v27 = vpop.eup %9855  ;;  %v5469_v43 = vpop.xlane.xlu0 %5468  ;;  %v5585_v0 = vmul.f32 %v9854_v44, %v13597_v15  ;;  %v15056_v15 = vld [vmem:[#allocation46_spill] sm:$0xff] }
0x12f3   :  { %v9858_v14 = vpop.eup %9857  ;;  %v5591_v49 = vmul.f32 %v9856_v27, %v13555_v22  ;;  %9863 = vrcp.f32 %v5469_v43  ;;  %v15057_v22 = vld [vmem:[#allocation60_spill] sm:$0xff]  ;;  %v15059_v27 = vld [vmem:[#allocation53_spill] sm:$0xff] }
0x12f4   :  { %v5587_v45 = vmul.f32 %v9858_v14, %v13600_v2 }
0x12f5   :  { %v9860_v56 = vpop.eup %9859  ;;  %v5689_v48 = vpack.c.bf16 %v5591_v49, %v5589_v63  ;;  %v15060_v49 = vld [vmem:[#allocation61_spill] sm:$0xff] }
0x12f6   :  { %v13810_v37 = vpop.xlane.xlu0 %5500  ;;  %v5688_v53 = vpack.c.bf16 %v5587_v45, %v5585_v0  ;;  %v5617_v41 = vmul.f32 %v9860_v56, %v13604_v46  ;;  %v15058_v46 = vld [vmem:[#allocation47_spill] sm:$0xff] }
0x12f7   :  { %v9862_v23 = vpop.eup %9861 }
0x12f8   :  { %v5467_v21 = vpop.xlane.xlu1 %5466  ;;  %8697 = vmatprep.mubr.bf16.mxu0 %v5688_v53  ;;  %v5619_v32 = vmul.f32 %v9862_v23, %v13608_v30 }
0x12f9   :  { %9865 = vrcp.f32 %v5467_v21  ;;  %8698 = vmatmul.mubr.bf16.vlgmr.msra.gmra.mrb[144].mxu0 %v5689_v48 }
0x12fa   :  { %9867 = vrcp.f32 %v5471_v52  ;;  %8746 = vmatpush3.bf16.msra.mxu0 %v15056_v15  ;;  %v5465_v2 = vpop.xlane.xlu0 %5464  ;;  %v5696_v57 = vpack.c.bf16 %v5619_v32, %v5617_v41  ;;  %v15061_v32 = vld [vmem:[#allocation72_spill] sm:$0xff] }
0x12fb   :  { %8747 = vmatprep.subr.bf16.mxu0 %v15057_v22  ;;  %9869 = vrcp.f32 %v5465_v2 }
0x12fc   :  { %8729 = vmatprep.mubr.bf16.mxu1 %v5696_v57  ;;  %v13816_v47 = vpop.xlane.xlu1 %5498 }
0x12fd   :  { %v9864_v30 = vpop.eup %9863 }
0x12fe   :  { %8748 = vmatpush3.bf16.msra.mxu0 %v15057_v22  ;;  %v13819_v3 = vpop.xlane.xlu0 %5496  ;;  %v5597_v52 = vmul.f32 %v9864_v30, %v13620_v20 }
0x12ff   :  { %8749 = vmatprep.subr.bf16.mxu0 %v15058_v46 }
0x1300   :  { %v5479_v14 = vpop.xlane.xlu1 %5478 }
0x1302   :  { %8750 = vmatpush3.bf16.msra.mxu0 %v15058_v46  ;;  %v13823_v31 = vpop.xlane.xlu0 %5502 }
0x1303   :  { %v9866_v44 = vpop.eup %9865  ;;  %8751 = vmatprep.subr.bf16.mxu0 %v15059_v27 }
0x1304   :  { %v9868_v43 = vpop.eup %9867  ;;  %v5595_v56 = vmul.f32 %v9866_v44, %v13628_v11 }
0x1305   :  { %v9870_v63 = vpop.eup %9869  ;;  %v5599_v53 = vmul.f32 %v9868_v43, %v13616_v39 }
0x1306   :  { %8752 = vmatpush3.bf16.msra.mxu0 %v15059_v27  ;;  %v5477_v0 = vpop.xlane.xlu0 %5476  ;;  %v5593_v45 = vmul.f32 %v9870_v63, %v13632_v26  ;;  %v15062_v26 = vld [vmem:[#allocation66_spill] sm:$0xff] }
0x1307   :  { %8753 = vmatprep.subr.bf16.mxu0 %v15060_v49  ;;  %v5691_v21 = vpack.c.bf16 %v5599_v53, %v5597_v52  ;;  %9871 = vrcp.f32 %v5477_v0 }
0x1308   :  { %v5475_v23 = vpop.xlane.xlu1 %5474  ;;  %v5690_v48 = vpack.c.bf16 %v5595_v56, %v5593_v45 }
0x1309   :  { %9873 = vrcp.f32 %v5475_v23 }
0x130a   :  { %8754 = vmatpush3.bf16.msra.mxu0 %v15060_v49  ;;  %8701 = vmatprep.mubr.bf16.mxu0 %v5690_v48  ;;  %v5509_v41 = vpop.xlane.xlu0 %5508  ;;  %9875 = vrcp.f32 %v5479_v14 }
0x130b   :  { %8755 = vmatprep.subr.bf16.mxu0 %v15061_v32  ;;  %8702 = vmatmul.mubr.bf16.gmra.mrb[148].mxu0 %v5691_v21 }
0x130c   :  { %v5507_v20 = vpop.xlane.xlu1 %5506 }
0x130e   :  { %8756 = vmatpush3.bf16.msra.mxu0 %v15061_v32  ;;  %v5473_v11 = vpop.xlane.xlu0 %5472 }
0x130f   :  { %8757 = vmatprep.subr.bf16.mxu0 %v15062_v26  ;;  %9877 = vrcp.f32 %v5473_v11 }
0x1310   :  { %9879 = vrcp.f32 %v5507_v20  ;;  %v5487_v44 = vpop.xlane.xlu1 %5486 }
0x1311   :  { %v9872_v15 = vpop.eup %9871 }
0x1312   :  { %8758 = vmatpush3.bf16.msra.mxu0 %v15062_v26  ;;  %v5505_v39 = vpop.xlane.xlu0 %5504  ;;  %v5605_v30 = vmul.f32 %v9872_v15, %v13653_v10 }
0x1313   :  { %9881 = vrcp.f32 %v5505_v39  ;;  %v9874_v57 = vpop.eup %9873 }
0x1314   :  { %9883 = vrcp.f32 %v5509_v41  ;;  %v9876_v22 = vpop.eup %9875  ;;  %v5603_v14 = vmul.f32 %v9874_v57, %v13657_v38 }
0x1315   :  { %v5607_v52 = vmul.f32 %v9876_v22, %v13644_v1 }
0x1316   :  { %v5511_v2 = vpop.xlane.xlu0 %5510 }
0x1317   :  { %9885 = vrcp.f32 %v5511_v2  ;;  %v5693_v56 = vpack.c.bf16 %v5607_v52, %v5605_v30 }
0x1318   :  { %v5483_v49 = vpop.xlane.xlu1 %5482 }
0x1319   :  { %v9878_v46 = vpop.eup %9877 }
0x131a   :  { %v5485_v27 = vpop.xlane.xlu0 %5484  ;;  %v5601_v43 = vmul.f32 %v9878_v46, %v13668_v8  ;;  %v9880_v63 = vpop.eup %9879 }
0x131b   :  { %v13847_v10 = vmul.f32 %v9880_v63, %v13665_v18  ;;  %9887 = vrcp.f32 %v5485_v27 }
0x131c   :  { %v5692_v0 = vpack.c.bf16 %v5603_v14, %v5601_v43  ;;  %9889 = vrcp.f32 %v5483_v49  ;;  %v13860_v39 = vpop.xlane.xlu1 %5514 }
0x131d   :  { %v9882_v45 = vpop.eup %9881  ;;  %9891 = vrcp.f32 %v5487_v44 }
0x131e   :  { %8705 = vmatprep.mubr.bf16.mxu0 %v5692_v0  ;;  %v13841_v53 = vpop.xlane.xlu0 %5516  ;;  %v13844_v23 = vmul.f32 %v9882_v45, %v13676_v6  ;;  %v9884_v48 = vpop.eup %9883 }
0x131f   :  { %8706 = vmatmul.mubr.bf16.gmra.mrb[152].mxu0 %v5693_v56  ;;  %v13852_v21 = vmul.f32 %v9884_v48, %v13661_v5 }
0x1320   :  { %v5700_v38 = vpack.c.bf16 %v13847_v10, %v13844_v23 }
0x1321   :  { %v9886_v1 = vpop.eup %9885 }
0x1322   :  { %v5481_v8 = vpop.xlane.xlu0 %5480  ;;  %v13855_v41 = vmul.f32 %v9886_v1, %v13680_v9 }
0x1323   :  { %9893 = vrcp.f32 %v5481_v8 }
0x1324   :  { %v5701_v18 = vpack.c.bf16 %v13855_v41, %v13852_v21 }
0x1325   :  { %v9888_v6 = vpop.eup %9887 }
0x1326   :  { %v9890_v32 = vpop.eup %9889  ;;  %v5613_v26 = vmul.f32 %v9888_v6, %v13686_v58  ;;  %v13865_v46 = vpop.xlane.xlu0 %5512 }
0x1327   :  { %v9892_v20 = vpop.eup %9891  ;;  %v5611_v5 = vmul.f32 %v9890_v32, %v13684_v16 }
0x1328   :  { %v5615_v2 = vmul.f32 %v9892_v20, %v13672_v59 }
0x132a   :  { %v5695_v57 = vpack.c.bf16 %v5615_v2, %v5613_v26  ;;  %v13867_v44 = vpop.xlane.xlu0 %5518 }
0x132d   :  { %v9894_v11 = vpop.eup %9893 }
0x132e   :  { %v5609_v15 = vmul.f32 %v9894_v11, %v13700_v34 }
0x1330   :  { %v5694_v9 = vpack.c.bf16 %v5611_v5, %v5609_v15  ;;  %v5527_v22 = vpop.xlane.xlu1 %5526 }
0x1332   :  { %8709 = vmatprep.mubr.bf16.mxu0 %v5694_v9 }
0x1333   :  { %8710 = vmatmul.mubr.bf16.gmra.mrb[156].mxu0 %v5695_v57 }
0x1334   :  { %v5523_v30 = vpop.xlane.xlu1 %5522 }
0x1335   :  { %9895 = vrcp.f32 %v5523_v30 }
0x133c   :  { %v5535_v27 = vpop.xlane.xlu1 %5534 }
0x133e   :  { %v5525_v58 = vpop.xlane.xlu0 %5524 }
0x133f   :  { %v9896_v16 = vpop.eup %9895 }
0x1340   :  { %v5531_v43 = vpop.xlane.xlu1 %5530  ;;  %v5651_v45 = vmul.f32 %v9896_v16, %v13731_v60 }
0x1342   :  { %v5521_v14 = vpop.xlane.xlu0 %5520 }
0x1343   :  { %9897 = vrcp.f32 %v5521_v14 }
0x1344   :  { %v5543_v34 = vpop.xlane.xlu1 %5542  ;;  %9899 = vrcp.f32 %v5525_v58 }
0x1345   :  { %9901 = vrcp.f32 %v5527_v22 }
0x1348   :  { %v5539_v59 = vpop.xlane.xlu1 %5538 }
0x134c   :  { %v5551_v63 = vpop.xlane.xlu1 %5550 }
0x134d   :  { %v9898_v52 = vpop.eup %9897 }
0x134e   :  { %v5649_v0 = vmul.f32 %v9898_v52, %v13754_v42  ;;  %v9900_v56 = vpop.eup %9899  ;;  %v15063_v52 = vld [vmem:[#allocation19_spill] sm:$0xff] }
0x134f   :  { %v9902_v1 = vpop.eup %9901  ;;  %v5653_v6 = vmul.f32 %v9900_v56, %v13746_v51 }
0x1350   :  { %v5547_v49 = vpop.xlane.xlu1 %5546  ;;  %v5704_v48 = vpack.c.bf16 %v5651_v45, %v5649_v0  ;;  %v5655_v20 = vmul.f32 %v9902_v1, %v13722_v61 }
0x1352   :  { %8761 = vmatprep.mubr.bf16.mxu0 %v5704_v48  ;;  %v5533_v8 = vpop.xlane.xlu0 %5532  ;;  %v5705_v42 = vpack.c.bf16 %v5655_v20, %v5653_v6  ;;  %v15064_v48 = vld [vmem:[#allocation20_spill] sm:$0xff] }
0x1353   :  { %9903 = vrcp.f32 %v5533_v8 }
0x1354   :  { %v6090_v32 = vpop.permute.xlu1 %6089  ;;  %9905 = vrcp.f32 %v5531_v43 }
0x1355   :  { %8759 = vmatprep.subr.bf16.mxu0 %v6090_v32  ;;  %9907 = vrcp.f32 %v5535_v27 }
0x1356   :  { %8760 = vmatpush3.bf16.msra.mxu0 %v6090_v32  ;;  %v5529_v11 = vpop.xlane.xlu0 %5528 }
0x1357   :  { %9909 = vrcp.f32 %v5529_v11 }
0x1358   :  { %9911 = vrcp.f32 %v13800_v35 }
0x1359   :  { %9913 = vrcp.f32 %v13802_v28  ;;  %8762 = vmatmul.mubr.bf16.vlgmr.msra.gmra.mrb[160].mxu0 %v5705_v42  ;;  %v15065_v42 = vld [vmem:[#allocation25_spill] sm:$0xff] }
0x135a   :  { %9915 = vrcp.f32 %v13816_v47  ;;  %v5541_v60 = vpop.xlane.xlu0 %5540 }
0x135b   :  { %9917 = vrcp.f32 %v13819_v3 }
0x135c   :  { %9919 = vrcp.f32 %v5541_v60 }
0x135d   :  { %9921 = vrcp.f32 %v5539_v59  ;;  %v9904_v61 = vpop.eup %9903 }
0x135e   :  { %9923 = vrcp.f32 %v5543_v34  ;;  %v5537_v51 = vpop.xlane.xlu0 %5536  ;;  %v9906_v26 = vpop.eup %9905  ;;  %v5661_v2 = vmul.f32 %v9904_v61, %v13778_v54 }
0x135f   :  { %9925 = vrcp.f32 %v5537_v51  ;;  %v9908_v15 = vpop.eup %9907  ;;  %v5659_v9 = vmul.f32 %v9906_v26, %v13751_v62  ;;  %v15066_v26 = vld [vmem:[#allocation18_spill] sm:$0xff] }
0x1360   :  { %9927 = vrcp.f32 %v13810_v37  ;;  %v5663_v57 = vmul.f32 %v9908_v15, %v13743_v7 }
0x1361   :  { %v9910_v5 = vpop.eup %9909  ;;  %9929 = vrcp.f32 %v13823_v31 }
0x1362   :  { %v9912_v35 = vpop.eup %9911  ;;  %v5549_v28 = vpop.xlane.xlu0 %5548  ;;  %v5657_v47 = vmul.f32 %v9910_v5, %v13782_v33  ;;  %v5707_v58 = vpack.c.bf16 %v5663_v57, %v5661_v2 }
0x1363   :  { %v9914_v3 = vpop.eup %9913  ;;  %9931 = vrcp.f32 %v5549_v28  ;;  %v5621_v0 = vmul.f32 %v9912_v35, %v15063_v52 }
0x1364   :  { %v9916_v22 = vpop.eup %9915  ;;  %v5706_v30 = vpack.c.bf16 %v5659_v9, %v5657_v47  ;;  %9933 = vrcp.f32 %v5547_v49  ;;  %v5623_v14 = vmul.f32 %v9914_v3, %v13612_v36  ;;  %v15067_v9 = vld [vmem:[#allocation27_spill] sm:$0xff] }
0x1365   :  { %v9918_v27 = vpop.eup %9917  ;;  %9935 = vrcp.f32 %v5551_v63  ;;  %v5627_v1 = vmul.f32 %v9916_v22, %v15064_v48 }
0x1366   :  { %v9920_v54 = vpop.eup %9919  ;;  %8765 = vmatprep.mubr.bf16.mxu0 %v5706_v30  ;;  %v5545_v37 = vpop.xlane.xlu0 %5544  ;;  %v5625_v63 = vmul.f32 %v9918_v27, %v13640_v4  ;;  %v5697_v4 = vpack.c.bf16 %v5623_v14, %v5621_v0 }
0x1367   :  { %v9922_v43 = vpop.eup %9921  ;;  %9937 = vrcp.f32 %v5545_v37  ;;  %8766 = vmatmul.mubr.bf16.gmra.mrb[164].mxu0 %v5707_v58  ;;  %v5669_v31 = vmul.f32 %v9920_v54, %v13786_v17 }
0x1368   :  { %v9924_v33 = vpop.eup %9923  ;;  %v5667_v16 = vmul.f32 %v9922_v43, %v13764_v25  ;;  %9939 = vrcp.f32 %v13865_v46  ;;  %v5698_v32 = vpack.c.bf16 %v5627_v1, %v5625_v63 }
0x1369   :  { %v9926_v62 = vpop.eup %9925  ;;  %v5671_v56 = vmul.f32 %v9924_v33, %v13758_v55  ;;  %9941 = vrcp.f32 %v13860_v39 }
0x136a   :  { %v13885_v7 = vpop.f32.mrb[144].mxu1  ;;  %v5969_v34 = vpop.permute.xlu0 %5968  ;;  %v5665_v59 = vmul.f32 %v9926_v62, %v13789_v13  ;;  %9943 = vrcp.f32 %v13867_v44 }
0x136b   :  { %v13891_v45 = vpop.f32.mrb[145].mxu1  ;;  %8727 = vmatprep.subr.bf16.mxu1 %v5969_v34  ;;  %v9928_v49 = vpop.eup %9927  ;;  %v5709_v13 = vpack.c.bf16 %v5671_v56, %v5669_v31  ;;  %9945 = vrcp.f32 %v13841_v53 }
0x136c   :  { %v13894_v36 = vpop.f32.mrb[146].mxu1  ;;  %8728 = vmatpush3.bf16.msra.mxu1 %v5969_v34  ;;  %v5708_v17 = vpack.c.bf16 %v5667_v16, %v5665_v59  ;;  %v9930_v8 = vpop.eup %9929  ;;  %v5629_v15 = vmul.f32 %v9928_v49, %v15066_v26 }
0x136d   :  { %v13898_v25 = vpop.f32.mrb[147].mxu1  ;;  %v9932_v6 = vpop.eup %9931  ;;  %v5631_v60 = vmul.f32 %v9930_v8, %v15065_v42 }
0x136e   :  { %8769 = vmatprep.mubr.bf16.mxu0 %v5708_v17  ;;  %v9934_v20 = vpop.eup %9933  ;;  %v5677_v61 = vmul.f32 %v9932_v6, %v13792_v19  ;;  %v9261_v17 = vld [vmem:[%s14579_s7 + $0x10] sm:$0xff]  }
0x136f   :  { %8730 = vmatmul.mubr.bf16.vlgmr.msra.gmra.mrb[160].mxu1 %v5697_v4  ;;  %8770 = vmatmul.mubr.bf16.gmra.mrb[168].mxu0 %v5709_v13  ;;  %v9936_v55 = vpop.eup %9935  ;;  %v5675_v51 = vmul.f32 %v9934_v20, %v13774_v40  ;;  %v5699_v28 = vpack.c.bf16 %v5631_v60, %v5629_v15 }
0x1370   :  { %8733 = vmatprep.mubr.bf16.mxu1 %v5698_v32  ;;  %v5679_v5 = vmul.f32 %v9936_v55, %v13770_v50  ;;  %8777 = vmatprep.subr.bf16.mxu1 %v9261_v17 }
0x1371   :  { %v9938_v11 = vpop.eup %9937  ;;  %8778 = vmatpush3.bf16.msra.mxu1 %v9261_v17 }
0x1372   :  { %v5673_v46 = vmul.f32 %v9938_v11, %v13797_v24  ;;  %v5711_v47 = vpack.c.bf16 %v5679_v5, %v5677_v61  ;;  %v9940_v24 = vpop.eup %9939 }
0x1373   :  { %v9942_v50 = vpop.eup %9941  ;;  %v5641_v44 = vmul.f32 %v9940_v24, %v13704_v29  ;;  %v15068_v29 = vld [vmem:[#allocation26_spill] sm:$0xff] }
0x1374   :  { %v13908_v39 = vpop.f32.mrb[148].mxu1  ;;  %v5710_v2 = vpack.c.bf16 %v5675_v51, %v5673_v46  ;;  %v5643_v3 = vmul.f32 %v9942_v50, %v15067_v9  ;;  %v9944_v57 = vpop.eup %9943 }
0x1375   :  { %v13910_v35 = vpop.f32.mrb[149].mxu1  ;;  %v9946_v53 = vpop.eup %9945  ;;  %v5647_v23 = vmul.f32 %v9944_v57, %v13712_v12 }
0x1376   :  { %v13913_v19 = vpop.f32.mrb[150].mxu1  ;;  %8773 = vmatprep.mubr.bf16.mxu0 %v5710_v2  ;;  %v5702_v22 = vpack.c.bf16 %v5643_v3, %v5641_v44  ;;  %v5645_v58 = vmul.f32 %v9946_v53, %v15068_v29  ;;  %v9262_v29 = vld [vmem:[%s14579_s7 + $0x18] sm:$0xff]   ;;  %s15069_s7 = smov 24  }
0x1377   :  { %v13915_v40 = vpop.f32.mrb[151].mxu1  ;;  %8734 = vmatmul.mubr.bf16.gmra.mrb[164].mxu1 %v5699_v28  ;;  %8774 = vmatmul.mubr.bf16.gmra.mrb[172].mxu0 %v5711_v47 }
0x1378   :  { %8737 = vmatprep.mubr.bf16.mxu1 %v5700_v38  ;;  %v5703_v54 = vpack.c.bf16 %v5647_v23, %v5645_v58  ;;  %8779 = vmatprep.subr.bf16.mxu1 %v9262_v29 }
0x1379   :  { %8780 = vmatpush3.bf16.msra.mxu1 %v9262_v29 }
0x137f   :  { %8738 = vmatmul.mubr.bf16.gmra.mrb[168].mxu1 %v5701_v18 }
0x1380   :  { %v13925_v30 = vpop.f32.mrb[152].mxu1  ;;  %8741 = vmatprep.mubr.bf16.mxu1 %v5702_v22 }
0x1381   :  { %v13927_v27 = vpop.f32.mrb[153].mxu1 }
0x1382   :  { %v13930_v10 = vpop.f32.mrb[154].mxu1 }
0x1383   :  { %v13932_v38 = vpop.f32.mrb[155].mxu1 }
0x1387   :  { %8742 = vmatmul.mubr.bf16.gmra.mrb[172].mxu1 %v5703_v54 }
0x1394   :  { %v13935_v37 = vpop.f32.mrb[156].mxu1 }
0x1395   :  { %v13937_v21 = vpop.f32.mrb[157].mxu1 }
0x1396   :  { %v13939_v41 = vpop.f32.mrb[158].mxu1 }
0x1397   :  { %v13941_v18 = vpop.f32.mrb[159].mxu1 }
0x13cc   :  { %v8699_v43 = vpop.f32.mrb[144].mxu0 }
0x13cd   :  { %v5891_v33 = vpop.f32.mrb[145].mxu0 }
0x13ce   :  { %v8700_v62 = vpop.f32.mrb[146].mxu0 }
0x13cf   :  { %v9114_v12 = vpack.i.bf16 %v8700_v62, %v8699_v43  ;;  %v5894_v14 = vpop.f32.mrb[147].mxu0 }
0x13d0   :  { %v9124_v31 = vpack.i.bf16 %v5894_v14, %v5891_v33 }
0x13d1   :  { %9115 = vrot.lane.b32.xlu1 %v9114_v12, %s10043_s2 }
0x13de   :  { %v13944_v34 = vpop.f32.mrb[148].mxu0 }
0x13df   :  { %v5907_v59 = vpop.f32.mrb[149].mxu0 }
0x13e0   :  { %v8704_v16 = vpop.f32.mrb[150].mxu0 }
0x13e1   :  { %v9134_v63 = vpack.i.bf16 %v8704_v16, %v13944_v34  ;;  %v5910_v52 = vpop.f32.mrb[151].mxu0 }
0x13e2   :  { %v9144_v0 = vpack.i.bf16 %v5910_v52, %v5907_v59 }
0x13f2   :  { %v13947_v56 = vpop.f32.mrb[152].mxu0 }
0x13f3   :  { %v5923_v49 = vpop.f32.mrb[153].mxu0 }
0x13f4   :  { %v13952_v48 = vpop.f32.mrb[154].mxu0 }
0x13f5   :  { %v9154_v1 = vpack.i.bf16 %v13952_v48, %v13947_v56  ;;  %v5926_v8 = vpop.f32.mrb[155].mxu0 }
0x13f6   :  { %v9159_v4 = vpack.i.bf16 %v5926_v8, %v5923_v49 }
0x1406   :  { %v13956_v13 = vpop.f32.mrb[156].mxu0 }
0x1407   :  { %v13958_v6 = vpop.f32.mrb[157].mxu0 }
0x1408   :  { %v13960_v32 = vpop.f32.mrb[158].mxu0 }
0x1409   :  { %v9199_v20 = vpack.i.bf16 %v13960_v32, %v13956_v13  ;;  %v13964_v55 = vpop.f32.mrb[159].mxu0 }
0x140a   :  { %v9194_v11 = vpack.i.bf16 %v13964_v55, %v13958_v6 }
0x142c   :  { %v8763_v42 = vpop.f32.mrb[160].mxu0 }
0x142d   :  { %v6133_v60 = vpop.f32.mrb[161].mxu0 }
0x142e   :  { %v8764_v61 = vpop.f32.mrb[162].mxu0 }
0x142f   :  { %v9164_v46 = vpack.i.bf16 %v8764_v61, %v8763_v42  ;;  %v6136_v51 = vpop.f32.mrb[163].mxu0 }
0x1430   :  { %v9169_v26 = vpack.i.bf16 %v6136_v51, %v6133_v60 }
0x143a   :  { %v8767_v15 = vpop.f32.mrb[164].mxu0 }
0x143b   :  { %v6149_v5 = vpop.f32.mrb[165].mxu0 }
0x143c   :  { %v8768_v2 = vpop.f32.mrb[166].mxu0 }
0x143d   :  { %v9184_v28 = vpack.i.bf16 %v8768_v2, %v8767_v15  ;;  %v6152_v47 = vpop.f32.mrb[167].mxu0 }
0x143e   :  { %v9189_v24 = vpack.i.bf16 %v6152_v47, %v6149_v5 }
0x1442   :  { %v8731_v50 = vpop.f32.mrb[160].mxu1  ;;  %v8771_v44 = vpop.f32.mrb[168].mxu0 }
0x1443   :  { %v6012_v9 = vpop.f32.mrb[161].mxu1  ;;  %v6165_v3 = vpop.f32.mrb[169].mxu0 }
0x1444   :  { %v8732_v57 = vpop.f32.mrb[162].mxu1  ;;  %v8772_v53 = vpop.f32.mrb[170].mxu0 }
0x1445   :  { %v9119_v22 = vpack.i.bf16 %v8732_v57, %v8731_v50  ;;  %v6015_v23 = vpop.f32.mrb[163].mxu1  ;;  %v9204_v58 = vpack.i.bf16 %v8772_v53, %v8771_v44  ;;  %v6168_v43 = vpop.f32.mrb[171].mxu0 }
0x1446   :  { %v9129_v54 = vpack.i.bf16 %v6015_v23, %v6012_v9  ;;  %v9209_v33 = vpack.i.bf16 %v6168_v43, %v6165_v3  ;;  %v9116_v56 = vpop.permute.xlu1 %9115 }
0x1447   :  { %9120 = vrot.lane.b32.xlu1 %v9119_v22, %s10044_s4 }
0x1448   :  { %9130 = vrot.lane.b32.xlu0 %v9129_v54, %s10044_s4 }
0x144a   :  { %v8735_v62 = vpop.f32.mrb[164].mxu1  ;;  %v8775_v12 = vpop.f32.mrb[172].mxu0 }
0x144b   :  { %v6181_v14 = vpop.f32.mrb[173].mxu0  ;;  %9125 = vrot.lane.b32.xlu1 %v9124_v31, %s10043_s2  ;;  %v6028_v34 = vpop.f32.mrb[165].mxu1 }
0x144c   :  { %v8776_v59 = vpop.f32.mrb[174].mxu0  ;;  %9145 = vrot.lane.b32.xlu0 %v9144_v0, %s10043_s2  ;;  %v8736_v16 = vpop.f32.mrb[166].mxu1 }
0x144d   :  { %v9229_v52 = vpack.i.bf16 %v8776_v59, %v8775_v12  ;;  %v9139_v49 = vpack.i.bf16 %v8736_v16, %v8735_v62  ;;  %v6031_v17 = vpop.f32.mrb[167].mxu1  ;;  %v6184_v8 = vpop.f32.mrb[175].mxu0 }
0x144e   :  { %v9149_v42 = vpack.i.bf16 %v6031_v17, %v6028_v34  ;;  %v9224_v60 = vpack.i.bf16 %v6184_v8, %v6181_v14 }
0x144f   :  { %9135 = vrot.lane.b32.xlu1 %v9134_v63, %s10043_s2 }
0x1450   :  { %9150 = vrot.lane.b32.xlu0 %v9149_v42, %s10044_s4 }
0x1452   :  { %v8739_v61 = vpop.f32.mrb[168].mxu1 }
0x1453   :  { %9140 = vrot.lane.b32.xlu1 %v9139_v49, %s10044_s4  ;;  %v6044_v51 = vpop.f32.mrb[169].mxu1 }
0x1454   :  { %9160 = vrot.lane.b32.xlu0 %v9159_v4, %s10043_s2  ;;  %v8740_v31 = vpop.f32.mrb[170].mxu1 }
0x1455   :  { %v9179_v15 = vpack.i.bf16 %v8740_v31, %v8739_v61  ;;  %v6047_v0 = vpop.f32.mrb[171].mxu1 }
0x1456   :  { %v9174_v5 = vpack.i.bf16 %v6047_v0, %v6044_v51 }
0x1457   :  { %9155 = vrot.lane.b32.xlu1 %v9154_v1, %s10043_s2 }
0x1458   :  { %9170 = vrot.lane.b32.xlu0 %v9169_v26, %s15069_s7 }
0x145a   :  { %v8743_v63 = vpop.f32.mrb[172].mxu1 }
0x145b   :  { %9165 = vrot.lane.b32.xlu1 %v9164_v46, %s15069_s7  ;;  %v6060_v2 = vpop.f32.mrb[173].mxu1 }
0x145c   :  { %9175 = vrot.lane.b32.xlu0 %v9174_v5, %s10044_s4  ;;  %v8744_v47 = vpop.f32.mrb[174].mxu1 }
0x145d   :  { %v9219_v50 = vpack.i.bf16 %v8744_v47, %v8743_v63  ;;  %v6063_v4 = vpop.f32.mrb[175].mxu1 }
0x145e   :  { %v9214_v44 = vpack.i.bf16 %v6063_v4, %v6060_v2 }
0x145f   :  { %9180 = vrot.lane.b32.xlu1 %v9179_v15, %s10044_s4 }
0x1460   :  { %9190 = vrot.lane.b32.xlu0 %v9189_v24, %s15069_s7  ;;  %v9117_v24 = vunpack.i.l.bf16 %v9116_v56 }
0x1463   :  { %9185 = vrot.lane.b32.xlu1 %v9184_v28, %s15069_s7  ;;  %v9118_v28 = vunpack.i.h.bf16 %v9116_v56 }
0x1464   :  { %9195 = vrot.lane.b32.xlu0 %v9194_v11, %s10043_s2 }
0x1467   :  { %9200 = vrot.lane.b32.xlu1 %v9199_v20, %s10043_s2 }
0x1468   :  { %9210 = vrot.lane.b32.xlu0 %v9209_v33, %s15069_s7  ;;  %v6391_v33 = vsel %vm1113_vm2, %v13894_v36, %v9118_v28 }
0x146b   :  { %9205 = vrot.lane.b32.xlu1 %v9204_v58, %s15069_s7 }
0x146c   :  { %9215 = vrot.lane.b32.xlu0 %v9214_v44, %s10044_s4 }
0x146f   :  { %9220 = vrot.lane.b32.xlu1 %v9219_v50, %s10044_s4 }
0x1470   :  { %9225 = vrot.lane.b32.xlu0 %v9224_v60, %s15069_s7 }
0x1473   :  { %9230 = vrot.lane.b32.xlu1 %v9229_v52, %s15069_s7 }
0x14b9   :  { %v9121_v48 = vpop.permute.xlu1 %9120 }
0x14ba   :  { %v9131_v1 = vpop.permute.xlu0 %9130  ;;  %v9123_v29 = vunpack.i.h.bf16 %v9121_v48  ;;  %v9122_v58 = vunpack.i.l.bf16 %v9121_v48 }
0x14bb   :  { %v9133_v22 = vunpack.i.h.bf16 %v9131_v1  ;;  %v9132_v53 = vunpack.i.l.bf16 %v9131_v1 }
0x14bc   :  { %v6407_v36 = vsel %vm3042_vm4, %v6391_v33, %v9123_v29 }
0x14bd   :  { %v9126_v6 = vpop.permute.xlu1 %9125 }
0x14be   :  { %v9146_v55 = vpop.permute.xlu0 %9145  ;;  %v9128_v32 = vunpack.i.h.bf16 %v9126_v6  ;;  %v9127_v20 = vunpack.i.l.bf16 %v9126_v6 }
0x14bf   :  { %v9147_v16 = vunpack.i.l.bf16 %v9146_v55 }
0x14c0   :  { %v6389_v9 = vsel %vm1113_vm2, %v13898_v25, %v9128_v32  ;;  %v6388_v3 = vsel %vm1113_vm2, %v13891_v45, %v9127_v20  ;;  %v6390_v25 = vsel %vm1113_vm2, %v13885_v7, %v9117_v24  ;;  %v9148_v45 = vunpack.i.h.bf16 %v9146_v55 }
0x14c1   :  { %v9136_v11 = vpop.permute.xlu1 %9135  ;;  %v6404_v62 = vsel %vm3042_vm4, %v6388_v3, %v9132_v53  ;;  %v6405_v12 = vsel %vm3042_vm4, %v6389_v9, %v9133_v22  ;;  %v6406_v42 = vsel %vm3042_vm4, %v6390_v25, %v9122_v58  ;;  %v6392_v2 = vsel %vm1113_vm2, %v13910_v35, %v9147_v16 }
0x14c2   :  { %v9151_v13 = vpop.permute.xlu0 %9150  ;;  %v9138_v60 = vunpack.i.h.bf16 %v9136_v11  ;;  %v9137_v15 = vunpack.i.l.bf16 %v9136_v11  ;;  %v6393_v63 = vsel %vm1113_vm2, %v13915_v40, %v9148_v45 }
0x14c3   :  { %v9153_v61 = vunpack.i.h.bf16 %v9151_v13  ;;  %v9152_v51 = vunpack.i.l.bf16 %v9151_v13 }
0x14c4   :  { %v6395_v48 = vsel %vm1113_vm2, %v13913_v19, %v9138_v60  ;;  %v6394_v40 = vsel %vm1113_vm2, %v13908_v39, %v9137_v15 }
0x14c5   :  { %v9141_v46 = vpop.permute.xlu1 %9140  ;;  %v6409_v1 = vsel %vm3042_vm4, %v6393_v63, %v9153_v61  ;;  %v6408_v6 = vsel %vm3042_vm4, %v6392_v2, %v9152_v51 }
0x14c6   :  { %v14003_v26 = vpop.permute.xlu0 %9160  ;;  %v9143_v50 = vunpack.i.h.bf16 %v9141_v46  ;;  %v9142_v4 = vunpack.i.l.bf16 %v9141_v46 }
0x14c7   :  { %v9163_v55 = vunpack.i.h.bf16 %v14003_v26  ;;  %v9162_v32 = vunpack.i.l.bf16 %v14003_v26 }
0x14c8   :  { %v6411_v24 = vsel %vm3042_vm4, %v6395_v48, %v9143_v50  ;;  %v6410_v9 = vsel %vm3042_vm4, %v6394_v40, %v9142_v4 }
0x14c9   :  { %v14009_v57 = vpop.permute.xlu1 %9155 }
0x14ca   :  { %v9171_v23 = vpop.permute.xlu0 %9170  ;;  %v9158_v3 = vunpack.i.h.bf16 %v14009_v57  ;;  %v9157_v26 = vunpack.i.l.bf16 %v14009_v57 }
0x14cb   :  { %v9173_v54 = vunpack.i.h.bf16 %v9171_v23  ;;  %v9172_v43 = vunpack.i.l.bf16 %v9171_v23 }
0x14cd   :  { %v6421_v14 = vsel %vm3059_vm10, %v6405_v12, %v9173_v54  ;;  %v6420_v34 = vsel %vm3059_vm10, %v6404_v62, %v9172_v43  ;;  %v9166_v59 = vpop.permute.xlu1 %9165  ;;  %v6397_v54 = vsel %vm1113_vm2, %v13932_v38, %v9163_v55  ;;  %v6396_v43 = vsel %vm1113_vm2, %v13927_v27, %v9162_v32 }
0x14ce   :  { %v6436_v52 = vpack.c.bf16 %v6421_v14, %v6420_v34  ;;  %v9168_v49 = vunpack.i.h.bf16 %v9166_v59  ;;  %v9167_v17 = vunpack.i.l.bf16 %v9166_v59  ;;  %v9176_v8 = vpop.permute.xlu0 %9175  ;;  %v6399_v14 = vsel %vm1113_vm2, %v13930_v10, %v9158_v3 }
0x14cf   :  { %v9178_v39 = vunpack.i.h.bf16 %v9176_v8  ;;  %v9177_v22 = vunpack.i.l.bf16 %v9176_v8  ;;  %v6398_v38 = vsel %vm1113_vm2, %v13925_v30, %v9157_v26 }
0x14d0   :  { %v6423_v7 = vsel %vm3059_vm10, %v6407_v36, %v9168_v49  ;;  %v6422_v31 = vsel %vm3059_vm10, %v6406_v42, %v9167_v17  ;;  %8781 = vmatprep.mubr.msk.bf16.mxu1 %vm373_vm1, %v6436_v52 }
0x14d1   :  { %v6437_v0 = vpack.c.bf16 %v6423_v7, %v6422_v31  ;;  %v9181_v5 = vpop.permute.xlu1 %9180  ;;  %v6413_v57 = vsel %vm3042_vm4, %v6397_v54, %v9178_v39  ;;  %v6412_v34 = vsel %vm3042_vm4, %v6396_v43, %v9177_v22  ;;  %v15072_v43 = vld [vmem:[#allocation44_spill] sm:$0xff] }
0x14d2   :  { %v9191_v47 = vpop.permute.xlu0 %9190  ;;  %v9183_v62 = vunpack.i.h.bf16 %v9181_v5  ;;  %v9182_v12 = vunpack.i.l.bf16 %v9181_v5 }
0x14d3   :  { %v9193_v44 = vunpack.i.h.bf16 %v9191_v47  ;;  %v9192_v56 = vunpack.i.l.bf16 %v9191_v47  ;;  %8782 = vmatmul.mubr.msk.bf16.vlgmr.msra.gmra.mrb[176].mxu1 %vm373_vm1, %v6437_v0 }
0x14d4   :  { %v6415_v10 = vsel %vm3042_vm4, %v6399_v14, %v9183_v62  ;;  %v6414_v60 = vsel %vm3042_vm4, %v6398_v38, %v9182_v12  ;;  %v15073_v14 = vld [vmem:[#allocation51_spill] sm:$0xff] }
0x14d5   :  { %v6425_v35 = vsel %vm3059_vm10, %v6409_v1, %v9193_v44  ;;  %v6424_v11 = vsel %vm3059_vm10, %v6408_v6, %v9192_v56  ;;  %v9186_v13 = vpop.permute.xlu1 %9185 }
0x14d6   :  { %v6438_v20 = vpack.c.bf16 %v6425_v35, %v6424_v11  ;;  %v9188_v46 = vunpack.i.h.bf16 %v9186_v13  ;;  %v9187_v28 = vunpack.i.l.bf16 %v9186_v13  ;;  %v9196_v19 = vpop.permute.xlu0 %9195 }
0x14d7   :  { %v9198_v59 = vunpack.i.h.bf16 %v9196_v19  ;;  %v9197_v49 = vunpack.i.l.bf16 %v9196_v19 }
0x14d8   :  { %v6427_v53 = vsel %vm3059_vm10, %v6411_v24, %v9188_v46  ;;  %v6426_v23 = vsel %vm3059_vm10, %v6410_v9, %v9187_v28  ;;  %8785 = vmatprep.mubr.msk.bf16.mxu1 %vm373_vm1, %v6438_v20 }
0x14d9   :  { %v6439_v29 = vpack.c.bf16 %v6427_v53, %v6426_v23  ;;  %v9201_v58 = vpop.permute.xlu1 %9200  ;;  %v6401_v5 = vsel %vm1113_vm2, %v13941_v18, %v9198_v59  ;;  %v6400_v63 = vsel %vm1113_vm2, %v13937_v21, %v9197_v49  ;;  %v15070_v53 = vld [vmem:[#allocation40_spill] sm:$0xff] }
0x14da   :  { %v9211_v33 = vpop.permute.xlu0 %9210  ;;  %v9203_v31 = vunpack.i.h.bf16 %v9201_v58  ;;  %v9202_v2 = vunpack.i.l.bf16 %v9201_v58 }
0x14db   :  { %v9213_v25 = vunpack.i.h.bf16 %v9211_v33  ;;  %v9212_v45 = vunpack.i.l.bf16 %v9211_v33  ;;  %8786 = vmatmul.mubr.msk.bf16.gmra.mrb[180].mxu1 %vm373_vm1, %v6439_v29  ;;  %v15071_v29 = vld [vmem:[#allocation49_spill] sm:$0xff] }
0x14dc   :  { %v6403_v6 = vsel %vm1113_vm2, %v13939_v41, %v9203_v31  ;;  %v6402_v55 = vsel %vm1113_vm2, %v13935_v37, %v9202_v2  ;;  %v14086_v37 = vld [vmem:[%s14580_s8 + $0x1] ss:$0 sm:$0xff]  ;;  %v15077_v31 = vld [vmem:[#allocation59_spill] sm:$0xff]  ;;  %vm10047_vm2 = vmmov 0  }
0x14dd   :  { %v6428_v27 = vsel %vm3059_vm10, %v6412_v34, %v9212_v45  ;;  %v6429_v16 = vsel %vm3059_vm10, %v6413_v57, %v9213_v25  ;;  %v9206_v52 = vpop.permute.xlu1 %9205 }
0x14de   :  { %v6440_v17 = vpack.c.bf16 %v6429_v16, %v6428_v27  ;;  %v9208_v8 = vunpack.i.h.bf16 %v9206_v52  ;;  %v9207_v36 = vunpack.i.l.bf16 %v9206_v52  ;;  %v9216_v42 = vpop.permute.xlu0 %9215 }
0x14df   :  { %v9218_v30 = vunpack.i.h.bf16 %v9216_v42  ;;  %v9217_v7 = vunpack.i.l.bf16 %v9216_v42 }
0x14e0   :  { %v6430_v61 = vsel %vm3059_vm10, %v6414_v60, %v9207_v36  ;;  %v6431_v51 = vsel %vm3059_vm10, %v6415_v10, %v9208_v8  ;;  %8789 = vmatprep.mubr.msk.bf16.mxu1 %vm373_vm1, %v6440_v17  ;;  %v15074_v17 = vld [vmem:[#allocation55_spill] sm:$0xff]  ;;  %v15075_v36 = vld [vmem:[#allocation58_spill] sm:$0xff]  ;;  %v15076_v60 = vld [vmem:[#allocation21_spill] sm:$0xff] }
0x14e1   :  { %v6441_v15 = vpack.c.bf16 %v6431_v51, %v6430_v61  ;;  %v9221_v0 = vpop.permute.xlu1 %9220  ;;  %v6417_v48 = vsel %vm3042_vm4, %v6401_v5, %v9218_v30  ;;  %v6416_v1 = vsel %vm3042_vm4, %v6400_v63, %v9217_v7 }
0x14e2   :  { %v9226_v47 = vpop.permute.xlu0 %9225  ;;  %v9223_v50 = vunpack.i.h.bf16 %v9221_v0  ;;  %v9222_v4 = vunpack.i.l.bf16 %v9221_v0 }
0x14e3   :  { %v9228_v44 = vunpack.i.h.bf16 %v9226_v47  ;;  %v9227_v56 = vunpack.i.l.bf16 %v9226_v47  ;;  %8790 = vmatmul.mubr.msk.bf16.gmra.mrb[184].mxu1 %vm373_vm1, %v6441_v15 }
0x14e4   :  { %v6419_v32 = vsel %vm3042_vm4, %v6403_v6, %v9223_v50  ;;  %v6418_v20 = vsel %vm3042_vm4, %v6402_v55, %v9222_v4 }
0x14e5   :  { %v6432_v18 = vsel %vm3059_vm10, %v6416_v1, %v9227_v56  ;;  %v6433_v40 = vsel %vm3059_vm10, %v6417_v48, %v9228_v44  ;;  %v9231_v21 = vpop.permute.xlu1 %9230  ;;  %v15078_v56 = vld [vmem:[#allocation22_spill] sm:$0xff]  ;;  %v15079_v1 = vld [vmem:[#allocation67_spill] sm:$0xff] }
0x14e6   :  { %v6442_v35 = vpack.c.bf16 %v6433_v40, %v6432_v18  ;;  %v9233_v11 = vunpack.i.h.bf16 %v9231_v21  ;;  %v9232_v13 = vunpack.i.l.bf16 %v9231_v21  ;;  %v15080_v40 = vld [vmem:[#allocation68_spill] sm:$0xff] }
0x14e8   :  { %v6434_v46 = vsel %vm3059_vm10, %v6418_v20, %v9232_v13  ;;  %v6435_v28 = vsel %vm3059_vm10, %v6419_v32, %v9233_v11  ;;  %8793 = vmatprep.mubr.msk.bf16.mxu1 %vm373_vm1, %v6442_v35  ;;  %v15081_v13 = vld [vmem:[#allocation63_spill] sm:$0xff] }
0x14e9   :  { %v6443_v41 = vpack.c.bf16 %v6435_v28, %v6434_v46 }
0x14eb   :  { %8794 = vmatmul.mubr.msk.bf16.gmra.mrb[188].mxu1 %vm373_vm1, %v6443_v41 }
0x15a6   :  { %v8783_v19 = vpop.f32.mrb[176].mxu1 }
0x15a7   :  { %v6527_v24 = vpop.f32.mrb[177].mxu1  ;;  %v6536_v9 = vadd.f32 %v8783_v19, %v14086_v37 }
0x15a8   :  { %v6528_v3 = vadd.f32 %v14086_v37, %v6527_v24  ;;  %v8784_v39 = vpop.f32.mrb[178].mxu1 }
0x15a9   :  { %v6530_v22 = vpop.f32.mrb[179].mxu1  ;;  %v14095_v58 = vadd.f32 %v6536_v9, %v15071_v29  ;;  %v6539_v54 = vadd.f32 %v8784_v39, %v14086_v37  ;;  %v15082_v39 = vld [vmem:[#allocation64_spill] sm:$0xff] }
0x15aa   :  { %v14091_v23 = vadd.f32 %v6528_v3, %v15070_v53  ;;  %v6531_v26 = vadd.f32 %v14086_v37, %v6530_v22  ;;  %v15083_v53 = vld [vmem:[#allocation71_spill] sm:$0xff] }
0x15ab   :  { %v14106_v57 = vadd.f32 %v6539_v54, %v15073_v14  ;;  %v6616_v59 = vsel %vm373_vm1, %v14095_v58, 0.0  ;;  %v15084_v54 = vld [vmem:[#allocation69_spill] sm:$0xff] }
0x15ac   :  { %v14099_v33 = vadd.f32 %v6531_v26, %v15072_v43  ;;  %v6610_v62 = vsel %vm373_vm1, %v14091_v23, 0.0 }
0x15ad   :  { %6611 = vadd.xlane.f32.xlu0 %v6610_v62  ;;  %v6619_v10 = vsel %vm373_vm1, %v14106_v57, 0.0 }
0x15ae   :  { %v8787_v12 = vpop.f32.mrb[180].mxu1  ;;  %v6613_v25 = vsel %vm373_vm1, %v14099_v33, 0.0 }
0x15af   :  { %v6543_v45 = vpop.f32.mrb[181].mxu1  ;;  %6614 = vadd.xlane.f32.xlu1 %v6613_v25  ;;  %v6552_v49 = vadd.f32 %v8787_v12, %v14086_v37  ;;  %v15085_v12 = vld [vmem:[#allocation70_spill] sm:$0xff] }
0x15b0   :  { %v6544_v34 = vadd.f32 %v14086_v37, %v6543_v45  ;;  %v8788_v38 = vpop.f32.mrb[182].mxu1 }
0x15b1   :  { %v6546_v27 = vpop.f32.mrb[183].mxu1  ;;  %6617 = vadd.xlane.f32.xlu0 %v6616_v59  ;;  %v6555_v16 = vadd.f32 %v8788_v38, %v14086_v37  ;;  %v14128_v15 = vadd.f32 %v6552_v49, %v15077_v31 }
0x15b2   :  { %v6547_v52 = vadd.f32 %v14086_v37, %v6546_v27  ;;  %v14115_v8 = vadd.f32 %v6544_v34, %v15074_v17  ;;  %v9263_v34 = vld [vmem:[%s14585_s13 + $0x10] sm:$0xff]  }
0x15b3   :  { %v14123_v61 = vadd.f32 %v6555_v16, %v15076_v60  ;;  %v6628_v18 = vsel %vm373_vm1, %v14128_v15, 0.0  ;;  %8797 = vmatprep.subr.bf16.mxu0 %v9263_v34 }
0x15b4   :  { %v14118_v42 = vadd.f32 %v6547_v52, %v15075_v36  ;;  %v6622_v63 = vsel %vm373_vm1, %v14115_v8, 0.0  ;;  %8798 = vmatpush3.bf16.msra.mxu0 %v9263_v34 }
0x15b5   :  { %6620 = vadd.xlane.f32.xlu0 %v6619_v10  ;;  %v6631_v4 = vsel %vm373_vm1, %v14123_v61, 0.0 }
0x15b6   :  { %v8791_v51 = vpop.f32.mrb[184].mxu1  ;;  %v6625_v30 = vsel %vm373_vm1, %v14118_v42, 0.0 }
0x15b7   :  { %v6559_v7 = vpop.f32.mrb[185].mxu1  ;;  %6626 = vadd.xlane.f32.xlu1 %v6625_v30  ;;  %v6568_v44 = vadd.f32 %v8791_v51, %v14086_v37 }
0x15b8   :  { %v6560_v0 = vadd.f32 %v14086_v37, %v6559_v7  ;;  %v8792_v5 = vpop.f32.mrb[186].mxu1 }
0x15b9   :  { %v6562_v2 = vpop.f32.mrb[187].mxu1  ;;  %6623 = vadd.xlane.f32.xlu0 %v6622_v63  ;;  %v6571_v47 = vadd.f32 %v8792_v5, %v14086_v37  ;;  %v14152_v32 = vadd.f32 %v6568_v44, %v15081_v13 }
0x15ba   :  { %v6563_v50 = vadd.f32 %v14086_v37, %v6562_v2  ;;  %v14139_v48 = vadd.f32 %v6560_v0, %v15078_v56 }
0x15bb   :  { %6632 = vadd.xlane.f32.xlu1 %v6631_v4  ;;  %v14147_v21 = vadd.f32 %v6571_v47, %v15080_v40  ;;  %v6640_v29 = vsel %vm373_vm1, %v14152_v32, 0.0 }
0x15bc   :  { %v14142_v6 = vadd.f32 %v6563_v50, %v15079_v1  ;;  %v6634_v28 = vsel %vm373_vm1, %v14139_v48, 0.0 }
0x15bd   :  { %6629 = vadd.xlane.f32.xlu0 %v6628_v18  ;;  %v6643_v9 = vsel %vm373_vm1, %v14147_v21, 0.0 }
0x15be   :  { %v8795_v55 = vpop.f32.mrb[188].mxu1  ;;  %v6637_v35 = vsel %vm373_vm1, %v14142_v6, 0.0 }
0x15bf   :  { %v6575_v11 = vpop.f32.mrb[189].mxu1  ;;  %6638 = vadd.xlane.f32.xlu1 %v6637_v35  ;;  %v6584_v3 = vadd.f32 %v8795_v55, %v14086_v37 }
0x15c0   :  { %v6576_v20 = vadd.f32 %v14086_v37, %v6575_v11  ;;  %v8796_v46 = vpop.f32.mrb[190].mxu1 }
0x15c1   :  { %v6578_v41 = vpop.f32.mrb[191].mxu1  ;;  %6635 = vadd.xlane.f32.xlu0 %v6634_v28  ;;  %v6587_v19 = vadd.f32 %v8796_v46, %v14086_v37  ;;  %v14176_v25 = vadd.f32 %v6584_v3, %v15085_v12 }
0x15c2   :  { %v6579_v24 = vadd.f32 %v14086_v37, %v6578_v41  ;;  %v14163_v22 = vadd.f32 %v6576_v20, %v15082_v39 }
0x15c3   :  { %6644 = vadd.xlane.f32.xlu1 %v6643_v9  ;;  %v14171_v43 = vadd.f32 %v6587_v19, %v15084_v54  ;;  %v6652_v14 = vsel %vm373_vm1, %v14176_v25, 0.0 }
0x15c4   :  { %v14166_v26 = vadd.f32 %v6579_v24, %v15083_v53  ;;  %v6646_v37 = vsel %vm373_vm1, %v14163_v22, 0.0 }
0x15c5   :  { %6641 = vadd.xlane.f32.xlu0 %v6640_v29  ;;  %v6655_v45 = vsel %vm373_vm1, %v14171_v43, 0.0 }
0x15c6   :  { %v6649_v62 = vsel %vm373_vm1, %v14166_v26, 0.0 }
0x15c7   :  { %6650 = vadd.xlane.f32.xlu1 %v6649_v62 }
0x15c9   :  { %6647 = vadd.xlane.f32.xlu0 %v6646_v37 }
0x15cb   :  { %6656 = vadd.xlane.f32.xlu1 %v6655_v45 }
0x15cd   :  { %6653 = vadd.xlane.f32.xlu0 %v6652_v14 }
0x163a   :  { %v6612_v38 = vpop.xlane.xlu0 %6611 }
0x163b   :  { %v6658_v59 = vmul.f32 0.03125, %v6612_v38 }
0x163c   :  { %v6615_v27 = vpop.xlane.xlu1 %6614 }
0x163d   :  { %v14188_v16 = vsub.f32 %v14091_v23, %v6658_v59  ;;  %v6659_v52 = vmul.f32 0.03125, %v6615_v27 }
0x163e   :  { %v6618_v49 = vpop.xlane.xlu0 %6617 }
0x163f   :  { %v14191_v17 = vsub.f32 %v14099_v33, %v6659_v52  ;;  %v6660_v36 = vmul.f32 0.03125, %v6618_v49  ;;  %v6690_v10 = vmul.f32 %v14188_v16, %v14188_v16 }
0x1641   :  { %v14196_v60 = vsub.f32 %v14095_v58, %v6660_v36  ;;  %v6706_v51 = vsel %vm373_vm1, %v6690_v10, 0.0  ;;  %v6691_v30 = vmul.f32 %v14191_v17, %v14191_v17 }
0x1642   :  { %6707 = vadd.xlane.f32.xlu0 %v6706_v51  ;;  %v6621_v7 = vpop.xlane.xlu0 %6620 }
0x1643   :  { %v6661_v31 = vmul.f32 0.03125, %v6621_v7  ;;  %v6709_v0 = vsel %vm373_vm1, %v6691_v30, 0.0  ;;  %v6692_v5 = vmul.f32 %v14196_v60, %v14196_v60 }
0x1644   :  { %6710 = vadd.xlane.f32.xlu1 %v6709_v0  ;;  %v6627_v63 = vpop.xlane.xlu1 %6626 }
0x1645   :  { %v14205_v2 = vsub.f32 %v14106_v57, %v6661_v31  ;;  %v6663_v47 = vmul.f32 0.03125, %v6627_v63  ;;  %v6712_v50 = vsel %vm373_vm1, %v6692_v5, 0.0 }
0x1646   :  { %6713 = vadd.xlane.f32.xlu0 %v6712_v50  ;;  %v6624_v4 = vpop.xlane.xlu0 %6623 }
0x1647   :  { %v14209_v44 = vsub.f32 %v14118_v42, %v6663_v47  ;;  %v6662_v56 = vmul.f32 0.03125, %v6624_v4  ;;  %v6693_v1 = vmul.f32 %v14205_v2, %v14205_v2 }
0x1648   :  { %v6633_v18 = vpop.xlane.xlu1 %6632 }
0x1649   :  { %v14214_v40 = vsub.f32 %v14115_v8, %v6662_v56  ;;  %v6665_v55 = vmul.f32 0.03125, %v6633_v18  ;;  %v6715_v35 = vsel %vm373_vm1, %v6693_v1, 0.0  ;;  %v6695_v11 = vmul.f32 %v14209_v44, %v14209_v44 }
0x164a   :  { %6716 = vadd.xlane.f32.xlu1 %v6715_v35  ;;  %v6630_v13 = vpop.xlane.xlu0 %6629 }
0x164b   :  { %v14220_v20 = vsub.f32 %v14123_v61, %v6665_v55  ;;  %v6664_v46 = vmul.f32 0.03125, %v6630_v13  ;;  %v6694_v28 = vmul.f32 %v14214_v40, %v14214_v40  ;;  %v6721_v19 = vsel %vm373_vm1, %v6695_v11, 0.0 }
0x164c   :  { %v6639_v41 = vpop.xlane.xlu1 %6638 }
0x164d   :  { %v14226_v24 = vsub.f32 %v14128_v15, %v6664_v46  ;;  %v6667_v9 = vmul.f32 0.03125, %v6639_v41  ;;  %v6718_v3 = vsel %vm373_vm1, %v6694_v28, 0.0  ;;  %v6697_v39 = vmul.f32 %v14220_v20, %v14220_v20 }
0x164e   :  { %6722 = vadd.xlane.f32.xlu1 %v6721_v19  ;;  %6719 = vadd.xlane.f32.xlu0 %v6718_v3  ;;  %v6636_v53 = vpop.xlane.xlu0 %6635 }
0x164f   :  { %v14232_v29 = vsub.f32 %v14142_v6, %v6667_v9  ;;  %v6666_v54 = vmul.f32 0.03125, %v6636_v53  ;;  %v6696_v62 = vmul.f32 %v14226_v24, %v14226_v24  ;;  %v6727_v37 = vsel %vm373_vm1, %v6697_v39, 0.0 }
0x1650   :  { %v6645_v12 = vpop.xlane.xlu1 %6644 }
0x1651   :  { %v14238_v45 = vsub.f32 %v14139_v48, %v6666_v54  ;;  %v6669_v14 = vmul.f32 0.03125, %v6645_v12  ;;  %v6724_v34 = vsel %vm373_vm1, %v6696_v62, 0.0  ;;  %v6699_v38 = vmul.f32 %v14232_v29, %v14232_v29  ;;  %v9264_v54 = vld [vmem:[%s14585_s13 + $0x18] sm:$0xff]  }
0x1652   :  { %6728 = vadd.xlane.f32.xlu1 %v6727_v37  ;;  %6725 = vadd.xlane.f32.xlu0 %v6724_v34  ;;  %v6642_v59 = vpop.xlane.xlu0 %6641 }
0x1653   :  { %v14244_v27 = vsub.f32 %v14147_v21, %v6669_v14  ;;  %v6668_v52 = vmul.f32 0.03125, %v6642_v59  ;;  %v6698_v49 = vmul.f32 %v14238_v45, %v14238_v45  ;;  %v6733_v10 = vsel %vm373_vm1, %v6699_v38, 0.0  ;;  %8799 = vmatprep.subr.bf16.mxu0 %v9264_v54 }
0x1654   :  { %v6651_v36 = vpop.xlane.xlu1 %6650  ;;  %8800 = vmatpush3.bf16.msra.mxu0 %v9264_v54 }
0x1655   :  { %v14250_v51 = vsub.f32 %v14152_v32, %v6668_v52  ;;  %v6671_v30 = vmul.f32 0.03125, %v6651_v36  ;;  %v6730_v7 = vsel %vm373_vm1, %v6698_v49, 0.0  ;;  %v6701_v31 = vmul.f32 %v14244_v27, %v14244_v27 }
0x1656   :  { %6734 = vadd.xlane.f32.xlu1 %v6733_v10  ;;  %6731 = vadd.xlane.f32.xlu0 %v6730_v7  ;;  %v6648_v0 = vpop.xlane.xlu0 %6647 }
0x1657   :  { %v14256_v5 = vsub.f32 %v14166_v26, %v6671_v30  ;;  %v6670_v63 = vmul.f32 0.03125, %v6648_v0  ;;  %v6700_v47 = vmul.f32 %v14250_v51, %v14250_v51  ;;  %v6739_v4 = vsel %vm373_vm1, %v6701_v31, 0.0 }
0x1658   :  { %v6657_v50 = vpop.xlane.xlu1 %6656 }
0x1659   :  { %v14262_v56 = vsub.f32 %v14163_v22, %v6670_v63  ;;  %v6673_v1 = vmul.f32 0.03125, %v6657_v50  ;;  %v6736_v18 = vsel %vm373_vm1, %v6700_v47, 0.0  ;;  %v6703_v55 = vmul.f32 %v14256_v5, %v14256_v5  ;;  %v14289_v50 = vld [vmem:[%s14583_s11 + $0x1] ss:$0 sm:$0xff] }
0x165a   :  { %6740 = vadd.xlane.f32.xlu1 %v6739_v4  ;;  %6737 = vadd.xlane.f32.xlu0 %v6736_v18  ;;  %v6654_v35 = vpop.xlane.xlu0 %6653 }
0x165b   :  { %v14268_v11 = vsub.f32 %v14171_v43, %v6673_v1  ;;  %v6672_v13 = vmul.f32 0.03125, %v6654_v35  ;;  %v6702_v46 = vmul.f32 %v14262_v56, %v14262_v56  ;;  %v6745_v41 = vsel %vm373_vm1, %v6703_v55, 0.0 }
0x165d   :  { %v14273_v28 = vsub.f32 %v14176_v25, %v6672_v13  ;;  %v6742_v19 = vsel %vm373_vm1, %v6702_v46, 0.0  ;;  %v6705_v9 = vmul.f32 %v14268_v11, %v14268_v11 }
0x165e   :  { %6746 = vadd.xlane.f32.xlu1 %v6745_v41  ;;  %6743 = vadd.xlane.f32.xlu0 %v6742_v19 }
0x165f   :  { %v6704_v3 = vmul.f32 %v14273_v28, %v14273_v28  ;;  %v6751_v39 = vsel %vm373_vm1, %v6705_v9, 0.0 }
0x1661   :  { %v6748_v53 = vsel %vm373_vm1, %v6704_v3, 0.0 }
0x1662   :  { %6752 = vadd.xlane.f32.xlu1 %v6751_v39  ;;  %6749 = vadd.xlane.f32.xlu0 %v6748_v53  ;;  %v14297_v39 = vld [vmem:[%s14584_s12 + $0x1] ss:$0 sm:$0xff] }
0x16cf   :  { %v6708_v62 = vpop.xlane.xlu0 %6707 }
0x16d0   :  { %v6754_v12 = vmul.f32 0.03125, %v6708_v62 }
0x16d1   :  { %v6711_v37 = vpop.xlane.xlu1 %6710 }
0x16d2   :  { %v6770_v14 = vadd.f32 1e-05, %v6754_v12  ;;  %v6755_v34 = vmul.f32 0.03125, %v6711_v37 }
0x16d3   :  { %v6714_v38 = vpop.xlane.xlu0 %6713 }
0x16d4   :  { %9947 = vrsqrt.f32 %v6770_v14  ;;  %v6771_v59 = vadd.f32 1e-05, %v6755_v34  ;;  %v6756_v52 = vmul.f32 0.03125, %v6714_v38 }
0x16d6   :  { %9949 = vrsqrt.f32 %v6771_v59  ;;  %v6772_v49 = vadd.f32 1e-05, %v6756_v52 }
0x16d7   :  { %v6717_v36 = vpop.xlane.xlu1 %6716 }
0x16d8   :  { %9951 = vrsqrt.f32 %v6772_v49  ;;  %v6757_v10 = vmul.f32 0.03125, %v6717_v36 }
0x16da   :  { %v6773_v30 = vadd.f32 1e-05, %v6757_v10 }
0x16db   :  { %v6723_v7 = vpop.xlane.xlu1 %6722  ;;  %v6720_v31 = vpop.xlane.xlu0 %6719 }
0x16dc   :  { %9953 = vrsqrt.f32 %v6773_v30  ;;  %v6759_v0 = vmul.f32 0.03125, %v6723_v7  ;;  %v6758_v63 = vmul.f32 0.03125, %v6720_v31 }
0x16de   :  { %v9948_v47 = vpop.eup %9947  ;;  %v6775_v4 = vadd.f32 1e-05, %v6759_v0  ;;  %v6774_v1 = vadd.f32 1e-05, %v6758_v63 }
0x16df   :  { %v6802_v18 = vmul.f32 %v9948_v47, %v14188_v16  ;;  %v6729_v55 = vpop.xlane.xlu1 %6728  ;;  %v6726_v35 = vpop.xlane.xlu0 %6725 }
0x16e0   :  { %v9950_v13 = vpop.eup %9949  ;;  %9955 = vrsqrt.f32 %v6775_v4  ;;  %v6761_v46 = vmul.f32 0.03125, %v6729_v55  ;;  %v6760_v41 = vmul.f32 0.03125, %v6726_v35 }
0x16e1   :  { %v6803_v19 = vmul.f32 %v9950_v13, %v14191_v17  ;;  %9957 = vrsqrt.f32 %v6774_v1  ;;  %v6824_v9 = vmul.f32 %v14289_v50, %v6802_v18 }
0x16e2   :  { %v9952_v3 = vpop.eup %9951  ;;  %v6777_v53 = vadd.f32 1e-05, %v6761_v46  ;;  %v6776_v54 = vadd.f32 1e-05, %v6760_v41 }
0x16e3   :  { %v6804_v16 = vmul.f32 %v9952_v3, %v14196_v60  ;;  %v6735_v62 = vpop.xlane.xlu1 %6734  ;;  %v6732_v12 = vpop.xlane.xlu0 %6731  ;;  %v6825_v37 = vmul.f32 %v14289_v50, %v6803_v19  ;;  %v6846_v34 = vadd.f32 %v14297_v39, %v6824_v9 }
0x16e4   :  { %9959 = vrsqrt.f32 %v6777_v53  ;;  %v6763_v14 = vmul.f32 0.03125, %v6735_v62  ;;  %v6762_v17 = vmul.f32 0.03125, %v6732_v12 }
0x16e5   :  { %9961 = vrsqrt.f32 %v6776_v54  ;;  %v6847_v38 = vadd.f32 %v14297_v39, %v6825_v37  ;;  %v6826_v36 = vmul.f32 %v14289_v50, %v6804_v16 }
0x16e6   :  { %v9954_v59 = vpop.eup %9953  ;;  %v6779_v52 = vadd.f32 1e-05, %v6763_v14  ;;  %v6778_v49 = vadd.f32 1e-05, %v6762_v17 }
0x16e7   :  { %v6805_v10 = vmul.f32 %v9954_v59, %v14205_v2  ;;  %v6741_v60 = vpop.xlane.xlu1 %6740  ;;  %v6738_v30 = vpop.xlane.xlu0 %6737  ;;  %v6862_v7 = vpack.c.bf16 %v6847_v38, %v6846_v34  ;;  %v6848_v55 = vadd.f32 %v14297_v39, %v6826_v36 }
0x16e8   :  { %9963 = vrsqrt.f32 %v6779_v52  ;;  %v6765_v31 = vmul.f32 0.03125, %v6741_v60  ;;  %v6764_v0 = vmul.f32 0.03125, %v6738_v30 }
0x16e9   :  { %v6827_v63 = vmul.f32 %v14289_v50, %v6805_v10  ;;  %9965 = vrsqrt.f32 %v6778_v49  ;;  %8801 = vmatprep.mubr.msk.bf16.mxu0 %vm373_vm1, %v6862_v7 }
0x16ea   :  { %v9956_v47 = vpop.eup %9955  ;;  %v6781_v4 = vadd.f32 1e-05, %v6765_v31  ;;  %v6780_v1 = vadd.f32 1e-05, %v6764_v0 }
0x16eb   :  { %v9958_v18 = vpop.eup %9957  ;;  %v6849_v35 = vadd.f32 %v14297_v39, %v6827_v63  ;;  %v6807_v2 = vmul.f32 %v9956_v47, %v14209_v44  ;;  %v6747_v13 = vpop.xlane.xlu1 %6746 }
0x16ec   :  { %v6744_v46 = vpop.xlane.xlu0 %6743  ;;  %v6806_v41 = vmul.f32 %v9958_v18, %v14214_v40  ;;  %9967 = vrsqrt.f32 %v6781_v4  ;;  %v6767_v19 = vmul.f32 0.03125, %v6747_v13 }
0x16ed   :  { %v6766_v9 = vmul.f32 0.03125, %v6744_v46  ;;  %9969 = vrsqrt.f32 %v6780_v1  ;;  %v6863_v3 = vpack.c.bf16 %v6849_v35, %v6848_v55  ;;  %v6829_v53 = vmul.f32 %v14289_v50, %v6807_v2 }
0x16ee   :  { %v9960_v54 = vpop.eup %9959  ;;  %v6783_v16 = vadd.f32 1e-05, %v6767_v19  ;;  %v6828_v12 = vmul.f32 %v14289_v50, %v6806_v41 }
0x16ef   :  { %v6782_v62 = vadd.f32 1e-05, %v6766_v9  ;;  %v9962_v37 = vpop.eup %9961  ;;  %v6809_v14 = vmul.f32 %v9960_v54, %v14220_v20  ;;  %v6753_v44 = vpop.xlane.xlu1 %6752  ;;  %8802 = vmatmul.mubr.msk.bf16.vlgmr.msra.gmra.mrb[176].mxu0 %vm373_vm1, %v6863_v3  ;;  %v6851_v40 = vadd.f32 %v14297_v39, %v6829_v53 }
0x16f0   :  { %v6750_v17 = vpop.xlane.xlu0 %6749  ;;  %v6808_v34 = vmul.f32 %v9962_v37, %v14226_v24  ;;  %9971 = vrsqrt.f32 %v6783_v16  ;;  %v6769_v38 = vmul.f32 0.03125, %v6753_v44  ;;  %v6850_v52 = vadd.f32 %v14297_v39, %v6828_v12 }
0x16f1   :  { %v6768_v59 = vmul.f32 0.03125, %v6750_v17  ;;  %9973 = vrsqrt.f32 %v6782_v62  ;;  %v6831_v49 = vmul.f32 %v14289_v50, %v6809_v14 }
0x16f2   :  { %v9964_v36 = vpop.eup %9963  ;;  %v6785_v10 = vadd.f32 1e-05, %v6769_v38  ;;  %v6830_v20 = vmul.f32 %v14289_v50, %v6808_v34  ;;  %v6864_v31 = vpack.c.bf16 %v6851_v40, %v6850_v52  ;;  %v9266_v52 = vld [vmem:[%s14587_s15 + $0x48] sm:$0xff]  }
0x16f3   :  { %v6784_v60 = vadd.f32 1e-05, %v6768_v59  ;;  %v9966_v30 = vpop.eup %9965  ;;  %v6811_v7 = vmul.f32 %v9964_v36, %v14232_v29  ;;  %v6853_v0 = vadd.f32 %v14297_v39, %v6831_v49  ;;  %v9269_v49 = vld [vmem:[%s14587_s15 + $0x60] sm:$0xff]   ;;  %v9270_v36 = vld [vmem:[%s14587_s15 + $0x68] sm:$0xff]  }
0x16f4   :  { %v6810_v24 = vmul.f32 %v9966_v30, %v14238_v45  ;;  %9975 = vrsqrt.f32 %v6785_v10  ;;  %v6852_v63 = vadd.f32 %v14297_v39, %v6830_v20  ;;  %8805 = vmatprep.mubr.msk.bf16.mxu0 %vm373_vm1, %v6864_v31  ;;  %v9271_v10 = vld [vmem:[%s14587_s15 + $0x70] sm:$0xff]   ;;  %v14379_v20 = vld [vmem:[%s14586_s14 + $0x1] ss:$0 sm:$0xff] }
0x16f5   :  { %9977 = vrsqrt.f32 %v6784_v60  ;;  %v6833_v47 = vmul.f32 %v14289_v50, %v6811_v7  ;;  %v9272_v60 = vld [vmem:[%s14587_s15 + $0x78] sm:$0xff]  }
0x16f6   :  { %v9968_v4 = vpop.eup %9967  ;;  %v6865_v1 = vpack.c.bf16 %v6853_v0, %v6852_v63  ;;  %v6832_v18 = vmul.f32 %v14289_v50, %v6810_v24 }
0x16f7   :  { %v9970_v55 = vpop.eup %9969  ;;  %v6813_v29 = vmul.f32 %v9968_v4, %v14244_v27  ;;  %v6855_v35 = vadd.f32 %v14297_v39, %v6833_v47 }
0x16f8   :  { %v6812_v2 = vmul.f32 %v9970_v55, %v14250_v51  ;;  %8806 = vmatmul.mubr.msk.bf16.gmra.mrb[180].mxu0 %vm373_vm1, %v6865_v1  ;;  %v6854_v45 = vadd.f32 %v14297_v39, %v6832_v18 }
0x16f9   :  { %v6835_v13 = vmul.f32 %v14289_v50, %v6813_v29 }
0x16fa   :  { %v9972_v46 = vpop.eup %9971  ;;  %v6866_v41 = vpack.c.bf16 %v6855_v35, %v6854_v45  ;;  %v6834_v19 = vmul.f32 %v14289_v50, %v6812_v2 }
0x16fb   :  { %v9974_v9 = vpop.eup %9973  ;;  %v6815_v3 = vmul.f32 %v9972_v46, %v14256_v5  ;;  %v6857_v53 = vadd.f32 %v14297_v39, %v6835_v13 }
0x16fc   :  { %v6814_v27 = vmul.f32 %v9974_v9, %v14262_v56  ;;  %8809 = vmatprep.mubr.msk.bf16.mxu0 %vm373_vm1, %v6866_v41  ;;  %v6856_v51 = vadd.f32 %v14297_v39, %v6834_v19 }
0x16fd   :  { %v6837_v54 = vmul.f32 %v14289_v50, %v6815_v3 }
0x16fe   :  { %v9976_v16 = vpop.eup %9975  ;;  %v6867_v62 = vpack.c.bf16 %v6857_v53, %v6856_v51  ;;  %v6836_v12 = vmul.f32 %v14289_v50, %v6814_v27 }
0x16ff   :  { %v9978_v37 = vpop.eup %9977  ;;  %v6817_v14 = vmul.f32 %v9976_v16, %v14268_v11  ;;  %v6859_v44 = vadd.f32 %v14297_v39, %v6837_v54 }
0x1700   :  { %v6816_v5 = vmul.f32 %v9978_v37, %v14273_v28  ;;  %8810 = vmatmul.mubr.msk.bf16.gmra.mrb[184].mxu0 %vm373_vm1, %v6867_v62  ;;  %v6858_v56 = vadd.f32 %v14297_v39, %v6836_v12  ;;  %v9265_v28 = vld [vmem:[%s14587_s15 + $0x40] sm:$0xff]  }
0x1701   :  { %v6839_v17 = vmul.f32 %v14289_v50, %v6817_v14  ;;  %8817 = vmatprep.subr.bf16.mxu1 %v9265_v28 }
0x1702   :  { %v6868_v40 = vpack.c.bf16 %v6859_v44, %v6858_v56  ;;  %v6838_v34 = vmul.f32 %v14289_v50, %v6816_v5  ;;  %8818 = vmatpush3.bf16.msra.mxu1 %v9265_v28  ;;  %v9267_v50 = vld [vmem:[%s14587_s15 + $0x50] sm:$0xff]  }
0x1703   :  { %v6861_v38 = vadd.f32 %v14297_v39, %v6839_v17  ;;  %8819 = vmatprep.subr.bf16.mxu1 %v9266_v52 }
0x1704   :  { %8813 = vmatprep.mubr.msk.bf16.mxu0 %vm373_vm1, %v6868_v40  ;;  %v6860_v59 = vadd.f32 %v14297_v39, %v6838_v34  ;;  %v9268_v39 = vld [vmem:[%s14587_s15 + $0x58] sm:$0xff]  }
0x1706   :  { %v6869_v11 = vpack.c.bf16 %v6861_v38, %v6860_v59  ;;  %8820 = vmatpush3.bf16.msra.mxu1 %v9266_v52 }
0x1707   :  { %8821 = vmatprep.subr.bf16.mxu1 %v9267_v50 }
0x1708   :  { %8814 = vmatmul.mubr.msk.bf16.gmra.mrb[188].mxu0 %vm373_vm1, %v6869_v11 }
0x170a   :  { %8822 = vmatpush3.bf16.msra.mxu1 %v9267_v50 }
0x170b   :  { %8823 = vmatprep.subr.bf16.mxu1 %v9268_v39 }
0x170e   :  { %8824 = vmatpush3.bf16.msra.mxu1 %v9268_v39 }
0x170f   :  { %8825 = vmatprep.subr.bf16.mxu1 %v9269_v49 }
0x1712   :  { %8826 = vmatpush3.bf16.msra.mxu1 %v9269_v49 }
0x1713   :  { %8827 = vmatprep.subr.bf16.mxu1 %v9270_v36 }
0x1716   :  { %8828 = vmatpush3.bf16.msra.mxu1 %v9270_v36 }
0x1717   :  { %8829 = vmatprep.subr.bf16.mxu1 %v9271_v10 }
0x171a   :  { %8830 = vmatpush3.bf16.msra.mxu1 %v9271_v10 }
0x171b   :  { %8831 = vmatprep.subr.bf16.mxu1 %v9272_v60 }
0x171e   :  { %8832 = vmatpush3.bf16.msra.mxu1 %v9272_v60 }
0x17c2   :  { %v8803_v30 = vpop.f32.mrb[176].mxu0 }
0x17c3   :  { %v14382_v7 = vadd.f32 %v8803_v30, %v14379_v20  ;;  %v6953_v31 = vpop.f32.mrb[177].mxu0 }
0x17c4   :  { %v14385_v0 = vadd.f32 %v14379_v20, %v6953_v31  ;;  %v8804_v24 = vpop.f32.mrb[178].mxu0 }
0x17c5   :  { %v7018_v63 = vmul.f32 %v14382_v7, %v14382_v7  ;;  %v14390_v47 = vadd.f32 %v8804_v24, %v14379_v20  ;;  %v6956_v4 = vpop.f32.mrb[179].mxu0 }
0x17c6   :  { %v7016_v1 = vmul.f32 %v14385_v0, %v14385_v0  ;;  %v14395_v18 = vadd.f32 %v14379_v20, %v6956_v4 }
0x17c7   :  { %v7034_v55 = vmul.f32 %v7018_v63, %v14382_v7  ;;  %v7019_v29 = vmul.f32 %v14390_v47, %v14390_v47 }
0x17c8   :  { %v7032_v35 = vmul.f32 %v7016_v1, %v14385_v0  ;;  %v7017_v2 = vmul.f32 %v14395_v18, %v14395_v18 }
0x17c9   :  { %v7050_v45 = vmul.f32 0.044715, %v7034_v55  ;;  %v7035_v13 = vmul.f32 %v7019_v29, %v14390_v47 }
0x17ca   :  { %v7048_v46 = vmul.f32 0.044715, %v7032_v35  ;;  %v7033_v41 = vmul.f32 %v7017_v2, %v14395_v18 }
0x17cb   :  { %v7066_v19 = vadd.f32 %v7050_v45, %v14382_v7  ;;  %v7051_v9 = vmul.f32 0.044715, %v7035_v13  ;;  %v8807_v3 = vpop.f32.mrb[180].mxu0 }
0x17cc   :  { %v7064_v53 = vadd.f32 %v7048_v46, %v14385_v0  ;;  %v7049_v27 = vmul.f32 0.044715, %v7033_v41  ;;  %v14408_v51 = vadd.f32 %v8807_v3, %v14379_v20  ;;  %v6969_v54 = vpop.f32.mrb[181].mxu0 }
0x17cd   :  { %v7082_v16 = vmul.f32 0.7978846, %v7066_v19  ;;  %v7067_v62 = vadd.f32 %v7051_v9, %v14390_v47  ;;  %v14412_v12 = vadd.f32 %v14379_v20, %v6969_v54  ;;  %v8808_v37 = vpop.f32.mrb[182].mxu0 }
0x17ce   :  { %v7080_v14 = vmul.f32 0.7978846, %v7064_v53  ;;  %v7065_v44 = vadd.f32 %v7049_v27, %v14395_v18  ;;  %v7022_v5 = vmul.f32 %v14408_v51, %v14408_v51  ;;  %v14418_v56 = vadd.f32 %v8808_v37, %v14379_v20  ;;  %v6972_v17 = vpop.f32.mrb[183].mxu0 }
0x17cf   :  { %9979 = vtanh.f32 %v7082_v16  ;;  %v7083_v40 = vmul.f32 0.7978846, %v7067_v62  ;;  %v7020_v34 = vmul.f32 %v14412_v12, %v14412_v12  ;;  %v14423_v38 = vadd.f32 %v14379_v20, %v6972_v17 }
0x17d0   :  { %9981 = vtanh.f32 %v7080_v14  ;;  %v7038_v59 = vmul.f32 %v7022_v5, %v14408_v51  ;;  %v7023_v11 = vmul.f32 %v14418_v56, %v14418_v56  ;;  %v7081_v28 = vmul.f32 0.7978846, %v7065_v44 }
0x17d1   :  { %9983 = vtanh.f32 %v7083_v40  ;;  %v7036_v52 = vmul.f32 %v7020_v34, %v14412_v12  ;;  %v7021_v50 = vmul.f32 %v14423_v38, %v14423_v38 }
0x17d2   :  { %v7054_v39 = vmul.f32 0.044715, %v7038_v59  ;;  %v7039_v49 = vmul.f32 %v7023_v11, %v14418_v56  ;;  %9985 = vtanh.f32 %v7081_v28 }
0x17d3   :  { %v7052_v36 = vmul.f32 0.044715, %v7036_v52  ;;  %v7037_v10 = vmul.f32 %v7021_v50, %v14423_v38  ;;  %v8811_v60 = vpop.f32.mrb[184].mxu0 }
0x17d4   :  { %v7070_v30 = vadd.f32 %v7054_v39, %v14408_v51  ;;  %v7055_v31 = vmul.f32 0.044715, %v7039_v49  ;;  %v14435_v24 = vadd.f32 %v8811_v60, %v14379_v20  ;;  %v6985_v63 = vpop.f32.mrb[185].mxu0 }
0x17d5   :  { %v7068_v4 = vadd.f32 %v7052_v36, %v14412_v12  ;;  %v7053_v1 = vmul.f32 0.044715, %v7037_v10  ;;  %v14439_v55 = vadd.f32 %v14379_v20, %v6985_v63  ;;  %v8812_v29 = vpop.f32.mrb[186].mxu0 }
0x17d6   :  { %v7086_v35 = vmul.f32 0.7978846, %v7070_v30  ;;  %v7071_v2 = vadd.f32 %v7055_v31, %v14418_v56  ;;  %v7026_v45 = vmul.f32 %v14435_v24, %v14435_v24  ;;  %v14445_v13 = vadd.f32 %v8812_v29, %v14379_v20  ;;  %v6988_v46 = vpop.f32.mrb[187].mxu0 }
0x17d7   :  { %v7084_v41 = vmul.f32 0.7978846, %v7068_v4  ;;  %v7069_v19 = vadd.f32 %v7053_v1, %v14423_v38  ;;  %v7024_v9 = vmul.f32 %v14439_v55, %v14439_v55  ;;  %v14451_v3 = vadd.f32 %v14379_v20, %v6988_v46 }
0x17d8   :  { %9987 = vtanh.f32 %v7086_v35  ;;  %v7087_v53 = vmul.f32 0.7978846, %v7071_v2  ;;  %v7042_v27 = vmul.f32 %v7026_v45, %v14435_v24  ;;  %v7027_v54 = vmul.f32 %v14445_v13, %v14445_v13 }
0x17d9   :  { %v9980_v16 = vpop.eup %9979  ;;  %9989 = vtanh.f32 %v7084_v41  ;;  %v7085_v62 = vmul.f32 0.7978846, %v7069_v19  ;;  %v7040_v37 = vmul.f32 %v7024_v9, %v14439_v55  ;;  %v7025_v14 = vmul.f32 %v14451_v3, %v14451_v3 }
0x17da   :  { %v9982_v44 = vpop.eup %9981  ;;  %v7114_v5 = vadd.f32 1.0, %v9980_v16  ;;  %9991 = vtanh.f32 %v7087_v53  ;;  %v7058_v17 = vmul.f32 0.044715, %v7042_v27  ;;  %v7043_v40 = vmul.f32 %v7027_v54, %v14445_v13 }
0x17db   :  { %v9984_v34 = vpop.eup %9983  ;;  %9993 = vtanh.f32 %v7085_v62  ;;  %v7056_v59 = vmul.f32 0.044715, %v7040_v37  ;;  %v7041_v11 = vmul.f32 %v7025_v14, %v14451_v3  ;;  %v8815_v28 = vpop.f32.mrb[188].mxu0  ;;  %v7112_v52 = vadd.f32 1.0, %v9982_v44 }
0x17dc   :  { %v7130_v50 = vmul.f32 0.5, %v7114_v5  ;;  %v7115_v39 = vadd.f32 1.0, %v9984_v34  ;;  %v7074_v49 = vadd.f32 %v7058_v17, %v14435_v24  ;;  %v7059_v36 = vmul.f32 0.044715, %v7043_v40  ;;  %v7001_v10 = vpop.f32.mrb[189].mxu0  ;;  %v9986_v46 = vpop.eup %9985 }
0x17dd   :  { %v7072_v60 = vadd.f32 %v7056_v59, %v14439_v55  ;;  %v7057_v30 = vmul.f32 0.044715, %v7041_v11  ;;  %v14464_v31 = vadd.f32 %v8815_v28, %v14379_v20  ;;  %v14467_v63 = vadd.f32 %v14379_v20, %v7001_v10  ;;  %v8816_v4 = vpop.f32.mrb[190].mxu0 }
0x17de   :  { %v14470_v1 = vmul.f32 %v7130_v50, %v14382_v7  ;;  %v7131_v29 = vmul.f32 0.5, %v7115_v39  ;;  %v7090_v35 = vmul.f32 0.7978846, %v7074_v49  ;;  %v7075_v2 = vadd.f32 %v7059_v36, %v14445_v13  ;;  %v7004_v45 = vpop.f32.mrb[191].mxu0 }
0x17df   :  { %v7088_v41 = vmul.f32 0.7978846, %v7072_v60  ;;  %v7073_v19 = vadd.f32 %v7057_v30, %v14451_v3  ;;  %v7030_v9 = vmul.f32 %v14464_v31, %v14464_v31  ;;  %v7028_v53 = vmul.f32 %v14467_v63, %v14467_v63 }
0x17e0   :  { %v7147_v27 = vmul.f32 %v7131_v29, %v14390_v47  ;;  %9995 = vtanh.f32 %v7090_v35  ;;  %v7091_v7 = vmul.f32 0.7978846, %v7075_v2  ;;  %v14480_v54 = vadd.f32 %v8816_v4, %v14379_v20 }
0x17e1   :  { %9997 = vtanh.f32 %v7088_v41  ;;  %v7089_v16 = vmul.f32 0.7978846, %v7073_v19  ;;  %v7046_v62 = vmul.f32 %v7030_v9, %v14464_v31  ;;  %v7044_v37 = vmul.f32 %v7028_v53, %v14467_v63 }
0x17e2   :  { %v9988_v14 = vpop.eup %9987  ;;  %v7161_v44 = vpack.c.bf16 %v7147_v27, %v14470_v1  ;;  %9999 = vtanh.f32 %v7091_v7  ;;  %v7031_v5 = vmul.f32 %v14480_v54, %v14480_v54  ;;  %v14488_v47 = vadd.f32 %v14379_v20, %v7004_v45 }
0x17e3   :  { %v9990_v17 = vpop.eup %9989  ;;  %10001 = vtanh.f32 %v7089_v16  ;;  %v7062_v40 = vmul.f32 0.044715, %v7046_v62  ;;  %v7060_v34 = vmul.f32 0.044715, %v7044_v37  ;;  %v7113_v59 = vadd.f32 1.0, %v9986_v46 }
0x17e4   :  { %v9992_v11 = vpop.eup %9991  ;;  %v7047_v28 = vmul.f32 %v7031_v5, %v14480_v54  ;;  %v7029_v50 = vmul.f32 %v14488_v47, %v14488_v47  ;;  %v7128_v39 = vmul.f32 0.5, %v7112_v52  ;;  %v7116_v49 = vadd.f32 1.0, %v9990_v17 }
0x17e5   :  { %v9994_v36 = vpop.eup %9993  ;;  %v7078_v10 = vadd.f32 %v7062_v40, %v14464_v31  ;;  %v7076_v60 = vadd.f32 %v7060_v34, %v14467_v63  ;;  %v7129_v20 = vmul.f32 0.5, %v7113_v59  ;;  %v7118_v30 = vadd.f32 1.0, %v9988_v14 }
0x17e6   :  { %v7063_v4 = vmul.f32 0.044715, %v7047_v28  ;;  %v7045_v1 = vmul.f32 %v7029_v50, %v14488_v47  ;;  %v7144_v29 = vmul.f32 %v7128_v39, %v14385_v0  ;;  %v7117_v35 = vadd.f32 1.0, %v9994_v36 }
0x17e7   :  { %v7094_v2 = vmul.f32 0.7978846, %v7078_v10  ;;  %v7092_v45 = vmul.f32 0.7978846, %v7076_v60  ;;  %v7145_v46 = vmul.f32 %v7129_v20, %v14395_v18  ;;  %v7132_v41 = vmul.f32 0.5, %v7116_v49 }
0x17e8   :  { %v7079_v52 = vadd.f32 %v7063_v4, %v14480_v54  ;;  %v7061_v19 = vmul.f32 0.044715, %v7045_v1  ;;  %v7133_v9 = vmul.f32 0.5, %v7117_v35  ;;  %v7119_v53 = vadd.f32 1.0, %v9992_v11 }
0x17e9   :  { %10003 = vtanh.f32 %v7094_v2  ;;  %v7160_v27 = vpack.c.bf16 %v7145_v46, %v7144_v29  ;;  %v7148_v7 = vmul.f32 %v7132_v41, %v14412_v12  ;;  %v7134_v16 = vmul.f32 0.5, %v7118_v30 }
0x17ea   :  { %v9996_v62 = vpop.eup %9995  ;;  %10005 = vtanh.f32 %v7092_v45  ;;  %v7095_v37 = vmul.f32 0.7978846, %v7079_v52  ;;  %v7077_v0 = vadd.f32 %v7061_v19, %v14488_v47  ;;  %v7149_v14 = vmul.f32 %v7133_v9, %v14423_v38 }
0x17eb   :  { %v9998_v5 = vpop.eup %9997  ;;  %8833 = vmatprep.mubr.bf16.mxu1 %v7160_v27  ;;  %v7135_v18 = vmul.f32 0.5, %v7119_v53  ;;  %v7122_v17 = vadd.f32 1.0, %v9996_v62  ;;  %v7150_v12 = vmul.f32 %v7134_v16, %v14408_v51 }
0x17ec   :  { %v10000_v40 = vpop.eup %9999  ;;  %10007 = vtanh.f32 %v7095_v37  ;;  %v7093_v34 = vmul.f32 0.7978846, %v7077_v0  ;;  %8834 = vmatmul.mubr.bf16.vlgmr.msra.gmra.mrb[192].mxu1 %v7161_v44  ;;  %v7162_v59 = vpack.c.bf16 %v7149_v14, %v7148_v7  ;;  %v7120_v11 = vadd.f32 1.0, %v9998_v5 }
0x17ed   :  { %v10002_v28 = vpop.eup %10001  ;;  %v7151_v50 = vmul.f32 %v7135_v18, %v14418_v56  ;;  %v7123_v39 = vadd.f32 1.0, %v10000_v40  ;;  %v7138_v49 = vmul.f32 0.5, %v7122_v17  ;;  %v10046_v37 = vmov 0.0|0.0  }
0x17ee   :  { %10009 = vtanh.f32 %v7093_v34  ;;  %8837 = vmatprep.mubr.bf16.mxu1 %v7162_v59  ;;  %v7121_v38 = vadd.f32 1.0, %v10002_v28  ;;  %v7136_v36 = vmul.f32 0.5, %v7120_v11  ;;  %8892 = vmatprep.subr.bf16.mxu0 %v10046_v37  ;;  %v10048_v0 = vmov 0.0  }
0x17ef   :  { %v7163_v10 = vpack.c.bf16 %v7151_v50, %v7150_v12  ;;  %v7139_v60 = vmul.f32 0.5, %v7123_v39  ;;  %v7154_v30 = vmul.f32 %v7138_v49, %v14435_v24  ;;  %8881 = vmatprep.mubr.msk.f32.mxu0 %vm10047_vm2, %v10048_v0 }
0x17f0   :  { %v7137_v20 = vmul.f32 0.5, %v7121_v38  ;;  %v7152_v4 = vmul.f32 %v7136_v36, %v14439_v55 }
0x17f1   :  { %v7155_v44 = vmul.f32 %v7139_v60, %v14445_v13 }
0x17f2   :  { %v7153_v1 = vmul.f32 %v7137_v20, %v14451_v3 }
0x17f3   :  { %v10004_v51 = vpop.eup %10003  ;;  %v7165_v29 = vpack.c.bf16 %v7155_v44, %v7154_v30 }
0x17f4   :  { %v10006_v56 = vpop.eup %10005  ;;  %8838 = vmatmul.mubr.bf16.gmra.mrb[196].mxu1 %v7163_v10  ;;  %v7164_v35 = vpack.c.bf16 %v7153_v1, %v7152_v4  ;;  %v7126_v2 = vadd.f32 1.0, %v10004_v51 }
0x17f5   :  { %v7124_v45 = vadd.f32 1.0, %v10006_v56 }
0x17f6   :  { %v10008_v46 = vpop.eup %10007  ;;  %8841 = vmatprep.mubr.bf16.mxu1 %v7164_v35  ;;  %v7142_v52 = vmul.f32 0.5, %v7126_v2 }
0x17f7   :  { %v7127_v41 = vadd.f32 1.0, %v10008_v46  ;;  %v7140_v24 = vmul.f32 0.5, %v7124_v45 }
0x17f8   :  { %v10010_v19 = vpop.eup %10009  ;;  %v7158_v55 = vmul.f32 %v7142_v52, %v14464_v31  ;;  %v7737_v31 = vld [vmem:[%s14588_s16 + $0x1] ss:$0 sm:$0xff] }
0x17f9   :  { %v7125_v9 = vadd.f32 1.0, %v10010_v19  ;;  %v7143_v53 = vmul.f32 0.5, %v7127_v41  ;;  %v7156_v27 = vmul.f32 %v7140_v24, %v14467_v63 }
0x17fb   :  { %v7141_v13 = vmul.f32 0.5, %v7125_v9  ;;  %v7159_v3 = vmul.f32 %v7143_v53, %v14480_v54 }
0x17fc   :  { %8842 = vmatmul.mubr.bf16.gmra.mrb[200].mxu1 %v7165_v29 }
0x17fd   :  { %v7157_v7 = vmul.f32 %v7141_v13, %v14488_v47  ;;  %v7167_v16 = vpack.c.bf16 %v7159_v3, %v7158_v55 }
0x17ff   :  { %v7166_v62 = vpack.c.bf16 %v7157_v7, %v7156_v27 }
0x1801   :  { %8845 = vmatprep.mubr.bf16.mxu1 %v7166_v62  ;;  %v15086_v62 = vld [vmem:[#allocation23_spill] sm:$0xff] }
0x1804   :  { %8846 = vmatmul.mubr.bf16.gmra.mrb[204].mxu1 %v7167_v16 }
0x18bf   :  { %v8835_v54 = vpop.f32.mrb[192].mxu1 }
0x18c0   :  { %v7284_v63 = vadd.f32 %v8835_v54, %v7737_v31  ;;  %v7275_v14 = vpop.f32.mrb[193].mxu1  ;;  %v7354_v54 = vmul.u32 32, %v15086_v62 }
0x18c1   :  { %v7276_v47 = vadd.f32 %v7737_v31, %v7275_v14  ;;  %v8836_v5 = vpop.f32.mrb[194].mxu1 }
0x18c2   :  { %v7287_v18 = vadd.f32 %v8836_v5, %v7737_v31  ;;  %v7278_v17 = vpop.f32.mrb[195].mxu1  ;;  %v7340_v34 = vadd.f32 %v7284_v63, %v14095_v58 }
0x18c3   :  { %v7279_v40 = vadd.f32 %v7737_v31, %v7278_v17  ;;  %v7338_v11 = vadd.f32 %v7276_v47, %v14091_v23  ;;  %v9274_v17 = vld [vmem:[%s14591_s19 + $0x8] sm:$0xff]  }
0x18c4   :  { %v7341_v59 = vadd.f32 %v7287_v18, %v14106_v57  ;;  %v9273_v18 = vld [vmem:[%s14591_s19] sm:$0xff]   ;;  %s10050_s19 = smov [#allocation2]  }
0x18c5   :  { %v7339_v28 = vadd.f32 %v7279_v40, %v14099_v33  ;;  %s7525_s12 = sshll.u32 %s10050_s19, 4  ;;  %s7526_s12 = int_to_ptr.vmem [resolvable:$true] %s7525_s12 }
0x18c6   :  { %v8896_v12 = vpack.c.bf16 %v7341_v59, %v7340_v34  ;;  %s10013_s25 = scalar_lea.vmem %s7526_s12, 64  ;;  %p10018_p1 = scmp.lt.s32.totalorder %s7526_s12, %s7526_s12 }
0x18c7   :  { %v8893_v50 = vpack.c.bf16 %v7339_v28, %v7338_v11  ;;  %v8839_v39 = vpop.f32.mrb[196].mxu1  ;;  %v7747_v28 = vld [vmem:[%s14589_s17] ss:$0 sm:$0xff]  ;;  %p10014_p0 = scmp.ne.s32.totalorder %s7526_s12, %s10013_s25  ;;  %p10019_p2 = scmp.lt.s32.totalorder %s10013_s25, %s10013_s25 }
0x18c8   :  { %v7300_v49 = vadd.f32 %v8839_v39, %v7737_v31  ;;  %v7291_v38 = vpop.f32.mrb[197].mxu1 }
0x18c9   :  { %v7292_v36 = vadd.f32 %v7737_v31, %v7291_v38  ;;  %v8840_v10 = vpop.f32.mrb[198].mxu1  ;;  %8894 = vmatpush3.bf16.msra.mxu0 %v8893_v50  ;;  %v7748_v50 = vld [vmem:[%s14590_s18] ss:$0 sm:$0xff]  ;;  %p10020_p3 = por %p10019_p2, %p10018_p1 }
0x18ca   :  { %v7303_v60 = vadd.f32 %v8840_v10, %v7737_v31  ;;  %v7294_v20 = vpop.f32.mrb[199].mxu1  ;;  %8895 = vmatprep.subr.bf16.mxu0 %v10046_v37  ;;  %v7344_v58 = vadd.f32 %v7300_v49, %v14128_v15 }
0x18cb   :  { %v7295_v30 = vadd.f32 %v7737_v31, %v7294_v20  ;;  %v7342_v23 = vadd.f32 %v7292_v36, %v14115_v8  ;;  %p10021_p4 = pnand %p10020_p3, %p10014_p0 }
0x18cc   :  { %v7345_v57 = vadd.f32 %v7303_v60, %v14123_v61 }
0x18cd   :  { %v7343_v33 = vadd.f32 %v7295_v30, %v14118_v42  ;;  %8897 = vmatpush3.bf16.msra.mxu0 %v8896_v12 }
0x18ce   :  { %v8902_v44 = vpack.c.bf16 %v7345_v57, %v7344_v58  ;;  %8898 = vmatprep.subr.bf16.mxu0 %v10046_v37 }
0x18cf   :  { %v8899_v4 = vpack.c.bf16 %v7343_v33, %v7342_v23  ;;  %v8843_v1 = vpop.f32.mrb[200].mxu1 }
0x18d0   :  { %v7316_v51 = vadd.f32 %v8843_v1, %v7737_v31  ;;  %v7307_v29 = vpop.f32.mrb[201].mxu1 }
0x18d1   :  { %v7308_v56 = vadd.f32 %v7737_v31, %v7307_v29  ;;  %v8844_v35 = vpop.f32.mrb[202].mxu1  ;;  %8900 = vmatpush3.bf16.msra.mxu0 %v8899_v4 }
0x18d2   :  { %v7319_v2 = vadd.f32 %v8844_v35, %v7737_v31  ;;  %v7310_v45 = vpop.f32.mrb[203].mxu1  ;;  %8901 = vmatprep.subr.bf16.mxu0 %v10046_v37  ;;  %v7348_v8 = vadd.f32 %v7316_v51, %v14152_v32 }
0x18d3   :  { %v7311_v61 = vadd.f32 %v7737_v31, %v7310_v45  ;;  %v7346_v15 = vadd.f32 %v7308_v56, %v14139_v48 }
0x18d4   :  { %v7349_v42 = vadd.f32 %v7319_v2, %v14147_v21 }
0x18d5   :  { %v7347_v46 = vadd.f32 %v7311_v61, %v14142_v6  ;;  %8903 = vmatpush3.bf16.msra.mxu0 %v8902_v44 }
0x18d6   :  { %v8908_v41 = vpack.c.bf16 %v7349_v42, %v7348_v8  ;;  %8904 = vmatprep.subr.bf16.mxu0 %v10046_v37 }
0x18d7   :  { %v8905_v52 = vpack.c.bf16 %v7347_v46, %v7346_v15  ;;  %v8847_v19 = vpop.f32.mrb[204].mxu1 }
0x18d8   :  { %v7332_v9 = vadd.f32 %v8847_v19, %v7737_v31  ;;  %v7323_v24 = vpop.f32.mrb[205].mxu1 }
0x18d9   :  { %v7324_v53 = vadd.f32 %v7737_v31, %v7323_v24  ;;  %v8848_v13 = vpop.f32.mrb[206].mxu1  ;;  %8906 = vmatpush3.bf16.msra.mxu0 %v8905_v52 }
0x18da   :  { %v7335_v55 = vadd.f32 %v8848_v13, %v7737_v31  ;;  %v7326_v3 = vpop.f32.mrb[207].mxu1  ;;  %8907 = vmatprep.subr.bf16.mxu0 %v10046_v37  ;;  %v7352_v48 = vadd.f32 %v7332_v9, %v14176_v25 }
0x18db   :  { %v7327_v21 = vadd.f32 %v7737_v31, %v7326_v3  ;;  %v7350_v32 = vadd.f32 %v7324_v53, %v14163_v22  ;;  %v15087_v31 = vld [vmem:[#allocation24_spill] sm:$0xff] }
0x18dc   :  { %v7353_v6 = vadd.f32 %v7335_v55, %v14171_v43  ;;  %vm7355_vm11 = vcmp.eq.s32.totalorder %v15087_v31, %v7354_v54  ;;  %v10049_v43 = vmov 1.0  }
0x18dd   :  { %v7351_v27 = vadd.f32 %v7327_v21, %v14166_v26  ;;  %8909 = vmatpush3.bf16.msra.mxu0 %v8908_v41 }
0x18de   :  { %v8914_v7 = vpack.c.bf16 %v7353_v6, %v7352_v48  ;;  %8910 = vmatprep.subr.bf16.mxu0 %v10046_v37 }
0x18df   :  { %v8911_v16 = vpack.c.bf16 %v7351_v27, %v7350_v32 }
0x18e1   :  { %8912 = vmatpush3.bf16.msra.mxu0 %v8911_v16 }
0x18e2   :  { %8913 = vmatprep.subr.bf16.mxu0 %v10046_v37 }
0x18e5   :  { %8915 = vmatpush3.bf16.msra.mxu0 %v8914_v7 }
0x18e6   :  { %8884 = vmatprep.subr.bf16.mxu0 %v10048_v0 }
0x18e8   :  { %8882 = vmatmul.mubr.msk.f32.vlgmr.msra.gmra.mrb[192].mxu0 %vm7355_vm11, %v10049_v43 }
0x18e9   :  { %8888 = vmatprep.mubr.msk.bf16.mxu0 %vm10047_vm2, %v10048_v0  ;;  %8885 = vmatpush3.bf16.msra.mxu0 %v9273_v18 }
0x18ea   :  { %8886 = vmatprep.subr.bf16.mxu0 %v10048_v0 }
0x18ed   :  { %8887 = vmatpush3.bf16.msra.mxu0 %v9274_v17 }
0x19bb   :  { %v7423_v22 = vpop.f32.mrb[192].mxu0 }
0x19bc   :  { %v8883_v26 = vpop.f32.mrb[193].mxu0  ;;  %v7430_v25 = vsel %vm7429_vm12, %v7423_v22, 0.0 }
0x19bd   :  { %7431 = vadd.xlane.f32.xlu0 %v7430_v25 }
0x1a4a   :  { %v7432_v63 = vpop.xlane.xlu0 %7431 }
0x1a4b   :  { %v7433_v14 = vmul.f32 0.03125, %v7432_v63 }
0x1a4d   :  { %v7434_v47 = vsub.f32 %v7423_v22, %v7433_v14 }
0x1a4f   :  { %v7435_v5 = vmul.f32 %v7434_v47, %v7434_v47 }
0x1a51   :  { %v7436_v37 = vsel %vm7429_vm12, %v7435_v5, 0.0 }
0x1a52   :  { %7437 = vadd.xlane.f32.xlu1 %v7436_v37 }
0x1adf   :  { %v7438_v40 = vpop.xlane.xlu1 %7437 }
0x1ae0   :  { %v7439_v34 = vmul.f32 0.03125, %v7438_v40 }
0x1ae2   :  { %v7440_v59 = vadd.f32 1e-05, %v7439_v34 }
0x1ae4   :  { %10011 = vrsqrt.f32 %v7440_v59 }
0x1aee   :  { %v10012_v11 = vpop.eup %10011 }
0x1aef   :  { %v7442_v12 = vmul.f32 %v10012_v11, %v7434_v47 }
0x1af1   :  { %v7449_v39 = vmul.f32 %v7747_v28, %v7442_v12 }
0x1af3   :  { %v7456_v49 = vadd.f32 %v7748_v50, %v7449_v39 }
0x1af5   :  { %v7457_v38 = vpack.c.bf16 %v7456_v49, %v7456_v49 }
0x1af7   :  { %8889 = vmatmul.mubr.msk.bf16.vlgmr.msra.gmra.mrb[196].mxu0 %vm373_vm1, %v7457_v38 }
0x1bca   :  { %v7511_v0 = vpop.f32.mrb[196].mxu0 }
0x1bcb   :  { %7518 = vst.msk [vmem:[#allocation2] sm:$0xf] %vm7517_vm13, %v7511_v0  ;;  %v8890_v36 = vpop.f32.mrb[197].mxu0 }
0x1bcc   :  { %v7514_v10 = vpop.f32.mrb[198].mxu0 }
0x1bcd   :  { %10024 = shalt.err (!%p10021_p4)
}
0x1bce   :  { %s10025_s5 = scalar_lea.hbm %s14592_s20, 64 }
0x1bcf   :  { %p10026_p5 = scmp.ne.s32.totalorder %s14592_s20, %s10025_s5  ;;  %p10029_p6 = scmp.lt.u32.totalorder %s10025_s5, %s14592_s20 }
0x1bd1   :  { %p10031_p7 = pnand %p10029_p6, %p10026_p5 }
0x1bd3   :  { %10034 = shalt.err (!%p10031_p7)
}
0x1bd4   :  { %7528 = dma.vmem_to_hbm [thread:$0]  %s7526_s12, 64, %s14592_s20, [#allocation3]   ;;  %v8891_v60 = vpop.f32.mrb[199].mxu0 }
0x1bd5   :  { %10035 = dma.done.wait [#allocation3], 64  }
0x1bd6   :  { %10036 = vsyncadd [#allocation3], 4294967232 }
0x1bd7   :  { %7532 = vsyncpa [#allocation3], 1 }

</bundles_post_ra>
